<compile_context>
chip_gen: v5e
topology: v5e:2x2
jax: 0.10.0
libtpu: 0.0.40
codegen_flags: <defaults>
</compile_context>

<pallas_src>
import functools

import jax
import jax.numpy as jnp
from jax.experimental import pallas as pl
from jax.experimental.pallas import tpu as pltpu


def _silu(v):
    return v * jax.nn.sigmoid(v)


def resblock_kernel(
    x_ref,      # [TN, C]   f32   input tokens
    y_ref,      # [TN, C]   bf16  conditioning
    ln_g_ref,   # [1,  C]   f32   LayerNorm gamma
    ln_b_ref,   # [1,  C]   f32   LayerNorm beta
    ada_w_ref,  # [C, 3C]   bf16  fused adaLN weight (shift | scale | gate)
    ada_b_ref,  # [1, 3C]   f32   fused adaLN bias
    w1_ref,     # [C,  C]   bf16  mlp[0] weight
    b1_ref,     # [1,  C]   f32   mlp[0] bias
    w2_ref,     # [C,  C]   bf16  mlp[2] weight
    b2_ref,     # [1,  C]   f32   mlp[2] bias
    o_ref,      # [TN, C]         output
    *,
    eps: float,
):
    C = x_ref.shape[-1]
    x = x_ref[...].astype(jnp.float32)

    # adaLN modulation: ONE fused [TN, 3C] dot (bf16 operands, f32 accumulation).
    sy = _silu(y_ref[...].astype(jnp.float32)).astype(ada_w_ref.dtype)
    ada = jnp.dot(sy, ada_w_ref[...],
                  preferred_element_type=jnp.float32) + ada_b_ref[...]
    shift = ada[:, 0:C]          # static lane-aligned slices -> no layout copy
    scale = ada[:, C:2 * C]
    # gate = ada[:, 2C:3C] is consumed only at the residual write below.

    # LayerNorm over channels (f32, eps=1e-6) + modulate.
    mean = jnp.mean(x, axis=-1, keepdims=True)
    xc = x - mean
    var = jnp.mean(xc * xc, axis=-1, keepdims=True)
    xn = xc * jax.lax.rsqrt(var + eps) * ln_g_ref[...] + ln_b_ref[...]
    h = xn * (1.0 + scale) + shift

    # MLP: Linear -> SiLU -> Linear (bf16 matmul operands, f32 accumulation).
    h = jnp.dot(h.astype(w1_ref.dtype), w1_ref[...],
                preferred_element_type=jnp.float32) + b1_ref[...]
    h = _silu(h)
    h = jnp.dot(h.astype(w2_ref.dtype), w2_ref[...],
                preferred_element_type=jnp.float32) + b2_ref[...]

    # Gated residual (f32); gate sliced lazily from the fused adaLN output.
    o_ref[...] = (x + ada[:, 2 * C:3 * C] * h).astype(o_ref.dtype)


def _vmem_budget_bytes():
    """Generation-aware VMEM budget: physical per-core VMEM minus ~25% headroom
    for compiler-internal scratch / spill (~48 MiB on v7x's 64 MiB, ~96 MiB on
    v5e/v6e's 128 MiB).  Conservative v7x fallback if the query fails."""
    cap = 0
    try:  # hardware-info query only -- never masks kernel / lowering errors.
        cap = int(getattr(pltpu.get_tpu_info(), "vmem_capacity_bytes", 0))
    except Exception:
        cap = 0
    if cap <= 0:
        cap = 64 * 1024 * 1024
    return min((3 * cap) // 4, 112 * 1024 * 1024)


def _pick_token_tile(n_tokens, channels, vmem_budget):
    """Largest sublane-aligned (multiple-of-8) token tile that
       * divides n_tokens,
       * fits the VMEM budget including resident weights, and
       * keeps >= 2 grid steps (both v7x TensorCores get work)."""
    # Grid-invariant weights (bf16) + biases / LN affine (f32), double-buffered.
    weight_bytes = 2 * (5 * channels * channels * 2 + 12 * channels * 4)
    # Per token row: double-buffered x(f32)/y(bf16)/out(f32) pipeline tiles plus
    # ~8 rows of C live f32 temporaries (x, ada[3C], xn, h, ...).
    per_row = 2 * (4 + 2 + 4) * channels + 8 * channels * 4
    cap = max(8, (vmem_budget - weight_bytes) // per_row)
    best = 0
    t = 8
    limit = min(cap, n_tokens // 2)
    while t <= limit:
        if n_tokens % t == 0:
            best = t
        t += 8
    if best:
        return best
    # Tiny / oddly-shaped inputs only: a single full-size block (still valid:
    # block dims equal to the full array are always allowed).
    return n_tokens


def resblock_forward(x, y, params, *, token_tile=None):
    """x: [N, C] f32 (donated to the output -- do not reuse afterwards),
    y: [N, C] (cast to the weight dtype), params: dict from prepare_params()."""
    N, C = x.shape
    vmem_budget = _vmem_budget_bytes()
    tn = token_tile or _pick_token_tile(N, C, vmem_budget)
    assert N % tn == 0, f"token count {N} must be divisible by tile {tn}"
    grid = (N // tn,)

    # y only feeds SiLU -> bf16 matmul operand: ship it as bf16 (25% less read).
    y = y.astype(params["ada_w"].dtype)

    flops = 2 * N * C * (5 * C)              # fused adaLN dot (3C) + 2 MLP dots
    transcendentals = 2 * N * C              # the two SiLUs
    bytes_accessed = (N * C * (4 + 2 + 4)    # x read, y(bf16) read, out write
                      + 5 * C * C * 2        # bf16 weights
                      + 12 * C * 4)          # biases + LN affine

    tok_spec = pl.BlockSpec((tn, C), lambda i: (i, 0))

    def const_spec(shape):
        return pl.BlockSpec(shape, lambda i: (0, 0))

    return pl.pallas_call(
        functools.partial(resblock_kernel, eps=1e-6),
        out_shape=jax.ShapeDtypeStruct((N, C), x.dtype),
        grid_spec=pltpu.PrefetchScalarGridSpec(
            num_scalar_prefetch=0,
            grid=grid,
            in_specs=[
                tok_spec,                    # x
                tok_spec,                    # y (bf16)
                const_spec((1, C)),          # LayerNorm gamma
                const_spec((1, C)),          # LayerNorm beta
                const_spec((C, 3 * C)),      # fused adaLN weight
                const_spec((1, 3 * C)),      # fused adaLN bias
                const_spec((C, C)),          # mlp W1
                const_spec((1, C)),          # mlp b1
                const_spec((C, C)),          # mlp W2
                const_spec((1, C)),          # mlp b2
            ],
            out_specs=pl.BlockSpec((tn, C), lambda i: (i, 0)),
        ),
        compiler_params=pltpu.CompilerParams(
            dimension_semantics=("parallel",),
            vmem_limit_bytes=int(vmem_budget)),
        cost_estimate=pl.CostEstimate(
            flops=flops, transcendentals=transcendentals,
            bytes_accessed=bytes_accessed),
        # Each x tile is fully read before the aliased output tile is written;
        # tiles are disjoint across grid steps.  Callers must not reuse x.
        input_output_aliases={0: 0},
    )(x, y,
      params["ln_g"], params["ln_b"],
      params["ada_w"], params["ada_b"],
      params["w1"], params["b1"],
      params["w2"], params["b2"])


def init_params(key, channels):
    """f32 parameters in the PyTorch ResBlock layout (weights stored [in, out])."""
    ks = jax.random.split(key, 8)
    s = 0.02
    return {
        "ln_g": 1.0 + s * jax.random.normal(ks[0], (1, channels), jnp.float32),
        "ln_b": s * jax.random.normal(ks[1], (1, channels), jnp.float32),
        "ada_w": s * jax.random.normal(ks[2], (channels, 3 * channels), jnp.float32),
        "ada_b": s * jax.random.normal(ks[3], (1, 3 * channels), jnp.float32),
        "w1": s * jax.random.normal(ks[4], (channels, channels), jnp.float32),
        "b1": s * jax.random.normal(ks[5], (1, channels), jnp.float32),
        "w2": s * jax.random.normal(ks[6], (channels, channels), jnp.float32),
        "b2": s * jax.random.normal(ks[7], (1, channels), jnp.float32),
    }


def prepare_params(p, weight_dtype=jnp.bfloat16):
    """Keep the adaLN weight fused as [C, 3C]; matmul weights in bf16 (native
    MXU dtype, half the DMA bytes); biases / LN affine stay f32."""
    return {
        "ln_g": p["ln_g"].astype(jnp.float32),
        "ln_b": p["ln_b"].astype(jnp.float32),
        "ada_w": p["ada_w"].astype(weight_dtype),
        "ada_b": p["ada_b"].astype(jnp.float32),
        "w1": p["w1"].astype(weight_dtype),
        "b1": p["b1"].astype(jnp.float32),
        "w2": p["w2"].astype(weight_dtype),
        "b2": p["b2"].astype(jnp.float32),
    }


def resblock_ref(x, y, p):
    """Pure-JAX f32 reference for verification."""
    ada = _silu(y) @ p["ada_w"] + p["ada_b"]
    C = x.shape[-1]
    shift, scale, gate = ada[:, :C], ada[:, C:2 * C], ada[:, 2 * C:]
    mean = jnp.mean(x, -1, keepdims=True)
    var = jnp.mean((x - mean) ** 2, -1, keepdims=True)
    xn = (x - mean) * jax.lax.rsqrt(var + 1e-6) * p["ln_g"] + p["ln_b"]
    h = xn * (1.0 + scale) + shift
    h = _silu(h @ p["w1"] + p["b1"]) @ p["w2"] + p["b2"]
    return x + gate * h


if __name__ == "__main__":
    key = jax.random.PRNGKey(0)
    k_x, k_y, k_p = jax.random.split(key, 3)

    # 1024 tokens (e.g. batch=4 x 256 tokens), 128 channels (lane-aligned).
    N, C = 1024, 128
    x = jax.random.normal(k_x, (N, C), jnp.float32)
    y = jax.random.normal(k_y, (N, C), jnp.float32)
    params_f32 = init_params(k_p, C)
    params = prepare_params(params_f32)

    # Compute the reference BEFORE the kernel call: x is donated (aliased) to
    # the kernel output and must not be reused afterwards.
    ref = jax.block_until_ready(resblock_ref(x, y, params_f32))

    out = jax.block_until_ready(resblock_forward(x, y, params))

    assert out.shape == (N, C)
    err = float(jnp.max(jnp.abs(out - ref)))
    # bf16 weights + bf16 y vs. f32 reference: expected max abs error ~1e-3.
    assert err < 1e-2, f"max abs error {err}"
    print("KERNEL_OK")
</pallas_src>

<mosaic_0001>
module attributes {stable_mosaic.version = 11 : i64} {
  func.func @resblock_kernel(%arg0: i32, %arg1: memref<512x128xf32, #tpu.memory_space<vmem>>, %arg2: memref<512x128xbf16, #tpu.memory_space<vmem>>, %arg3: memref<1x128xf32, #tpu.memory_space<vmem>>, %arg4: memref<1x128xf32, #tpu.memory_space<vmem>>, %arg5: memref<128x384xbf16, #tpu.memory_space<vmem>>, %arg6: memref<1x384xf32, #tpu.memory_space<vmem>>, %arg7: memref<128x128xbf16, #tpu.memory_space<vmem>>, %arg8: memref<1x128xf32, #tpu.memory_space<vmem>>, %arg9: memref<128x128xbf16, #tpu.memory_space<vmem>>, %arg10: memref<1x128xf32, #tpu.memory_space<vmem>>, %arg11: memref<512x128xf32, #tpu.memory_space<vmem>>) attributes {dimension_semantics = [#tpu.dimension_semantics<parallel>], iteration_bounds = array<i64: 2>, scalar_prefetch = 0 : i64, scratch_operands = 0 : i64, tpu.core_type = #tpu.core_type<tc>, window_params = [{transform_indices = @transform_0, window_bounds = array<i64: 512, 128>}, {transform_indices = @transform_1, window_bounds = array<i64: 512, 128>}, {pipeline_mode = #tpu.pipeline_mode<synchronous>, transform_indices = @transform_2, window_bounds = array<i64: 1, 128>}, {pipeline_mode = #tpu.pipeline_mode<synchronous>, transform_indices = @transform_3, window_bounds = array<i64: 1, 128>}, {pipeline_mode = #tpu.pipeline_mode<synchronous>, transform_indices = @transform_4, window_bounds = array<i64: 128, 384>}, {pipeline_mode = #tpu.pipeline_mode<synchronous>, transform_indices = @transform_5, window_bounds = array<i64: 1, 384>}, {pipeline_mode = #tpu.pipeline_mode<synchronous>, transform_indices = @transform_6, window_bounds = array<i64: 128, 128>}, {pipeline_mode = #tpu.pipeline_mode<synchronous>, transform_indices = @transform_7, window_bounds = array<i64: 1, 128>}, {pipeline_mode = #tpu.pipeline_mode<synchronous>, transform_indices = @transform_8, window_bounds = array<i64: 128, 128>}, {pipeline_mode = #tpu.pipeline_mode<synchronous>, transform_indices = @transform_9, window_bounds = array<i64: 1, 128>}, {transform_indices = @transform_10, window_bounds = array<i64: 512, 128>}]} {
    %c0 = arith.constant 0 : index
    %c0_0 = arith.constant 0 : index
    %0 = vector.load %arg1[%c0, %c0_0] : memref<512x128xf32, #tpu.memory_space<vmem>>, vector<512x128xf32>
    %c0_1 = arith.constant 0 : index
    %c0_2 = arith.constant 0 : index
    %1 = vector.load %arg2[%c0_1, %c0_2] : memref<512x128xbf16, #tpu.memory_space<vmem>>, vector<512x128xbf16>
    %2 = arith.extf %1 : vector<512x128xbf16> to vector<512x128xf32>
    %3 = arith.negf %2 : vector<512x128xf32>
    %4 = math.exp %3 : vector<512x128xf32>
    %cst = arith.constant 1.000000e+00 : f32
    %5 = vector.broadcast %cst : f32 to vector<512x128xf32>
    %6 = arith.addf %5, %4 : vector<512x128xf32>
    %7 = arith.divf %5, %6 : vector<512x128xf32>
    %8 = arith.mulf %2, %7 : vector<512x128xf32>
    %9 = arith.truncf %8 : vector<512x128xf32> to vector<512x128xbf16>
    %c0_3 = arith.constant 0 : index
    %c0_4 = arith.constant 0 : index
    %10 = vector.load %arg5[%c0_3, %c0_4] : memref<128x384xbf16, #tpu.memory_space<vmem>>, vector<128x384xbf16>
    %cst_5 = arith.constant dense<0.000000e+00> : vector<512x384xf32>
    %11 = tpu.matmul %9, %10, %cst_5 {dimension_numbers = #tpu.dot_dimension_numbers<[1], [0], [0], [1], [0, 0, 1, 1], [], []>} : vector<512x128xbf16>, vector<128x384xbf16>, vector<512x384xf32> -> vector<512x384xf32>
    %c0_6 = arith.constant 0 : index
    %c0_7 = arith.constant 0 : index
    %12 = vector.load %arg6[%c0_6, %c0_7] : memref<1x384xf32, #tpu.memory_space<vmem>>, vector<1x384xf32>
    %13 = vector.broadcast %12 : vector<1x384xf32> to vector<512x384xf32>
    %14 = arith.addf %11, %13 : vector<512x384xf32>
    %15 = vector.extract_strided_slice %14 {offsets = [0, 0], sizes = [512, 128], strides = [1, 1]} : vector<512x384xf32> to vector<512x128xf32>
    %16 = vector.extract_strided_slice %14 {offsets = [0, 128], sizes = [512, 128], strides = [1, 1]} : vector<512x384xf32> to vector<512x128xf32>
    %cst_8 = arith.constant dense<0.000000e+00> : vector<512xf32>
    %17 = vector.multi_reduction <add>, %0, %cst_8 [1] : vector<512x128xf32> to vector<512xf32>
    %18 = vector.shape_cast %17 : vector<512xf32> to vector<512x1xf32>
    %cst_9 = arith.constant 1.280000e+02 : f32
    %19 = vector.broadcast %cst_9 : f32 to vector<512x1xf32>
    %20 = arith.divf %18, %19 : vector<512x1xf32>
    %21 = vector.broadcast %20 : vector<512x1xf32> to vector<512x128xf32>
    %22 = arith.subf %0, %21 : vector<512x128xf32>
    %23 = arith.mulf %22, %22 : vector<512x128xf32>
    %cst_10 = arith.constant dense<0.000000e+00> : vector<512xf32>
    %24 = vector.multi_reduction <add>, %23, %cst_10 [1] : vector<512x128xf32> to vector<512xf32>
    %25 = vector.shape_cast %24 : vector<512xf32> to vector<512x1xf32>
    %cst_11 = arith.constant 1.280000e+02 : f32
    %26 = vector.broadcast %cst_11 : f32 to vector<512x1xf32>
    %27 = arith.divf %25, %26 : vector<512x1xf32>
    %cst_12 = arith.constant 9.99999997E-7 : f32
    %28 = vector.broadcast %cst_12 : f32 to vector<512x1xf32>
    %29 = arith.addf %27, %28 : vector<512x1xf32>
    %30 = math.rsqrt %29 : vector<512x1xf32>
    %31 = vector.broadcast %30 : vector<512x1xf32> to vector<512x128xf32>
    %32 = arith.mulf %22, %31 : vector<512x128xf32>
    %c0_13 = arith.constant 0 : index
    %c0_14 = arith.constant 0 : index
    %33 = vector.load %arg3[%c0_13, %c0_14] : memref<1x128xf32, #tpu.memory_space<vmem>>, vector<1x128xf32>
    %34 = vector.broadcast %33 : vector<1x128xf32> to vector<512x128xf32>
    %35 = arith.mulf %32, %34 : vector<512x128xf32>
    %c0_15 = arith.constant 0 : index
    %c0_16 = arith.constant 0 : index
    %36 = vector.load %arg4[%c0_15, %c0_16] : memref<1x128xf32, #tpu.memory_space<vmem>>, vector<1x128xf32>
    %37 = vector.broadcast %36 : vector<1x128xf32> to vector<512x128xf32>
    %38 = arith.addf %35, %37 : vector<512x128xf32>
    %cst_17 = arith.constant 1.000000e+00 : f32
    %39 = vector.broadcast %cst_17 : f32 to vector<512x128xf32>
    %40 = arith.addf %39, %16 : vector<512x128xf32>
    %41 = arith.mulf %38, %40 : vector<512x128xf32>
    %42 = arith.addf %41, %15 : vector<512x128xf32>
    %43 = arith.truncf %42 : vector<512x128xf32> to vector<512x128xbf16>
    %c0_18 = arith.constant 0 : index
    %c0_19 = arith.constant 0 : index
    %44 = vector.load %arg7[%c0_18, %c0_19] : memref<128x128xbf16, #tpu.memory_space<vmem>>, vector<128x128xbf16>
    %cst_20 = arith.constant dense<0.000000e+00> : vector<512x128xf32>
    %45 = tpu.matmul %43, %44, %cst_20 {dimension_numbers = #tpu.dot_dimension_numbers<[1], [0], [0], [1], [0, 0, 1, 1], [], []>} : vector<512x128xbf16>, vector<128x128xbf16>, vector<512x128xf32> -> vector<512x128xf32>
    %c0_21 = arith.constant 0 : index
    %c0_22 = arith.constant 0 : index
    %46 = vector.load %arg8[%c0_21, %c0_22] : memref<1x128xf32, #tpu.memory_space<vmem>>, vector<1x128xf32>
    %47 = vector.broadcast %46 : vector<1x128xf32> to vector<512x128xf32>
    %48 = arith.addf %45, %47 : vector<512x128xf32>
    %49 = arith.negf %48 : vector<512x128xf32>
    %50 = math.exp %49 : vector<512x128xf32>
    %cst_23 = arith.constant 1.000000e+00 : f32
    %51 = vector.broadcast %cst_23 : f32 to vector<512x128xf32>
    %52 = arith.addf %51, %50 : vector<512x128xf32>
    %53 = arith.divf %51, %52 : vector<512x128xf32>
    %54 = arith.mulf %48, %53 : vector<512x128xf32>
    %55 = arith.truncf %54 : vector<512x128xf32> to vector<512x128xbf16>
    %c0_24 = arith.constant 0 : index
    %c0_25 = arith.constant 0 : index
    %56 = vector.load %arg9[%c0_24, %c0_25] : memref<128x128xbf16, #tpu.memory_space<vmem>>, vector<128x128xbf16>
    %cst_26 = arith.constant dense<0.000000e+00> : vector<512x128xf32>
    %57 = tpu.matmul %55, %56, %cst_26 {dimension_numbers = #tpu.dot_dimension_numbers<[1], [0], [0], [1], [0, 0, 1, 1], [], []>} : vector<512x128xbf16>, vector<128x128xbf16>, vector<512x128xf32> -> vector<512x128xf32>
    %c0_27 = arith.constant 0 : index
    %c0_28 = arith.constant 0 : index
    %58 = vector.load %arg10[%c0_27, %c0_28] : memref<1x128xf32, #tpu.memory_space<vmem>>, vector<1x128xf32>
    %59 = vector.broadcast %58 : vector<1x128xf32> to vector<512x128xf32>
    %60 = arith.addf %57, %59 : vector<512x128xf32>
    %61 = vector.extract_strided_slice %14 {offsets = [0, 256], sizes = [512, 128], strides = [1, 1]} : vector<512x384xf32> to vector<512x128xf32>
    %62 = arith.mulf %61, %60 : vector<512x128xf32>
    %63 = arith.addf %0, %62 : vector<512x128xf32>
    %c0_29 = arith.constant 0 : index
    %c0_30 = arith.constant 0 : index
    %64 = vector.load %arg11[%c0_29, %c0_30] : memref<512x128xf32, #tpu.memory_space<vmem>>, vector<512x128xf32>
    tpu.vector_store %arg11[%c0_29, %c0_30], %63 {strides = array<i32>} : memref<512x128xf32, #tpu.memory_space<vmem>>, vector<512x128xf32>,
    return
  }
  func.func @transform_0(%arg0: i32) -> (i32, i32) {
    %c0_i32 = arith.constant 0 : i32
    %c0_i32_0 = arith.constant 0 : i32
    return %arg0, %c0_i32 : i32, i32
  }
  func.func @transform_1(%arg0: i32) -> (i32, i32) {
    %c0_i32 = arith.constant 0 : i32
    %c0_i32_0 = arith.constant 0 : i32
    return %arg0, %c0_i32 : i32, i32
  }
  func.func @transform_2(%arg0: i32) -> (i32, i32) {
    %c0_i32 = arith.constant 0 : i32
    %c0_i32_0 = arith.constant 0 : i32
    %c0_i32_1 = arith.constant 0 : i32
    return %c0_i32, %c0_i32_0 : i32, i32
  }
  func.func @transform_3(%arg0: i32) -> (i32, i32) {
    %c0_i32 = arith.constant 0 : i32
    %c0_i32_0 = arith.constant 0 : i32
    %c0_i32_1 = arith.constant 0 : i32
    return %c0_i32, %c0_i32_0 : i32, i32
  }
  func.func @transform_4(%arg0: i32) -> (i32, i32) {
    %c0_i32 = arith.constant 0 : i32
    %c0_i32_0 = arith.constant 0 : i32
    %c0_i32_1 = arith.constant 0 : i32
    return %c0_i32, %c0_i32_0 : i32, i32
  }
  func.func @transform_5(%arg0: i32) -> (i32, i32) {
    %c0_i32 = arith.constant 0 : i32
    %c0_i32_0 = arith.constant 0 : i32
    %c0_i32_1 = arith.constant 0 : i32
    return %c0_i32, %c0_i32_0 : i32, i32
  }
  func.func @transform_6(%arg0: i32) -> (i32, i32) {
    %c0_i32 = arith.constant 0 : i32
    %c0_i32_0 = arith.constant 0 : i32
    %c0_i32_1 = arith.constant 0 : i32
    return %c0_i32, %c0_i32_0 : i32, i32
  }
  func.func @transform_7(%arg0: i32) -> (i32, i32) {
    %c0_i32 = arith.constant 0 : i32
    %c0_i32_0 = arith.constant 0 : i32
    %c0_i32_1 = arith.constant 0 : i32
    return %c0_i32, %c0_i32_0 : i32, i32
  }
  func.func @transform_8(%arg0: i32) -> (i32, i32) {
    %c0_i32 = arith.constant 0 : i32
    %c0_i32_0 = arith.constant 0 : i32
    %c0_i32_1 = arith.constant 0 : i32
    return %c0_i32, %c0_i32_0 : i32, i32
  }
  func.func @transform_9(%arg0: i32) -> (i32, i32) {
    %c0_i32 = arith.constant 0 : i32
    %c0_i32_0 = arith.constant 0 : i32
    %c0_i32_1 = arith.constant 0 : i32
    return %c0_i32, %c0_i32_0 : i32, i32
  }
  func.func @transform_10(%arg0: i32) -> (i32, i32) {
    %c0_i32 = arith.constant 0 : i32
    %c0_i32_0 = arith.constant 0 : i32
    return %arg0, %c0_i32 : i32, i32
  }
}

</mosaic_0001>

<bundles_post_ra>
// kernel: tpu_custom_call.1
= control target key start
LH: loop header
LB: loop body
LE: loop exit
PB: predicated region body
PF: predicated region fallthrough
CT: control target
= control target key end

     0   :  { %15 = vsyncpa [#allocation3], 0  ;;  %s13952_s0 = inlined_call_operand.hbm [shape: f32[1024,128], index: 0, kind: input, shape index: {}, may-alias: {0,10}]   ;;  %s13953_s1 = inlined_call_operand.vmem [shape: bf16[1024,128], index: 1, kind: input, shape index: {}]   ;;  %s13954_s2 = inlined_call_operand.vmem [shape: f32[1,128], index: 2, kind: input, shape index: {}]   ;;  %s13955_s3 = inlined_call_operand.vmem [shape: f32[1,128], index: 3, kind: input, shape index: {}]   ;;  %s13956_s4 = inlined_call_operand.vmem [shape: bf16[128,384], index: 4, kind: input, shape index: {}]   ;;  %s13957_s5 = inlined_call_operand.vmem [shape: f32[1,384], index: 5, kind: input, shape index: {}]   ;;  %s13958_s6 = inlined_call_operand.vmem [shape: bf16[128,128], index: 6, kind: input, shape index: {}]   ;;  %s13959_s7 = inlined_call_operand.vmem [shape: f32[1,128], index: 7, kind: input, shape index: {}]   ;;  %s13960_s8 = inlined_call_operand.vmem [shape: bf16[128,128], index: 8, kind: input, shape index: {}]   ;;  %s13961_s9 = inlined_call_operand.vmem [shape: f32[1,128], index: 9, kind: input, shape index: {}]   ;;  %s13962_s10 = inlined_call_operand.hbm [shape: f32[1024,128], index: 10, kind: output, shape index: {}, may-alias: {0,10}]  }
   0x1   :  { %17 = vsyncpa [#allocation3 + $0x1], 0 }
   0x2   :  { %18 = vsyncpa [#allocation4], 0 }
   0x3   :  { %20 = vsyncpa [#allocation4 + $0x1], 0  ;;  %s7808_s13 = smov 0   ;;  %s7810_s14 = smov 0  }
   0x4   :  { %s7812_s15 = smov 0   ;;  %s7814_s16 = smov 0  }
   0x5 LB: > { %14049 = sst [smem:[#allocation8_spill]] %s7742_s15  ;;  %s7829_s17 = sadd.s32 4294967295, %s7746_s16   ;;  %s7746_s16 = sphi %s7814_s16, %s14653_s16   ;;  %s7742_s15 = sphi %s7812_s15, %s14655_s15   ;;  %s7738_s14 = sphi %s7810_s14, %s14657_s14   ;;  %s7734_s13 = sphi %s7808_s13, %s14656_s13  }
   0x6   : > { %s6309_s18 = sadd.s32 4294967294, %s7746_s16   ;;  %s7833_s19 = sadd.s32 1, %s7746_s16  }
   0x7   : > { %14050 = sst [smem:[#allocation9_spill]] %s7833_s19  ;;  %s33_s20 = sadd.s32 1, %s7742_s15 }
   0x8   : > { %s30_s21 = ssub.s32 %s7746_s16, %s7833_s19  ;;  %p40_p0 = scmp.ne.s32.totalorder %s7742_s15, %s7738_s14 }
   0x9   : > { %p31_p1 = scmp.eq.s32.totalorder %s30_s21, 0  ;;  %p41_p2 = scmp.eq.s32.totalorder %s7746_s16, 0 }
   0xa   : > { %p46_p3 = scmp.ne.s32.totalorder %s7738_s14, %s7734_s13  ;;  %p47_p4 = scmp.eq.s32.totalorder %s7829_s17, 0 }
   0xb   : > { %s7845_s22 = scalar_select %p31_p1, %s7742_s15, %s33_s20  }
   0xc   : > { %p7847_p5 = por %p41_p2, %p40_p0  ;;  %p7851_p6 = por %p47_p4, %p46_p3 }
   0xd   : > { %14051 = sst [smem:[#allocation10_spill]] %s7845_s22  ;;  %p264_p7 = scmp.eq.s32.totalorder %s7829_s17, 1 }
   0xe   : > { %p270_p8 = scmp.eq.s32.totalorder %s6309_s18, 1  ;;  %p6850_p10 = scmp.lt.s32.totalorder %s7746_s16, 2 }
   0xf   : > { %p7858_p11 = por %p264_p7, %p40_p0  ;;  %s314_s27 = sand.u32 1, %s7742_s15  }
  0x10   : > { %p7862_p12 = por %p270_p8, %p46_p3  ;;  %s6613_s28 = sshll.u32 %s7746_s16, 9 }
  0x11   : > { %s6312_s29 = sshll.u32 %s314_s27, 9  ;;  %s323_s12 = scalar_lea.hbm %s13952_s0, %s6613_s28 }
  0x12   : > { %s14055_s26 = scalar_select %p7862_p12, 1, 0 }
  0x13   : > { %s324_s20 = sshll.u32 %s323_s12, 4  ;;  %s318_s18 = scalar_lea.vmem [#allocation2], %s6312_s29  ;;  %s325_s20 = int_to_ptr.hbm [resolvable:$true] %s324_s20 }
  0x14   : > { %14056 = sst [smem:[#allocation11_spill]] %s14055_s26  ;;  %s326_s21 = sshll.u32 %s318_s18, 4  ;;  %s327_s21 = int_to_ptr.vmem [resolvable:$true] %s326_s21 }
  0x15   : > { %p7873_p13 = pnand %p6850_p10, %p7847_p5  ;;  %p6315_p0 = scmp.ge.s32.totalorder %s7746_s16, 1 }
  0x16   : > { %p343_p1 = scmp.lt.s32.totalorder %s7746_s16, 3  ;;  %s315_s15 = scalar_lea.sflag [#allocation3], %s314_s27 }
  0x17   : > { %s7650_s19 = sshra.s32 %s325_s20, 4  ;;  %p7654_p3 = pneg %p7873_p13  ;;  %s7651_s19 = int_to_ptr.hbm [resolvable:$true] %s7650_s19 }
  0x18   : > { %s7652_s26 = scalar_lea.hbm %s7651_s19, 512  ;;  %s7657_s23 = scalar_lea.hbm %s13952_s0, 1024 }
  0x19   : > { %p7653_p2 = scmp.ne.s32.totalorder %s7651_s19, %s7652_s26  ;;  %p7658_p5 = scmp.lt.s32.totalorder %s7651_s19, %s13952_s0 }
  0x1a   : > { %p7659_p8 = scmp.lt.s32.totalorder %s7657_s23, %s7652_s26 }
  0x1b   : > { %p7655_p4 = pnand %p7654_p3, %p7653_p2 }
  0x1c   : > { %p7660_p10 = por %p7659_p8, %p7658_p5 }
  0x1d   : > { %p7656_p7 = pneg %p7655_p4 }
  0x1f   : > { %p7661_p9 = pnand %p7660_p10, %p7656_p7 }
  0x21   : > { %7664 = shalt.err (!%p7661_p9)
}
  0x22   : > { %s7748_s27 = smov 128   ;;  %s7749_s12 = smov 8  }
  0x23   : > { %6845 = dma.hbm_to_vmem [thread:$0]  (!%p7873_p13), %s325_s20, 8192, %s327_s21, %s315_s15, %s7748_s27, %s7748_s27, %s7749_s12  }
  0x24   : > { %p344_p2 = pnand %p6315_p0, %p343_p1 }
  0x26   : > { %347 = sbr.rel (%p344_p2) target bundleno = 1737 (0x6c9), region = 60 }
  0x2b   : > { %s7894_s18 = sand.u32 1, %s7738_s14  }
  0x2c   : > { %s6316_s19 = sshll.u32 %s7894_s18, 9  ;;  %s350_s26 = scalar_lea.sflag [#allocation3], %s7894_s18 }
  0x2d   : > { %s7900_s28 = scalar_lea.vmem [#allocation2], %s6316_s19 }
  0x2e   : > { %7725 = dma.done.wait (%p7851_p6), %s350_s26, 8192  }
  0x2f   : > { %7727 = vsyncadd (%p7851_p6), %s350_s26, 4294959104  ;;  %s6318_s15 = sshll.u32 %s7829_s17, 6  ;;  %v7908_v0 = vld [vmem:[%s7900_s28 + $0x10] sm:$0xff]  ;;  %v7911_v1 = vld [vmem:[%s7900_s28] sm:$0xff]  ;;  %s6654_s30 = sshll.u32 %s7829_s17, 9 }
  0x30   : > { %p398_p9 = scmp.lt.s32.totalorder %s6318_s15, 127  ;;  %v6470_v2 = vld [vmem:[%s13956_s4 + $0xa8] sm:$0xf]  ;;  %2587 = vadd.xlane.f32.xlu1 %v7908_v0  ;;  %2583 = vadd.xlane.f32.xlu0 %v7911_v1  ;;  %v6636_v3 = vld [vmem:[%s13956_s4 + $0xb0] sm:$0xf0]  ;;  %v7928_v8 = vld [vmem:[%s7900_s28 + $0x20] sm:$0xff]  ;;  %s6220_s12 = scalar_lea.hbm %s13962_s10, %s6654_s30 }
  0x31   : > { %v6458_v4 = vld [vmem:[%s13956_s4 + $0x90] sm:$0xf]  ;;  %v6633_v5 = vld [vmem:[%s13956_s4 + $0x98] sm:$0xf0]  ;;  %v6471_v6 = vor.u32 %v6636_v3, %v6470_v2  ;;  %v6446_v9 = vld [vmem:[%s13956_s4 + $0x78] sm:$0xf]  ;;  %2591 = vadd.xlane.f32.xlu2 %v7928_v8 }
  0x32   : > { %s14659_s15 = smov (!%p398_p9, %s6318_s15), 127  ;;  %v6459_v7 = vor.u32 %v6633_v5, %v6458_v4  ;;  %v6630_v10 = vld [vmem:[%s13956_s4 + $0x80] sm:$0xf0]  ;;  %v7943_v11 = vld [vmem:[%s7900_s28 + $0x18] sm:$0xff]  ;;  %v7946_v12 = vld [vmem:[%s7900_s28 + $0x8] sm:$0xff]  ;;  %s6223_s22 = sshll.u32 %s6220_s12, 4  ;;  %s6224_s22 = int_to_ptr.hbm [resolvable:$true] %s6223_s22 }
  0x33   : > { %s6319_s21 = sshll.u32 %s14659_s15, 2  ;;  %6814 = vmatpush.bf16.msra.mxu1 %v6471_v6  ;;  %2076 = vmatpush.bf16.msra.mxu0 %v6471_v6  ;;  %v6434_v13 = vld [vmem:[%s13956_s4 + $0x60] sm:$0xf]  ;;  %v6627_v14 = vld [vmem:[%s13956_s4 + $0x68] sm:$0xf0]  ;;  %v6447_v16 = vor.u32 %v6630_v10, %v6446_v9  ;;  %v410_v38 = vld [vmem:[%s7900_s28 + $0x30] sm:$0xff] }
  0x34   : > { %s7933_s15 = scalar_lea.vmem %s13953_s1, %s6319_s21  ;;  %6816 = vmatpush.bf16.msra.mxu3 %v6471_v6  ;;  %6815 = vmatpush.bf16.msra.mxu2 %v6471_v6  ;;  %v409_v23 = vld [vmem:[%s7900_s28 + $0x28] sm:$0xff]  ;;  %v6435_v28 = vor.u32 %v6627_v14, %v6434_v13  ;;  %v6624_v31 = vld [vmem:[%s13956_s4 + $0x50] sm:$0xf0]  ;;  %v6410_v35 = vld [vmem:[%s13956_s4 + $0x30] sm:$0xf]  ;;  %s6209_s17 = scalar_lea.sflag [#allocation4], %s7894_s18 }
  0x35   : > { %v7955_v15 = vld [vmem:[%s7933_s15 + $0x40] sm:$0xff]   ;;  %v7960_v19 = vld [vmem:[%s7933_s15 + $0x48] sm:$0xff]   ;;  %v7963_v20 = vld [vmem:[%s7933_s15 + $0x50] sm:$0xff]   ;;  %s7694_s20 = sshra.s32 %s6224_s22, 4  ;;  %s7695_s20 = int_to_ptr.hbm [resolvable:$true] %s7694_s20 }
  0x36   : > { %v6689_v17 = vunpack.c.l.bf16 %v7955_v15  ;;  %v6690_v18 = vunpack.c.h.bf16 %v7955_v15  ;;  %v6693_v21 = vunpack.c.l.bf16 %v7960_v19  ;;  %v6694_v22 = vunpack.c.h.bf16 %v7960_v19  ;;  %v6422_v30 = vld [vmem:[%s13956_s4 + $0x48] sm:$0xf]  ;;  %v6621_v36 = vld [vmem:[%s13956_s4 + $0x38] sm:$0xf0]  ;;  %v6398_v46 = vld [vmem:[%s13956_s4 + $0x18] sm:$0xf]  ;;  %p7701_p1 = scmp.lt.s32.totalorder %s7695_s20, %s13962_s10 }
  0x37   : > { %6817 = vmatpush.bf16.msra.mxu1 %v6459_v7  ;;  %2077 = vmatpush.bf16.msra.mxu0 %v6459_v7  ;;  %v6697_v29 = vunpack.c.l.bf16 %v7963_v20  ;;  %v6698_v32 = vunpack.c.h.bf16 %v7963_v20  ;;  %v6423_v33 = vor.u32 %v6624_v31, %v6422_v30  ;;  %v6411_v43 = vor.u32 %v6621_v36, %v6410_v35  ;;  %v6618_v47 = vld [vmem:[%s13956_s4 + $0x20] sm:$0xf0]  ;;  %v6386_v51 = vld [vmem:[%s13956_s4] sm:$0xf]  ;;  %v6615_v52 = vld [vmem:[%s13956_s4 + $0x8] sm:$0xf0] }
  0x38   : > { %2589 = vadd.xlane.f32.xlu1 %v7943_v11  ;;  %2585 = vadd.xlane.f32.xlu0 %v7946_v12  ;;  %v6336_v24 = vmul.f32 -1.442695, %v6689_v17  ;;  %v6337_v25 = vmul.f32 -1.442695, %v6690_v18  ;;  %v6338_v26 = vmul.f32 -1.442695, %v6693_v21  ;;  %v6399_v50 = vor.u32 %v6618_v47, %v6398_v46 }
  0x39   : > { %6819 = vmatpush.bf16.msra.mxu3 %v6459_v7  ;;  %6818 = vmatpush.bf16.msra.mxu2 %v6459_v7  ;;  %v6339_v27 = vmul.f32 -1.442695, %v6694_v22  ;;  %v6340_v34 = vmul.f32 -1.442695, %v6697_v29  ;;  %v6341_v41 = vmul.f32 -1.442695, %v6698_v32  ;;  %v6387_v56 = vor.u32 %v6615_v52, %v6386_v51 }
  0x3a   : > { %6893 = vpow2.f32 %v6336_v24  ;;  %2593 = vadd.xlane.f32.xlu2 %v409_v23  ;;  %s7696_s24 = scalar_lea.hbm %s7695_s20, 512 }
  0x3b   : > { %6820 = vmatpush.bf16.msra.mxu1 %v6447_v16  ;;  %2078 = vmatpush.bf16.msra.mxu0 %v6447_v16  ;;  %6895 = vpow2.f32 %v6337_v25  ;;  %v8038_v25 = vld [vmem:[%s7933_s15 + $0x58] sm:$0xff]   ;;  %p7697_p6 = scmp.ne.s32.totalorder %s7695_s20, %s7696_s24 }
  0x3c   : > { %6897 = vpow2.f32 %v6338_v26  ;;  %v6701_v36 = vunpack.c.l.bf16 %v8038_v25 }
  0x3d   : > { %6822 = vmatpush.bf16.msra.mxu3 %v6447_v16  ;;  %6821 = vmatpush.bf16.msra.mxu2 %v6447_v16  ;;  %6899 = vpow2.f32 %v6339_v27  ;;  %p7698_p13 = pnand %p7697_p6, %p7858_p11 }
  0x3e   : > { %6901 = vpow2.f32 %v6340_v34 }
  0x3f   : > { %6823 = vmatpush.bf16.msra.mxu1 %v6435_v28  ;;  %2079 = vmatpush.bf16.msra.mxu0 %v6435_v28  ;;  %p7699_p0 = pneg %p7698_p13 }
  0x40   : > { %v6894_v37 = vpop.eup %6893 }
  0x41   : > { %6825 = vmatpush.bf16.msra.mxu3 %v6435_v28  ;;  %6824 = vmatpush.bf16.msra.mxu2 %v6435_v28  ;;  %v6896_v39 = vpop.eup %6895  ;;  %v804_v40 = vadd.f32 1.0, %v6894_v37  ;;  %v6702_v37 = vunpack.c.h.bf16 %v8038_v25 }
  0x42   : > { %v6898_v42 = vpop.eup %6897  ;;  %v805_v44 = vadd.f32 1.0, %v6896_v39  ;;  %2595 = vadd.xlane.f32.xlu2 %v410_v38 }
  0x43   : > { %6826 = vmatpush.bf16.msra.mxu1 %v6423_v33  ;;  %2080 = vmatpush.bf16.msra.mxu0 %v6423_v33  ;;  %v6900_v45 = vpop.eup %6899  ;;  %6903 = vrcp.f32 %v804_v40  ;;  %v8003_v48 = vadd.f32 1.0, %v6898_v42  ;;  %vm1097_vm0 = vweird.f32 %v804_v40  ;;  %v1101_v59 = vand.u32 2147483647, %v804_v40 }
  0x44   : > { %6905 = vrcp.f32 %v805_v44  ;;  %v8005_v49 = vadd.f32 1.0, %v6900_v45  ;;  %v6902_v53 = vpop.eup %6901  ;;  %v1103_v60 = vand.u32 2147483648, %v804_v40  ;;  %v1116_v63 = vand.u32 2147483647, %v805_v44 }
  0x45   : > { %6828 = vmatpush.bf16.msra.mxu3 %v6423_v33  ;;  %6827 = vmatpush.bf16.msra.mxu2 %v6423_v33  ;;  %6907 = vpow2.f32 %v6341_v41  ;;  %v1118_v2 = vand.u32 2147483648, %v805_v44  ;;  %vm1112_vm2 = vweird.f32 %v805_v44  ;;  %v8017_v5 = vadd.f32 1.0, %v6902_v53 }
  0x46   : > { %6909 = vrcp.f32 %v8003_v48  ;;  %vm8031_vm5 = vcmp.eq.f32.partialorder %v1101_v59, 8.507059e+37  ;;  %v1104_v16 = vor.u32 1.1754944e-38, %v1103_v60  ;;  %vm8046_vm7 = vcmp.eq.f32.partialorder %v1116_v63, 8.507059e+37 }
  0x47   : > { %6829 = vmatpush.bf16.msra.mxu1 %v6411_v43  ;;  %2081 = vmatpush.bf16.msra.mxu0 %v6411_v43  ;;  %6911 = vrcp.f32 %v8005_v49  ;;  %v1119_v30 = vor.u32 1.1754944e-38, %v1118_v2  ;;  %vm1127_vm8 = vweird.f32 %v8003_v48  ;;  %vm1142_vm10 = vweird.f32 %v8005_v49 }
  0x48   : > { %6913 = vrcp.f32 %v8017_v5  ;;  %v1146_v46 = vand.u32 2147483647, %v8005_v49  ;;  %v1133_v47 = vand.u32 2147483648, %v8003_v48  ;;  %v6343_v51 = vmul.f32 -1.442695, %v6702_v37 }
  0x49   : > { %6831 = vmatpush.bf16.msra.mxu3 %v6411_v43  ;;  %6830 = vmatpush.bf16.msra.mxu2 %v6411_v43  ;;  %v6904_v54 = vpop.eup %6903  ;;  %v1161_v19 = vand.u32 2147483647, %v8017_v5 }
  0x4a   : > { %v6906_v55 = vpop.eup %6905  ;;  %v1093_v57 = vmul.f32 %v6904_v54, %v804_v40  ;;  %vm1098_vm1 = vweird.f32 %v6904_v54  ;;  %vm1147_vm15 = vcmp.eq.f32.partialorder %v1146_v46, 8.507059e+37 }
  0x4b   : > { %6832 = vmatpush.bf16.msra.mxu1 %v6399_v50  ;;  %2082 = vmatpush.bf16.msra.mxu0 %v6399_v50  ;;  %v6908_v58 = vpop.eup %6907  ;;  %v1108_v61 = vmul.f32 %v6906_v55, %v805_v44  ;;  %vm1113_vm3 = vweird.f32 %v6906_v55  ;;  %vm8027_vm4 = vmor %vm1097_vm0, %vm1098_vm1  ;;  %v1131_v44 = vand.u32 2147483647, %v8003_v48  ;;  %vm1157_vm0 = vweird.f32 %v8017_v5 }
  0x4c   : > { %v1094_v62 = vsub.f32 1.0, %v1093_v57  ;;  %v8015_v3 = vpop.eup %6909  ;;  %v8023_v10 = vadd.f32 1.0, %v6908_v58  ;;  %vm8042_vm6 = vmor %vm1112_vm2, %vm1113_vm3 }
  0x4d   : > { %6834 = vmatpush.bf16.msra.mxu3 %v6399_v50  ;;  %6833 = vmatpush.bf16.msra.mxu2 %v6399_v50  ;;  %v1109_v4 = vsub.f32 1.0, %v1108_v61  ;;  %v8019_v6 = vpop.eup %6911  ;;  %v1123_v9 = vmul.f32 %v8015_v3, %v8003_v48  ;;  %vm1128_vm9 = vweird.f32 %v8015_v3  ;;  %v1148_v50 = vand.u32 2147483648, %v8005_v49 }
  0x4e   : > { %v1095_v7 = vmul.f32 %v6904_v54, %v1094_v62  ;;  %v1138_v24 = vmul.f32 %v8019_v6, %v8005_v49  ;;  %6915 = vrcp.f32 %v8023_v10  ;;  %vm1143_vm11 = vweird.f32 %v8019_v6  ;;  %v8080_v52 = vpop.eup %6913  ;;  %vm8087_vm12 = vmor %vm1127_vm8, %vm1128_vm9 }
  0x4f   : > { %6835 = vmatpush.bf16.msra.mxu1 %v6387_v56  ;;  %2083 = vmatpush.bf16.msra.mxu0 %v6387_v56  ;;  %v1110_v23 = vmul.f32 %v6906_v55, %v1109_v4  ;;  %v1124_v31 = vsub.f32 1.0, %v1123_v9  ;;  %vm8094_vm13 = vmor %vm1142_vm10, %vm1143_vm11  ;;  %vm1132_vm14 = vcmp.eq.f32.partialorder %v1131_v44, 8.507059e+37  ;;  %v1134_v48 = vor.u32 1.1754944e-38, %v1133_v47 }
  0x50   : > { %v1096_v26 = vadd.f32 %v6904_v54, %v1095_v7  ;;  %v1139_v34 = vsub.f32 1.0, %v1138_v24  ;;  %v1149_v57 = vor.u32 1.1754944e-38, %v1148_v50  ;;  %v1153_v58 = vmul.f32 %v8080_v52, %v8017_v5 }
  0x51   : > { %6837 = vmatpush.bf16.msra.mxu3 %v6387_v56  ;;  %6836 = vmatpush.bf16.msra.mxu2 %v6387_v56  ;;  %v1111_v33 = vadd.f32 %v6906_v55, %v1110_v23  ;;  %v1125_v40 = vmul.f32 %v8015_v3, %v1124_v31  ;;  %v8099_v56 = vld [vmem:[%s7933_s15 + $0x60] sm:$0xff]   ;;  %vm1158_vm1 = vweird.f32 %v8080_v52  ;;  %vm1172_vm2 = vweird.f32 %v8023_v10 }
  0x52   : > { %v1100_v35 = vsel %vm8027_vm4, %v6904_v54, %v1096_v26  ;;  %v1140_v41 = vmul.f32 %v8019_v6, %v1139_v34  ;;  %v6705_v62 = vunpack.c.l.bf16 %v8099_v56  ;;  %v6706_v63 = vunpack.c.h.bf16 %v8099_v56  ;;  %v8142_v34 = vld [vmem:[%s7933_s15 + $0x68] sm:$0xff]   ;;  %vm8146_vm4 = vmor %vm1157_vm0, %vm1158_vm1 }
  0x53   : > { %v1105_v38 = vsel %vm8031_vm5, %v1104_v16, %v1100_v35  ;;  %v1115_v39 = vsel %vm8042_vm6, %v6906_v55, %v1111_v33  ;;  %v1154_v9 = vsub.f32 1.0, %v1153_v58  ;;  %v1176_v31 = vand.u32 2147483647, %v8023_v10 }
  0x54   : > { %v1120_v42 = vsel %vm8046_vm7, %v1119_v30, %v1115_v39  ;;  %v1828_v43 = vmul.f32 %v6689_v17, %v1105_v38  ;;  %v6342_v17 = vmul.f32 -1.442695, %v6701_v36  ;;  %v1141_v49 = vadd.f32 %v8019_v6, %v1140_v41  ;;  %v8092_v54 = vpop.eup %6915 }
  0x55   : > { %v1829_v45 = vmul.f32 %v6690_v18, %v1120_v42  ;;  %v1126_v18 = vadd.f32 %v8015_v3, %v1125_v40  ;;  %v1168_v61 = vmul.f32 %v8092_v54, %v8023_v10  ;;  %v1155_v27 = vmul.f32 %v8080_v52, %v1154_v9 }
  0x56   : > { %6917 = vpow2.f32 %v6342_v17  ;;  %v1145_v60 = vsel %vm8094_vm13, %v8019_v6, %v1141_v49  ;;  %v6345_v6 = vmul.f32 -1.442695, %v6706_v63  ;;  %vm1173_vm3 = vweird.f32 %v8092_v54 }
  0x57   : > { %v8082_v15 = vpack.c.bf16 %v1829_v45, %v1828_v43  ;;  %6919 = vpow2.f32 %v6343_v51  ;;  %v1130_v59 = vsel %vm8087_vm12, %v8015_v3, %v1126_v18  ;;  %v1150_v7 = vsel %vm1147_vm15, %v1149_v57, %v1145_v60  ;;  %vm8154_vm5 = vmor %vm1172_vm2, %vm1173_vm3 }
  0x58   : > { %v1135_v4 = vsel %vm1132_vm14, %v1134_v48, %v1130_v59  ;;  %v1169_v14 = vsub.f32 1.0, %v1168_v61  ;;  %v6344_v3 = vmul.f32 -1.442695, %v6705_v62  ;;  %v1831_v26 = vmul.f32 %v6694_v22, %v1150_v7 }
  0x59   : > { %2124 = vmatmul.bf16.vlgmr.msra.gmra.mxu1 %v8082_v15  ;;  %v1830_v24 = vmul.f32 %v6693_v21, %v1135_v4  ;;  %v1156_v21 = vadd.f32 %v8080_v52, %v1155_v27  ;;  %v1163_v22 = vand.u32 2147483648, %v8017_v5  ;;  %v1178_v33 = vand.u32 2147483648, %v8023_v10 }
  0x5a   : > { %v1170_v28 = vmul.f32 %v8092_v54, %v1169_v14  ;;  %v6709_v40 = vunpack.c.l.bf16 %v8142_v34  ;;  %v6710_v10 = vunpack.c.h.bf16 %v8142_v34  ;;  %vm1162_vm6 = vcmp.eq.f32.partialorder %v1161_v19, 8.507059e+37  ;;  %v6626_v34 = vld [vmem:[%s13956_s4 + $0x64] sm:$0xf] }
  0x5b   : > { %v8132_v30 = vpack.c.bf16 %v1831_v26, %v1830_v24  ;;  %v1160_v44 = vsel %vm8146_vm4, %v8080_v52, %v1156_v21  ;;  %v1164_v45 = vor.u32 1.1754944e-38, %v1163_v22  ;;  %vm1177_vm7 = vcmp.eq.f32.partialorder %v1176_v31, 8.507059e+37 }
  0x5c   : > { %v6918_v2 = vpop.eup %6917  ;;  %v1171_v39 = vadd.f32 %v8092_v54, %v1170_v28  ;;  %v1179_v46 = vor.u32 1.1754944e-38, %v1178_v33  ;;  %v6346_v51 = vmul.f32 -1.442695, %v6709_v40  ;;  %v6347_v52 = vmul.f32 -1.442695, %v6710_v10 }
  0x5d   : > { %v6920_v13 = vpop.eup %6919  ;;  %v8114_v16 = vadd.f32 1.0, %v6918_v2  ;;  %v1165_v49 = vsel %vm1162_vm6, %v1164_v45, %v1160_v44 }
  0x5e   : > { %v8118_v23 = vadd.f32 1.0, %v6920_v13  ;;  %v1175_v47 = vsel %vm8154_vm5, %v8092_v54, %v1171_v39  ;;  %v1832_v57 = vmul.f32 %v6697_v29, %v1165_v49  ;;  %v8200_v13 = vld [vmem:[%s7933_s15 + $0x70] sm:$0xff]  }
  0x5f   : > { %6921 = vrcp.f32 %v8114_v16  ;;  %v1180_v55 = vsel %vm1177_vm7, %v1179_v46, %v1175_v47  ;;  %vm1187_vm8 = vweird.f32 %v8114_v16  ;;  %v1191_v29 = vand.u32 2147483647, %v8114_v16 }
  0x60   : > { %6923 = vrcp.f32 %v8118_v23  ;;  %v1833_v58 = vmul.f32 %v6698_v32, %v1180_v55  ;;  %vm1202_vm10 = vweird.f32 %v8118_v23  ;;  %v1193_v32 = vand.u32 2147483648, %v8114_v16 }
  0x61   : > { %6925 = vpow2.f32 %v6344_v3  ;;  %v1208_v7 = vand.u32 2147483648, %v8118_v23  ;;  %v1206_v26 = vand.u32 2147483647, %v8118_v23  ;;  %v6713_v28 = vunpack.c.l.bf16 %v8200_v13 }
  0x62   : > { %6927 = vpow2.f32 %v6345_v6  ;;  %v8188_v4 = vpack.c.bf16 %v1833_v58, %v1832_v57  ;;  %v6714_v19 = vunpack.c.h.bf16 %v8200_v13  ;;  %vm1192_vm14 = vcmp.eq.f32.partialorder %v1191_v29, 8.507059e+37  ;;  %v6617_v13 = vld [vmem:[%s13956_s4 + $0x1c] sm:$0xf] }
  0x63   : > { %6929 = vpow2.f32 %v6346_v51  ;;  %v1194_v22 = vor.u32 1.1754944e-38, %v1193_v32  ;;  %v1209_v31 = vor.u32 1.1754944e-38, %v1208_v7  ;;  %vm1207_vm15 = vcmp.eq.f32.partialorder %v1206_v26, 8.507059e+37 }
  0x64   : > { %6931 = vpow2.f32 %v6347_v52  ;;  %14074 = vst [vmem:[#allocation12_spill] sm:$0xff] %v8188_v4  ;;  %v6348_v39 = vmul.f32 -1.442695, %v6713_v28  ;;  %v6349_v5 = vmul.f32 -1.442695, %v6714_v19  ;;  %v7750_v51 = vmov 128.0  }
  0x65   : > { %v8144_v35 = vpop.eup %6921 }
  0x66   : > { %v8152_v41 = vpop.eup %6923  ;;  %v1183_v50 = vmul.f32 %v8144_v35, %v8114_v16  ;;  %vm1188_vm9 = vweird.f32 %v8144_v35 }
  0x67   : > { %v6926_v42 = vpop.eup %6925  ;;  %v1198_v17 = vmul.f32 %v8152_v41, %v8118_v23  ;;  %vm1203_vm11 = vweird.f32 %v8152_v41  ;;  %vm8205_vm12 = vmor %vm1187_vm8, %vm1188_vm9 }
  0x68   : > { %v6928_v43 = vpop.eup %6927  ;;  %v8172_v18 = vadd.f32 1.0, %v6926_v42  ;;  %v1184_v54 = vsub.f32 1.0, %v1183_v50  ;;  %vm8213_vm13 = vmor %vm1202_vm10, %vm1203_vm11 }
  0x69   : > { %2129 = vmatmul.bf16.gmra.mxu1 %v8132_v30  ;;  %v8176_v53 = vadd.f32 1.0, %v6928_v43  ;;  %v1199_v48 = vsub.f32 1.0, %v1198_v17  ;;  %v6930_v59 = vpop.eup %6929 }
  0x6a   : > { %6933 = vrcp.f32 %v8172_v18  ;;  %v1185_v60 = vmul.f32 %v8144_v35, %v1184_v54  ;;  %v6932_v2 = vpop.eup %6931  ;;  %v8197_v9 = vadd.f32 1.0, %v6930_v59  ;;  %vm1217_vm0 = vweird.f32 %v8172_v18 }
  0x6b   : > { %6935 = vrcp.f32 %v8176_v53  ;;  %v1200_v61 = vmul.f32 %v8152_v41, %v1199_v48  ;;  %v8211_v27 = vadd.f32 1.0, %v6932_v2  ;;  %v1221_v52 = vand.u32 2147483647, %v8172_v18  ;;  %v8271_v2 = vld [vmem:[%s7933_s15 + $0x78] sm:$0xff]  }
  0x6c   : > { %v1186_v3 = vadd.f32 %v8144_v35, %v1185_v60  ;;  %6937 = vrcp.f32 %v8197_v9  ;;  %v1223_v25 = vand.u32 2147483648, %v8172_v18  ;;  %vm1232_vm2 = vweird.f32 %v8176_v53 }
  0x6d   : > { %v1201_v24 = vadd.f32 %v8152_v41, %v1200_v61  ;;  %6939 = vrcp.f32 %v8211_v27  ;;  %v1238_v57 = vand.u32 2147483648, %v8176_v53  ;;  %v1236_v60 = vand.u32 2147483647, %v8176_v53 }
  0x6e   : > { %v1190_v33 = vsel %vm8205_vm12, %v8144_v35, %v1186_v3  ;;  %6941 = vpow2.f32 %v6348_v39  ;;  %v6717_v7 = vunpack.c.l.bf16 %v8271_v2  ;;  %v1224_v6 = vor.u32 1.1754944e-38, %v1223_v25 }
  0x6f   : > { %v1205_v38 = vsel %vm8213_vm13, %v8152_v41, %v1201_v24  ;;  %v1195_v43 = vsel %vm1192_vm14, %v1194_v22, %v1190_v33  ;;  %6943 = vpow2.f32 %v6349_v5  ;;  %vm1222_vm6 = vcmp.eq.f32.partialorder %v1221_v52, 8.507059e+37 }
  0x70   : > { %v8193_v20 = vpop.eup %6933  ;;  %v1210_v44 = vsel %vm1207_vm15, %v1209_v31, %v1205_v38  ;;  %v1834_v41 = vmul.f32 %v6701_v36, %v1195_v43  ;;  %6945 = vrcp.f32 %v7750_v51  ;;  %v1239_v16 = vor.u32 1.1754944e-38, %v1238_v57 }
  0x71   : > { %v8202_v14 = vpop.eup %6935  ;;  %v1213_v21 = vmul.f32 %v8193_v20, %v8172_v18  ;;  %v1835_v47 = vmul.f32 %v6702_v37, %v1210_v44  ;;  %vm1218_vm1 = vweird.f32 %v8193_v20  ;;  %vm1237_vm7 = vcmp.eq.f32.partialorder %v1236_v60, 8.507059e+37 }
  0x72   : > { %v1228_v23 = vmul.f32 %v8202_v14, %v8176_v53  ;;  %v8236_v35 = vpop.eup %6937  ;;  %vm1233_vm3 = vweird.f32 %v8202_v14  ;;  %vm8262_vm4 = vmor %vm1217_vm0, %vm1218_vm1  ;;  %v6718_v53 = vunpack.c.h.bf16 %v8271_v2  ;;  %vm1247_vm8 = vweird.f32 %v8197_v9 }
  0x73   : > { %v1214_v42 = vsub.f32 1.0, %v1213_v21  ;;  %v8238_v46 = vpop.eup %6939  ;;  %v1243_v49 = vmul.f32 %v8236_v35, %v8197_v9  ;;  %v8256_v54 = vpack.c.bf16 %v1835_v47, %v1834_v41  ;;  %vm8273_vm5 = vmor %vm1232_vm2, %vm1233_vm3  ;;  %v6350_v21 = vmul.f32 -1.442695, %v6717_v7 }
  0x74   : > { %v1229_v45 = vsub.f32 1.0, %v1228_v23  ;;  %v6942_v36 = vpop.eup %6941  ;;  %v1258_v37 = vmul.f32 %v8238_v46, %v8211_v27  ;;  %v6351_v31 = vmul.f32 -1.442695, %v6718_v53  ;;  %vm1248_vm9 = vweird.f32 %v8236_v35 }
  0x75   : > { %v1215_v50 = vmul.f32 %v8193_v20, %v1214_v42  ;;  %v6944_v55 = vpop.eup %6943  ;;  %14079 = vst [vmem:[#allocation13_spill] sm:$0xff] %v8256_v54  ;;  %v8260_v58 = vadd.f32 1.0, %v6942_v36  ;;  %v1244_v32 = vsub.f32 1.0, %v1243_v49  ;;  %v1253_v43 = vand.u32 2147483648, %v8197_v9  ;;  %vm8310_vm12 = vmor %vm1247_vm8, %vm1248_vm9 }
  0x76   : > { %v1230_v17 = vmul.f32 %v8202_v14, %v1229_v45  ;;  %v8268_v61 = vadd.f32 1.0, %v6944_v55  ;;  %v8279_v3 = vpop.eup %6945  ;;  %v1259_v24 = vsub.f32 1.0, %v1258_v37  ;;  %vm1262_vm10 = vweird.f32 %v8211_v27 }
  0x77   : > { %v1216_v48 = vadd.f32 %v8193_v20, %v1215_v50  ;;  %6947 = vrcp.f32 %v8260_v58  ;;  %v1245_v23 = vmul.f32 %v8236_v35, %v1244_v32  ;;  %v2712_v33 = vmul.f32 128.0, %v8279_v3 }
  0x78   : > { %v1231_v18 = vadd.f32 %v8202_v14, %v1230_v17  ;;  %6949 = vrcp.f32 %v8268_v61  ;;  %vm1263_vm11 = vweird.f32 %v8238_v46  ;;  %v1266_v44 = vand.u32 2147483647, %v8211_v27 }
  0x79   : > { %2134 = vmatmul.bf16.gmra.mxu1 %v8188_v4  ;;  %v1220_v26 = vsel %vm8262_vm4, %v8193_v20, %v1216_v48  ;;  %6951 = vpow2.f32 %v6350_v21  ;;  %v1260_v20 = vmul.f32 %v8238_v46, %v1259_v24  ;;  %v1246_v45 = vadd.f32 %v8236_v35, %v1245_v23  ;;  %vm8323_vm13 = vmor %vm1262_vm10, %vm1263_vm11  ;;  %v8351_v24 = vld [vmem:[%s7933_s15] sm:$0xff]   ;;  %v6632_v23 = vld [vmem:[%s13956_s4 + $0x94] sm:$0xf] }
  0x7a   : > { %v1235_v22 = vsel %vm8273_vm5, %v8202_v14, %v1231_v18  ;;  %v1225_v38 = vsel %vm1222_vm6, %v1224_v6, %v1220_v26  ;;  %6953 = vpow2.f32 %v6351_v31  ;;  %v1251_v14 = vand.u32 2147483647, %v8197_v9  ;;  %v6635_v6 = vld [vmem:[%s13956_s4 + $0xac] sm:$0xf] }
  0x7b   : > { %v1240_v5 = vsel %vm1237_vm7, %v1239_v16, %v1235_v22  ;;  %v1268_v41 = vand.u32 2147483648, %v8211_v27  ;;  %v2713_v47 = vsub.f32 1.0, %v2712_v33  ;;  %v1261_v17 = vadd.f32 %v8238_v46, %v1260_v20  ;;  %v6460_v33 = vld [vmem:[%s13956_s4 + $0x9c] sm:$0xf0] }
  0x7c   : > { %v1836_v49 = vmul.f32 %v6705_v62, %v1225_v38  ;;  %v1837_v27 = vmul.f32 %v6706_v63, %v1240_v5  ;;  %vm1252_vm14 = vcmp.eq.f32.partialorder %v1251_v14, 8.507059e+37  ;;  %v1254_v37 = vor.u32 1.1754944e-38, %v1253_v43 }
  0x7d   : > { %v8297_v39 = vpop.eup %6947  ;;  %vm1267_vm15 = vcmp.eq.f32.partialorder %v1266_v44, 8.507059e+37  ;;  %v1250_v48 = vsel %vm8310_vm12, %v8236_v35, %v1246_v45  ;;  %v1269_v57 = vor.u32 1.1754944e-38, %v1268_v41  ;;  %v2714_v62 = vmul.f32 %v8279_v3, %v2713_v47  ;;  %v6629_v45 = vld [vmem:[%s13956_s4 + $0x7c] sm:$0xf]  ;;  %v6448_v41 = vld [vmem:[%s13956_s4 + $0x84] sm:$0xf0] }
  0x7e   : > { %v8302_v42 = vpop.eup %6949  ;;  %v1273_v9 = vmul.f32 %v8297_v39, %v8260_v58  ;;  %v1265_v63 = vsel %vm8323_vm13, %v8238_v46, %v1261_v17  ;;  %v8339_v60 = vpack.c.bf16 %v1837_v27, %v1836_v49  ;;  %v1255_v29 = vsel %vm1252_vm14, %v1254_v37, %v1250_v48  ;;  %v6472_v46 = vld [vmem:[%s13956_s4 + $0xb4] sm:$0xf0]  ;;  %v6436_v37 = vld [vmem:[%s13956_s4 + $0x6c] sm:$0xf0] }
  0x7f   : > { %v1288_v51 = vmul.f32 %v8302_v42, %v8268_v61  ;;  %v6952_v52 = vpop.eup %6951  ;;  %v1270_v35 = vsel %vm1267_vm15, %v1269_v57, %v1265_v63  ;;  %v2715_v32 = vadd.f32 %v8279_v3, %v2714_v62  ;;  %vm2716_vm0 = vweird.f32 %v8279_v3  ;;  %v6412_v57 = vld [vmem:[%s13956_s4 + $0x3c] sm:$0xf0] }
  0x80   : > { %v6954_v25 = vpop.eup %6953  ;;  %v8327_v55 = vadd.f32 1.0, %v6952_v52  ;;  %v1274_v59 = vsub.f32 1.0, %v1273_v9  ;;  %14088 = vst [vmem:[#allocation14_spill] sm:$0xff] %v8339_v60  ;;  %v1281_v16 = vand.u32 2147483647, %v8260_v58  ;;  %v6475_v22 = vor.u32 %v6635_v6, %v6472_v46 }
  0x81   : > { %v8333_v56 = vadd.f32 1.0, %v6954_v25  ;;  %v1289_v18 = vsub.f32 1.0, %v1288_v51  ;;  %vm1277_vm1 = vweird.f32 %v8260_v58  ;;  %vm1278_vm2 = vweird.f32 %v8297_v39  ;;  %v8483_v51 = vld [vmem:[%s7933_s15 + $0x8] sm:$0xff]  }
  0x82   : > { %6955 = vrcp.f32 %v8327_v55  ;;  %v1275_v26 = vmul.f32 %v8297_v39, %v1274_v59  ;;  %v1283_v31 = vand.u32 2147483648, %v8260_v58  ;;  %vm1292_vm3 = vweird.f32 %v8268_v61  ;;  %2245 = vmatpush.bf16.msrb.mxu1 %v6475_v22  ;;  %vm8391_vm5 = vmor %vm1277_vm1, %vm1278_vm2  ;;  %v6623_v58 = vld [vmem:[%s13956_s4 + $0x4c] sm:$0xf] }
  0x83   : > { %6957 = vrcp.f32 %v8333_v56  ;;  %v1290_v21 = vmul.f32 %v8302_v42, %v1289_v18  ;;  %vm1293_vm4 = vweird.f32 %v8302_v42  ;;  %v1296_v20 = vand.u32 2147483647, %v8268_v61 }
  0x84   : > { %v6463_v5 = vor.u32 %v6632_v23, %v6460_v33  ;;  %v6657_v14 = vunpack.c.l.bf16 %v8351_v24  ;;  %v1298_v44 = vand.u32 2147483648, %v8268_v61  ;;  %v6658_v50 = vunpack.c.h.bf16 %v8351_v24  ;;  %vm8413_vm7 = vmor %vm1292_vm3, %vm1293_vm4 }
  0x85   : > { %v1838_v17 = vmul.f32 %v6709_v40, %v1255_v29  ;;  %v1276_v9 = vadd.f32 %v8297_v39, %v1275_v26  ;;  %v1291_v52 = vadd.f32 %v8302_v42, %v1290_v21  ;;  %v1839_v27 = vmul.f32 %v6710_v10, %v1270_v35 }
  0x86   : > { %v8403_v40 = vsel %vm2716_vm0, %v8279_v3, %v2715_v32  ;;  %vm8405_vm6 = vcmp.eq.f32.partialorder %v1281_v16, 8.507059e+37  ;;  %v1284_v25 = vor.u32 1.1754944e-38, %v1283_v31  ;;  %2246 = vmatpush.bf16.msrb.mxu1 %v6463_v5  ;;  %v6451_v3 = vor.u32 %v6629_v45, %v6448_v41 }
  0x87   : > { %v6320_v61 = vmul.f32 -1.442695, %v6657_v14  ;;  %vm8425_vm8 = vcmp.eq.f32.partialorder %v1296_v20, 8.507059e+37  ;;  %v1299_v62 = vor.u32 1.1754944e-38, %v1298_v44  ;;  %v6321_v59 = vmul.f32 -1.442695, %v6658_v50 }
  0x88   : > { %v8367_v38 = vpop.eup %6955  ;;  %v1280_v18 = vsel %vm8391_vm5, %v8297_v39, %v1276_v9  ;;  %v1295_v29 = vsel %vm8413_vm7, %v8302_v42, %v1291_v52  ;;  %vm1307_vm9 = vweird.f32 %v8327_v55  ;;  %v6439_v35 = vor.u32 %v6626_v34, %v6436_v37  ;;  %v8480_v9 = vld [vmem:[%s7933_s15 + $0xc0] sm:$0xff]   ;;  %v6424_v34 = vld [vmem:[%s13956_s4 + $0x54] sm:$0xf0] }
  0x89   : > { %2139 = vmatmul.bf16.gmra.mxu1 %v8256_v54  ;;  %v8372_v43 = vpop.eup %6957  ;;  %v1303_v47 = vmul.f32 %v8367_v38, %v8327_v55  ;;  %6959 = vpow2.f32 %v6320_v61  ;;  %vm1308_vm10 = vweird.f32 %v8367_v38  ;;  %v1311_v26 = vand.u32 2147483647, %v8327_v55  ;;  %v6620_v61 = vld [vmem:[%s13956_s4 + $0x34] sm:$0xf] }
  0x8a   : > { %v1318_v49 = vmul.f32 %v8372_v43, %v8333_v56  ;;  %6961 = vpow2.f32 %v6321_v59  ;;  %2247 = vmatpush.bf16.msrb.mxu1 %v6451_v3  ;;  %v1313_v39 = vand.u32 2147483648, %v8327_v55  ;;  %v1326_v16 = vand.u32 2147483647, %v8333_v56  ;;  %vm8455_vm13 = vmor %vm1307_vm9, %vm1308_vm10 }
  0x8b   : > { %v1304_v10 = vsub.f32 1.0, %v1303_v47  ;;  %v1328_v42 = vand.u32 2147483648, %v8333_v56  ;;  %vm1322_vm11 = vweird.f32 %v8333_v56  ;;  %vm1323_vm12 = vweird.f32 %v8372_v43 }
  0x8c   : > { %v1319_v48 = vsub.f32 1.0, %v1318_v49  ;;  %v8449_v31 = vpack.c.bf16 %v1839_v27, %v1838_v17  ;;  %v1285_v56 = vsel %vm8405_vm6, %v1284_v25, %v1280_v18  ;;  %v1300_v20 = vsel %vm8425_vm8, %v1299_v62, %v1295_v29  ;;  %vm8471_vm15 = vmor %vm1322_vm11, %vm1323_vm12 }
  0x8d   : > { %v1305_v63 = vmul.f32 %v8367_v38, %v1304_v10  ;;  %vm8467_vm14 = vcmp.eq.f32.partialorder %v1311_v26, 8.507059e+37  ;;  %v1314_v41 = vor.u32 1.1754944e-38, %v1313_v39  ;;  %vm8475_vm0 = vcmp.eq.f32.partialorder %v1326_v16, 8.507059e+37 }
  0x8e   : > { %v1320_v32 = vmul.f32 %v8372_v43, %v1319_v48  ;;  %14097 = vst [vmem:[#allocation15_spill] sm:$0xff] %v8449_v31  ;;  %2248 = vmatpush.bf16.msrb.mxu1 %v6439_v35  ;;  %v1329_v17 = vor.u32 1.1754944e-38, %v1328_v42  ;;  %v6427_v3 = vor.u32 %v6623_v58, %v6424_v34  ;;  %v6753_v48 = vunpack.c.l.bf16 %v8480_v9  ;;  %v6614_v58 = vld [vmem:[%s13956_s4 + $0x4] sm:$0xf]  ;;  %v6388_v34 = vld [vmem:[%s13956_s4 + $0xc] sm:$0xf0] }
  0x8f   : > { %v1306_v22 = vadd.f32 %v8367_v38, %v1305_v63  ;;  %v6960_v44 = vpop.eup %6959  ;;  %v6754_v62 = vunpack.c.h.bf16 %v8480_v9  ;;  %v6661_v63 = vunpack.c.l.bf16 %v8483_v51  ;;  %v1840_v29 = vmul.f32 %v6713_v28, %v1285_v56  ;;  %v6400_v28 = vld [vmem:[%s13956_s4 + $0x24] sm:$0xf0]  ;;  %v411_v56 = vld [vmem:[%s7900_s28 + $0x38] sm:$0xff] }
  0x90   : > { %v1321_v5 = vadd.f32 %v8372_v43, %v1320_v32  ;;  %v6962_v52 = vpop.eup %6961  ;;  %v8497_v10 = vadd.f32 1.0, %v6960_v44  ;;  %v6415_v35 = vor.u32 %v6620_v61, %v6412_v57  ;;  %v6368_v39 = vmul.f32 -1.442695, %v6753_v48 }
  0x91   : > { %v1310_v36 = vsel %vm8455_vm13, %v8367_v38, %v1306_v22  ;;  %v8500_v37 = vadd.f32 1.0, %v6962_v52  ;;  %v6369_v16 = vmul.f32 -1.442695, %v6754_v62  ;;  %v6662_v22 = vunpack.c.h.bf16 %v8483_v51 }
  0x92   : > { %v1325_v38 = vsel %vm8471_vm15, %v8372_v43, %v1321_v5  ;;  %6963 = vrcp.f32 %v8497_v10  ;;  %v1841_v43 = vmul.f32 %v6714_v19, %v1300_v20  ;;  %2249 = vmatpush.bf16.msrb.mxu1 %v6427_v3  ;;  %v1315_v26 = vsel %vm8467_vm14, %v1314_v41, %v1310_v36 }
  0x93   : > { %6965 = vrcp.f32 %v8500_v37  ;;  %v8557_v5 = vmul.f32 %v6717_v7, %v1315_v26  ;;  %v6403_v44 = vor.u32 %v6617_v13, %v6400_v28  ;;  %v861_v2 = vand.u32 2147483647, %v8497_v10 }
  0x94   : > { %v8552_v23 = vpack.c.bf16 %v1841_v43, %v1840_v29  ;;  %6967 = vpow2.f32 %v6368_v39  ;;  %v6323_v52 = vmul.f32 -1.442695, %v6662_v22  ;;  %vm857_vm1 = vweird.f32 %v8497_v10  ;;  %v8618_v39 = vld [vmem:[%s7933_s15 + $0xc8] sm:$0xff]  }
  0x95   : > { %6969 = vpow2.f32 %v6369_v16  ;;  %vm872_vm3 = vweird.f32 %v8500_v37  ;;  %vm8603_vm6 = vcmp.eq.f32.partialorder %v861_v2, 8.507059e+37  ;;  %v412_v16 = vld [vmem:[%s7900_s28 + $0x40] sm:$0xff]  ;;  %v413_v43 = vld [vmem:[%s7900_s28 + $0x48] sm:$0xff] }
  0x96   : > { %14106 = vst [vmem:[#allocation16_spill] sm:$0xff] %v8552_v23  ;;  %2250 = vmatpush.bf16.msrb.mxu1 %v6415_v35 }
  0x99   : > { %2144 = vmatmul.bf16.gmra.mxu1 %v8339_v60 }
  0x9a   : > { %2251 = vmatpush.bf16.msrb.mxu1 %v6403_v44  ;;  %v6757_v44 = vunpack.c.l.bf16 %v8618_v39 }
  0xa3   : > { %v2588_v6 = vpop.xlane.xlu1 %2587  ;;  %v2584_v46 = vpop.xlane.xlu0 %2583 }
  0xa4   : > { %v2718_v21 = vmul.f32 %v8403_v40, %v2584_v46  ;;  %v2592_v45 = vpop.xlane.xlu2 %2591  ;;  %v2720_v49 = vmul.f32 %v8403_v40, %v2588_v6 }
  0xa5   : > { %v2722_v25 = vmul.f32 %v8403_v40, %v2592_v45 }
  0xa6   : > { %v8460_v33 = vsub.f32 %v7911_v1, %v2718_v21  ;;  %v8522_v32 = vsub.f32 %v7908_v0, %v2720_v49  ;;  %v1330_v0 = vsel %vm8475_vm0, %v1329_v17, %v1325_v38  ;;  %v863_v1 = vand.u32 2147483648, %v8497_v10 }
  0xa7   : > { %v8535_v19 = vsub.f32 %v7928_v8, %v2722_v25  ;;  %v6322_v8 = vmul.f32 -1.442695, %v6661_v63  ;;  %v8567_v55 = vmul.f32 %v6718_v53, %v1330_v0  ;;  %v878_v53 = vand.u32 2147483648, %v8500_v37 }
  0xa8   : > { %v2846_v27 = vmul.f32 %v8460_v33, %v8460_v33  ;;  %v2848_v7 = vmul.f32 %v8522_v32, %v8522_v32  ;;  %v864_v25 = vor.u32 1.1754944e-38, %v863_v1  ;;  %v6391_v38 = vor.u32 %v6614_v58, %v6388_v34  ;;  %v7535_v1 = vld [vmem:[%s7900_s28 + $0x28] sm:$0xff]  ;;  %v7536_v58 = vld [vmem:[%s7900_s28 + $0x30] sm:$0xff] }
  0xa9   : > { %2149 = vmatmul.bf16.gmra.mxu1 %v8449_v31  ;;  %6971 = vpow2.f32 %v6322_v8  ;;  %v2850_v17 = vmul.f32 %v8535_v19, %v8535_v19  ;;  %v879_v35 = vor.u32 1.1754944e-38, %v878_v53 }
  0xaa   : > { %2910 = vadd.xlane.f32.xlu0 %v2846_v27  ;;  %6973 = vpow2.f32 %v6323_v52  ;;  %2252 = vmatpush.bf16.msrb.mxu1 %v6391_v38 }
  0xab   : > { %v2590_v59 = vpop.xlane.xlu1 %2589  ;;  %v2586_v18 = vpop.xlane.xlu0 %2585 }
  0xac   : > { %v2721_v6 = vmul.f32 %v8403_v40, %v2590_v59  ;;  %v2719_v46 = vmul.f32 %v8403_v40, %v2586_v18  ;;  %v876_v59 = vand.u32 2147483647, %v8500_v37 }
  0xad   : > { %v2594_v20 = vpop.xlane.xlu2 %2593 }
  0xae   : > { %v8544_v42 = vsub.f32 %v7943_v11, %v2721_v6  ;;  %v8547_v21 = vsub.f32 %v7946_v12, %v2719_v46  ;;  %v8559_v11 = vpop.eup %6963  ;;  %v2723_v36 = vmul.f32 %v8403_v40, %v2594_v20  ;;  %vm8611_vm7 = vcmp.eq.f32.partialorder %v876_v59, 8.507059e+37  ;;  %v415_v59 = vld [vmem:[%s7900_s28 + $0x58] sm:$0xff] }
  0xaf   : > { %v8569_v41 = vpop.eup %6965  ;;  %v853_v47 = vmul.f32 %v8559_v11, %v8497_v10  ;;  %vm858_vm2 = vweird.f32 %v8559_v11 }
  0xb0   : > { %v2849_v12 = vmul.f32 %v8544_v42, %v8544_v42  ;;  %v2847_v45 = vmul.f32 %v8547_v21, %v8547_v21  ;;  %v868_v27 = vmul.f32 %v8569_v41, %v8500_v37  ;;  %vm873_vm4 = vweird.f32 %v8569_v41  ;;  %v6968_v3 = vpop.eup %6967  ;;  %vm8599_vm5 = vmor %vm857_vm1, %vm858_vm2 }
  0xb1   : > { %v854_v49 = vsub.f32 1.0, %v853_v47  ;;  %v6970_v18 = vpop.eup %6969  ;;  %v8607_v6 = vadd.f32 1.0, %v6968_v3  ;;  %vm8626_vm8 = vmor %vm872_vm3, %vm873_vm4  ;;  %v6758_v37 = vunpack.c.h.bf16 %v8618_v39  ;;  %v8645_v2 = vsub.f32 %v7535_v1, %v2723_v36 }
  0xb2   : > { %2916 = vadd.xlane.f32.xlu2 %v2849_v12  ;;  %2597 = vadd.xlane.f32.xlu0 %v411_v56  ;;  %v869_v57 = vsub.f32 1.0, %v868_v27  ;;  %v6972_v46 = vpop.eup %6971  ;;  %v8615_v0 = vadd.f32 1.0, %v6970_v18  ;;  %v8635_v12 = vld [vmem:[%s7933_s15 + $0x10] sm:$0xff]  }
  0xb3   : > { %2912 = vadd.xlane.f32.xlu1 %v2847_v45  ;;  %v855_v61 = vmul.f32 %v8559_v11, %v854_v49  ;;  %6975 = vrcp.f32 %v8607_v6  ;;  %v8631_v20 = vadd.f32 1.0, %v6972_v46  ;;  %v6371_v49 = vmul.f32 -1.442695, %v6758_v37  ;;  %v6974_v36 = vpop.eup %6973 }
  0xb4   : > { %v870_v10 = vmul.f32 %v8569_v41, %v869_v57  ;;  %6977 = vrcp.f32 %v8615_v0  ;;  %v6665_v27 = vunpack.c.l.bf16 %v8635_v12  ;;  %v2851_v18 = vmul.f32 %v8645_v2, %v8645_v2 }
  0xb5   : > { %v2596_v26 = vpop.xlane.xlu2 %2595  ;;  %v856_v13 = vadd.f32 %v8559_v11, %v855_v61  ;;  %6979 = vrcp.f32 %v8631_v20  ;;  %v8674_v61 = vpack.c.bf16 %v8567_v55, %v8557_v5  ;;  %vm1577_vm9 = vweird.f32 %v8607_v6 }
  0xb6   : > { %v2724_v8 = vmul.f32 %v8403_v40, %v2596_v26  ;;  %v871_v47 = vadd.f32 %v8569_v41, %v870_v10  ;;  %v6324_v3 = vmul.f32 -1.442695, %v6665_v27  ;;  %v1583_v26 = vand.u32 2147483648, %v8607_v6 }
  0xb7   : > { %v860_v45 = vsel %vm8599_vm5, %v8559_v11, %v856_v13  ;;  %v6370_v11 = vmul.f32 -1.442695, %v6757_v44  ;;  %14116 = vst [vmem:[#allocation18_spill] sm:$0xff] %v8674_v61  ;;  %v1598_v13 = vand.u32 2147483648, %v8615_v0  ;;  %v1581_v28 = vand.u32 2147483647, %v8607_v6 }
  0xb8   : > { %v865_v53 = vsel %vm8603_vm6, %v864_v25, %v860_v45  ;;  %v875_v52 = vsel %vm8626_vm8, %v8569_v41, %v871_v47  ;;  %v8661_v34 = vsub.f32 %v7536_v58, %v2724_v8  ;;  %v6666_v25 = vunpack.c.h.bf16 %v8635_v12 }
  0xb9   : > { %2154 = vmatmul.bf16.gmra.mxu1 %v8552_v23  ;;  %6981 = vpow2.f32 %v6370_v11  ;;  %v6976_v38 = vpop.eup %6975  ;;  %v1584_v45 = vor.u32 1.1754944e-38, %v1583_v26  ;;  %vm1592_vm11 = vweird.f32 %v8615_v0  ;;  %vm8705_vm14 = vcmp.eq.f32.partialorder %v1581_v28, 8.507059e+37 }
  0xba   : > { %2918 = vadd.xlane.f32.xlu2 %v2850_v17  ;;  %2599 = vadd.xlane.f32.xlu0 %v412_v16  ;;  %v1812_v17 = vmul.f32 %v6657_v14, %v865_v53  ;;  %14115 = vst [vmem:[#allocation17_spill] sm:$0xff] %v8661_v34  ;;  %v8668_v14 = vadd.f32 1.0, %v6974_v36  ;;  %6983 = vpow2.f32 %v6371_v49  ;;  %v6978_v57 = vpop.eup %6977  ;;  %v1573_v24 = vmul.f32 %v6976_v38, %v8607_v6 }
  0xbb   : > { %2914 = vadd.xlane.f32.xlu1 %v2848_v7  ;;  %v880_v7 = vsel %vm8611_vm7, %v879_v35, %v875_v52  ;;  %v2852_v35 = vmul.f32 %v8661_v34, %v8661_v34  ;;  %v1588_v5 = vmul.f32 %v6978_v57, %v8615_v0  ;;  %v8691_v55 = vmul.f32 -1.442695, %v6666_v25 }
  0xbc   : > { %v1813_v41 = vmul.f32 %v6658_v50, %v880_v7  ;;  %6985 = vrcp.f32 %v8668_v14  ;;  %v8683_v50 = vpop.eup %6979  ;;  %v1574_v46 = vsub.f32 1.0, %v1573_v24  ;;  %vm1578_vm10 = vweird.f32 %v6976_v38 }
  0xbd   : > { %6987 = vpow2.f32 %v6324_v3  ;;  %v883_v10 = vmul.f32 %v8683_v50, %v8631_v20  ;;  %v1589_v16 = vsub.f32 1.0, %v1588_v5  ;;  %vm1593_vm12 = vweird.f32 %v6978_v57  ;;  %vm8701_vm13 = vmor %vm1577_vm9, %vm1578_vm10  ;;  %v414_v5 = vld [vmem:[%s7900_s28 + $0x50] sm:$0xff] }
  0xbe   : > { %v8679_v29 = vpack.c.bf16 %v1813_v41, %v1812_v17  ;;  %v1575_v56 = vmul.f32 %v6976_v38, %v1574_v46  ;;  %v1596_v11 = vand.u32 2147483647, %v8615_v0  ;;  %v1599_v52 = vor.u32 1.1754944e-38, %v1598_v13  ;;  %vm8710_vm15 = vmor %vm1592_vm11, %vm1593_vm12 }
  0xbf   : > { %v6982_v8 = vpop.eup %6981  ;;  %v1590_v6 = vmul.f32 %v6978_v57, %v1589_v16  ;;  %v884_v58 = vsub.f32 1.0, %v883_v10  ;;  %vm887_vm0 = vweird.f32 %v8631_v20  ;;  %vm888_vm1 = vweird.f32 %v8683_v50 }
  0xc0   : > { %14117 = vst [vmem:[#allocation19_spill] sm:$0xff] %v8679_v29  ;;  %2084 = vmatmul.bf16.vlgmr.msra.gmra.mxu0 %v8679_v29  ;;  %v6984_v47 = vpop.eup %6983  ;;  %v1576_v49 = vadd.f32 %v6976_v38, %v1575_v56  ;;  %vm1597_vm2 = vcmp.eq.f32.partialorder %v1596_v11, 8.507059e+37  ;;  %v891_v3 = vand.u32 2147483647, %v8631_v20  ;;  %v893_v0 = vand.u32 2147483648, %v8631_v20  ;;  %vm8731_vm4 = vmor %vm887_vm0, %vm888_vm1 }
  0xc1   : > { %v1591_v41 = vadd.f32 %v6978_v57, %v1590_v6  ;;  %v885_v24 = vmul.f32 %v8683_v50, %v884_v58  ;;  %vm902_vm3 = vweird.f32 %v8668_v14  ;;  %v908_v1 = vand.u32 2147483648, %v8668_v14 }
  0xc2   : > { %2605 = vadd.xlane.f32.xlu2 %v415_v59  ;;  %2920 = vadd.xlane.f32.xlu0 %v2851_v18  ;;  %v6986_v17 = vpop.eup %6985  ;;  %v416_v59 = vld [vmem:[%s7900_s28 + $0x60] sm:$0xff]  ;;  %v1580_v18 = vsel %vm8701_vm13, %v6976_v38, %v1576_v49  ;;  %vm8735_vm5 = vcmp.eq.f32.partialorder %v891_v3, 8.507059e+37  ;;  %v894_v10 = vor.u32 1.1754944e-38, %v893_v0  ;;  %v838_v6 = vadd.f32 1.0, %v6982_v8 }
  0xc3   : > { %2601 = vadd.xlane.f32.xlu1 %v413_v43  ;;  %v6988_v7 = vpop.eup %6987  ;;  %v898_v43 = vmul.f32 %v6986_v17, %v8668_v14  ;;  %v1585_v46 = vsel %vm8705_vm14, %v1584_v45, %v1580_v18  ;;  %v1595_v26 = vsel %vm8710_vm15, %v6978_v57, %v1591_v41  ;;  %v886_v56 = vadd.f32 %v8683_v50, %v885_v24  ;;  %v8777_v41 = vld [vmem:[%s7933_s15 + $0x18] sm:$0xff]  }
  0xc4   : > { %v1600_v28 = vsel %vm1597_vm2, %v1599_v52, %v1595_v26  ;;  %v1860_v16 = vmul.f32 %v6753_v48, %v1585_v46  ;;  %vm903_vm6 = vweird.f32 %v6986_v17  ;;  %v906_v57 = vand.u32 2147483647, %v8668_v14  ;;  %v8753_v52 = vld [vmem:[%s7933_s15 + $0xd0] sm:$0xff]  }
  0xc5   : > { %v899_v45 = vsub.f32 1.0, %v898_v43  ;;  %v1861_v20 = vmul.f32 %v6754_v62, %v1600_v28  ;;  %v890_v48 = vsel %vm8731_vm4, %v8683_v50, %v886_v56  ;;  %v8750_v11 = vadd.f32 1.0, %v6984_v47  ;;  %vm8761_vm7 = vmor %vm902_vm3, %vm903_vm6 }
  0xc6   : > { %v895_v62 = vsel %vm8735_vm5, %v894_v10, %v890_v48  ;;  %v909_v50 = vor.u32 1.1754944e-38, %v908_v1  ;;  %vm907_vm8 = vcmp.eq.f32.partialorder %v906_v57, 8.507059e+37  ;;  %6989 = vrcp.f32 %v838_v6 }
  0xc7   : > { %v900_v53 = vmul.f32 %v6986_v17, %v899_v45  ;;  %v8755_v9 = vpack.c.bf16 %v1861_v20, %v1860_v16  ;;  %v8765_v8 = vadd.f32 1.0, %v6988_v7  ;;  %6991 = vrcp.f32 %v8750_v11  ;;  %v417_v7 = vld [vmem:[%s7900_s28 + $0x68] sm:$0xff] }
  0xc8   : > { %v6761_v47 = vunpack.c.l.bf16 %v8753_v52  ;;  %v1814_v14 = vmul.f32 %v6661_v63, %v895_v62  ;;  %6993 = vpow2.f32 %v8691_v55  ;;  %v6762_v58 = vunpack.c.h.bf16 %v8753_v52  ;;  %v8805_v62 = vld [vmem:[%s7933_s15 + $0xd8] sm:$0xff]  }
  0xc9   : > { %2159 = vmatmul.bf16.gmra.mxu1 %v8674_v61  ;;  %14128 = vst [vmem:[#allocation20_spill] sm:$0xff] %v8755_v9  ;;  %v901_v49 = vadd.f32 %v6986_v17, %v900_v53  ;;  %2204 = vmatmul.bf16.vlgmr.msra.gmra.mxu3 %v8755_v9  ;;  %6995 = vrcp.f32 %v8765_v8  ;;  %v1628_v18 = vand.u32 2147483648, %v8750_v11  ;;  %v6669_v63 = vunpack.c.l.bf16 %v8777_v41 }
  0xca   : > { %2607 = vadd.xlane.f32.xlu2 %v416_v59  ;;  %2922 = vadd.xlane.f32.xlu0 %v2852_v35  ;;  %v1613_v59 = vand.u32 2147483648, %v838_v6  ;;  %v6670_v55 = vunpack.c.h.bf16 %v8777_v41  ;;  %vm1607_vm9 = vweird.f32 %v838_v6  ;;  %v6373_v51 = vmul.f32 -1.442695, %v6762_v58  ;;  %v418_v35 = vld [vmem:[%s7900_s28 + $0x70] sm:$0xff] }
  0xcb   : > { %2603 = vadd.xlane.f32.xlu1 %v414_v5  ;;  %v905_v36 = vsel %vm8761_vm7, %v6986_v17, %v901_v49  ;;  %v6372_v17 = vmul.f32 -1.442695, %v6761_v47  ;;  %v923_v5 = vand.u32 2147483648, %v8765_v8  ;;  %v1611_v26 = vand.u32 2147483647, %v838_v6 }
  0xcc   : > { %v910_v3 = vsel %vm907_vm8, %v909_v50, %v905_v36  ;;  %v6990_v24 = vpop.eup %6989  ;;  %vm1622_vm10 = vweird.f32 %v8750_v11  ;;  %v1626_v13 = vand.u32 2147483647, %v8750_v11  ;;  %v1614_v10 = vor.u32 1.1754944e-38, %v1613_v59 }
  0xcd   : > { %v1815_v0 = vmul.f32 %v6662_v22, %v910_v3  ;;  %v6992_v22 = vpop.eup %6991  ;;  %v1603_v46 = vmul.f32 %v6990_v24, %v838_v6  ;;  %v1629_v16 = vor.u32 1.1754944e-38, %v1628_v18  ;;  %vm917_vm11 = vweird.f32 %v8765_v8 }
  0xce   : > { %v6994_v38 = vpop.eup %6993  ;;  %v1618_v28 = vmul.f32 %v6992_v22, %v8750_v11  ;;  %vm1608_vm12 = vweird.f32 %v6990_v24  ;;  %6997 = vpow2.f32 %v6372_v17  ;;  %vm1623_vm13 = vweird.f32 %v6992_v22 }
  0xcf   : > { %v8788_v43 = vpack.c.bf16 %v1815_v0, %v1814_v14  ;;  %v6996_v56 = vpop.eup %6995  ;;  %v1604_v45 = vsub.f32 1.0, %v1603_v46  ;;  %v8798_v20 = vadd.f32 1.0, %v6994_v38  ;;  %v921_v53 = vand.u32 2147483647, %v8765_v8  ;;  %vm8816_vm15 = vmor %vm1607_vm9, %vm1608_vm12 }
  0xd0   : > { %v1619_v1 = vsub.f32 1.0, %v1618_v28  ;;  %v913_v48 = vmul.f32 %v6996_v56, %v8765_v8  ;;  %vm8808_vm14 = vcmp.eq.f32.partialorder %v1611_v26, 8.507059e+37  ;;  %v6326_v36 = vmul.f32 -1.442695, %v6669_v63  ;;  %vm8828_vm2 = vmor %vm1622_vm10, %vm1623_vm13 }
  0xd1   : > { %14131 = vst [vmem:[#allocation21_spill] sm:$0xff] %v8788_v43  ;;  %2089 = vmatmul.bf16.gmra.mxu0 %v8788_v43  ;;  %v1605_v50 = vmul.f32 %v6990_v24, %v1604_v45  ;;  %6999 = vrcp.f32 %v8798_v20  ;;  %vm8820_vm0 = vcmp.eq.f32.partialorder %v1626_v13, 8.507059e+37  ;;  %vm918_vm1 = vweird.f32 %v6996_v56 }
  0xd2   : > { %2609 = vadd.xlane.f32.xlu0 %v417_v7  ;;  %v1620_v7 = vmul.f32 %v6992_v22, %v1619_v1  ;;  %v914_v0 = vsub.f32 1.0, %v913_v48  ;;  %7001 = vpow2.f32 %v6373_v51  ;;  %v6327_v6 = vmul.f32 -1.442695, %v6670_v55  ;;  %vm8843_vm4 = vmor %vm917_vm11, %vm918_vm1 }
  0xd3   : > { %v1606_v59 = vadd.f32 %v6990_v24, %v1605_v50  ;;  %v6765_v17 = vunpack.c.l.bf16 %v8805_v62  ;;  %vm8835_vm3 = vcmp.eq.f32.partialorder %v921_v53, 8.507059e+37  ;;  %v924_v38 = vor.u32 1.1754944e-38, %v923_v5 }
  0xd4   : > { %v1621_v46 = vadd.f32 %v6992_v22, %v1620_v7  ;;  %v915_v26 = vmul.f32 %v6996_v56, %v914_v0  ;;  %v6998_v28 = vpop.eup %6997  ;;  %v936_v45 = vand.u32 2147483647, %v8798_v20  ;;  %7003 = vpow2.f32 %v6326_v36 }
  0xd5   : > { %v1610_v11 = vsel %vm8816_vm15, %v6990_v24, %v1606_v59  ;;  %v6766_v1 = vunpack.c.h.bf16 %v8805_v62  ;;  %7005 = vpow2.f32 %v6327_v6  ;;  %v6374_v36 = vmul.f32 -1.442695, %v6765_v17 }
  0xd6   : > { %v8800_v57 = vpop.f32.mrf.mxu1  ;;  %v1615_v48 = vsel %vm8808_vm14, %v1614_v10, %v1610_v11  ;;  %v1625_v5 = vsel %vm8828_vm2, %v6992_v22, %v1621_v46  ;;  %v916_v53 = vadd.f32 %v6996_v56, %v915_v26  ;;  %v938_v7 = vand.u32 2147483648, %v8798_v20 }
  0xd7   : > { %14132 = vst [vmem:[#allocation22_spill] sm:$0xff] %v8800_v57  ;;  %v7000_v24 = vpop.eup %6999  ;;  %v1630_v8 = vsel %vm8820_vm0, %v1629_v16, %v1625_v5  ;;  %v1862_v50 = vmul.f32 %v6757_v44, %v1615_v48  ;;  %vm932_vm5 = vweird.f32 %v8798_v20  ;;  %v6375_v44 = vmul.f32 -1.442695, %v6766_v1 }
  0xd8   : > { %v1863_v10 = vmul.f32 %v6758_v37, %v1630_v8  ;;  %v920_v22 = vsel %vm8843_vm4, %v6996_v56, %v916_v53  ;;  %v928_v49 = vmul.f32 %v7000_v24, %v8798_v20  ;;  %v7002_v16 = vpop.eup %7001  ;;  %vm933_vm6 = vweird.f32 %v7000_v24  ;;  %v9018_v53 = vld [vmem:[%s7933_s15 + $0xe8] sm:$0xff]  }
  0xd9   : > { %2253 = vmatmul.bf16.vlgmr.msrb.gmra.mxu1 %v8679_v29  ;;  %v925_v39 = vsel %vm8835_vm3, %v924_v38, %v920_v22  ;;  %v8877_v56 = vadd.f32 1.0, %v7002_v16  ;;  %vm8882_vm7 = vcmp.eq.f32.partialorder %v936_v45, 8.507059e+37  ;;  %v939_v26 = vor.u32 1.1754944e-38, %v938_v7  ;;  %vm8890_vm8 = vmor %vm932_vm5, %vm933_vm6 }
  0xda   : > { %2611 = vadd.xlane.f32.xlu0 %v418_v35  ;;  %v8853_v35 = vadd.f32 1.0, %v6998_v28  ;;  %v8873_v3 = vpack.c.bf16 %v1863_v10, %v1862_v50  ;;  %v929_v37 = vsub.f32 1.0, %v928_v49  ;;  %v7004_v0 = vpop.eup %7003  ;;  %v1816_v28 = vmul.f32 %v6665_v27, %v925_v39  ;;  %v8924_v39 = vld [vmem:[%s7933_s15 + $0xe0] sm:$0xff]  }
  0xdb   : > { %v7006_v13 = vpop.eup %7005  ;;  %v1656_v11 = vand.u32 2147483647, %v8877_v56  ;;  %v1658_v51 = vand.u32 2147483648, %v8877_v56  ;;  %v8898_v45 = vadd.f32 1.0, %v7004_v0  ;;  %vm1652_vm11 = vweird.f32 %v8877_v56 }
  0xdc   : > { %7007 = vrcp.f32 %v8853_v35  ;;  %14146 = vst [vmem:[#allocation24_spill] sm:$0xff] %v8873_v3  ;;  %v1641_v59 = vand.u32 2147483647, %v8853_v35  ;;  %v1643_v18 = vand.u32 2147483648, %v8853_v35  ;;  %2209 = vmatmul.bf16.gmra.mxu3 %v8873_v3  ;;  %v930_v6 = vmul.f32 %v7000_v24, %v929_v37 }
  0xdd   : > { %7009 = vpow2.f32 %v6374_v36  ;;  %vm1637_vm9 = vweird.f32 %v8853_v35  ;;  %v8901_v5 = vadd.f32 1.0, %v7006_v13  ;;  %v951_v10 = vand.u32 2147483647, %v8898_v45 }
  0xde   : > { %v8861_v14 = vpop.f32.mrf.mxu1  ;;  %7011 = vrcp.f32 %v8877_v56  ;;  %v931_v48 = vadd.f32 %v7000_v24, %v930_v6  ;;  %vm8903_vm10 = vcmp.eq.f32.partialorder %v1641_v59, 8.507059e+37  ;;  %v1644_v8 = vor.u32 1.1754944e-38, %v1643_v18 }
  0xdf   : > { %14145 = vst [vmem:[#allocation23_spill] sm:$0xff] %v8861_v14  ;;  %7013 = vpow2.f32 %v6375_v44  ;;  %v953_v22 = vand.u32 2147483648, %v8898_v45  ;;  %vm8918_vm12 = vcmp.eq.f32.partialorder %v1656_v11, 8.507059e+37  ;;  %v1659_v44 = vor.u32 1.1754944e-38, %v1658_v51 }
  0xe0   : > { %7015 = vrcp.f32 %v8898_v45  ;;  %v935_v50 = vsel %vm8890_vm8, %v7000_v24, %v931_v48  ;;  %vm947_vm14 = vweird.f32 %v8898_v45  ;;  %v966_v6 = vand.u32 2147483647, %v8901_v5 }
  0xe1   : > { %v940_v7 = vsel %vm8882_vm7, %v939_v26, %v935_v50  ;;  %7017 = vrcp.f32 %v8901_v5  ;;  %v954_v18 = vor.u32 1.1754944e-38, %v953_v22  ;;  %v968_v46 = vand.u32 2147483648, %v8901_v5 }
  0xe2   : > { %v7008_v20 = vpop.eup %7007  ;;  %v1817_v37 = vmul.f32 %v6666_v25, %v940_v7  ;;  %vm8935_vm15 = vcmp.eq.f32.partialorder %v951_v10, 8.507059e+37  ;;  %v13967_v11 = vunpack.c.l.bf16 %v8924_v39  ;;  %vm962_vm2 = vweird.f32 %v8901_v5 }
  0xe3   : > { %v1633_v36 = vmul.f32 %v7008_v20, %v8853_v35  ;;  %v7010_v49 = vpop.eup %7009  ;;  %vm1638_vm13 = vweird.f32 %v7008_v20  ;;  %vm8953_vm3 = vcmp.eq.f32.partialorder %v966_v6, 8.507059e+37  ;;  %v969_v7 = vor.u32 1.1754944e-38, %v968_v46 }
  0xe4   : > { %v7012_v24 = vpop.eup %7011  ;;  %v8933_v13 = vpack.c.bf16 %v1817_v37, %v1816_v28  ;;  %v8939_v25 = vadd.f32 1.0, %v7010_v49  ;;  %vm8944_vm0 = vmor %vm1637_vm9, %vm1638_vm13  ;;  %v6376_v37 = vmul.f32 -1.442695, %v13967_v11  ;;  %v13974_v11 = vunpack.c.h.bf16 %v8924_v39 }
  0xe5   : > { %v1634_v0 = vsub.f32 1.0, %v1633_v36  ;;  %v1648_v59 = vmul.f32 %v7012_v24, %v8877_v56  ;;  %v7014_v26 = vpop.eup %7013  ;;  %vm1653_vm1 = vweird.f32 %v7012_v24 }
  0xe6   : > { %v8909_v27 = vpop.f32.mrf.mxu1  ;;  %14156 = vst [vmem:[#allocation26_spill] sm:$0xff] %v8933_v13  ;;  %v7016_v51 = vpop.eup %7015  ;;  %v8949_v28 = vadd.f32 1.0, %v7014_v26  ;;  %2094 = vmatmul.bf16.gmra.mxu0 %v8933_v13  ;;  %7019 = vrcp.f32 %v8939_v25  ;;  %vm8968_vm4 = vmor %vm1652_vm11, %vm1653_vm1  ;;  %vm1667_vm8 = vweird.f32 %v8939_v25 }
  0xe7   : > { %14153 = vst [vmem:[#allocation25_spill] sm:$0xff] %v8909_v27  ;;  %v1635_v38 = vmul.f32 %v7008_v20, %v1634_v0  ;;  %v1649_v50 = vsub.f32 1.0, %v1648_v59  ;;  %v943_v10 = vmul.f32 %v7016_v51, %v8898_v45  ;;  %v7018_v35 = vpop.eup %7017  ;;  %vm948_vm5 = vweird.f32 %v7016_v51 }
  0xe8   : > { %7021 = vrcp.f32 %v8949_v28  ;;  %v958_v46 = vmul.f32 %v7018_v35, %v8901_v5  ;;  %vm963_vm6 = vweird.f32 %v7018_v35  ;;  %vm8983_vm7 = vmor %vm947_vm14, %vm948_vm5  ;;  %vm1682_vm9 = vweird.f32 %v8949_v28 }
  0xe9   : > { %2258 = vmatmul.bf16.gmra.mxu1 %v8788_v43  ;;  %v1636_v36 = vadd.f32 %v7008_v20, %v1635_v38  ;;  %v1650_v49 = vmul.f32 %v7012_v24, %v1649_v50  ;;  %v944_v26 = vsub.f32 1.0, %v943_v10  ;;  %7023 = vpow2.f32 %v6376_v37 }
  0xea   : > { %v13972_v45 = vunpack.c.h.bf16 %v9018_v53 }
  0xeb   : > { %v1640_v59 = vsel %vm8944_vm0, %v7008_v20, %v1636_v36  ;;  %v1651_v50 = vadd.f32 %v7012_v24, %v1650_v49  ;;  %v945_v48 = vmul.f32 %v7016_v51, %v944_v26  ;;  %v959_v20 = vsub.f32 1.0, %v958_v46 }
  0xec   : > { %v1645_v38 = vsel %vm8903_vm10, %v1644_v8, %v1640_v59  ;;  %v1673_v36 = vand.u32 2147483648, %v8939_v25  ;;  %v1671_v8 = vand.u32 2147483647, %v8939_v25  ;;  %v7020_v49 = vpop.eup %7019  ;;  %vm8997_vm10 = vmor %vm962_vm2, %vm963_vm6 }
  0xed   : > { %v1655_v56 = vsel %vm8968_vm4, %v7012_v24, %v1651_v50  ;;  %v1864_v10 = vmul.f32 %v6761_v47, %v1645_v38  ;;  %v946_v59 = vadd.f32 %v7016_v51, %v945_v48  ;;  %v960_v6 = vmul.f32 %v7018_v35, %v959_v20 }
  0xee   : > { %v8961_v0 = vpop.f32.mrf.mxu1  ;;  %v1660_v37 = vsel %vm8918_vm12, %v1659_v44, %v1655_v56  ;;  %v7022_v24 = vpop.eup %7021  ;;  %v1663_v26 = vmul.f32 %v7020_v49, %v8939_v25  ;;  %vm1668_vm11 = vweird.f32 %v7020_v49  ;;  %v1674_v16 = vor.u32 1.1754944e-38, %v1673_v36 }
  0xef   : > { %14163 = vst [vmem:[#allocation27_spill] sm:$0xff] %v8961_v0  ;;  %v1865_v47 = vmul.f32 %v6762_v58, %v1660_v37  ;;  %v950_v44 = vsel %vm8983_vm7, %v7016_v51, %v946_v59  ;;  %v961_v46 = vadd.f32 %v7018_v35, %v960_v6  ;;  %v1678_v38 = vmul.f32 %v7022_v24, %v8949_v28  ;;  %v7024_v48 = vpop.eup %7023 }
  0xf0   : > { %vm1683_vm12 = vweird.f32 %v7022_v24  ;;  %v955_v58 = vsel %vm8935_vm15, %v954_v18, %v950_v44  ;;  %v1664_v5 = vsub.f32 1.0, %v1663_v26  ;;  %v1686_v50 = vand.u32 2147483647, %v8949_v28  ;;  %vm9039_vm15 = vmor %vm1667_vm8, %vm1668_vm11 }
  0xf1   : > { %v9005_v52 = vpack.c.bf16 %v1865_v47, %v1864_v10  ;;  %v965_v36 = vsel %vm8997_vm10, %v7018_v35, %v961_v46  ;;  %v1818_v51 = vmul.f32 %v6669_v63, %v955_v58  ;;  %v1679_v56 = vsub.f32 1.0, %v1678_v38  ;;  %v9032_v63 = vld [vmem:[%s7933_s15 + $0x20] sm:$0xff]   ;;  %vm9049_vm0 = vmor %vm1682_vm9, %vm1683_vm12 }
  0xf2   : > { %v1688_v10 = vand.u32 2147483648, %v8949_v28  ;;  %v970_v18 = vsel %vm8953_vm3, %v969_v7, %v965_v36  ;;  %v1665_v12 = vmul.f32 %v7020_v49, %v1664_v5  ;;  %vm9023_vm13 = vcmp.eq.f32.partialorder %v1671_v8, 8.507059e+37 }
  0xf3   : > { %14170 = vst [vmem:[#allocation28_spill] sm:$0xff] %v9005_v52  ;;  %2214 = vmatmul.bf16.gmra.mxu3 %v9005_v52  ;;  %vm9027_vm14 = vcmp.eq.f32.partialorder %v1686_v50, 8.507059e+37  ;;  %v1819_v59 = vmul.f32 %v6670_v55, %v970_v18  ;;  %v1680_v7 = vmul.f32 %v7022_v24, %v1679_v56  ;;  %v6377_v6 = vmul.f32 -1.442695, %v13974_v11 }
  0xf4   : > { %v1689_v8 = vor.u32 1.1754944e-38, %v1688_v10  ;;  %v1666_v47 = vadd.f32 %v7020_v49, %v1665_v12  ;;  %v844_v55 = vadd.f32 1.0, %v7024_v48  ;;  %v13973_v25 = vunpack.c.l.bf16 %v9018_v53 }
  0xf5   : > { %v9055_v26 = vpack.c.bf16 %v1819_v59, %v1818_v51  ;;  %v1681_v44 = vadd.f32 %v7022_v24, %v1680_v7  ;;  %7025 = vpow2.f32 %v6377_v6  ;;  %v13971_v46 = vunpack.c.l.bf16 %v9032_v63 }
  0xf6   : > { %v9010_v20 = vpop.f32.mrf.mxu1  ;;  %v1670_v38 = vsel %vm9039_vm15, %v7020_v49, %v1666_v47  ;;  %7027 = vrcp.f32 %v844_v55  ;;  %v6378_v28 = vmul.f32 -1.442695, %v13973_v25  ;;  %v6379_v58 = vmul.f32 -1.442695, %v13972_v45 }
  0xf7   : > { %14171 = vst [vmem:[#allocation29_spill] sm:$0xff] %v9010_v20  ;;  %2099 = vmatmul.bf16.gmra.mxu0 %v9055_v26  ;;  %v1675_v5 = vsel %vm9023_vm13, %v1674_v16, %v1670_v38  ;;  %v1685_v50 = vsel %vm9049_vm0, %v7022_v24, %v1681_v44  ;;  %v13969_v48 = vunpack.c.h.bf16 %v9032_v63  ;;  %v6328_v49 = vmul.f32 -1.442695, %v13971_v46  ;;  %v9094_v38 = vld [vmem:[%s7933_s15 + $0xf0] sm:$0xff]   ;;  %v7541_v20 = vld [vmem:[%s7900_s28 + $0x60] sm:$0xff] }
  0xf8   : > { %14180 = vst [vmem:[#allocation30_spill] sm:$0xff] %v9055_v26  ;;  %v1690_v36 = vsel %vm9027_vm14, %v1689_v8, %v1685_v50  ;;  %7029 = vpow2.f32 %v6378_v28  ;;  %v1866_v16 = vmul.f32 %v6765_v17, %v1675_v5  ;;  %v1703_v22 = vand.u32 2147483648, %v844_v55 }
  0xf9   : > { %2263 = vmatmul.bf16.gmra.mxu1 %v8933_v13  ;;  %7031 = vpow2.f32 %v6379_v58  ;;  %v6329_v56 = vmul.f32 -1.442695, %v13969_v48  ;;  %v1867_v24 = vmul.f32 %v6766_v1, %v1690_v36  ;;  %vm1697_vm1 = vweird.f32 %v844_v55  ;;  %v9106_v36 = vld [vmem:[%s7933_s15 + $0x28] sm:$0xff]  }
  0xfa   : > { %7033 = vpow2.f32 %v6328_v49  ;;  %v1701_v1 = vand.u32 2147483647, %v844_v55  ;;  %v1704_v50 = vor.u32 1.1754944e-38, %v1703_v22  ;;  %v13970_v49 = vunpack.c.h.bf16 %v9094_v38 }
  0xfb   : > { %v7026_v10 = vpop.eup %7025  ;;  %7035 = vpow2.f32 %v6329_v56  ;;  %v9082_v59 = vpack.c.bf16 %v1867_v24, %v1866_v16 }
  0xfc   : > { %v7028_v18 = vpop.eup %7027  ;;  %v845_v12 = vadd.f32 1.0, %v7026_v10  ;;  %vm1702_vm4 = vcmp.eq.f32.partialorder %v1701_v1, 8.507059e+37  ;;  %v6381_v1 = vmul.f32 -1.442695, %v13970_v49 }
  0xfd   : > { %v1693_v37 = vmul.f32 %v7028_v18, %v844_v55  ;;  %14182 = vst [vmem:[#allocation32_spill] sm:$0xff] %v9082_v59  ;;  %vm1698_vm2 = vweird.f32 %v7028_v18  ;;  %v13968_v55 = vunpack.c.l.bf16 %v9094_v38 }
  0xfe   : > { %v9074_v51 = vpop.f32.mrf.mxu1  ;;  %v7030_v35 = vpop.eup %7029  ;;  %7037 = vrcp.f32 %v845_v12  ;;  %vm9097_vm3 = vmor %vm1697_vm1, %vm1698_vm2  ;;  %v1716_v16 = vand.u32 2147483647, %v845_v12  ;;  %vm1712_vm5 = vweird.f32 %v845_v12 }
  0xff   : > { %14181 = vst [vmem:[#allocation31_spill] sm:$0xff] %v9074_v51  ;;  %v7032_v7 = vpop.eup %7031  ;;  %v1694_v8 = vsub.f32 1.0, %v1693_v37  ;;  %v9084_v17 = vadd.f32 1.0, %v7030_v35  ;;  %v1718_v37 = vand.u32 2147483648, %v845_v12  ;;  %v6380_v22 = vmul.f32 -1.442695, %v13968_v55 }
 0x100   : > { %v7034_v62 = vpop.eup %7033  ;;  %v9086_v6 = vadd.f32 1.0, %v7032_v7  ;;  %v13975_v7 = vunpack.c.l.bf16 %v9106_v36  ;;  %vm9122_vm7 = vcmp.eq.f32.partialorder %v1716_v16, 8.507059e+37 }
 0x101   : > { %v1695_v41 = vmul.f32 %v7028_v18, %v1694_v8  ;;  %7039 = vrcp.f32 %v9084_v17  ;;  %v9091_v44 = vadd.f32 1.0, %v7034_v62  ;;  %v7036_v28 = vpop.eup %7035  ;;  %vm1727_vm9 = vweird.f32 %v9084_v17 }
 0x102   : > { %7041 = vrcp.f32 %v9086_v6  ;;  %v9111_v35 = vadd.f32 1.0, %v7036_v28  ;;  %v6330_v45 = vmul.f32 -1.442695, %v13975_v7  ;;  %v1733_v11 = vand.u32 2147483648, %v9084_v17 }
 0x103   : > { %2219 = vmatmul.bf16.gmra.mxu3 %v9082_v59  ;;  %v1696_v5 = vadd.f32 %v7028_v18, %v1695_v41  ;;  %7043 = vrcp.f32 %v9091_v44  ;;  %vm1742_vm11 = vweird.f32 %v9086_v6  ;;  %vm977_vm15 = vweird.f32 %v9091_v44 }
 0x104   : > { %v7038_v56 = vpop.eup %7037  ;;  %7045 = vrcp.f32 %v9111_v35 }
 0x105   : > { %v1700_v24 = vsel %vm9097_vm3, %v7028_v18, %v1696_v5  ;;  %v1708_v10 = vmul.f32 %v7038_v56, %v845_v12  ;;  %vm1713_vm6 = vweird.f32 %v7038_v56  ;;  %7047 = vpow2.f32 %v6380_v22 }
 0x106   : > { %v9088_v47 = vpop.f32.mrf.mxu1  ;;  %v1705_v62 = vsel %vm1702_vm4, %v1704_v50, %v1700_v24  ;;  %v1719_v50 = vor.u32 1.1754944e-38, %v1718_v37  ;;  %vm9136_vm8 = vmor %vm1712_vm5, %vm1713_vm6  ;;  %7049 = vpow2.f32 %v6381_v1  ;;  %vm992_vm4 = vweird.f32 %v9111_v35 }
 0x107   : > { %14183 = vst [vmem:[#allocation33_spill] sm:$0xff] %v9088_v47  ;;  %v9116_v8 = vpop.eup %7039  ;;  %v1709_v41 = vsub.f32 1.0, %v1708_v10  ;;  %v14191_v10 = vunpack.c.l.bf16 %v8924_v39  ;;  %7051 = vpow2.f32 %v6330_v45  ;;  %v981_v45 = vand.u32 2147483647, %v9091_v44 }
 0x108   : > { %v9120_v58 = vpop.eup %7041  ;;  %v1723_v28 = vmul.f32 %v9116_v8, %v9084_v17  ;;  %vm1728_vm10 = vweird.f32 %v9116_v8 }
 0x109   : > { %2268 = vmatmul.bf16.gmra.mxu1 %v9055_v26  ;;  %v9128_v5 = vpop.eup %7043  ;;  %v1710_v48 = vmul.f32 %v7038_v56, %v1709_v41  ;;  %v1738_v24 = vmul.f32 %v9120_v58, %v9086_v6  ;;  %v1868_v49 = vmul.f32 %v14191_v10, %v1705_v62  ;;  %vm1743_vm12 = vweird.f32 %v9120_v58  ;;  %vm9162_vm13 = vmor %vm1727_vm9, %vm1728_vm10 }
 0x10a   : > { %v1724_v46 = vsub.f32 1.0, %v1723_v28  ;;  %v973_v25 = vmul.f32 %v9128_v5, %v9091_v44  ;;  %v1731_v28 = vand.u32 2147483647, %v9084_v17  ;;  %v14192_v10 = vunpack.c.h.bf16 %v8924_v39  ;;  %vm9167_vm14 = vmor %vm1742_vm11, %vm1743_vm12 }
 0x10b   : > { %v1711_v41 = vadd.f32 %v7038_v56, %v1710_v48  ;;  %v1739_v37 = vsub.f32 1.0, %v1738_v24  ;;  %v1748_v48 = vand.u32 2147483648, %v9086_v6  ;;  %v7046_v24 = vpop.eup %7045  ;;  %vm978_vm0 = vweird.f32 %v9128_v5 }
 0x10c   : > { %v1725_v12 = vmul.f32 %v9116_v8, %v1724_v46  ;;  %v974_v17 = vsub.f32 1.0, %v973_v25  ;;  %vm9182_vm1 = vcmp.eq.f32.partialorder %v1731_v28, 8.507059e+37  ;;  %vm9191_vm2 = vmor %vm977_vm15, %vm978_vm0  ;;  %vm993_vm5 = vweird.f32 %v7046_v24 }
 0x10d   : > { %v1715_v22 = vsel %vm9136_vm8, %v7038_v56, %v1711_v41  ;;  %v1740_v62 = vmul.f32 %v9120_v58, %v1739_v37  ;;  %v7048_v37 = vpop.eup %7047  ;;  %v1749_v25 = vor.u32 1.1754944e-38, %v1748_v48  ;;  %vm982_vm6 = vcmp.eq.f32.partialorder %v981_v45, 8.507059e+37 }
 0x10e   : > { %v9130_v55 = vpop.f32.mrf.mxu1  ;;  %v1720_v1 = vsel %vm9122_vm7, %v1719_v50, %v1715_v22  ;;  %v1726_v46 = vadd.f32 %v9116_v8, %v1725_v12  ;;  %v1746_v50 = vand.u32 2147483647, %v9086_v6  ;;  %v7050_v39 = vpop.eup %7049  ;;  %v975_v7 = vmul.f32 %v9128_v5, %v974_v17  ;;  %vm994_vm7 = vmor %vm992_vm4, %vm993_vm5 }
 0x10f   : > { %14188 = vst [vmem:[#allocation34_spill] sm:$0xff] %v9130_v55  ;;  %v1869_v16 = vmul.f32 %v14192_v10, %v1720_v1  ;;  %v1741_v41 = vadd.f32 %v9120_v58, %v1740_v62  ;;  %v1734_v1 = vor.u32 1.1754944e-38, %v1733_v11  ;;  %v13978_v62 = vunpack.c.h.bf16 %v9106_v36 }
 0x110   : > { %v1730_v10 = vsel %vm9162_vm13, %v9116_v8, %v1726_v46  ;;  %v983_v8 = vand.u32 2147483648, %v9091_v44  ;;  %v988_v46 = vmul.f32 %v7046_v24, %v9111_v35  ;;  %vm1747_vm3 = vcmp.eq.f32.partialorder %v1746_v50, 8.507059e+37 }
 0x111   : > { %v9176_v22 = vpack.c.bf16 %v1869_v16, %v1868_v49  ;;  %v1745_v11 = vsel %vm9167_vm14, %v9120_v58, %v1741_v41  ;;  %v976_v48 = vadd.f32 %v9128_v5, %v975_v7  ;;  %v996_v58 = vand.u32 2147483647, %v9111_v35  ;;  %v7052_v7 = vpop.eup %7051 }
 0x112   : > { %v984_v28 = vor.u32 1.1754944e-38, %v983_v8  ;;  %v989_v16 = vsub.f32 1.0, %v988_v46  ;;  %v998_v41 = vand.u32 2147483648, %v9111_v35  ;;  %v9205_v44 = vadd.f32 1.0, %v7048_v37 }
 0x113   : > { %14198 = vst [vmem:[#allocation36_spill] sm:$0xff] %v9176_v22  ;;  %2224 = vmatmul.bf16.gmra.mxu3 %v9176_v22  ;;  %v980_v56 = vsel %vm9191_vm2, %v9128_v5, %v976_v48  ;;  %v6331_v18 = vmul.f32 -1.442695, %v13978_v62  ;;  %v1735_v17 = vsel %vm9182_vm1, %v1734_v1, %v1730_v10  ;;  %v1750_v45 = vsel %vm1747_vm3, %v1749_v25, %v1745_v11 }
 0x114   : > { %v990_v8 = vmul.f32 %v7046_v24, %v989_v16  ;;  %v849_v46 = vadd.f32 1.0, %v7050_v39  ;;  %v985_v22 = vsel %vm982_vm6, %v984_v28, %v980_v56  ;;  %v999_v5 = vor.u32 1.1754944e-38, %v998_v41 }
 0x115   : > { %7053 = vrcp.f32 %v9205_v44  ;;  %vm997_vm8 = vcmp.eq.f32.partialorder %v996_v58, 8.507059e+37  ;;  %v14204_v48 = vunpack.c.l.bf16 %v9018_v53  ;;  %v14205_v1 = vunpack.c.h.bf16 %v9018_v53 }
 0x116   : > { %v9174_v12 = vpop.f32.mrf.mxu1  ;;  %v991_v49 = vadd.f32 %v7046_v24, %v990_v8  ;;  %7055 = vrcp.f32 %v849_v46  ;;  %v9221_v39 = vadd.f32 1.0, %v7052_v7  ;;  %v14206_v35 = vunpack.c.l.bf16 %v9032_v63 }
 0x117   : > { %14197 = vst [vmem:[#allocation35_spill] sm:$0xff] %v9174_v12  ;;  %v1870_v6 = vmul.f32 %v14204_v48, %v1735_v17  ;;  %v1871_v10 = vmul.f32 %v14205_v1, %v1750_v45  ;;  %7057 = vpow2.f32 %v6331_v18  ;;  %v14207_v16 = vunpack.c.h.bf16 %v9032_v63 }
 0x118   : > { %v995_v25 = vsel %vm994_vm7, %v7046_v24, %v991_v49  ;;  %v1820_v11 = vmul.f32 %v14206_v35, %v985_v22  ;;  %7059 = vrcp.f32 %v9221_v39  ;;  %v1763_v22 = vand.u32 2147483648, %v9205_v44 }
 0x119   : > { %v1000_v28 = vsel %vm997_vm8, %v999_v5, %v995_v25  ;;  %v9227_v58 = vpack.c.bf16 %v1871_v10, %v1870_v6  ;;  %vm1757_vm9 = vweird.f32 %v9205_v44  ;;  %v1778_v48 = vand.u32 2147483648, %v849_v46  ;;  %v7537_v10 = vld [vmem:[%s7900_s28 + $0x38] sm:$0xff] }
 0x11a   : > { %v1821_v56 = vmul.f32 %v14207_v16, %v1000_v28  ;;  %v1761_v1 = vand.u32 2147483647, %v9205_v44  ;;  %vm1772_vm11 = vweird.f32 %v849_v46  ;;  %vm1007_vm1 = vweird.f32 %v9221_v39 }
 0x11b   : > { %v7054_v41 = vpop.eup %7053  ;;  %14208 = vst [vmem:[#allocation38_spill] sm:$0xff] %v9227_v58 }
 0x11c   : > { %v7056_v17 = vpop.eup %7055  ;;  %v9231_v7 = vpack.c.bf16 %v1821_v56, %v1820_v11  ;;  %v1753_v24 = vmul.f32 %v7054_v41, %v9205_v44  ;;  %vm1758_vm10 = vweird.f32 %v7054_v41  ;;  %v1776_v11 = vand.u32 2147483647, %v849_v46  ;;  %v6645_v56 = vld [vmem:[%s13958_s6 + $0x38] sm:$0xff] }
 0x11d   : > { %v2911_v50 = vpop.xlane.xlu0 %2910  ;;  %v7058_v8 = vpop.eup %7057  ;;  %v1768_v49 = vmul.f32 %v7056_v17, %v849_v46  ;;  %vm1773_vm12 = vweird.f32 %v7056_v17  ;;  %vm9257_vm13 = vmor %vm1757_vm9, %vm1758_vm10  ;;  %vm1762_vm14 = vcmp.eq.f32.partialorder %v1761_v1, 8.507059e+37  ;;  %4298 = vmatpush.bf16.msrb.mxu3 %v6645_v56  ;;  %v6644_v46 = vld [vmem:[%s13958_s6 + $0x30] sm:$0xff] }
 0x11e   : > { %v9215_v37 = vpop.f32.mrf.mxu1  ;;  %v3038_v53 = vmul.f32 %v2911_v50, %v8403_v40  ;;  %14209 = vst [vmem:[#allocation39_spill] sm:$0xff] %v9231_v7  ;;  %2273 = vmatmul.bf16.gmra.mxu1 %v9231_v7  ;;  %2104 = vmatmul.bf16.gmra.mxu0 %v9231_v7  ;;  %v1754_v50 = vsub.f32 1.0, %v1753_v24  ;;  %v9246_v16 = vadd.f32 1.0, %v7058_v8  ;;  %vm9264_vm15 = vmor %vm1772_vm11, %vm1773_vm12  ;;  %vm1777_vm0 = vcmp.eq.f32.partialorder %v1776_v11, 8.507059e+37  ;;  %v1940_v7 = vld [vmem:[%s13957_s5] sm:$0x7] }
 0x11f   : > { %14203 = vst [vmem:[#allocation37_spill] sm:$0xff] %v9215_v37  ;;  %v1769_v35 = vsub.f32 1.0, %v1768_v49  ;;  %v1764_v49 = vor.u32 1.1754944e-38, %v1763_v22  ;;  %v14233_v37 = vunpack.c.l.bf16 %v9106_v36  ;;  %v9542_v47 = vperm.slane %v1940_v7, 0 }
 0x120   : > { %v1755_v28 = vmul.f32 %v7054_v41, %v1754_v50  ;;  %v9261_v50 = vadd.f32 1e-06, %v3038_v53  ;;  %7061 = vrcp.f32 %v9246_v16  ;;  %vm1022_vm4 = vweird.f32 %v9246_v16 }
 0x121   : > { %4299 = vmatpush.bf16.msrb.mxu3 %v6644_v46 }
 0x122   : > { %v1756_v8 = vadd.f32 %v7054_v41, %v1755_v28  ;;  %7063 = vrsqrt.f32 %v9261_v50  ;;  %vm3172_vm10 = vweird.f32 %v9261_v50 }
 0x123   : > { %2229 = vmatmul.bf16.gmra.mxu3 %v9227_v58  ;;  %v1779_v58 = vor.u32 1.1754944e-38, %v1778_v48 }
 0x124   : > { %v1760_v52 = vsel %vm9257_vm13, %v7054_v41, %v1756_v8 }
 0x125   : > { %v2917_v45 = vpop.xlane.xlu2 %2916  ;;  %v2598_v18 = vpop.xlane.xlu0 %2597 }
 0x126   : > { %v2913_v63 = vpop.xlane.xlu1 %2912  ;;  %v2725_v5 = vmul.f32 %v8403_v40, %v2598_v18  ;;  %v9237_v6 = vpop.f32.mrf.mxu1  ;;  %v3041_v56 = vmul.f32 %v2917_v45, %v8403_v40  ;;  %v7538_v45 = vld [vmem:[%s7900_s28 + $0x40] sm:$0xff] }
 0x127   : > { %14210 = vst [vmem:[#allocation40_spill] sm:$0xff] %v9237_v6  ;;  %v9251_v18 = vpop.eup %7059  ;;  %v3039_v22 = vmul.f32 %v2913_v63, %v8403_v40 }
 0x128   : > { %v9243_v25 = vsub.f32 %v7537_v10, %v2725_v5  ;;  %v1770_v10 = vmul.f32 %v7056_v17, %v1769_v35  ;;  %v1003_v53 = vmul.f32 %v9251_v18, %v9221_v39  ;;  %v1765_v35 = vsel %vm1762_vm14, %v1764_v49, %v1760_v52 }
 0x129   : > { %v14217_v5 = vunpack.c.l.bf16 %v9094_v38  ;;  %v9291_v62 = vadd.f32 1e-06, %v3039_v22  ;;  %vm1008_vm2 = vweird.f32 %v9251_v18 }
 0x12a   : > { %14211 = vst [vmem:[#allocation41_spill] sm:$0xff] %v9243_v25  ;;  %v2853_v24 = vmul.f32 %v9243_v25, %v9243_v25  ;;  %v1771_v59 = vadd.f32 %v7056_v17, %v1770_v10  ;;  %v14218_v10 = vunpack.c.h.bf16 %v9094_v38  ;;  %v1004_v49 = vsub.f32 1.0, %v1003_v53  ;;  %vm9334_vm3 = vmor %vm1007_vm1, %vm1008_vm2 }
 0x12b   : > { %v1872_v63 = vmul.f32 %v14217_v5, %v1765_v35  ;;  %7065 = vrsqrt.f32 %v9291_v62  ;;  %vm3182_vm13 = vweird.f32 %v9291_v62 }
 0x12c   : > { %2924 = vadd.xlane.f32.xlu1 %v2853_v24  ;;  %v1775_v11 = vsel %vm9264_vm15, %v7056_v17, %v1771_v59  ;;  %v6643_v59 = vld [vmem:[%s13958_s6 + $0x28] sm:$0xff]  ;;  %v9293_v17 = vpop.eup %7061  ;;  %v1005_v53 = vmul.f32 %v9251_v18, %v1004_v49  ;;  %v1013_v49 = vand.u32 2147483648, %v9221_v39 }
 0x12d   : > { %v2919_v44 = vpop.xlane.xlu2 %2918  ;;  %v2600_v1 = vpop.xlane.xlu0 %2599  ;;  %v1780_v28 = vsel %vm1777_vm0, %v1779_v58, %v1775_v11  ;;  %4300 = vmatpush.bf16.msrb.mxu3 %v6643_v59  ;;  %v9295_v58 = vadd.f32 1e-06, %v3041_v56  ;;  %v1018_v22 = vmul.f32 %v9293_v17, %v9246_v16  ;;  %v7540_v59 = vld [vmem:[%s7900_s28 + $0x48] sm:$0xff]  ;;  %vm1023_vm5 = vweird.f32 %v9293_v17 }
 0x12e   : > { %v2915_v48 = vpop.xlane.xlu1 %2914  ;;  %v9280_v41 = vpop.f32.mrf.mxu1  ;;  %v2726_v24 = vmul.f32 %v8403_v40, %v2600_v1  ;;  %v1873_v52 = vmul.f32 %v14218_v10, %v1780_v28  ;;  %v7539_v10 = vld [vmem:[%s7900_s28 + $0x58] sm:$0xff]  ;;  %vm9369_vm7 = vmor %vm1022_vm4, %vm1023_vm5 }
 0x12f   : > { %14216 = vst [vmem:[#allocation42_spill] sm:$0xff] %v9280_v41  ;;  %v9300_v46 = vpop.eup %7063  ;;  %7067 = vrsqrt.f32 %v9295_v58  ;;  %v3040_v41 = vmul.f32 %v2915_v48, %v8403_v40  ;;  %vm3202_vm12 = vweird.f32 %v9295_v58 }
 0x130   : > { %v9298_v8 = vsub.f32 %v7538_v45, %v2726_v24  ;;  %v9302_v38 = vpack.c.bf16 %v1873_v52, %v1872_v63  ;;  %v3167_v63 = vmul.f32 %v9300_v46, %v9261_v50  ;;  %vm3173_vm9 = vweird.f32 %v9300_v46 }
 0x131   : > { %vm9463_vm11 = vmor %vm3172_vm10, %vm3173_vm9 }
 0x132   : > { %14219 = vst [vmem:[#allocation43_spill] sm:$0xff] %v9298_v8  ;;  %v2854_v35 = vmul.f32 %v9298_v8, %v9298_v8  ;;  %v3168_v48 = vmul.f32 %v9300_v46, %v3167_v63 }
 0x133   : > { %14220 = vst [vmem:[#allocation44_spill] sm:$0xff] %v9302_v38  ;;  %2234 = vmatmul.bf16.gmra.mxu3 %v9302_v38 }
 0x134   : > { %2926 = vadd.xlane.f32.xlu1 %v2854_v35  ;;  %v3169_v55 = vmul.f32 0.5, %v3168_v48 }
 0x135   : > { %v2606_v1 = vpop.xlane.xlu2 %2605  ;;  %v9311_v56 = vpop.xlane.xlu0 %2920 }
 0x136   : > { %v2729_v11 = vmul.f32 %v8403_v40, %v2606_v1  ;;  %v2602_v28 = vpop.xlane.xlu1 %2601  ;;  %v9313_v24 = vpop.f32.mrf.mxu1  ;;  %v1006_v1 = vadd.f32 %v9251_v18, %v1005_v53 }
 0x137   : > { %14221 = vst [vmem:[#allocation45_spill] sm:$0xff] %v9313_v24  ;;  %v2727_v5 = vmul.f32 %v8403_v40, %v2602_v28  ;;  %v1011_v28 = vand.u32 2147483647, %v9221_v39  ;;  %v1019_v24 = vsub.f32 1.0, %v1018_v22  ;;  %v9344_v53 = vpop.eup %7065  ;;  %v3042_v39 = vmul.f32 %v2919_v44, %v8403_v40 }
 0x138   : > { %v9322_v52 = vsub.f32 %v7539_v10, %v2729_v11  ;;  %v1014_v22 = vor.u32 1.1754944e-38, %v1013_v49  ;;  %v6642_v10 = vld [vmem:[%s13958_s6 + $0x20] sm:$0xff]  ;;  %v1010_v6 = vsel %vm9334_vm3, %v9251_v18, %v1006_v1  ;;  %v9360_v44 = vpop.eup %7067  ;;  %v1026_v1 = vand.u32 2147483647, %v9246_v16 }
 0x139   : > { %v9326_v45 = vsub.f32 %v7540_v59, %v2727_v5  ;;  %v419_v59 = vld [vmem:[%s7900_s28 + $0x78] sm:$0xff]  ;;  %vm9355_vm6 = vcmp.eq.f32.partialorder %v1011_v28, 8.507059e+37  ;;  %v1020_v63 = vmul.f32 %v9293_v17, %v1019_v24  ;;  %v1028_v24 = vand.u32 2147483648, %v9246_v16  ;;  %4301 = vmatpush.bf16.msrb.mxu3 %v6642_v10 }
 0x13a   : > { %14222 = vst [vmem:[#allocation46_spill] sm:$0xff] %v9322_v52  ;;  %v2857_v11 = vmul.f32 %v9322_v52, %v9322_v52  ;;  %v9377_v28 = vadd.f32 1e-06, %v3040_v41  ;;  %v9383_v9 = vadd.f32 1e-06, %v3042_v39  ;;  %v1015_v10 = vsel %vm9355_vm6, %v1014_v22, %v1010_v6  ;;  %v9405_v22 = vld [vmem:[%s7933_s15 + $0xf8] sm:$0xff]  }
 0x13b   : > { %14223 = vst [vmem:[#allocation47_spill] sm:$0xff] %v9326_v45  ;;  %v2855_v5 = vmul.f32 %v9326_v45, %v9326_v45  ;;  %v1021_v3 = vadd.f32 %v9293_v17, %v1020_v63  ;;  %v3197_v41 = vmul.f32 %v9360_v44, %v9295_v58  ;;  %vm1027_vm8 = vcmp.eq.f32.partialorder %v1026_v1, 8.507059e+37  ;;  %v422_v58 = vld [vmem:[%s7900_s28 + $0x90] sm:$0xff] }
 0x13c   : > { %2932 = vadd.xlane.f32.xlu0 %v2857_v11  ;;  %2613 = vadd.xlane.f32.xlu1 %v419_v59  ;;  %v1029_v48 = vor.u32 1.1754944e-38, %v1028_v24  ;;  %7069 = vrsqrt.f32 %v9377_v28  ;;  %v1822_v6 = vmul.f32 %v14233_v37, %v1015_v10  ;;  %v9408_v59 = vld [vmem:[%s7933_s15 + $0x30] sm:$0xff]   ;;  %v14234_v18 = vunpack.c.h.bf16 %v9106_v36  ;;  %v420_v24 = vld [vmem:[%s7900_s28 + $0x80] sm:$0xff] }
 0x13d   : > { %2928 = vadd.xlane.f32.xlu2 %v2855_v5  ;;  %v2608_v38 = vpop.xlane.xlu2 %2607  ;;  %v9363_v11 = vpop.xlane.xlu0 %2922  ;;  %7071 = vrsqrt.f32 %v9383_v9  ;;  %v13991_v10 = vunpack.c.l.bf16 %v9408_v59  ;;  %vm3183_vm14 = vweird.f32 %v9344_v53  ;;  %vm3203_vm15 = vweird.f32 %v9360_v44 }
 0x13e   : > { %v2730_v49 = vmul.f32 %v8403_v40, %v2608_v38  ;;  %v2604_v12 = vpop.xlane.xlu1 %2603  ;;  %v3177_v38 = vmul.f32 %v9344_v53, %v9291_v62  ;;  %v9379_v35 = vpop.f32.mrf.mxu1  ;;  %vm9497_vm0 = vmor %vm3182_vm13, %vm3183_vm14 }
 0x13f   : > { %14230 = vst [vmem:[#allocation48_spill] sm:$0xff] %v9379_v35  ;;  %v2728_v5 = vmul.f32 %v8403_v40, %v2604_v12  ;;  %v7542_v35 = vld [vmem:[%s7900_s28 + $0x50] sm:$0xff]  ;;  %v1025_v12 = vsel %vm9369_vm7, %v9293_v17, %v1021_v3  ;;  %v3170_v17 = vsub.f32 1.5, %v3169_v55  ;;  %v13993_v55 = vunpack.c.h.bf16 %v9408_v59  ;;  %vm9513_vm1 = vmor %vm3202_vm12, %vm3203_vm15 }
 0x140   : > { %v9386_v16 = vsub.f32 %v7541_v20, %v2730_v49  ;;  %v3178_v39 = vmul.f32 %v9344_v53, %v3177_v38  ;;  %v1030_v63 = vsel %vm1027_vm8, %v1029_v48, %v1025_v12  ;;  %v3198_v49 = vmul.f32 %v9360_v44, %v3197_v41 }
 0x141   : > { %v9393_v51 = vsub.f32 %v7542_v35, %v2728_v5  ;;  %v1823_v1 = vmul.f32 %v14234_v18, %v1030_v63  ;;  %v13994_v35 = vunpack.c.l.bf16 %v9405_v22  ;;  %v13992_v5 = vunpack.c.h.bf16 %v9405_v22 }
 0x142   : > { %14231 = vst [vmem:[#allocation49_spill] sm:$0xff] %v9386_v16  ;;  %v2858_v20 = vmul.f32 %v9386_v16, %v9386_v16  ;;  %v3179_v12 = vmul.f32 0.5, %v3178_v39  ;;  %v3043_v41 = vmul.f32 %v9311_v56, %v8403_v40  ;;  %v6332_v39 = vmul.f32 -1.442695, %v13991_v10  ;;  %v423_v10 = vld [vmem:[%s7900_s28 + $0x98] sm:$0xff] }
 0x143   : > { %14232 = vst [vmem:[#allocation50_spill] sm:$0xff] %v9393_v51  ;;  %v2856_v3 = vmul.f32 %v9393_v51, %v9393_v51  ;;  %v9425_v48 = vpack.c.bf16 %v1823_v1, %v1822_v6  ;;  %v6382_v37 = vmul.f32 -1.442695, %v13994_v35  ;;  %v6383_v63 = vmul.f32 -1.442695, %v13992_v5  ;;  %v7543_v6 = vld [vmem:[%s7900_s28 + $0x68] sm:$0xff] }
 0x144   : > { %2934 = vadd.xlane.f32.xlu0 %v2858_v20  ;;  %2615 = vadd.xlane.f32.xlu1 %v420_v24  ;;  %v3199_v56 = vmul.f32 0.5, %v3198_v49  ;;  %v6333_v1 = vmul.f32 -1.442695, %v13993_v55  ;;  %v9444_v24 = vld [vmem:[%s7933_s15 + $0x38] sm:$0xff]   ;;  %v3180_v49 = vsub.f32 1.5, %v3179_v12  ;;  %vm3192_vm12 = vweird.f32 %v9377_v28 }
 0x145   : > { %2930 = vadd.xlane.f32.xlu2 %v2856_v3  ;;  %v2610_v38 = vpop.xlane.xlu0 %2609  ;;  %14236 = vst [vmem:[#allocation52_spill] sm:$0xff] %v9425_v48  ;;  %v9434_v3 = vpop.eup %7069  ;;  %2278 = vmatmul.bf16.gmra.mxu1 %v9425_v48  ;;  %7073 = vpow2.f32 %v6382_v37  ;;  %v13995_v37 = vunpack.c.l.bf16 %v9444_v24  ;;  %v14280_v62 = vunpack.c.l.bf16 %v9444_v24 }
 0x146   : > { %v9423_v36 = vpop.f32.mrf.mxu1  ;;  %v2731_v20 = vmul.f32 %v8403_v40, %v2610_v38  ;;  %2109 = vmatmul.bf16.gmra.mxu0 %v9425_v48  ;;  %v3171_v38 = vmul.f32 %v9300_v46, %v3170_v17  ;;  %v9449_v5 = vpop.eup %7071  ;;  %7075 = vpow2.f32 %v6383_v63  ;;  %v3187_v55 = vmul.f32 %v9434_v3, %v9377_v28  ;;  %v6641_v17 = vld [vmem:[%s13958_s6 + $0x18] sm:$0xff] }
 0x147   : > { %14235 = vst [vmem:[#allocation51_spill] sm:$0xff] %v9423_v36  ;;  %7077 = vpow2.f32 %v6332_v39  ;;  %v3200_v12 = vsub.f32 1.5, %v3199_v56  ;;  %4302 = vmatpush.bf16.msrb.mxu3 %v6641_v17  ;;  %v6640_v56 = vld [vmem:[%s13958_s6 + $0x10] sm:$0xff]  ;;  %v3181_v17 = vmul.f32 %v9344_v53, %v3180_v49  ;;  %v3207_v50 = vmul.f32 %v9449_v5, %v9383_v9 }
 0x148   : > { %v9438_v18 = vsub.f32 %v7543_v6, %v2731_v20  ;;  %v9452_v20 = vadd.f32 1e-06, %v3043_v41  ;;  %v421_v6 = vld [vmem:[%s7900_s28 + $0x88] sm:$0xff]  ;;  %7079 = vpow2.f32 %v6333_v1  ;;  %v13996_v41 = vunpack.c.h.bf16 %v9444_v24 }
 0x149   : > { %v3175_v63 = vsel %vm9463_vm11, %v9300_v46, %v3171_v38  ;;  %vm3193_vm13 = vweird.f32 %v9434_v3 }
 0x14a   : > { %14237 = vst [vmem:[#allocation53_spill] sm:$0xff] %v9438_v18  ;;  %v2859_v35 = vmul.f32 %v9438_v18, %v9438_v18  ;;  %7081 = vrsqrt.f32 %v9452_v20  ;;  %v6335_v38 = vmul.f32 -1.442695, %v13996_v41  ;;  %v3806_v49 = vmul.f32 %v3175_v63, %v8460_v33  ;;  %v424_v63 = vld [vmem:[%s7900_s28 + $0xa0] sm:$0xff] }
 0x14b   : > { %4303 = vmatpush.bf16.msrb.mxu3 %v6640_v56 }
 0x14c   : > { %2621 = vadd.xlane.f32.xlu0 %v423_v10  ;;  %v6334_v10 = vmul.f32 -1.442695, %v13995_v37  ;;  %v3188_v37 = vmul.f32 %v9434_v3, %v3187_v55  ;;  %2936 = vadd.xlane.f32.xlu1 %v2859_v35  ;;  %v9505_v35 = vld [vmem:[%s13954_s2] ss:$0 sm:$0xff]  ;;  %v9623_v45 = vpop.f32.mrf.mxu3 }
 0x14d   : > { %2617 = vadd.xlane.f32.xlu2 %v421_v6  ;;  %v2612_v39 = vpop.xlane.xlu0 %2611  ;;  %v7074_v6 = vpop.eup %7073  ;;  %14254 = vst [vmem:[#allocation56_spill] sm:$0xff] %v9623_v45 }
 0x14e   : > { %v9481_v1 = vpop.f32.mrf.mxu1  ;;  %v2732_v46 = vmul.f32 %v8403_v40, %v2612_v39  ;;  %7083 = vpow2.f32 %v6334_v10  ;;  %v7076_v36 = vpop.eup %7075  ;;  %v9507_v55 = vadd.f32 1.0, %v7074_v6  ;;  %v7544_v10 = vld [vmem:[%s7900_s28 + $0x70] sm:$0xff]  ;;  %v6639_v6 = vld [vmem:[%s13958_s6 + $0x8] sm:$0xff]  ;;  %v9535_v56 = vmul.f32 0.5, %v3188_v37 }
 0x14f   : > { %14240 = vst [vmem:[#allocation54_spill] sm:$0xff] %v9481_v1  ;;  %v9491_v1 = vmul.f32 %v9360_v44, %v3200_v12  ;;  %v7078_v12 = vpop.eup %7077  ;;  %v9520_v33 = vadd.f32 1.0, %v7076_v36  ;;  %7085 = vpow2.f32 %v6335_v38  ;;  %v3185_v36 = vsel %vm9497_vm0, %v9344_v53, %v3181_v17  ;;  %v9552_v53 = vld [vmem:[%s13955_s3] ss:$0 sm:$0xff]  ;;  %4304 = vmatpush.bf16.msrb.mxu3 %v6639_v6 }
 0x150   : > { %v9518_v41 = vsub.f32 %v7544_v10, %v2732_v46  ;;  %v7080_v48 = vpop.eup %7079  ;;  %7087 = vrcp.f32 %v9507_v55  ;;  %v3208_v46 = vmul.f32 %v9449_v5, %v3207_v50  ;;  %v9538_v10 = vpop.f32.mrf.mxu0  ;;  %v3874_v39 = vmul.f32 %v9505_v35, %v3806_v49  ;;  %v6638_v49 = vld [vmem:[%s13958_s6] sm:$0xff] }
 0x151   : > { %7089 = vrcp.f32 %v9520_v33  ;;  %v9540_v38 = vpop.eup %7081  ;;  %v9554_v37 = vadd.f32 1.0, %v7078_v12  ;;  %v1791_v50 = vand.u32 2147483647, %v9507_v55  ;;  %v1793_v27 = vand.u32 2147483648, %v9507_v55 }
 0x152   : > { %14245 = vst [vmem:[#allocation55_spill] sm:$0xff] %v9518_v41  ;;  %v9558_v14 = vadd.f32 1.0, %v7080_v48  ;;  %v2860_v0 = vmul.f32 %v9518_v41, %v9518_v41  ;;  %v9566_v12 = vmul.f32 %v3185_v36, %v8547_v21  ;;  %v1806_v26 = vand.u32 2147483647, %v9520_v33 }
 0x153   : > { %v1808_v57 = vand.u32 2147483648, %v9520_v33  ;;  %7091 = vrcp.f32 %v9554_v37  ;;  %v9576_v6 = vmul.f32 %v9540_v38, %v9452_v20  ;;  %v9579_v36 = vperm.slane %v1940_v7, 1  ;;  %4305 = vmatpush.bf16.msrb.mxu3 %v6638_v49  ;;  %v425_v49 = vld [vmem:[%s7900_s28 + $0xa8] sm:$0xff] }
 0x154   : > { %2623 = vadd.xlane.f32.xlu0 %v424_v63  ;;  %v7084_v17 = vpop.eup %7083  ;;  %7093 = vrcp.f32 %v9558_v14  ;;  %2938 = vadd.xlane.f32.xlu1 %v2860_v0  ;;  %v9582_v43 = vadd.f32 %v9552_v53, %v3874_v39  ;;  %vm1787_vm2 = vweird.f32 %v9507_v55  ;;  %vm9588_vm3 = vcmp.eq.f32.partialorder %v1791_v50, 8.507059e+37 }
 0x155   : > { %2619 = vadd.xlane.f32.xlu2 %v422_v58  ;;  %v7086_v48 = vpop.eup %7085  ;;  %v9571_v58 = vmul.f32 0.5, %v3208_v46  ;;  %v9585_v41 = vadd.f32 1.0, %v7084_v17  ;;  %v1794_v61 = vor.u32 1.1754944e-38, %v1793_v27  ;;  %vm1802_vm4 = vweird.f32 %v9520_v33 }
 0x156   : > { %v2254_v63 = vpop.f32.mrf.mxu1  ;;  %v7088_v21 = vpop.eup %7087  ;;  %vm9594_vm5 = vcmp.eq.f32.partialorder %v1806_v26, 8.507059e+37  ;;  %v1809_v39 = vor.u32 1.1754944e-38, %v1808_v57  ;;  %v1041_v17 = vand.u32 2147483647, %v9554_v37  ;;  %vm1037_vm7 = vweird.f32 %v9554_v37 }
 0x157   : > { %v7090_v46 = vpop.eup %7089  ;;  %v1783_v13 = vmul.f32 %v7088_v21, %v9507_v55  ;;  %vm1788_vm6 = vweird.f32 %v7088_v21  ;;  %7095 = vrcp.f32 %v9585_v41  ;;  %v2255_v27 = vadd.f32 %v2254_v63, %v9579_v36 }
 0x158   : > { %v1798_v0 = vmul.f32 %v7090_v46, %v9520_v33  ;;  %vm1803_vm8 = vweird.f32 %v7090_v46  ;;  %v9603_v31 = vadd.f32 1.0, %v7086_v48  ;;  %v1043_v51 = vand.u32 2147483648, %v9554_v37  ;;  %v9608_v52 = vpop.f32.mrf.mxu0  ;;  %vm9613_vm9 = vmor %vm1787_vm2, %vm1788_vm6 }
 0x159   : > { %v1784_v23 = vsub.f32 1.0, %v1783_v13  ;;  %v7092_v50 = vpop.eup %7091  ;;  %v1056_v13 = vand.u32 2147483647, %v9558_v14  ;;  %vm9617_vm10 = vcmp.eq.f32.partialorder %v1041_v17, 8.507059e+37  ;;  %vm1052_vm11 = vweird.f32 %v9558_v14  ;;  %vm9630_vm14 = vmor %vm1802_vm4, %vm1803_vm8 }
 0x15a   : > { %v1799_v18 = vsub.f32 1.0, %v1798_v0  ;;  %v7094_v26 = vpop.eup %7093  ;;  %v1033_v57 = vmul.f32 %v7092_v50, %v9554_v37  ;;  %vm1038_vm15 = vweird.f32 %v7092_v50  ;;  %v1058_v8 = vand.u32 2147483648, %v9558_v14 }
 0x15b   : > { %v1785_v16 = vmul.f32 %v7088_v21, %v1784_v23  ;;  %v1048_v23 = vmul.f32 %v7094_v26, %v9558_v14  ;;  %vm1053_vm0 = vweird.f32 %v7094_v26  ;;  %7097 = vrcp.f32 %v9603_v31  ;;  %vm9650_vm4 = vmor %vm1037_vm7, %vm1038_vm15 }
 0x15c   : > { %v1800_v0 = vmul.f32 %v7090_v46, %v1799_v18  ;;  %v1034_v17 = vsub.f32 1.0, %v1033_v57  ;;  %2625 = vadd.xlane.f32.xlu1 %v425_v49  ;;  %v1044_v4 = vor.u32 1.1754944e-38, %v1043_v51  ;;  %vm9640_vm2 = vcmp.eq.f32.partialorder %v1056_v13, 8.507059e+37 }
 0x15d   : > { %v1786_v55 = vadd.f32 %v7088_v21, %v1785_v16  ;;  %v1049_v25 = vsub.f32 1.0, %v1048_v23  ;;  %v9636_v45 = vpop.eup %7095  ;;  %v14261_v63 = vunpack.c.l.bf16 %v9405_v22  ;;  %v1059_v37 = vor.u32 1.1754944e-38, %v1058_v8 }
 0x15e   : > { %v2256_v60 = vpop.f32.mrf.mxu1  ;;  %v1801_v54 = vadd.f32 %v7090_v46, %v1800_v0  ;;  %v1035_v33 = vmul.f32 %v7092_v50, %v1034_v17  ;;  %v1063_v51 = vmul.f32 %v9636_v45, %v9585_v41  ;;  %v4006_v18 = vadd.f32 1.0, %v2255_v27 }
 0x15f   : > { %v1790_v16 = vsel %vm9613_vm9, %v7088_v21, %v1786_v55  ;;  %v1050_v21 = vmul.f32 %v7094_v26, %v1049_v25  ;;  %v14264_v25 = vunpack.c.h.bf16 %v9405_v22  ;;  %v2257_v55 = vadd.f32 %v2256_v60, %v9579_v36  ;;  %vm9706_vm9 = vmor %vm3192_vm12, %vm3193_vm13 }
 0x160   : > { %v1795_v49 = vsel %vm9588_vm3, %v1794_v61, %v1790_v16  ;;  %v1805_v57 = vsel %vm9630_vm14, %v7090_v46, %v1801_v54  ;;  %v1036_v61 = vadd.f32 %v7092_v50, %v1035_v33  ;;  %vm9663_vm3 = vmor %vm1052_vm11, %vm1053_vm0  ;;  %v1064_v7 = vsub.f32 1.0, %v1063_v51  ;;  %v9696_v34 = vpop.f32.mrf.mxu0  ;;  %v9698_v51 = vpop.f32.mrf.mxu3 }
 0x161   : > { %v1810_v13 = vsel %vm9594_vm5, %v1809_v39, %v1805_v57  ;;  %v1874_v29 = vmul.f32 %v14261_v63, %v1795_v49  ;;  %v1051_v23 = vadd.f32 %v7094_v26, %v1050_v21  ;;  %v426_v39 = vld [vmem:[%s7900_s28 + $0xb0] sm:$0xff]  ;;  %v3875_v14 = vmul.f32 %v9505_v35, %v9566_v12  ;;  %v7098_v16 = vpop.eup %7097  ;;  %14268 = vst [vmem:[#allocation58_spill] sm:$0xff] %v9698_v51 }
 0x162   : > { %v1875_v46 = vmul.f32 %v14264_v25, %v1810_v13  ;;  %v1040_v17 = vsel %vm9650_vm4, %v7092_v50, %v1036_v61  ;;  %vm1067_vm5 = vweird.f32 %v9585_v41  ;;  %v1065_v27 = vmul.f32 %v9636_v45, %v1064_v7 }
 0x163   : > { %v1045_v8 = vsel %vm9617_vm10, %v1044_v4, %v1040_v17  ;;  %v1055_v60 = vsel %vm9663_vm3, %v7094_v26, %v1051_v23  ;;  %v14266_v12 = vunpack.c.l.bf16 %v9408_v59  ;;  %v1071_v57 = vand.u32 2147483647, %v9585_v41 }
 0x164   : > { %v9676_v33 = vpack.c.bf16 %v1875_v46, %v1874_v29  ;;  %v1060_v50 = vsel %vm9640_vm2, %v1059_v37, %v1055_v60  ;;  %v1078_v0 = vmul.f32 %v7098_v16, %v9603_v31  ;;  %2627 = vadd.xlane.f32.xlu1 %v426_v39  ;;  %v14267_v4 = vunpack.c.h.bf16 %v9408_v59  ;;  %v9731_v39 = vld [vmem:[%s7933_s15 + $0x80] sm:$0xff]  }
 0x165   : > { %v1824_v49 = vmul.f32 %v14266_v12, %v1045_v8  ;;  %v4007_v48 = vadd.f32 1.0, %v2257_v55  ;;  %vm1068_vm6 = vweird.f32 %v9636_v45  ;;  %v1073_v21 = vand.u32 2147483648, %v9585_v41 }
 0x166   : > { %14265 = vst [vmem:[#allocation57_spill] sm:$0xff] %v9676_v33  ;;  %v9682_v22 = vpop.f32.mrf.mxu1  ;;  %2239 = vmatmul.bf16.gmra.mxu3 %v9676_v33  ;;  %v1825_v26 = vmul.f32 %v14267_v4, %v1060_v50  ;;  %v1079_v13 = vsub.f32 1.0, %v1078_v0  ;;  %vm1082_vm7 = vweird.f32 %v9603_v31  ;;  %vm1083_vm8 = vweird.f32 %v7098_v16  ;;  %vm9726_vm10 = vmor %vm1067_vm5, %vm1068_vm6 }
 0x167   : > { %v1088_v63 = vand.u32 2147483648, %v9603_v31  ;;  %v3943_v61 = vadd.f32 %v9552_v53, %v3875_v14  ;;  %v1066_v54 = vadd.f32 %v9636_v45, %v1065_v27  ;;  %v1086_v37 = vand.u32 2147483647, %v9603_v31  ;;  %vm9741_vm11 = vmor %vm1082_vm7, %vm1083_vm8 }
 0x168   : > { %v9710_v29 = vpack.c.bf16 %v1825_v26, %v1824_v49  ;;  %v14271_v25 = vsub.f32 1.5, %v9535_v56  ;;  %v3218_v23 = vmul.f32 %v9540_v38, %v9576_v6  ;;  %v2086_v28 = vadd.f32 %v9538_v10, %v9542_v47  ;;  %v9775_v59 = vpop.f32.mrf.mxu3 }
 0x169   : > { %v1080_v7 = vmul.f32 %v7098_v16, %v1079_v13  ;;  %v4070_v56 = vmul.f32 %v4006_v18, %v9582_v43  ;;  %v4071_v6 = vmul.f32 %v4007_v48, %v3943_v61  ;;  %v2088_v10 = vadd.f32 %v9608_v52, %v9542_v47  ;;  %14279 = vst [vmem:[#allocation59_spill] sm:$0xff] %v9775_v59 }
 0x16a   : > { %v3191_v46 = vmul.f32 %v9434_v3, %v14271_v25  ;;  %2283 = vmatmul.bf16.gmra.mxu1 %v9710_v29  ;;  %2114 = vmatmul.bf16.gmra.mxu0 %v9710_v29  ;;  %v6721_v17 = vunpack.c.l.bf16 %v9731_v39  ;;  %vm9746_vm12 = vcmp.eq.f32.partialorder %v1071_v57, 8.507059e+37  ;;  %v1074_v43 = vor.u32 1.1754944e-38, %v1073_v21 }
 0x16b   : > { %v1081_v18 = vadd.f32 %v7098_v16, %v1080_v7  ;;  %v1089_v8 = vor.u32 1.1754944e-38, %v1088_v63  ;;  %v1070_v52 = vsel %vm9726_vm10, %v9636_v45, %v1066_v54  ;;  %vm1087_vm13 = vcmp.eq.f32.partialorder %v1086_v37, 8.507059e+37  ;;  %v2092_v63 = vpop.f32.mrf.mxu0 }
 0x16c   : > { %v6722_v31 = vunpack.c.h.bf16 %v9731_v39  ;;  %v6352_v27 = vmul.f32 -1.442695, %v6721_v17  ;;  %v3195_v50 = vsel %vm9706_vm9, %v9434_v3, %v3191_v46  ;;  %v3219_v12 = vmul.f32 0.5, %v3218_v23 }
 0x16d   : > { %v1085_v49 = vsel %vm9741_vm11, %v7098_v16, %v1081_v18  ;;  %v4135_v57 = vadd.f32 %v4071_v6, %v2088_v10  ;;  %v14278_v0 = vsel %vm9513_vm1, %v9360_v44, %v9491_v1  ;;  %v3210_v26 = vsub.f32 1.5, %v9571_v58  ;;  %v9807_v10 = vld [vmem:[%s7933_s15 + $0x88] sm:$0xff]  }
 0x16e   : > { %v2261_v60 = vpop.f32.mrf.mxu1  ;;  %7099 = vpow2.f32 %v6352_v27  ;;  %v6353_v45 = vmul.f32 -1.442695, %v6722_v31  ;;  %v3809_v4 = vmul.f32 %v14278_v0, %v8544_v42  ;;  %v1075_v3 = vsel %vm9746_vm12, %v1074_v43, %v1070_v52 }
 0x16f   : > { %v1090_v48 = vsel %vm1087_vm13, %v1089_v8, %v1085_v49  ;;  %v3044_v16 = vmul.f32 %v9363_v11, %v8403_v40  ;;  %v4134_v21 = vadd.f32 %v4070_v56, %v2086_v28  ;;  %v3808_v13 = vmul.f32 %v3195_v50, %v8522_v32 }
 0x170   : > { %7101 = vpow2.f32 %v6353_v45  ;;  %vm3212_vm14 = vweird.f32 %v9383_v9  ;;  %vm3213_vm1 = vweird.f32 %v9449_v5  ;;  %v3220_v42 = vsub.f32 1.5, %v3219_v12  ;;  %v9830_v45 = vpop.f32.mrf.mxu3 }
 0x171   : > { %v2262_v44 = vadd.f32 %v2261_v60, %v9579_v36  ;;  %v2260_v1 = vadd.f32 %v9682_v22, %v9579_v36  ;;  %v1826_v11 = vmul.f32 %v14280_v62, %v1075_v3  ;;  %v14281_v58 = vunpack.c.h.bf16 %v9444_v24  ;;  %vm9790_vm2 = vmor %vm3212_vm14, %vm3213_vm1  ;;  %14286 = vst [vmem:[#allocation60_spill] sm:$0xff] %v9830_v45 }
 0x172   : > { %v4198_v61 = vpack.c.bf16 %v4135_v57, %v4134_v21  ;;  %v3211_v54 = vmul.f32 %v9449_v5, %v3210_v26  ;;  %vm3222_vm15 = vweird.f32 %v9452_v20  ;;  %vm3223_vm0 = vweird.f32 %v9540_v38 }
 0x173   : > { %v1827_v32 = vmul.f32 %v14281_v58, %v1090_v48  ;;  %v3877_v9 = vmul.f32 %v9505_v35, %v3809_v4  ;;  %v9794_v22 = vadd.f32 1e-06, %v3044_v16  ;;  %v3876_v24 = vmul.f32 %v9505_v35, %v3808_v13  ;;  %vm9800_vm4 = vmor %vm3222_vm15, %vm3223_vm0  ;;  %v2095_v57 = vpop.f32.mrf.mxu0 }
 0x174   : > { %v7100_v37 = vpop.eup %7099  ;;  %v3221_v23 = vmul.f32 %v9540_v38, %v3220_v42  ;;  %v4009_v28 = vadd.f32 1.0, %v2262_v44  ;;  %v4008_v56 = vadd.f32 1.0, %v2260_v1  ;;  %v3215_v41 = vsel %vm9790_vm2, %v9449_v5, %v3211_v54 }
 0x175   : > { %v9798_v55 = vadd.f32 1.0, %v7100_v37  ;;  %v9804_v6 = vpack.c.bf16 %v1827_v32, %v1826_v11  ;;  %v3945_v14 = vadd.f32 %v9552_v53, %v3877_v9  ;;  %v3944_v18 = vadd.f32 %v9552_v53, %v3876_v24 }
 0x176   : > { %v2264_v46 = vpop.f32.mrf.mxu1  ;;  %v7102_v20 = vpop.eup %7101  ;;  %4306 = vmatmul.bf16.vlgmr.msrb.gmra.mxu3 %v4198_v61  ;;  %v6725_v8 = vunpack.c.l.bf16 %v9807_v10  ;;  %v6726_v52 = vunpack.c.h.bf16 %v9807_v10  ;;  %v3225_v60 = vsel %vm9800_vm4, %v9540_v38, %v3221_v23  ;;  %v2093_v5 = vadd.f32 %v2092_v63, %v9542_v47 }
 0x177   : > { %v9813_v43 = vadd.f32 1.0, %v7102_v20  ;;  %7103 = vrcp.f32 %v9798_v55  ;;  %v4073_v27 = vmul.f32 %v4009_v28, %v3945_v14  ;;  %v4072_v50 = vmul.f32 %v4008_v56, %v3944_v18 }
 0x178   : > { %7105 = vrsqrt.f32 %v9794_v22  ;;  %v2091_v12 = vadd.f32 %v9696_v34, %v9542_v47  ;;  %v3810_v49 = vmul.f32 %v3215_v41, %v8535_v19  ;;  %v6354_v38 = vmul.f32 -1.442695, %v6725_v8  ;;  %v9859_v41 = vpop.f32.mrf.mxu3 }
 0x179   : > { %7107 = vrcp.f32 %v9813_v43  ;;  %v6355_v0 = vmul.f32 -1.442695, %v6726_v52  ;;  %v3811_v26 = vmul.f32 %v3225_v60, %v8645_v2  ;;  %v4137_v3 = vadd.f32 %v4073_v27, %v2093_v5  ;;  %14289 = vst [vmem:[#allocation61_spill] sm:$0xff] %v9859_v41 }
 0x17a   : > { %2288 = vmatmul.bf16.gmra.mxu1 %v9804_v6  ;;  %2119 = vmatmul.bf16.gmra.mxu0 %v9804_v6  ;;  %7109 = vpow2.f32 %v6354_v38  ;;  %v4136_v16 = vadd.f32 %v4072_v50, %v2091_v12  ;;  %v3878_v19 = vmul.f32 %v9505_v35, %v3810_v49  ;;  %v2265_v63 = vadd.f32 %v2264_v46, %v9579_v36 }
 0x17b   : > { %7111 = vpow2.f32 %v6355_v0  ;;  %vm1337_vm3 = vweird.f32 %v9798_v55  ;;  %v1341_v42 = vand.u32 2147483647, %v9798_v55  ;;  %v1343_v44 = vand.u32 2147483648, %v9798_v55  ;;  %v2097_v56 = vpop.f32.mrf.mxu0 }
 0x17c   : > { %v4199_v11 = vpack.c.bf16 %v4137_v3, %v4136_v16  ;;  %v3879_v58 = vmul.f32 %v9505_v35, %v3811_v26  ;;  %vm1352_vm6 = vweird.f32 %v9813_v43  ;;  %v1358_v32 = vand.u32 2147483648, %v9813_v43 }
 0x17d   : > { %v7104_v4 = vpop.eup %7103  ;;  %v1356_v37 = vand.u32 2147483647, %v9813_v43  ;;  %v4010_v24 = vadd.f32 1.0, %v2265_v63  ;;  %v1344_v23 = vor.u32 1.1754944e-38, %v1343_v44  ;;  %vm1342_vm9 = vcmp.eq.f32.partialorder %v1341_v42, 8.507059e+37 }
 0x17e   : > { %v2266_v48 = vpop.f32.mrf.mxu1  ;;  %v9837_v34 = vpop.eup %7105  ;;  %v1333_v21 = vmul.f32 %v7104_v4, %v9798_v55  ;;  %vm1338_vm5 = vweird.f32 %v7104_v4  ;;  %v3946_v60 = vadd.f32 %v9552_v53, %v3878_v19  ;;  %v1359_v27 = vor.u32 1.1754944e-38, %v1358_v32 }
 0x17f   : > { %v7108_v13 = vpop.eup %7107  ;;  %v2267_v2 = vadd.f32 %v2266_v48, %v9579_v36  ;;  %v3227_v25 = vmul.f32 %v9837_v34, %v9794_v22  ;;  %vm9855_vm8 = vmor %vm1337_vm3, %vm1338_vm5  ;;  %v3947_v50 = vadd.f32 %v9552_v53, %v3879_v58  ;;  %vm1357_vm11 = vcmp.eq.f32.partialorder %v1356_v37, 8.507059e+37 }
 0x180   : > { %v1334_v1 = vsub.f32 1.0, %v1333_v21  ;;  %v1348_v62 = vmul.f32 %v7108_v13, %v9813_v43  ;;  %v7110_v61 = vpop.eup %7109  ;;  %vm1353_vm7 = vweird.f32 %v7108_v13  ;;  %v2096_v38 = vadd.f32 %v2095_v57, %v9542_v47  ;;  %v9879_v21 = vld [vmem:[%s7933_s15 + $0x90] sm:$0xff]   ;;  %v9894_v58 = vpop.f32.mrf.mxu3 }
 0x181   : > { %v822_v28 = vadd.f32 1.0, %v7110_v61  ;;  %v7112_v20 = vpop.eup %7111  ;;  %v4011_v7 = vadd.f32 1.0, %v2267_v2  ;;  %vm9865_vm10 = vmor %vm1352_vm6, %vm1353_vm7  ;;  %v2098_v43 = vadd.f32 %v2097_v56, %v9542_v47  ;;  %v4074_v26 = vmul.f32 %v4010_v24, %v3946_v60  ;;  %14293 = vst [vmem:[#allocation63_spill] sm:$0xff] %v9894_v58 }
 0x182   : > { %v1335_v54 = vmul.f32 %v7104_v4, %v1334_v1  ;;  %v1349_v9 = vsub.f32 1.0, %v1348_v62  ;;  %v823_v5 = vadd.f32 1.0, %v7112_v20  ;;  %v6729_v57 = vunpack.c.l.bf16 %v9879_v21 }
 0x183   : > { %7113 = vrcp.f32 %v822_v28  ;;  %v4075_v3 = vmul.f32 %v4011_v7, %v3947_v50  ;;  %v6730_v63 = vunpack.c.h.bf16 %v9879_v21  ;;  %v3228_v44 = vmul.f32 %v9837_v34, %v3227_v25 }
 0x184   : > { %v1336_v14 = vadd.f32 %v7104_v4, %v1335_v54  ;;  %v1350_v18 = vmul.f32 %v7108_v13, %v1349_v9  ;;  %7115 = vrcp.f32 %v823_v5  ;;  %v4138_v2 = vadd.f32 %v4074_v26, %v2096_v38 }
 0x185   : > { %vm1367_vm12 = vweird.f32 %v822_v28  ;;  %v6356_v39 = vmul.f32 -1.442695, %v6729_v57  ;;  %v1371_v61 = vand.u32 2147483647, %v822_v28  ;;  %vm1382_vm14 = vweird.f32 %v823_v5 }
 0x186   : > { %4311 = vmatmul.bf16.gmra.mxu3 %v4199_v11  ;;  %v1340_v12 = vsel %vm9855_vm8, %v7104_v4, %v1336_v14  ;;  %v1351_v49 = vadd.f32 %v7108_v13, %v1350_v18  ;;  %v1373_v11 = vand.u32 2147483648, %v822_v28  ;;  %v1386_v9 = vand.u32 2147483647, %v823_v5 }
 0x187   : > { %v1345_v0 = vsel %vm1342_vm9, %v1344_v23, %v1340_v12  ;;  %v1388_v37 = vand.u32 2147483648, %v823_v5  ;;  %7117 = vpow2.f32 %v6356_v39  ;;  %v3229_v46 = vmul.f32 0.5, %v3228_v44 }
 0x188   : > { %v1355_v48 = vsel %vm9865_vm10, %v7108_v13, %v1351_v49  ;;  %v1844_v16 = vmul.f32 %v6721_v17, %v1345_v0  ;;  %v4139_v13 = vadd.f32 %v4075_v3, %v2098_v43  ;;  %v1374_v23 = vor.u32 1.1754944e-38, %v1373_v11  ;;  %v9907_v3 = vld [vmem:[%s7933_s15 + $0x98] sm:$0xff]  }
 0x189   : > { %v1360_v19 = vsel %vm1357_vm11, %v1359_v27, %v1355_v48  ;;  %v7114_v42 = vpop.eup %7113  ;;  %vm1372_vm0 = vcmp.eq.f32.partialorder %v1371_v61, 8.507059e+37  ;;  %v1389_v14 = vor.u32 1.1754944e-38, %v1388_v37  ;;  %vm1387_vm4 = vcmp.eq.f32.partialorder %v1386_v9, 8.507059e+37 }
 0x18a   : > { %v1845_v4 = vmul.f32 %v6722_v31, %v1360_v19  ;;  %2293 = vmatmul.bf16.gmra.mxu1 %v8082_v15  ;;  %v1363_v17 = vmul.f32 %v7114_v42, %v822_v28  ;;  %v7116_v62 = vpop.eup %7115  ;;  %v6357_v31 = vmul.f32 -1.442695, %v6730_v63  ;;  %vm1368_vm13 = vweird.f32 %v7114_v42 }
 0x18b   : > { %v1378_v54 = vmul.f32 %v7116_v62, %v823_v5  ;;  %vm1383_vm1 = vweird.f32 %v7116_v62  ;;  %vm1369_vm15 = vmor %vm1367_vm12, %vm1368_vm13  ;;  %v4200_v20 = vpack.c.bf16 %v4139_v13, %v4138_v2  ;;  %v3230_v12 = vsub.f32 1.5, %v3229_v46  ;;  %v9902_v5 = vpop.f32.mrf.mxu3 }
 0x18c   : > { %v9887_v1 = vpack.c.bf16 %v1845_v4, %v1844_v16  ;;  %v1364_v32 = vsub.f32 1.0, %v1363_v17  ;;  %7119 = vpow2.f32 %v6357_v31  ;;  %vm1384_vm2 = vmor %vm1382_vm14, %vm1383_vm1  ;;  %vm3232_vm3 = vweird.f32 %v9794_v22  ;;  %14294 = vst [vmem:[#allocation64_spill] sm:$0xff] %v9902_v5  ;;  %v432_v5 = vld [vmem:[%s7900_s28 + $0xe0] sm:$0xff] }
 0x18d   : > { %v1379_v24 = vsub.f32 1.0, %v1378_v54  ;;  %v7118_v55 = vpop.eup %7117  ;;  %vm3233_vm5 = vweird.f32 %v9837_v34  ;;  %v3231_v48 = vmul.f32 %v9837_v34, %v3230_v12  ;;  %v6733_v22 = vunpack.c.l.bf16 %v9907_v3 }
 0x18e   : > { %14292 = vst [vmem:[#allocation62_spill] sm:$0xff] %v9887_v1  ;;  %2164 = vmatmul.bf16.vlgmr.msra.gmra.mxu2 %v9887_v1  ;;  %v1365_v25 = vmul.f32 %v7114_v42, %v1364_v32  ;;  %v824_v38 = vadd.f32 1.0, %v7118_v55  ;;  %vm9913_vm6 = vmor %vm3232_vm3, %vm3233_vm5  ;;  %v6734_v19 = vunpack.c.h.bf16 %v9907_v3  ;;  %v2269_v32 = vpop.f32.mrf.mxu1 }
 0x18f   : > { %v1380_v56 = vmul.f32 %v7116_v62, %v1379_v24  ;;  %v6358_v17 = vmul.f32 -1.442695, %v6733_v22 }
 0x190   : > { %v1366_v7 = vadd.f32 %v7114_v42, %v1365_v25  ;;  %7121 = vrcp.f32 %v824_v38  ;;  %vm1397_vm7 = vweird.f32 %v824_v38  ;;  %v1401_v11 = vand.u32 2147483647, %v824_v38  ;;  %v14299_v25 = vld [vmem:[#allocation17_spill] sm:$0xff] }
 0x191   : > { %v1381_v60 = vadd.f32 %v7116_v62, %v1380_v56  ;;  %v1403_v39 = vand.u32 2147483648, %v824_v38  ;;  %v2270_v56 = vadd.f32 %v2269_v32, %v9579_v36 }
 0x192   : > { %v1370_v18 = vsel %vm1369_vm15, %v7114_v42, %v1366_v7  ;;  %v7120_v50 = vpop.eup %7119  ;;  %v3235_v42 = vsel %vm9913_vm6, %v9837_v34, %v3231_v48  ;;  %vm1402_vm12 = vcmp.eq.f32.partialorder %v1401_v11, 8.507059e+37  ;;  %v2100_v48 = vpop.f32.mrf.mxu0  ;;  %v14304_v11 = vld [vmem:[#allocation12_spill] sm:$0xff] }
 0x193   : > { %v1375_v27 = vsel %vm1372_vm0, %v1374_v23, %v1370_v18  ;;  %v1385_v49 = vsel %vm1384_vm2, %v7116_v62, %v1381_v60  ;;  %v825_v0 = vadd.f32 1.0, %v7120_v50  ;;  %v6359_v62 = vmul.f32 -1.442695, %v6734_v19  ;;  %v9931_v61 = vpop.f32.mrf.mxu3 }
 0x194   : > { %v1846_v28 = vmul.f32 %v6725_v8, %v1375_v27  ;;  %v1390_v43 = vsel %vm1387_vm4, %v1389_v14, %v1385_v49  ;;  %14298 = vst [vmem:[#allocation66_spill] sm:$0xff] %v9931_v61  ;;  %v3812_v24 = vmul.f32 %v3235_v42, %v14299_v25  ;;  %v2101_v21 = vadd.f32 %v2100_v48, %v9542_v47 }
 0x195   : > { %v1847_v26 = vmul.f32 %v6726_v52, %v1390_v43  ;;  %7123 = vrcp.f32 %v825_v0  ;;  %vm1412_vm9 = vweird.f32 %v825_v0  ;;  %v1416_v9 = vand.u32 2147483647, %v825_v0 }
 0x196   : > { %4316 = vmatmul.bf16.gmra.mxu3 %v4200_v20  ;;  %v7122_v4 = vpop.eup %7121  ;;  %v1418_v37 = vand.u32 2147483648, %v825_v0  ;;  %v1404_v20 = vor.u32 1.1754944e-38, %v1403_v39  ;;  %v3880_v50 = vmul.f32 %v9505_v35, %v3812_v24  ;;  %v2271_v8 = vpop.f32.mrf.mxu1 }
 0x197   : > { %v9910_v16 = vpack.c.bf16 %v1847_v26, %v1846_v28  ;;  %v1393_v13 = vmul.f32 %v7122_v4, %v824_v38  ;;  %vm1398_vm8 = vweird.f32 %v7122_v4  ;;  %vm1417_vm14 = vcmp.eq.f32.partialorder %v1416_v9, 8.507059e+37 }
 0x198   : > { %vm9935_vm11 = vmor %vm1397_vm7, %vm1398_vm8  ;;  %v1419_v60 = vor.u32 1.1754944e-38, %v1418_v37  ;;  %v4012_v26 = vadd.f32 1.0, %v2270_v56 }
 0x199   : > { %14295 = vst [vmem:[#allocation65_spill] sm:$0xff] %v9910_v16  ;;  %v1394_v34 = vsub.f32 1.0, %v1393_v13 }
 0x19a   : > { %2298 = vmatmul.bf16.gmra.mxu1 %v8132_v30  ;;  %v2102_v18 = vpop.f32.mrf.mxu0 }
 0x19b   : > { %v7124_v44 = vpop.eup %7123  ;;  %v1395_v46 = vmul.f32 %v7122_v4, %v1394_v34  ;;  %v9964_v34 = vpop.f32.mrf.mxu3 }
 0x19c   : > { %v1408_v31 = vmul.f32 %v7124_v44, %v825_v0  ;;  %vm1413_vm10 = vweird.f32 %v7124_v44  ;;  %14305 = vst [vmem:[#allocation17_spill] sm:$0xff] %v9964_v34 }
 0x19d   : > { %v1396_v14 = vadd.f32 %v7122_v4, %v1395_v46  ;;  %vm9941_vm13 = vmor %vm1412_vm9, %vm1413_vm10 }
 0x19e   : > { %2169 = vmatmul.bf16.gmra.mxu2 %v9910_v16  ;;  %v1409_v54 = vsub.f32 1.0, %v1408_v31 }
 0x19f   : > { %v2925_v10 = vpop.xlane.xlu1 %2924  ;;  %v1400_v12 = vsel %vm9935_vm11, %v7122_v4, %v1396_v14 }
 0x1a0   : > { %v3045_v52 = vmul.f32 %v2925_v10, %v8403_v40  ;;  %v1410_v7 = vmul.f32 %v7124_v44, %v1409_v54  ;;  %v1405_v38 = vsel %vm1402_vm12, %v1404_v20, %v1400_v12 }
 0x1a1   : > { %v1848_v42 = vmul.f32 %v6729_v57, %v1405_v38  ;;  %v14307_v38 = vld [vmem:[#allocation41_spill] sm:$0xff] }
 0x1a2   : > { %v9924_v2 = vadd.f32 1e-06, %v3045_v52  ;;  %v1411_v55 = vadd.f32 %v7124_v44, %v1410_v7 }
 0x1a4   : > { %7125 = vrsqrt.f32 %v9924_v2  ;;  %v1415_v43 = vsel %vm9941_vm13, %v7124_v44, %v1411_v55  ;;  %v3948_v44 = vadd.f32 %v9552_v53, %v3880_v50  ;;  %vm3242_vm15 = vweird.f32 %v9924_v2 }
 0x1a5   : > { %7127 = vpow2.f32 %v6358_v17  ;;  %v1420_v52 = vsel %vm1417_vm14, %v1419_v60, %v1415_v43 }
 0x1a6   : > { %7129 = vpow2.f32 %v6359_v62  ;;  %v1849_v4 = vmul.f32 %v6730_v63, %v1420_v52  ;;  %v4076_v57 = vmul.f32 %v4012_v26, %v3948_v44  ;;  %v2272_v63 = vadd.f32 %v2271_v8, %v9579_v36  ;;  %v7545_v26 = vld [vmem:[%s7900_s28 + $0x78] sm:$0xff] }
 0x1a7   : > { %v2927_v28 = vpop.xlane.xlu1 %2926 }
 0x1a8   : > { %v3046_v10 = vmul.f32 %v2927_v28, %v8403_v40  ;;  %v9966_v54 = vpack.c.bf16 %v1849_v4, %v1848_v42  ;;  %v9981_v14 = vadd.f32 %v4076_v57, %v2101_v21 }
 0x1aa   : > { %v7126_v27 = vpop.eup %7125  ;;  %2303 = vmatmul.bf16.gmra.mxu1 %v14304_v11  ;;  %v9960_v39 = vadd.f32 1e-06, %v3046_v10  ;;  %14306 = vst [vmem:[#allocation12_spill] sm:$0xff] %v9966_v54  ;;  %v10003_v10 = vadd.f32 %v2102_v18, %v9542_v47 }
 0x1ab   : > { %v3237_v49 = vmul.f32 %v7126_v27, %v9924_v2  ;;  %v7128_v0 = vpop.eup %7127  ;;  %vm3243_vm1 = vweird.f32 %v7126_v27 }
 0x1ac   : > { %v7130_v13 = vpop.eup %7129  ;;  %v9956_v62 = vadd.f32 1.0, %v7128_v0  ;;  %vm3244_vm0 = vmor %vm3242_vm15, %vm3243_vm1  ;;  %v2274_v0 = vpop.f32.mrf.mxu1  ;;  %vm3252_vm11 = vweird.f32 %v9960_v39 }
 0x1ad   : > { %v3238_v17 = vmul.f32 %v7126_v27, %v3237_v49  ;;  %v9962_v31 = vadd.f32 1.0, %v7130_v13  ;;  %v9987_v49 = vadd.f32 1.0, %v2272_v63  ;;  %v10006_v52 = vadd.f32 %v2274_v0, %v9579_v36 }
 0x1ae   : > { %7131 = vrcp.f32 %v9956_v62  ;;  %2174 = vmatmul.bf16.gmra.mxu2 %v9966_v54  ;;  %v1431_v55 = vand.u32 2147483647, %v9956_v62  ;;  %v1433_v2 = vand.u32 2147483648, %v9956_v62  ;;  %vm1427_vm2 = vweird.f32 %v9956_v62 }
 0x1af   : > { %v3239_v32 = vmul.f32 0.5, %v3238_v17  ;;  %7133 = vrsqrt.f32 %v9960_v39  ;;  %v2933_v37 = vpop.xlane.xlu0 %2932  ;;  %v2614_v7 = vpop.xlane.xlu1 %2613  ;;  %vm1442_vm3 = vweird.f32 %v9962_v31 }
 0x1b0   : > { %v2929_v9 = vpop.xlane.xlu2 %2928  ;;  %v3049_v46 = vmul.f32 %v2933_v37, %v8403_v40  ;;  %7135 = vrcp.f32 %v9962_v31  ;;  %v2733_v60 = vmul.f32 %v8403_v40, %v2614_v7  ;;  %vm10013_vm4 = vcmp.eq.f32.partialorder %v1431_v55, 8.507059e+37 }
 0x1b1   : > { %v3240_v25 = vsub.f32 1.5, %v3239_v32  ;;  %v3047_v24 = vmul.f32 %v2929_v9, %v8403_v40  ;;  %v1446_v9 = vand.u32 2147483647, %v9962_v31 }
 0x1b2   : > { %v9979_v56 = vadd.f32 1e-06, %v3049_v46  ;;  %v9995_v48 = vsub.f32 %v7545_v26, %v2733_v60  ;;  %v1434_v46 = vor.u32 1.1754944e-38, %v1433_v2 }
 0x1b3   : > { %v3241_v23 = vmul.f32 %v7126_v27, %v3240_v25  ;;  %v9977_v20 = vadd.f32 1e-06, %v3047_v24  ;;  %v10024_v25 = vpop.f32.mrf.mxu3  ;;  %vm10076_vm13 = vcmp.eq.f32.partialorder %v1446_v9, 8.507059e+37 }
 0x1b4   : > { %v9985_v50 = vpop.eup %7131  ;;  %v2861_v13 = vmul.f32 %v9995_v48, %v9995_v48  ;;  %14310 = vst [vmem:[#allocation41_spill] sm:$0xff] %v10024_v25  ;;  %vm3282_vm15 = vweird.f32 %v9979_v56  ;;  %v430_v25 = vld [vmem:[%s7900_s28 + $0xd0] sm:$0xff] }
 0x1b5   : > { %v3245_v12 = vsel %vm3244_vm0, %v7126_v27, %v3241_v23  ;;  %7137 = vrsqrt.f32 %v9977_v20  ;;  %v9991_v28 = vpop.eup %7133  ;;  %v1423_v8 = vmul.f32 %v9985_v50, %v9956_v62  ;;  %v1448_v23 = vand.u32 2147483648, %v9962_v31  ;;  %v14324_v62 = vld [vmem:[#allocation47_spill] sm:$0xff] }
 0x1b6   : > { %v3813_v43 = vmul.f32 %v3245_v12, %v14307_v38  ;;  %7139 = vrsqrt.f32 %v9979_v56  ;;  %v3247_v27 = vmul.f32 %v9991_v28, %v9960_v39  ;;  %v10009_v42 = vpop.eup %7135  ;;  %2940 = vadd.xlane.f32.xlu2 %v2861_v13  ;;  %vm3262_vm5 = vweird.f32 %v9977_v20 }
 0x1b7   : > { %v2935_v17 = vpop.xlane.xlu0 %2934  ;;  %v1424_v4 = vsub.f32 1.0, %v1423_v8  ;;  %v1438_v63 = vmul.f32 %v10009_v42, %v9962_v31  ;;  %v2616_v60 = vpop.xlane.xlu1 %2615  ;;  %vm1428_vm6 = vweird.f32 %v9985_v50  ;;  %vm3253_vm7 = vweird.f32 %v9991_v28 }
 0x1b8   : > { %v3248_v32 = vmul.f32 %v9991_v28, %v3247_v27  ;;  %v2931_v57 = vpop.xlane.xlu2 %2930  ;;  %v3050_v21 = vmul.f32 %v2935_v17, %v8403_v40  ;;  %v3881_v37 = vmul.f32 %v9505_v35, %v3813_v43  ;;  %v2734_v8 = vmul.f32 %v8403_v40, %v2616_v60  ;;  %v14311_v27 = vld [vmem:[#allocation13_spill] sm:$0xff]  ;;  %vm10062_vm9 = vmor %vm1427_vm2, %vm1428_vm6 }
 0x1b9   : > { %v3048_v24 = vmul.f32 %v2931_v57, %v8403_v40  ;;  %v1425_v2 = vmul.f32 %v9985_v50, %v1424_v4  ;;  %v1439_v43 = vsub.f32 1.0, %v1438_v63  ;;  %vm1443_vm8 = vweird.f32 %v10009_v42  ;;  %vm10088_vm14 = vmor %vm3252_vm11, %vm3253_vm7 }
 0x1ba   : > { %v3249_v18 = vmul.f32 0.5, %v3248_v32  ;;  %v10031_v55 = vadd.f32 1e-06, %v3050_v21  ;;  %2308 = vmatmul.bf16.gmra.mxu1 %v14311_v27  ;;  %v3949_v13 = vadd.f32 %v9552_v53, %v3881_v37  ;;  %v10048_v32 = vpop.f32.mrf.mxu0  ;;  %v7546_v21 = vld [vmem:[%s7900_s28 + $0x80] sm:$0xff]  ;;  %vm10072_vm12 = vmor %vm1442_vm3, %vm1443_vm8 }
 0x1bb   : > { %v10028_v7 = vpop.eup %7137  ;;  %v10038_v38 = vadd.f32 1e-06, %v3048_v24  ;;  %v10055_v63 = vsub.f32 %v7546_v21, %v2734_v8  ;;  %v2276_v24 = vpop.f32.mrf.mxu1  ;;  %v1440_v60 = vmul.f32 %v10009_v42, %v1439_v43 }
 0x1bc   : > { %v10034_v12 = vpop.eup %7139  ;;  %v3257_v35 = vmul.f32 %v10028_v7, %v9977_v20  ;;  %v3250_v0 = vsub.f32 1.5, %v3249_v18  ;;  %vm3263_vm10 = vweird.f32 %v10028_v7  ;;  %v1426_v18 = vadd.f32 %v9985_v50, %v1425_v2 }
 0x1bd   : > { %v3277_v26 = vmul.f32 %v10034_v12, %v9979_v56  ;;  %7141 = vrsqrt.f32 %v10038_v38  ;;  %v4077_v39 = vmul.f32 %v9987_v49, %v3949_v13  ;;  %v1441_v43 = vadd.f32 %v10009_v42, %v1440_v60  ;;  %vm10103_vm1 = vmor %vm3262_vm5, %vm3263_vm10  ;;  %v7547_v49 = vld [vmem:[%s7900_s28 + $0x98] sm:$0xff] }
 0x1be   : > { %v3258_v17 = vmul.f32 %v10028_v7, %v3257_v35  ;;  %v3251_v4 = vmul.f32 %v9991_v28, %v3250_v0  ;;  %7143 = vrsqrt.f32 %v10031_v55  ;;  %v1449_v0 = vor.u32 1.1754944e-38, %v1448_v23 }
 0x1bf   : > { %v3278_v57 = vmul.f32 %v10034_v12, %v3277_v26  ;;  %v2862_v26 = vmul.f32 %v10055_v63, %v10055_v63  ;;  %v2622_v2 = vpop.xlane.xlu0 %2621  ;;  %v1430_v23 = vsel %vm10062_vm9, %v9985_v50, %v1426_v18  ;;  %v2937_v53 = vpop.xlane.xlu1 %2936  ;;  %v1445_v20 = vsel %vm10072_vm12, %v10009_v42, %v1441_v43  ;;  %v14323_v42 = vld [vmem:[#allocation43_spill] sm:$0xff] }
 0x1c0   : > { %v3259_v37 = vmul.f32 0.5, %v3258_v17  ;;  %v2618_v8 = vpop.xlane.xlu2 %2617  ;;  %v10083_v17 = vld [vmem:[%s7933_s15 + $0xa0] sm:$0xff]   ;;  %v3255_v21 = vsel %vm10088_vm14, %v9991_v28, %v3251_v4  ;;  %v1435_v50 = vsel %vm10013_vm4, %v1434_v46, %v1430_v23  ;;  %v10113_v4 = vpop.f32.mrf.mxu3  ;;  %v2737_v60 = vmul.f32 %v8403_v40, %v2622_v2 }
 0x1c1   : > { %v3279_v13 = vmul.f32 0.5, %v3278_v57  ;;  %2942 = vadd.xlane.f32.xlu2 %v2862_v26  ;;  %14322 = vst [vmem:[#allocation13_spill] sm:$0xff] %v10113_v4  ;;  %v14024_v57 = vunpack.c.l.bf16 %v10083_v17  ;;  %v1450_v46 = vsel %vm10076_vm13, %v1449_v0, %v1445_v20  ;;  %v1850_v26 = vmul.f32 %v6733_v22, %v1435_v50 }
 0x1c2   : > { %v3260_v9 = vsub.f32 1.5, %v3259_v37  ;;  %v2277_v37 = vadd.f32 %v2276_v24, %v9579_v36  ;;  %v2735_v35 = vmul.f32 %v8403_v40, %v2618_v8  ;;  %v3814_v31 = vmul.f32 %v3255_v21, %v14323_v42  ;;  %v2107_v21 = vpop.f32.mrf.mxu0 }
 0x1c3   : > { %v10110_v18 = vpop.eup %7141  ;;  %v4141_v23 = vadd.f32 %v4077_v39, %v10003_v10  ;;  %v3280_v43 = vsub.f32 1.5, %v3279_v13  ;;  %v1851_v8 = vmul.f32 %v6734_v19, %v1450_v46  ;;  %vm3283_vm0 = vweird.f32 %v10034_v12  ;;  %v427_v10 = vld [vmem:[%s7900_s28 + $0xb8] sm:$0xff]  ;;  %v10150_v39 = vld [vmem:[%s13954_s2] ss:$0 sm:$0xff] }
 0x1c4   : > { %v3261_v28 = vmul.f32 %v10028_v7, %v3260_v9  ;;  %v10120_v24 = vpop.eup %7143  ;;  %v3267_v44 = vmul.f32 %v10110_v18, %v10038_v38  ;;  %v10144_v50 = vsub.f32 %v7547_v49, %v2737_v60  ;;  %v4015_v46 = vadd.f32 1.0, %v2277_v37  ;;  %v2279_v60 = vpop.f32.mrf.mxu1  ;;  %vm10171_vm3 = vmor %vm3282_vm15, %vm3283_vm0 }
 0x1c5   : > { %v3287_v9 = vmul.f32 %v10120_v24, %v10031_v55  ;;  %v10153_v19 = vpack.c.bf16 %v1851_v8, %v1850_v26  ;;  %vm3272_vm2 = vweird.f32 %v10038_v38  ;;  %v3051_v42 = vmul.f32 %v2937_v53, %v8403_v40  ;;  %v10178_v53 = vld [vmem:[%s13955_s3] ss:$0 sm:$0xff] }
 0x1c6   : > { %v3265_v2 = vsel %vm10103_vm1, %v10028_v7, %v3261_v28  ;;  %v3268_v22 = vmul.f32 %v10110_v18, %v3267_v44  ;;  %v7549_v28 = vld [vmem:[%s7900_s28 + $0x88] sm:$0xff]  ;;  %v3882_v44 = vmul.f32 %v10150_v39, %v3814_v31  ;;  %vm3273_vm4 = vweird.f32 %v10110_v18 }
 0x1c7   : > { %v3815_v0 = vmul.f32 %v3265_v2, %v14324_v62  ;;  %v3288_v7 = vmul.f32 %v10120_v24, %v3287_v9  ;;  %14325 = vst [vmem:[#allocation43_spill] sm:$0xff] %v10153_v19  ;;  %v10156_v20 = vsub.f32 %v7549_v28, %v2735_v35  ;;  %v3281_v2 = vmul.f32 %v10034_v12, %v3280_v43  ;;  %v10165_v62 = vpop.xlane.xlu1 %2938  ;;  %vm10197_vm5 = vmor %vm3272_vm2, %vm3273_vm4  ;;  %v2624_v28 = vpop.xlane.xlu0 %2623 }
 0x1c8   : > { %v3269_v3 = vmul.f32 0.5, %v3268_v22  ;;  %2179 = vmatmul.bf16.gmra.mxu2 %v10153_v19  ;;  %v4201_v26 = vpack.c.bf16 %v4141_v23, %v9981_v14  ;;  %v2620_v35 = vpop.xlane.xlu2 %2619  ;;  %v10181_v23 = vadd.f32 1e-06, %v3051_v42  ;;  %v2865_v56 = vmul.f32 %v10144_v50, %v10144_v50 }
 0x1c9   : > { %v3883_v13 = vmul.f32 %v10150_v39, %v3815_v0  ;;  %2629 = vadd.xlane.f32.xlu2 %v427_v10  ;;  %v3289_v14 = vmul.f32 0.5, %v3288_v7  ;;  %v2863_v0 = vmul.f32 %v10156_v20, %v10156_v20  ;;  %v14025_v22 = vunpack.c.h.bf16 %v10083_v17  ;;  %v14333_v10 = vld [vmem:[#allocation50_spill] sm:$0xff] }
 0x1ca   : > { %v3270_v9 = vsub.f32 1.5, %v3269_v3  ;;  %4321 = vmatmul.bf16.gmra.mxu3 %v4201_v26  ;;  %v6360_v8 = vmul.f32 -1.442695, %v14024_v57  ;;  %v3950_v49 = vadd.f32 %v10178_v53, %v3882_v44  ;;  %v4014_v7 = vadd.f32 1.0, %v10006_v52  ;;  %v14331_v44 = vld [vmem:[#allocation14_spill] sm:$0xff]  ;;  %2948 = vadd.xlane.f32.xlu1 %v2865_v56 }
 0x1cb   : > { %v3951_v31 = vadd.f32 %v10178_v53, %v3883_v13  ;;  %v10201_v13 = vpop.f32.mrf.mxu3  ;;  %7145 = vrsqrt.f32 %v10181_v23  ;;  %2944 = vadd.xlane.f32.xlu0 %v2863_v0  ;;  %v2736_v3 = vmul.f32 %v8403_v40, %v2620_v35  ;;  %2313 = vmatmul.bf16.gmra.mxu1 %v14331_v44  ;;  %v3285_v52 = vsel %vm10171_vm3, %v10034_v12, %v3281_v2  ;;  %v7551_v26 = vld [vmem:[%s7900_s28 + $0x90] sm:$0xff]  ;;  %v428_v12 = vld [vmem:[%s7900_s28 + $0xc0] sm:$0xff] }
 0x1cc   : > { %v3271_v43 = vmul.f32 %v10110_v18, %v3270_v9  ;;  %14330 = vst [vmem:[#allocation47_spill] sm:$0xff] %v10201_v13  ;;  %v3290_v42 = vsub.f32 1.5, %v3289_v14  ;;  %v2108_v9 = vadd.f32 %v2107_v21, %v9542_v47  ;;  %v2738_v0 = vmul.f32 %v8403_v40, %v2624_v28  ;;  %v2110_v14 = vpop.f32.mrf.mxu0  ;;  %v10235_v28 = vld [vmem:[%s7933_s15 + $0xa8] sm:$0xff]  }
 0x1cd   : > { %v4079_v38 = vmul.f32 %v4015_v46, %v3951_v31  ;;  %v10211_v57 = vsub.f32 %v7551_v26, %v2736_v3  ;;  %7147 = vpow2.f32 %v6360_v8  ;;  %v6361_v37 = vmul.f32 -1.442695, %v14025_v22  ;;  %v14332_v46 = vld [vmem:[#allocation46_spill] sm:$0xff]  ;;  %v2281_v3 = vpop.f32.mrf.mxu1  ;;  %v14338_v13 = vld [vmem:[#allocation49_spill] sm:$0xff] }
 0x1ce   : > { %v3275_v35 = vsel %vm10197_vm5, %v10110_v18, %v3271_v43  ;;  %v4078_v2 = vmul.f32 %v4014_v7, %v3950_v49  ;;  %v3817_v31 = vmul.f32 %v3285_v52, %v14332_v46  ;;  %v2106_v21 = vadd.f32 %v10048_v32, %v9542_v47  ;;  %v7552_v18 = vld [vmem:[%s7900_s28 + $0xa0] sm:$0xff] }
 0x1cf   : > { %vm3292_vm6 = vweird.f32 %v10031_v55  ;;  %vm3293_vm7 = vweird.f32 %v10120_v24  ;;  %v10226_v43 = vsub.f32 %v7552_v18, %v2738_v0  ;;  %7149 = vpow2.f32 %v6361_v37  ;;  %v2626_v8 = vpop.xlane.xlu1 %2625 }
 0x1d0   : > { %v2864_v56 = vmul.f32 %v10211_v57, %v10211_v57  ;;  %v2280_v7 = vadd.f32 %v2279_v60, %v9579_v36  ;;  %v3816_v32 = vmul.f32 %v3275_v35, %v14333_v10  ;;  %v3291_v52 = vmul.f32 %v10120_v24, %v3290_v42  ;;  %vm10246_vm8 = vmor %vm3292_vm6, %vm3293_vm7 }
 0x1d1   : > { %2631 = vadd.xlane.f32.xlu2 %v428_v12  ;;  %v10230_v49 = vpop.eup %7145  ;;  %v4143_v26 = vadd.f32 %v4079_v38, %v2108_v9  ;;  %v2866_v37 = vmul.f32 %v10226_v43, %v10226_v43  ;;  %v4142_v12 = vadd.f32 %v4078_v2, %v2106_v21  ;;  %v3885_v35 = vmul.f32 %v10150_v39, %v3817_v31 }
 0x1d2   : > { %v3297_v0 = vmul.f32 %v10230_v49, %v10181_v23  ;;  %v2739_v38 = vmul.f32 %v8403_v40, %v2626_v8  ;;  %v2282_v2 = vadd.f32 %v2281_v3, %v9579_v36  ;;  %v14026_v46 = vunpack.c.l.bf16 %v10235_v28 }
 0x1d3   : > { %2946 = vadd.xlane.f32.xlu0 %v2864_v56  ;;  %v7148_v42 = vpop.eup %7147  ;;  %2950 = vadd.xlane.f32.xlu1 %v2866_v37  ;;  %v3884_v21 = vmul.f32 %v10150_v39, %v3816_v32  ;;  %v10257_v18 = vpop.f32.mrf.mxu3  ;;  %v3295_v8 = vsel %vm10246_vm8, %v10120_v24, %v3291_v52  ;;  %v4016_v10 = vadd.f32 1.0, %v2280_v7  ;;  %v4202_v3 = vpack.c.bf16 %v4143_v26, %v4142_v12  ;;  %v10265_v37 = vld [vmem:[%s7933_s15 + $0xb0] sm:$0xff]   ;;  %v7553_v32 = vld [vmem:[%s7900_s28 + $0xa8] sm:$0xff] }
 0x1d4   : > { %v3298_v9 = vmul.f32 %v10230_v49, %v3297_v0  ;;  %14336 = vst [vmem:[#allocation46_spill] sm:$0xff] %v10257_v18  ;;  %v10259_v31 = vadd.f32 1.0, %v7148_v42  ;;  %v10271_v55 = vsub.f32 %v7553_v32, %v2739_v38  ;;  %v6362_v42 = vmul.f32 -1.442695, %v14026_v46  ;;  %v429_v7 = vld [vmem:[%s7900_s28 + $0xc8] sm:$0xff]  ;;  %v431_v32 = vld [vmem:[%s7900_s28 + $0xd8] sm:$0xff] }
 0x1d5   : > { %v7150_v56 = vpop.eup %7149  ;;  %v3953_v60 = vadd.f32 %v10178_v53, %v3885_v35  ;;  %v4017_v24 = vadd.f32 1.0, %v2282_v2  ;;  %v14337_v26 = vunpack.c.h.bf16 %v10235_v28  ;;  %v3818_v38 = vmul.f32 %v3295_v8, %v14338_v13  ;;  %v14339_v8 = vld [vmem:[#allocation15_spill] sm:$0xff] }
 0x1d6   : > { %v3299_v0 = vmul.f32 0.5, %v3298_v9  ;;  %v10267_v22 = vadd.f32 1.0, %v7150_v56  ;;  %7151 = vrcp.f32 %v10259_v31  ;;  %v3952_v9 = vadd.f32 %v10178_v53, %v3884_v21  ;;  %v2112_v56 = vpop.f32.mrf.mxu0 }
 0x1d7   : > { %v2628_v52 = vpop.xlane.xlu1 %2627  ;;  %v6363_v12 = vmul.f32 -1.442695, %v14337_v26  ;;  %v14027_v4 = vunpack.c.l.bf16 %v10265_v37  ;;  %vm3302_vm9 = vweird.f32 %v10181_v23  ;;  %vm3303_vm10 = vweird.f32 %v10230_v49 }
 0x1d8   : > { %v3300_v18 = vsub.f32 1.5, %v3299_v0  ;;  %7153 = vrcp.f32 %v10267_v22  ;;  %v2111_v35 = vadd.f32 %v2110_v14, %v9542_v47  ;;  %v2867_v2 = vmul.f32 %v10271_v55, %v10271_v55  ;;  %vm10298_vm11 = vmor %vm3302_vm9, %vm3303_vm10 }
 0x1d9   : > { %v2740_v21 = vmul.f32 %v8403_v40, %v2628_v52  ;;  %7155 = vpow2.f32 %v6362_v42  ;;  %v14028_v13 = vunpack.c.h.bf16 %v10265_v37  ;;  %v4081_v26 = vmul.f32 %v4017_v24, %v3953_v60 }
 0x1da   : > { %4326 = vmatmul.bf16.gmra.mxu3 %v4202_v3  ;;  %v3301_v0 = vmul.f32 %v10230_v49, %v3300_v18  ;;  %v2113_v46 = vadd.f32 %v2112_v56, %v9542_v47  ;;  %7157 = vpow2.f32 %v6363_v12  ;;  %v4080_v3 = vmul.f32 %v4016_v10, %v3952_v9  ;;  %2952 = vadd.xlane.f32.xlu2 %v2867_v2  ;;  %v7554_v18 = vld [vmem:[%s7900_s28 + $0xb0] sm:$0xff]  ;;  %v10313_v12 = vld [vmem:[%s7933_s15 + $0xb8] sm:$0xff]   ;;  %s11286_s15 = scalar_lea.vmem [#allocation5], %s6316_s19  ;;  %s7700_s19 = scalar_lea.hbm %s13962_s10, 1024 }
 0x1db   : > { %2633 = vadd.xlane.f32.xlu0 %v429_v7  ;;  %2318 = vmatmul.bf16.gmra.mxu1 %v14339_v8  ;;  %v3886_v7 = vmul.f32 %v10150_v39, %v3818_v38  ;;  %v10304_v60 = vsub.f32 %v7554_v18, %v2740_v21  ;;  %v6364_v24 = vmul.f32 -1.442695, %v14027_v4  ;;  %vm1457_vm12 = vweird.f32 %v10259_v31  ;;  %s6221_s26 = sshll.u32 %s11286_s15, 4  ;;  %p7702_p3 = scmp.lt.s32.totalorder %s7700_s19, %s7696_s24  ;;  %s6222_s26 = int_to_ptr.vmem [resolvable:$true] %s6221_s26 }
 0x1dc   : > { %2637 = vadd.xlane.f32.xlu1 %v431_v32  ;;  %v7152_v14 = vpop.eup %7151  ;;  %v1461_v23 = vand.u32 2147483647, %v10259_v31  ;;  %v1463_v52 = vand.u32 2147483648, %v10259_v31  ;;  %vm1472_vm13 = vweird.f32 %v10267_v22  ;;  %v1476_v56 = vand.u32 2147483647, %v10267_v22  ;;  %v10318_v32 = vpop.f32.mrf.mxu3 }
 0x1dd   : > { %v1453_v10 = vmul.f32 %v7152_v14, %v10259_v31  ;;  %v1478_v38 = vand.u32 2147483648, %v10267_v22  ;;  %14342 = vst [vmem:[#allocation50_spill] sm:$0xff] %v10318_v32  ;;  %v6365_v2 = vmul.f32 -1.442695, %v14028_v13  ;;  %v3305_v21 = vsel %vm10298_vm11, %v10230_v49, %v3301_v0  ;;  %v14347_v31 = vld [vmem:[#allocation53_spill] sm:$0xff]  ;;  %p7703_p4 = por %p7702_p3, %p7701_p1 }
 0x1de   : > { %v7154_v9 = vpop.eup %7153  ;;  %vm1458_vm14 = vweird.f32 %v7152_v14  ;;  %v2868_v61 = vmul.f32 %v10304_v60, %v10304_v60  ;;  %7159 = vpow2.f32 %v6364_v24  ;;  %v14030_v32 = vunpack.c.l.bf16 %v10313_v12 }
 0x1df   : > { %v1454_v18 = vsub.f32 1.0, %v1453_v10  ;;  %v1468_v4 = vmul.f32 %v7154_v9, %v10267_v22  ;;  %v7156_v34 = vpop.eup %7155  ;;  %vm1473_vm1 = vweird.f32 %v7154_v9  ;;  %7161 = vpow2.f32 %v6365_v2  ;;  %vm10336_vm15 = vmor %vm1457_vm12, %vm1458_vm14  ;;  %p7704_p7 = pnand %p7703_p4, %p7699_p0 }
 0x1e0   : > { %v7158_v58 = vpop.eup %7157  ;;  %v10331_v45 = vadd.f32 1.0, %v7156_v34  ;;  %v4144_v49 = vadd.f32 %v4080_v3, %v2111_v35  ;;  %vm10340_vm0 = vcmp.eq.f32.partialorder %v1461_v23, 8.507059e+37  ;;  %v1464_v24 = vor.u32 1.1754944e-38, %v1463_v52  ;;  %vm10352_vm2 = vmor %vm1472_vm13, %vm1473_vm1 }
 0x1e1   : > { %v1455_v13 = vmul.f32 %v7152_v14, %v1454_v18  ;;  %v1469_v41 = vsub.f32 1.0, %v1468_v4  ;;  %v10344_v10 = vadd.f32 1.0, %v7158_v58  ;;  %v14029_v35 = vunpack.c.h.bf16 %v10313_v12 }
 0x1e2   : > { %7163 = vrcp.f32 %v10331_v45  ;;  %v3819_v3 = vmul.f32 %v3305_v21, %v14347_v31  ;;  %v1479_v52 = vor.u32 1.1754944e-38, %v1478_v38  ;;  %2954 = vadd.xlane.f32.xlu2 %v2868_v61  ;;  %vm1477_vm4 = vcmp.eq.f32.partialorder %v1476_v56, 8.507059e+37 }
 0x1e3   : > { %2635 = vadd.xlane.f32.xlu0 %v430_v25  ;;  %v1456_v4 = vadd.f32 %v7152_v14, %v1455_v13  ;;  %v1470_v34 = vmul.f32 %v7154_v9, %v1469_v41  ;;  %7165 = vrcp.f32 %v10344_v10  ;;  %v6366_v41 = vmul.f32 -1.442695, %v14030_v32 }
 0x1e4   : > { %2639 = vadd.xlane.f32.xlu1 %v432_v5  ;;  %v4145_v25 = vadd.f32 %v4081_v26, %v2113_v46  ;;  %v7160_v13 = vpop.eup %7159  ;;  %v3954_v21 = vadd.f32 %v10178_v53, %v3886_v7  ;;  %v14350_v31 = vunpack.c.l.bf16 %v10083_v17  ;;  %v6367_v46 = vmul.f32 -1.442695, %v14029_v35 }
 0x1e5   : > { %v1460_v58 = vsel %vm10336_vm15, %v7152_v14, %v1456_v4  ;;  %v1471_v5 = vadd.f32 %v7154_v9, %v1470_v34  ;;  %v7162_v18 = vpop.eup %7161  ;;  %v3887_v7 = vmul.f32 %v10150_v39, %v3819_v3  ;;  %7167 = vpow2.f32 %v6366_v41  ;;  %v433_v34 = vld [vmem:[%s7900_s28 + $0xe8] sm:$0xff] }
 0x1e6   : > { %v1465_v22 = vsel %vm10340_vm0, %v1464_v24, %v1460_v58  ;;  %v4203_v14 = vpack.c.bf16 %v4145_v25, %v4144_v49  ;;  %v14352_v4 = vunpack.c.h.bf16 %v10083_v17  ;;  %vm1487_vm3 = vweird.f32 %v10331_v45  ;;  %v14353_v17 = vld [vmem:[#allocation16_spill] sm:$0xff] }
 0x1e7   : > { %v2284_v2 = vpop.f32.mrf.mxu1  ;;  %v2115_v38 = vpop.f32.mrf.mxu0  ;;  %v1475_v61 = vsel %vm10352_vm2, %v7154_v9, %v1471_v5  ;;  %v1852_v0 = vmul.f32 %v14350_v31, %v1465_v22  ;;  %v1491_v49 = vand.u32 2147483647, %v10331_v45  ;;  %v10381_v23 = vadd.f32 1.0, %v7160_v13  ;;  %v6637_v31 = vld [vmem:[%s13956_s4 + $0xb8] sm:$0xf0] }
 0x1e8   : > { %v1480_v26 = vsel %vm1477_vm4, %v1479_v52, %v1475_v61  ;;  %v2285_v56 = vadd.f32 %v2284_v2, %v9579_v36  ;;  %v10374_v24 = vpop.eup %7163  ;;  %v1493_v39 = vand.u32 2147483648, %v10331_v45  ;;  %v1506_v3 = vand.u32 2147483647, %v10344_v10  ;;  %v6478_v61 = vld [vmem:[%s13956_s4 + $0xb0] sm:$0xf] }
 0x1e9   : > { %v10371_v42 = vpop.f32.mrf.mxu3  ;;  %v1853_v9 = vmul.f32 %v14352_v4, %v1480_v26  ;;  %v10383_v52 = vpop.eup %7165  ;;  %v1483_v58 = vmul.f32 %v10374_v24, %v10331_v45  ;;  %v10389_v41 = vadd.f32 1.0, %v7162_v18  ;;  %v1508_v13 = vand.u32 2147483648, %v10344_v10 }
 0x1ea   : > { %14351 = vst [vmem:[#allocation49_spill] sm:$0xff] %v10371_v42  ;;  %4331 = vmatmul.bf16.gmra.mxu3 %v4203_v14  ;;  %v1498_v25 = vmul.f32 %v10383_v52, %v10344_v10  ;;  %7169 = vpow2.f32 %v6367_v46  ;;  %v4018_v22 = vadd.f32 1.0, %v2285_v56  ;;  %vm1488_vm5 = vweird.f32 %v10374_v24  ;;  %2641 = vadd.xlane.f32.xlu2 %v433_v34 }
 0x1eb   : > { %2323 = vmatmul.bf16.gmra.mxu1 %v14353_v17  ;;  %v10392_v5 = vpack.c.bf16 %v1853_v9, %v1852_v0  ;;  %v1484_v2 = vsub.f32 1.0, %v1483_v58  ;;  %7171 = vrcp.f32 %v10381_v23  ;;  %vm1502_vm6 = vweird.f32 %v10344_v10  ;;  %v7168_v0 = vpop.eup %7167  ;;  %vm10421_vm9 = vmor %vm1487_vm3, %vm1488_vm5  ;;  %v6454_v58 = vld [vmem:[%s13956_s4 + $0x80] sm:$0xf] }
 0x1ec   : > { %v1499_v18 = vsub.f32 1.0, %v1498_v25  ;;  %vm1503_vm7 = vweird.f32 %v10383_v52  ;;  %7173 = vrcp.f32 %v10389_v41  ;;  %v3955_v46 = vadd.f32 %v10178_v53, %v3887_v7 }
 0x1ed   : > { %14354 = vst [vmem:[#allocation53_spill] sm:$0xff] %v10392_v5  ;;  %2184 = vmatmul.bf16.gmra.mxu2 %v10392_v5  ;;  %v1485_v26 = vmul.f32 %v10374_v24, %v1484_v2  ;;  %vm10411_vm8 = vcmp.eq.f32.partialorder %v1491_v49, 8.507059e+37  ;;  %v2116_v9 = vadd.f32 %v2115_v38, %v9542_v47  ;;  %v1494_v53 = vor.u32 1.1754944e-38, %v1493_v39  ;;  %v6466_v49 = vld [vmem:[%s13956_s4 + $0x98] sm:$0xf]  ;;  %vm10437_vm10 = vmor %vm1502_vm6, %vm1503_vm7 }
 0x1ee   : > { %v1500_v7 = vmul.f32 %v10383_v52, %v1499_v18  ;;  %v6634_v38 = vld [vmem:[%s13956_s4 + $0xa0] sm:$0xf0]  ;;  %v4082_v25 = vmul.f32 %v4018_v22, %v3954_v21  ;;  %v1509_v39 = vor.u32 1.1754944e-38, %v1508_v13  ;;  %vm10444_vm11 = vcmp.eq.f32.partialorder %v1506_v3, 8.507059e+37  ;;  %v6442_v21 = vld [vmem:[%s13956_s4 + $0x68] sm:$0xf] }
 0x1ef   : > { %v2286_v14 = vpop.f32.mrf.mxu1  ;;  %v2117_v4 = vpop.f32.mrf.mxu0  ;;  %v1486_v2 = vadd.f32 %v10374_v24, %v1485_v26  ;;  %v434_v26 = vld [vmem:[%s7900_s28 + $0xf0] sm:$0xff]  ;;  %v14365_v56 = vunpack.c.h.bf16 %v10235_v28  ;;  %vm1517_vm12 = vweird.f32 %v10381_v23  ;;  %vm1532_vm14 = vweird.f32 %v10389_v41 }
 0x1f0   : > { %v2287_v34 = vadd.f32 %v2286_v14, %v9579_v36  ;;  %v6479_v14 = vor.u32 %v6637_v31, %v6478_v61  ;;  %v7170_v35 = vpop.eup %7169  ;;  %v1501_v42 = vadd.f32 %v10383_v52, %v1500_v7  ;;  %v2118_v22 = vadd.f32 %v2117_v4, %v9542_v47  ;;  %v6653_v61 = vld [vmem:[%s13960_s8 + $0x38] sm:$0xff] }
 0x1f1   : > { %v10441_v18 = vpop.f32.mrf.mxu3  ;;  %v10450_v10 = vpop.eup %7171  ;;  %v1490_v13 = vsel %vm10421_vm9, %v10374_v24, %v1486_v2  ;;  %v10458_v31 = vadd.f32 1.0, %v7168_v0  ;;  %v6631_v0 = vld [vmem:[%s13956_s4 + $0x88] sm:$0xf0]  ;;  %5847 = vmatpush.bf16.msrb.mxu0 %v6653_v61  ;;  %v10486_v2 = vld [vmem:[%s13959_s7] ss:$0 sm:$0xff] }
 0x1f2   : > { %14361 = vst [vmem:[#allocation67_spill] sm:$0xff] %v10441_v18  ;;  %v4019_v32 = vadd.f32 1.0, %v2287_v34  ;;  %2414 = vmatpush.bf16.msrb.mxu2 %v6479_v14  ;;  %v6467_v18 = vor.u32 %v6634_v38, %v6466_v49  ;;  %v10460_v3 = vpop.eup %7173  ;;  %v1495_v4 = vsel %vm10411_vm8, %v1494_v53, %v1490_v13  ;;  %v1505_v7 = vsel %vm10437_vm10, %v10383_v52, %v1501_v42 }
 0x1f3   : > { %v1513_v24 = vmul.f32 %v10450_v10, %v10381_v23  ;;  %v4146_v49 = vadd.f32 %v4082_v25, %v2116_v9  ;;  %2643 = vadd.xlane.f32.xlu2 %v434_v26  ;;  %v14364_v42 = vunpack.c.l.bf16 %v10235_v28  ;;  %v6455_v45 = vor.u32 %v6631_v0, %v6454_v58  ;;  %v6651_v58 = vld [vmem:[%s13960_s8 + $0x28] sm:$0xff] }
 0x1f4   : > { %v4083_v34 = vmul.f32 %v4019_v32, %v3955_v46  ;;  %v1510_v32 = vsel %vm10444_vm11, %v1509_v39, %v1505_v7  ;;  %v1528_v46 = vmul.f32 %v10460_v3, %v10389_v41  ;;  %v6652_v39 = vld [vmem:[%s13960_s8 + $0x30] sm:$0xff]  ;;  %v10491_v14 = vadd.f32 1.0, %v7170_v35 }
 0x1f5   : > { %v1854_v52 = vmul.f32 %v14364_v42, %v1495_v4  ;;  %v1855_v53 = vmul.f32 %v14365_v56, %v1510_v32  ;;  %v1514_v9 = vsub.f32 1.0, %v1513_v24  ;;  %7175 = vrcp.f32 %v10458_v31  ;;  %5848 = vmatpush.bf16.msrb.mxu0 %v6652_v39  ;;  %v6650_v39 = vld [vmem:[%s13960_s8 + $0x20] sm:$0xff] }
 0x1f6   : > { %v4147_v38 = vadd.f32 %v4083_v34, %v2118_v22  ;;  %v1529_v25 = vsub.f32 1.0, %v1528_v46  ;;  %2415 = vmatpush.bf16.msrb.mxu2 %v6467_v18  ;;  %v6628_v18 = vld [vmem:[%s13956_s4 + $0x70] sm:$0xf0]  ;;  %vm1518_vm13 = vweird.f32 %v10450_v10  ;;  %v1521_v35 = vand.u32 2147483647, %v10381_v23 }
 0x1f7   : > { %v1515_v28 = vmul.f32 %v10450_v10, %v1514_v9  ;;  %v10505_v61 = vpack.c.bf16 %v1855_v53, %v1854_v52  ;;  %vm1533_vm1 = vweird.f32 %v10460_v3  ;;  %v1523_v4 = vand.u32 2147483648, %v10381_v23  ;;  %vm10524_vm15 = vmor %vm1517_vm12, %vm1518_vm13  ;;  %v14369_v52 = vld [vmem:[#allocation18_spill] sm:$0xff] }
 0x1f8   : > { %v1530_v26 = vmul.f32 %v10460_v3, %v1529_v25  ;;  %v4204_v13 = vpack.c.bf16 %v4147_v38, %v4146_v49  ;;  %v1538_v7 = vand.u32 2147483648, %v10389_v41  ;;  %v6443_v24 = vor.u32 %v6628_v18, %v6442_v21  ;;  %vm10537_vm0 = vmor %vm1532_vm14, %vm1533_vm1  ;;  %v6430_v23 = vld [vmem:[%s13956_s4 + $0x50] sm:$0xf]  ;;  %v6625_v38 = vld [vmem:[%s13956_s4 + $0x58] sm:$0xf0] }
 0x1f9   : > { %v4307_v22 = vpop.f32.mrf.mxu3  ;;  %14366 = vst [vmem:[#allocation68_spill] sm:$0xff] %v10505_v61  ;;  %7177 = vrcp.f32 %v10491_v14  ;;  %v1516_v49 = vadd.f32 %v10450_v10, %v1515_v28  ;;  %v1536_v42 = vand.u32 2147483647, %v10389_v41  ;;  %5849 = vmatpush.bf16.msrb.mxu0 %v6651_v58  ;;  %vm10548_vm2 = vcmp.eq.f32.partialorder %v1521_v35, 8.507059e+37  ;;  %v6622_v35 = vld [vmem:[%s13956_s4 + $0x40] sm:$0xf0] }
 0x1fa   : > { %v10508_v34 = vadd.f32 %v10486_v2, %v4307_v22  ;;  %4336 = vmatmul.bf16.gmra.mxu3 %v4204_v13  ;;  %2416 = vmatpush.bf16.msrb.mxu2 %v6455_v45  ;;  %v1531_v46 = vadd.f32 %v10460_v3, %v1530_v26  ;;  %v1524_v41 = vor.u32 1.1754944e-38, %v1523_v4  ;;  %v1539_v25 = vor.u32 1.1754944e-38, %v1538_v7  ;;  %v6418_v22 = vld [vmem:[%s13956_s4 + $0x38] sm:$0xf] }
 0x1fb   : > { %2328 = vmatmul.bf16.gmra.mxu1 %v14369_v52  ;;  %v10531_v56 = vpop.eup %7175  ;;  %v1520_v28 = vsel %vm10524_vm15, %v10450_v10, %v1516_v49  ;;  %vm1537_vm4 = vcmp.eq.f32.partialorder %v1536_v42, 8.507059e+37  ;;  %v6431_v18 = vor.u32 %v6625_v38, %v6430_v23  ;;  %v6419_v58 = vor.u32 %v6622_v35, %v6418_v22  ;;  %v6406_v42 = vld [vmem:[%s13956_s4 + $0x20] sm:$0xf]  ;;  %v6619_v23 = vld [vmem:[%s13956_s4 + $0x28] sm:$0xf0] }
 0x1fc   : > { %v6512_v0 = vmul.f32 -1.442695, %v10508_v34  ;;  %v1543_v45 = vmul.f32 %v10531_v56, %v10458_v31  ;;  %v1535_v21 = vsel %vm10537_vm0, %v10460_v3, %v1531_v46  ;;  %v1525_v4 = vsel %vm10548_vm2, %v1524_v41, %v1520_v28 }
 0x1fd   : > { %2189 = vmatmul.bf16.gmra.mxu2 %v10505_v61  ;;  %5850 = vmatpush.bf16.msrb.mxu0 %v6650_v39  ;;  %v1540_v7 = vsel %vm1537_vm4, %v1539_v25, %v1535_v21  ;;  %v14374_v38 = vunpack.c.l.bf16 %v10265_v37  ;;  %v14375_v41 = vunpack.c.h.bf16 %v10265_v37  ;;  %v6407_v28 = vor.u32 %v6619_v23, %v6406_v42  ;;  %v6648_v21 = vld [vmem:[%s13960_s8 + $0x10] sm:$0xff]  ;;  %v6394_v37 = vld [vmem:[%s13956_s4 + $0x8] sm:$0xf] }
 0x1fe   : > { %7179 = vpow2.f32 %v6512_v0  ;;  %2417 = vmatpush.bf16.msrb.mxu2 %v6443_v24  ;;  %v1544_v24 = vsub.f32 1.0, %v1543_v45  ;;  %v6649_v0 = vld [vmem:[%s13960_s8 + $0x18] sm:$0xff]  ;;  %vm1547_vm3 = vweird.f32 %v10458_v31  ;;  %vm1548_vm5 = vweird.f32 %v10531_v56 }
 0x1ff   : > { %v10569_v26 = vpop.eup %7177  ;;  %v1856_v9 = vmul.f32 %v14374_v38, %v1525_v4  ;;  %v1857_v25 = vmul.f32 %v14375_v41, %v1540_v7  ;;  %v1551_v35 = vand.u32 2147483647, %v10458_v31  ;;  %vm1562_vm6 = vweird.f32 %v10491_v14  ;;  %vm10619_vm8 = vmor %vm1547_vm3, %vm1548_vm5 }
 0x200   : > { %v1558_v3 = vmul.f32 %v10569_v26, %v10491_v14  ;;  %v1545_v45 = vmul.f32 %v10531_v56, %v1544_v24  ;;  %vm1563_vm7 = vweird.f32 %v10569_v26  ;;  %v1553_v4 = vand.u32 2147483648, %v10458_v31 }
 0x201   : > { %v4309_v13 = vpop.f32.mrf.mxu3  ;;  %5851 = vmatpush.bf16.msrb.mxu0 %v6649_v0  ;;  %v1568_v7 = vand.u32 2147483648, %v10491_v14  ;;  %vm10633_vm9 = vmor %vm1562_vm6, %vm1563_vm7  ;;  %vm10640_vm10 = vcmp.eq.f32.partialorder %v1551_v35, 8.507059e+37 }
 0x202   : > { %v10572_v10 = vadd.f32 %v10486_v2, %v4309_v13  ;;  %2418 = vmatpush.bf16.msrb.mxu2 %v6431_v18  ;;  %v1559_v46 = vsub.f32 1.0, %v1558_v3  ;;  %v6616_v18 = vld [vmem:[%s13956_s4 + $0x10] sm:$0xf0]  ;;  %v10611_v13 = vpack.c.bf16 %v1857_v25, %v1856_v9  ;;  %v1546_v24 = vadd.f32 %v10531_v56, %v1545_v45 }
 0x203   : > { %v3052_v9 = vmul.f32 %v10165_v62, %v8403_v40 }
 0x204   : > { %v7180_v49 = vpop.eup %7179  ;;  %v6513_v32 = vmul.f32 -1.442695, %v10572_v10  ;;  %v1560_v39 = vmul.f32 %v10569_v26, %v1559_v46  ;;  %14376 = vst [vmem:[#allocation69_spill] sm:$0xff] %v10611_v13  ;;  %v6647_v46 = vld [vmem:[%s13960_s8 + $0x8] sm:$0xff] }
 0x205   : > { %v10585_v53 = vadd.f32 1.0, %v7180_v49  ;;  %5852 = vmatpush.bf16.msrb.mxu0 %v6648_v21  ;;  %v1566_v49 = vand.u32 2147483647, %v10491_v14  ;;  %v1554_v14 = vor.u32 1.1754944e-38, %v1553_v4  ;;  %v6646_v21 = vld [vmem:[%s13960_s8] sm:$0xff] }
 0x206   : > { %7181 = vpow2.f32 %v6513_v32  ;;  %2419 = vmatpush.bf16.msrb.mxu2 %v6419_v58  ;;  %v1561_v0 = vadd.f32 %v10569_v26, %v1560_v39  ;;  %v6395_v32 = vor.u32 %v6616_v18, %v6394_v37  ;;  %v1569_v39 = vor.u32 1.1754944e-38, %v1568_v7 }
 0x207   : > { %7183 = vrcp.f32 %v10585_v53  ;;  %vm1567_vm11 = vcmp.eq.f32.partialorder %v1566_v49, 8.507059e+37  ;;  %v10655_v18 = vadd.f32 1e-06, %v3052_v9  ;;  %v14383_v49 = vunpack.c.l.bf16 %v10313_v12 }
 0x208   : > { %v1565_v62 = vsel %vm10633_vm9, %v10569_v26, %v1561_v0  ;;  %v4734_v9 = vand.u32 2147483648, %v10585_v53  ;;  %vm4728_vm13 = vweird.f32 %v10585_v53  ;;  %v4732_v25 = vand.u32 2147483647, %v10585_v53 }
 0x209   : > { %v4312_v22 = vpop.f32.mrf.mxu3  ;;  %5853 = vmatpush.bf16.msrb.mxu0 %v6647_v46  ;;  %v14384_v46 = vunpack.c.h.bf16 %v10313_v12 }
 0x20a   : > { %v10614_v3 = vadd.f32 %v10486_v2, %v4312_v22  ;;  %2420 = vmatpush.bf16.msrb.mxu2 %v6407_v28  ;;  %v1550_v28 = vsel %vm10619_vm8, %v10531_v56, %v1546_v24  ;;  %v1570_v56 = vsel %vm1567_vm11, %v1569_v39, %v1565_v62  ;;  %vm4733_vm15 = vcmp.eq.f32.partialorder %v4732_v25, 8.507059e+37 }
 0x20b   : > { %2333 = vmatmul.bf16.gmra.mxu1 %v9887_v1  ;;  %v1555_v4 = vsel %vm10640_vm10, %v1554_v14, %v1550_v28  ;;  %vm3312_vm8 = vweird.f32 %v10655_v18 }
 0x20c   : > { %v7182_v42 = vpop.eup %7181  ;;  %v6514_v31 = vmul.f32 -1.442695, %v10614_v3 }
 0x20d   : > { %v7184_v38 = vpop.eup %7183  ;;  %v4660_v41 = vadd.f32 1.0, %v7182_v42  ;;  %2194 = vmatmul.bf16.gmra.mxu2 %v10611_v13  ;;  %5854 = vmatpush.bf16.msrb.mxu0 %v6646_v21  ;;  %v1859_v42 = vmul.f32 %v14384_v46, %v1570_v56 }
 0x20e   : > { %v4724_v45 = vmul.f32 %v7184_v38, %v10585_v53  ;;  %7185 = vpow2.f32 %v6514_v31  ;;  %2421 = vmatpush.bf16.msrb.mxu2 %v6395_v32  ;;  %v1858_v32 = vmul.f32 %v14383_v49, %v1555_v4  ;;  %vm4729_vm12 = vweird.f32 %v7184_v38 }
 0x20f   : > { %7187 = vrcp.f32 %v4660_v41  ;;  %vm10674_vm14 = vmor %vm4728_vm13, %vm4729_vm12  ;;  %v4747_v39 = vand.u32 2147483647, %v4660_v41  ;;  %v4749_v12 = vand.u32 2147483648, %v4660_v41  ;;  %v4735_v53 = vor.u32 1.1754944e-38, %v4734_v9 }
 0x210   : > { %v4725_v37 = vsub.f32 1.0, %v4724_v45  ;;  %7189 = vrsqrt.f32 %v10655_v18  ;;  %v10678_v28 = vpack.c.bf16 %v1859_v42, %v1858_v32  ;;  %vm4743_vm0 = vweird.f32 %v4660_v41 }
 0x211   : > { %v4314_v22 = vpop.f32.mrf.mxu3  ;;  %vm4748_vm4 = vcmp.eq.f32.partialorder %v4747_v39, 8.507059e+37 }
 0x212   : > { %v4726_v35 = vmul.f32 %v7184_v38, %v4725_v37  ;;  %v10660_v7 = vadd.f32 %v10486_v2, %v4314_v22  ;;  %14387 = vst [vmem:[#allocation70_spill] sm:$0xff] %v10678_v28 }
 0x214   : > { %v7186_v26 = vpop.eup %7185  ;;  %v6515_v24 = vmul.f32 -1.442695, %v10660_v7  ;;  %v4727_v31 = vadd.f32 %v7184_v38, %v4726_v35 }
 0x215   : > { %v7188_v58 = vpop.eup %7187  ;;  %v10664_v0 = vadd.f32 1.0, %v7186_v26 }
 0x216   : > { %v4739_v23 = vmul.f32 %v7188_v58, %v4660_v41  ;;  %7191 = vpow2.f32 %v6515_v24  ;;  %v4731_v21 = vsel %vm10674_vm14, %v7184_v38, %v4727_v31  ;;  %vm4744_vm1 = vweird.f32 %v7188_v58  ;;  %v10685_v35 = vpop.eup %7189 }
 0x217   : > { %7193 = vrcp.f32 %v10664_v0  ;;  %v4736_v49 = vsel %vm4733_vm15, %v4735_v53, %v4731_v21  ;;  %vm4745_vm2 = vmor %vm4743_vm0, %vm4744_vm1  ;;  %v4750_v38 = vor.u32 1.1754944e-38, %v4749_v12  ;;  %v3307_v31 = vmul.f32 %v10685_v35, %v10655_v18 }
 0x218   : > { %v4740_v45 = vsub.f32 1.0, %v4739_v23  ;;  %v5683_v23 = vmul.f32 %v4736_v49, %v10508_v34  ;;  %v10704_v34 = vpop.f32.mrf.mxu1  ;;  %v4764_v49 = vand.u32 2147483648, %v10664_v0  ;;  %vm4758_vm5 = vweird.f32 %v10664_v0 }
 0x219   : > { %v4317_v62 = vpop.f32.mrf.mxu3  ;;  %vm3313_vm12 = vweird.f32 %v10685_v35 }
 0x21a   : > { %v4741_v37 = vmul.f32 %v7188_v58, %v4740_v45  ;;  %v10683_v22 = vadd.f32 %v10486_v2, %v4317_v62  ;;  %v10695_v45 = vpop.f32.mrf.mxu2  ;;  %v3308_v62 = vmul.f32 %v10685_v35, %v3307_v31  ;;  %vm3314_vm14 = vmor %vm3312_vm8, %vm3313_vm12 }
 0x21b   : > { %2338 = vmatmul.bf16.gmra.mxu1 %v9910_v16  ;;  %14388 = vst [vmem:[#allocation71_spill] sm:$0xff] %v10695_v45  ;;  %v7561_v16 = vld [vmem:[%s7900_s28 + $0xe0] sm:$0xff] }
 0x21c   : > { %v7192_v4 = vpop.eup %7191  ;;  %v4742_v56 = vadd.f32 %v7188_v58, %v4741_v37  ;;  %v6516_v26 = vmul.f32 -1.442695, %v10683_v22 }
 0x21d   : > { %v7194_v24 = vpop.eup %7193  ;;  %v4662_v32 = vadd.f32 1.0, %v7192_v4  ;;  %2199 = vmatmul.bf16.gmra.mxu2 %v10678_v28 }
 0x21e   : > { %v4746_v46 = vsel %vm4745_vm2, %v7188_v58, %v4742_v56  ;;  %v4754_v42 = vmul.f32 %v7194_v24, %v10664_v0  ;;  %7195 = vpow2.f32 %v6516_v26  ;;  %vm4759_vm3 = vweird.f32 %v7194_v24 }
 0x21f   : > { %v4751_v41 = vsel %vm4748_vm4, %v4750_v38, %v4746_v46  ;;  %7197 = vrcp.f32 %v4662_v32  ;;  %v3309_v26 = vmul.f32 0.5, %v3308_v62  ;;  %v4762_v38 = vand.u32 2147483647, %v10664_v0  ;;  %vm10710_vm6 = vmor %vm4758_vm5, %vm4759_vm3 }
 0x220   : > { %v5684_v9 = vmul.f32 %v4751_v41, %v10572_v10  ;;  %v4755_v25 = vsub.f32 1.0, %v4754_v42  ;;  %v4779_v31 = vand.u32 2147483648, %v4662_v32  ;;  %vm4773_vm10 = vweird.f32 %v4662_v32 }
 0x221   : > { %v4319_v14 = vpop.f32.mrf.mxu3  ;;  %vm4763_vm9 = vcmp.eq.f32.partialorder %v4762_v38, 8.507059e+37 }
 0x222   : > { %v4756_v58 = vmul.f32 %v7194_v24, %v4755_v25  ;;  %v10698_v39 = vadd.f32 %v10486_v2, %v4319_v14  ;;  %v5747_v12 = vpack.c.bf16 %v5684_v9, %v5683_v23  ;;  %v10716_v23 = vpop.f32.mrf.mxu2  ;;  %v4777_v25 = vand.u32 2147483647, %v4662_v32 }
 0x223   : > { %14391 = vst [vmem:[#allocation72_spill] sm:$0xff] %v10716_v23 }
 0x224   : > { %v7196_v21 = vpop.eup %7195  ;;  %v6517_v37 = vmul.f32 -1.442695, %v10698_v39  ;;  %5855 = vmatmul.bf16.vlgmr.msrb.gmra.mxu0 %v5747_v12  ;;  %v4757_v10 = vadd.f32 %v7194_v24, %v4756_v58  ;;  %v3310_v58 = vsub.f32 1.5, %v3309_v26  ;;  %v4765_v12 = vor.u32 1.1754944e-38, %v4764_v49  ;;  %v14392_v49 = vld [vmem:[#allocation19_spill] sm:$0xff] }
 0x225   : > { %v7198_v53 = vpop.eup %7197  ;;  %v10702_v4 = vadd.f32 1.0, %v7196_v21  ;;  %vm4778_vm13 = vcmp.eq.f32.partialorder %v4777_v25, 8.507059e+37 }
 0x226   : > { %7199 = vpow2.f32 %v6517_v37  ;;  %v4769_v56 = vmul.f32 %v7198_v53, %v4662_v32  ;;  %v4761_v41 = vsel %vm10710_vm6, %v7194_v24, %v4757_v10  ;;  %vm4774_vm7 = vweird.f32 %v7198_v53  ;;  %v2291_v32 = vpop.f32.mrf.mxu1 }
 0x227   : > { %7201 = vrcp.f32 %v10702_v4  ;;  %v4766_v24 = vsel %vm4763_vm9, %v4765_v12, %v4761_v41  ;;  %vm4775_vm11 = vmor %vm4773_vm10, %vm4774_vm7  ;;  %v3311_v42 = vmul.f32 %v10685_v35, %v3310_v58  ;;  %vm4788_vm15 = vweird.f32 %v10702_v4 }
 0x228   : > { %v4770_v46 = vsub.f32 1.0, %v4769_v56  ;;  %v4780_v56 = vor.u32 1.1754944e-38, %v4779_v31 }
 0x229   : > { %v2941_v14 = vpop.xlane.xlu2 %2940  ;;  %v3315_v25 = vsel %vm3314_vm14, %v10685_v35, %v3311_v42  ;;  %v4792_v35 = vand.u32 2147483647, %v10702_v4 }
 0x22a   : > { %v4771_v9 = vmul.f32 %v7198_v53, %v4770_v46  ;;  %v3053_v62 = vmul.f32 %v2941_v14, %v8403_v40 }
 0x22b   : > { %2343 = vmatmul.bf16.gmra.mxu1 %v9966_v54  ;;  %vm4793_vm4 = vcmp.eq.f32.partialorder %v4792_v35, 8.507059e+37  ;;  %v14397_v35 = vld [vmem:[#allocation21_spill] sm:$0xff] }
 0x22c   : > { %v7200_v0 = vpop.eup %7199  ;;  %v4772_v21 = vadd.f32 %v7198_v53, %v4771_v9  ;;  %v10724_v46 = vadd.f32 1e-06, %v3053_v62  ;;  %v5685_v9 = vmul.f32 %v4766_v24, %v10614_v3 }
 0x22d   : > { %v7202_v37 = vpop.eup %7201  ;;  %v10721_v10 = vadd.f32 1.0, %v7200_v0  ;;  %2422 = vmatmul.bf16.vlgmr.msrb.gmra.mxu2 %v14392_v49  ;;  %v10737_v0 = vpop.f32.mrf.mxu2 }
 0x22e   : > { %v4784_v26 = vmul.f32 %v7202_v37, %v10702_v4  ;;  %v4776_v38 = vsel %vm4775_vm11, %v7198_v53, %v4772_v21  ;;  %14393 = vst [vmem:[#allocation19_spill] sm:$0xff] %v10737_v0  ;;  %vm4789_vm1 = vweird.f32 %v7202_v37  ;;  %vm3322_vm5 = vweird.f32 %v10724_v46 }
 0x22f   : > { %7203 = vrcp.f32 %v10721_v10  ;;  %v4781_v41 = vsel %vm4778_vm13, %v4780_v56, %v4776_v38  ;;  %vm10748_vm0 = vmor %vm4788_vm15, %vm4789_vm1  ;;  %vm4803_vm3 = vweird.f32 %v10721_v10 }
 0x230   : > { %v4785_v14 = vsub.f32 1.0, %v4784_v26  ;;  %v5686_v31 = vmul.f32 %v4781_v41, %v10660_v7  ;;  %7205 = vrsqrt.f32 %v10724_v46  ;;  %v4794_v7 = vand.u32 2147483648, %v10702_v4  ;;  %v14394_v26 = vld [vmem:[#allocation55_spill] sm:$0xff] }
 0x231   : > { %v3820_v49 = vmul.f32 %v3315_v25, %v14394_v26  ;;  %v4807_v4 = vand.u32 2147483647, %v10721_v10  ;;  %v2290_v25 = vadd.f32 %v10704_v34, %v9579_v36  ;;  %v2120_v26 = vpop.f32.mrf.mxu0 }
 0x232   : > { %v4786_v12 = vmul.f32 %v7202_v37, %v4785_v14  ;;  %v5748_v62 = vpack.c.bf16 %v5686_v31, %v5685_v9  ;;  %v10753_v9 = vpop.f32.mrf.mxu1 }
 0x233   : > { %vm4808_vm8 = vcmp.eq.f32.partialorder %v4807_v4, 8.507059e+37 }
 0x234   : > { %v2943_v53 = vpop.xlane.xlu2 %2942  ;;  %5860 = vmatmul.bf16.gmra.mxu0 %v5748_v62  ;;  %v4787_v3 = vadd.f32 %v7202_v37, %v4786_v12  ;;  %v4809_v12 = vand.u32 2147483648, %v10721_v10  ;;  %v4795_v62 = vor.u32 1.1754944e-38, %v4794_v7 }
 0x235   : > { %v3054_v58 = vmul.f32 %v2943_v53, %v8403_v40  ;;  %v7204_v21 = vpop.eup %7203 }
 0x236   : > { %v7206_v24 = vpop.eup %7205  ;;  %v4799_v56 = vmul.f32 %v7204_v21, %v10721_v10  ;;  %v4791_v14 = vsel %vm10748_vm0, %v7202_v37, %v4787_v3  ;;  %vm4804_vm2 = vweird.f32 %v7204_v21  ;;  %v2292_v10 = vadd.f32 %v2291_v32, %v9579_v36 }
 0x237   : > { %v10742_v18 = vadd.f32 1e-06, %v3054_v58  ;;  %v3317_v38 = vmul.f32 %v7206_v24, %v10724_v46  ;;  %v10764_v58 = vld [vmem:[%s13954_s2] ss:$0 sm:$0xff]  ;;  %vm3323_vm6 = vweird.f32 %v7206_v24  ;;  %vm4805_vm7 = vmor %vm4803_vm3, %vm4804_vm2 }
 0x238   : > { %v4800_v41 = vsub.f32 1.0, %v4799_v56  ;;  %v3888_v56 = vmul.f32 %v10764_v58, %v3820_v49  ;;  %v4810_v49 = vor.u32 1.1754944e-38, %v4809_v12  ;;  %vm3324_vm9 = vmor %vm3322_vm5, %vm3323_vm6 }
 0x239   : > { %7207 = vrsqrt.f32 %v10742_v18  ;;  %v3318_v31 = vmul.f32 %v7206_v24, %v3317_v38  ;;  %v4796_v38 = vsel %vm4793_vm4, %v4795_v62, %v4791_v14  ;;  %v10775_v14 = vpop.f32.mrf.mxu2  ;;  %v7556_v62 = vld [vmem:[%s7900_s28 + $0xb8] sm:$0xff]  ;;  %vm3332_vm11 = vweird.f32 %v10742_v18 }
 0x23a   : > { %v4801_v53 = vmul.f32 %v7204_v21, %v4800_v41  ;;  %14398 = vst [vmem:[#allocation55_spill] sm:$0xff] %v10775_v14  ;;  %v10798_v46 = vpop.f32.mrf.mxu1 }
 0x23b   : > { %v3319_v37 = vmul.f32 0.5, %v3318_v31  ;;  %2348 = vmatmul.bf16.gmra.mxu1 %v10153_v19  ;;  %v2297_v19 = vadd.f32 %v10798_v46, %v9579_v36 }
 0x23c   : > { %v2630_v3 = vpop.xlane.xlu2 %2629  ;;  %v4802_v7 = vadd.f32 %v7204_v21, %v4801_v53 }
 0x23d   : > { %v2741_v42 = vmul.f32 %v8403_v40, %v2630_v3  ;;  %v3320_v34 = vsub.f32 1.5, %v3319_v37  ;;  %2427 = vmatmul.bf16.gmra.mxu2 %v14397_v35  ;;  %v5687_v3 = vmul.f32 %v4796_v38, %v10683_v22  ;;  %v2949_v33 = vpop.xlane.xlu1 %2948  ;;  %v4023_v23 = vadd.f32 1.0, %v2297_v19 }
 0x23e   : > { %v4806_v31 = vsel %vm4805_vm7, %v7204_v21, %v4802_v7  ;;  %v2945_v37 = vpop.xlane.xlu0 %2944  ;;  %v3057_v32 = vmul.f32 %v2949_v33, %v8403_v40  ;;  %v10803_v33 = vld [vmem:[%s13955_s3] ss:$0 sm:$0xff] }
 0x23f   : > { %v10772_v41 = vpop.eup %7207  ;;  %v10779_v53 = vsub.f32 %v7556_v62, %v2741_v42  ;;  %v3321_v59 = vmul.f32 %v7206_v24, %v3320_v34  ;;  %v4811_v51 = vsel %vm4808_vm8, %v4810_v49, %v4806_v31  ;;  %v3055_v4 = vmul.f32 %v2945_v37, %v8403_v40 }
 0x240   : > { %v3327_v12 = vmul.f32 %v10772_v41, %v10742_v18  ;;  %v5688_v21 = vmul.f32 %v4811_v51, %v10698_v39  ;;  %v10794_v49 = vadd.f32 1e-06, %v3057_v32  ;;  %v3956_v51 = vadd.f32 %v10803_v33, %v3888_v56  ;;  %v7558_v32 = vld [vmem:[%s7900_s28 + $0xc0] sm:$0xff] }
 0x241   : > { %v2869_v7 = vmul.f32 %v10779_v53, %v10779_v53  ;;  %v3325_v22 = vsel %vm3324_vm9, %v7206_v24, %v3321_v59  ;;  %v10796_v35 = vadd.f32 1e-06, %v3055_v4  ;;  %v4020_v59 = vadd.f32 1.0, %v2290_v25  ;;  %v2122_v24 = vpop.f32.mrf.mxu0 }
 0x242   : > { %v3328_v38 = vmul.f32 %v10772_v41, %v3327_v12  ;;  %v3821_v42 = vmul.f32 %v3325_v22, %v9995_v48  ;;  %v5749_v34 = vpack.c.bf16 %v5688_v21, %v5687_v3  ;;  %v4021_v31 = vadd.f32 1.0, %v2292_v10  ;;  %v10817_v22 = vpop.f32.mrf.mxu2 }
 0x243   : > { %2956 = vadd.xlane.f32.xlu0 %v2869_v7  ;;  %7209 = vrsqrt.f32 %v10794_v49  ;;  %v2123_v56 = vadd.f32 %v2122_v24, %v9542_v47  ;;  %v4084_v21 = vmul.f32 %v4020_v59, %v3956_v51  ;;  %v2121_v25 = vadd.f32 %v2120_v26, %v9542_v47  ;;  %14399 = vst [vmem:[#allocation21_spill] sm:$0xff] %v10817_v22 }
 0x244   : > { %v2632_v39 = vpop.xlane.xlu2 %2631  ;;  %5865 = vmatmul.bf16.gmra.mxu0 %v5749_v34  ;;  %v3889_v48 = vmul.f32 %v10764_v58, %v3821_v42  ;;  %v3329_v62 = vmul.f32 0.5, %v3328_v38  ;;  %7211 = vrsqrt.f32 %v10796_v35  ;;  %vm3333_vm10 = vweird.f32 %v10772_v41 }
 0x245   : > { %v2742_v37 = vmul.f32 %v8403_v40, %v2632_v39  ;;  %v4148_v59 = vadd.f32 %v4084_v21, %v2121_v25  ;;  %vm10844_vm12 = vmor %vm3332_vm11, %vm3333_vm10  ;;  %vm3342_vm13 = vweird.f32 %v10796_v35  ;;  %vm3362_vm15 = vweird.f32 %v10794_v49 }
 0x246   : > { %v3957_v3 = vadd.f32 %v10803_v33, %v3889_v48  ;;  %v2947_v12 = vpop.xlane.xlu0 %2946  ;;  %v2951_v7 = vpop.xlane.xlu1 %2950  ;;  %v3330_v42 = vsub.f32 1.5, %v3329_v62 }
 0x247   : > { %v10814_v4 = vsub.f32 %v7558_v32, %v2742_v37  ;;  %v3056_v10 = vmul.f32 %v2947_v12, %v8403_v40  ;;  %v3058_v48 = vmul.f32 %v2951_v7, %v8403_v40  ;;  %v10833_v12 = vpop.f32.mrf.mxu1  ;;  %v14400_v32 = vld [vmem:[#allocation26_spill] sm:$0xff] }
 0x248   : > { %v4085_v38 = vmul.f32 %v4021_v31, %v3957_v3  ;;  %v3331_v62 = vmul.f32 %v10772_v41, %v3330_v42 }
 0x249   : > { %v10819_v34 = vadd.f32 1e-06, %v3056_v10  ;;  %v10821_v39 = vpop.eup %7209  ;;  %v2870_v26 = vmul.f32 %v10814_v4, %v10814_v4  ;;  %v10837_v7 = vadd.f32 1e-06, %v3058_v48 }
 0x24a   : > { %v4149_v24 = vadd.f32 %v4085_v38, %v2123_v56  ;;  %v7212_v51 = vpop.eup %7211  ;;  %v3357_v37 = vmul.f32 %v10821_v39, %v10794_v49  ;;  %v3335_v18 = vsel %vm10844_vm12, %v10772_v41, %v3331_v62  ;;  %v7559_v62 = vld [vmem:[%s7900_s28 + $0xd8] sm:$0xff]  ;;  %vm3363_vm0 = vweird.f32 %v10821_v39 }
 0x24b   : > { %7213 = vrsqrt.f32 %v10819_v34  ;;  %v3337_v31 = vmul.f32 %v7212_v51, %v10796_v35  ;;  %2958 = vadd.xlane.f32.xlu0 %v2870_v26  ;;  %2353 = vmatmul.bf16.gmra.mxu1 %v10392_v5  ;;  %vm3343_vm14 = vweird.f32 %v7212_v51  ;;  %v10863_v5 = vld [vmem:[%s7900_s28 + $0xf8] sm:$0xff]  ;;  %vm3352_vm2 = vweird.f32 %v10819_v34  ;;  %vm10923_vm3 = vmor %vm3362_vm15, %vm3363_vm0 }
 0x24c   : > { %v4205_v56 = vpack.c.bf16 %v4149_v24, %v4148_v59  ;;  %v3358_v21 = vmul.f32 %v10821_v39, %v3357_v37  ;;  %7215 = vrsqrt.f32 %v10837_v7  ;;  %vm10865_vm1 = vmor %vm3342_vm13, %vm3343_vm14  ;;  %v7560_v24 = vld [vmem:[%s7900_s28 + $0xc8] sm:$0xff]  ;;  %vm3372_vm6 = vweird.f32 %v10837_v7 }
 0x24d   : > { %v4322_v3 = vpop.f32.mrf.mxu3  ;;  %2432 = vmatmul.bf16.gmra.mxu2 %v14400_v32  ;;  %v3338_v25 = vmul.f32 %v7212_v51, %v3337_v31  ;;  %v2953_v37 = vpop.xlane.xlu2 %2952 }
 0x24e   : > { %v10840_v10 = vadd.f32 %v10486_v2, %v4322_v3  ;;  %v2634_v38 = vpop.xlane.xlu0 %2633  ;;  %4341 = vmatmul.bf16.gmra.mxu3 %v4205_v56  ;;  %v3059_v3 = vmul.f32 %v2953_v37, %v8403_v40  ;;  %v10857_v32 = vpop.f32.mrf.mxu2 }
 0x24f   : > { %v2638_v42 = vpop.xlane.xlu1 %2637  ;;  %v2743_v26 = vmul.f32 %v8403_v40, %v2634_v38  ;;  %v3339_v59 = vmul.f32 0.5, %v3338_v25  ;;  %14403 = vst [vmem:[#allocation26_spill] sm:$0xff] %v10857_v32  ;;  %v3359_v25 = vmul.f32 0.5, %v3358_v21  ;;  %v3822_v32 = vmul.f32 %v3335_v18, %v10055_v63  ;;  %v10881_v14 = vpop.f32.mrf.mxu1 }
 0x250   : > { %v6518_v48 = vmul.f32 -1.442695, %v10840_v10  ;;  %v2745_v56 = vmul.f32 %v8403_v40, %v2638_v42  ;;  %v10869_v41 = vadd.f32 1e-06, %v3059_v3 }
 0x251   : > { %v10850_v31 = vpop.eup %7213  ;;  %v3340_v35 = vsub.f32 1.5, %v3339_v59  ;;  %v10875_v21 = vsub.f32 %v7560_v24, %v2743_v26 }
 0x252   : > { %v3347_v38 = vmul.f32 %v10850_v31, %v10819_v34  ;;  %7217 = vpow2.f32 %v6518_v48  ;;  %v10872_v42 = vsub.f32 %v7559_v62, %v2745_v56  ;;  %v3360_v48 = vsub.f32 1.5, %v3359_v25  ;;  %v10893_v18 = vpop.eup %7215 }
 0x253   : > { %v3341_v59 = vmul.f32 %v7212_v51, %v3340_v35  ;;  %2645 = vadd.xlane.f32.xlu0 %v10863_v5  ;;  %7219 = vrsqrt.f32 %v10869_v41  ;;  %v2871_v63 = vmul.f32 %v10875_v21, %v10875_v21  ;;  %v2295_v25 = vadd.f32 %v10753_v9, %v9579_v36 }
 0x254   : > { %14406 = vst [vmem:[#allocation73_spill] sm:$0xff] %v10872_v42  ;;  %v3348_v37 = vmul.f32 %v10850_v31, %v3347_v38  ;;  %v2873_v38 = vmul.f32 %v10872_v42, %v10872_v42  ;;  %v3890_v62 = vmul.f32 %v10764_v58, %v3822_v32  ;;  %vm3353_vm4 = vweird.f32 %v10850_v31  ;;  %v11108_v42 = vld [vmem:[%s7900_s28 + $0x120] sm:$0xff] }
 0x255   : > { %v4324_v22 = vpop.f32.mrf.mxu3  ;;  %v3345_v3 = vsel %vm10865_vm1, %v7212_v51, %v3341_v59  ;;  %v2955_v51 = vpop.xlane.xlu2 %2954  ;;  %2960 = vadd.xlane.f32.xlu1 %v2871_v63  ;;  %v10917_v63 = vld [vmem:[%s7900_s28 + $0x100] sm:$0xff]  ;;  %vm10938_vm5 = vmor %vm3352_vm2, %vm3353_vm4  ;;  %vm3382_vm7 = vweird.f32 %v10869_v41  ;;  %vm3373_vm11 = vweird.f32 %v10893_v18 }
 0x256   : > { %v3349_v56 = vmul.f32 0.5, %v3348_v37  ;;  %v3823_v26 = vmul.f32 %v3345_v3, %v10156_v20  ;;  %v10887_v35 = vadd.f32 %v10486_v2, %v4324_v22  ;;  %2964 = vadd.xlane.f32.xlu2 %v2873_v38  ;;  %v3060_v59 = vmul.f32 %v2955_v51, %v8403_v40  ;;  %v10927_v51 = vpop.f32.mrf.mxu2  ;;  %v2636_v0 = vpop.xlane.xlu0 %2635  ;;  %vm11079_vm14 = vmor %vm3372_vm6, %vm3373_vm11 }
 0x257   : > { %v2640_v9 = vpop.xlane.xlu1 %2639  ;;  %v3361_v37 = vmul.f32 %v10821_v39, %v3360_v48  ;;  %14409 = vst [vmem:[#allocation74_spill] sm:$0xff] %v10927_v51  ;;  %v14412_v51 = vld [vmem:[#allocation22_spill] sm:$0xff] }
 0x258   : > { %v3350_v20 = vsub.f32 1.5, %v3349_v56  ;;  %v7218_v22 = vpop.eup %7217  ;;  %v6519_v24 = vmul.f32 -1.442695, %v10887_v35  ;;  %v3891_v32 = vmul.f32 %v10764_v58, %v3823_v26  ;;  %v3367_v56 = vmul.f32 %v10893_v18, %v10837_v7 }
 0x259   : > { %v10907_v46 = vadd.f32 1.0, %v7218_v22  ;;  %v10909_v3 = vpop.eup %7219  ;;  %v10914_v38 = vadd.f32 1e-06, %v3060_v59  ;;  %v2746_v22 = vmul.f32 %v8403_v40, %v2640_v9  ;;  %v4022_v59 = vadd.f32 1.0, %v2295_v25  ;;  %v10943_v9 = vpop.f32.mrf.mxu1 }
 0x25a   : > { %7221 = vpow2.f32 %v6519_v24  ;;  %v3351_v26 = vmul.f32 %v10850_v31, %v3350_v20  ;;  %v3958_v24 = vadd.f32 %v10803_v33, %v3890_v62  ;;  %v3377_v25 = vmul.f32 %v10909_v3, %v10869_v41  ;;  %v14413_v62 = vld [vmem:[#allocation30_spill] sm:$0xff] }
 0x25b   : > { %2647 = vadd.xlane.f32.xlu0 %v10917_v63  ;;  %2358 = vmatmul.bf16.gmra.mxu1 %v10505_v61  ;;  %7223 = vrcp.f32 %v10907_v46  ;;  %v2126_v61 = vadd.f32 %v14412_v51, %v9542_v47  ;;  %v3365_v34 = vsel %vm10923_vm3, %v10821_v39, %v3361_v37  ;;  %v3959_v45 = vadd.f32 %v10803_v33, %v3891_v32  ;;  %v14415_v37 = vld [vmem:[#allocation23_spill] sm:$0xff]  ;;  %v11121_v41 = vld [vmem:[%s7900_s28 + $0x110] sm:$0xff] }
 0x25c   : > { %v3368_v54 = vmul.f32 %v10893_v18, %v3367_v56  ;;  %7225 = vrsqrt.f32 %v10914_v38  ;;  %v3355_v19 = vsel %vm10938_vm5, %v10850_v31, %v3351_v26  ;;  %v3378_v51 = vmul.f32 %v10909_v3, %v3377_v25  ;;  %v14416_v31 = vld [vmem:[#allocation25_spill] sm:$0xff] }
 0x25d   : > { %v4327_v20 = vpop.f32.mrf.mxu3  ;;  %2437 = vmatmul.bf16.gmra.mxu2 %v14413_v62  ;;  %v10961_v1 = vsub.f32 %v7561_v16, %v2746_v22  ;;  %v2744_v62 = vmul.f32 %v8403_v40, %v2636_v0  ;;  %v2642_v48 = vpop.xlane.xlu2 %2641  ;;  %v2128_v32 = vadd.f32 %v14415_v37, %v9542_v47  ;;  %v4086_v52 = vmul.f32 %v4022_v59, %v3958_v24  ;;  %v7562_v22 = vld [vmem:[%s7900_s28 + $0xd0] sm:$0xff]  ;;  %v14418_v24 = vld [vmem:[#allocation27_spill] sm:$0xff] }
 0x25e   : > { %v2300_v56 = vadd.f32 %v10833_v12, %v9579_v36  ;;  %v10969_v17 = vadd.f32 %v10486_v2, %v4327_v20  ;;  %v10973_v26 = vadd.f32 %v14416_v31, %v9542_v47  ;;  %v3825_v16 = vmul.f32 %v3365_v34, %v10144_v50 }
 0x25f   : > { %14414 = vst [vmem:[#allocation22_spill] sm:$0xff] %v10961_v1  ;;  %v10977_v0 = vsub.f32 %v7562_v22, %v2744_v62  ;;  %v2874_v49 = vmul.f32 %v10961_v1, %v10961_v1  ;;  %v10985_v12 = vadd.f32 %v14418_v24, %v9542_v47  ;;  %v4087_v59 = vmul.f32 %v4023_v23, %v3959_v45 }
 0x260   : > { %v7222_v39 = vpop.eup %7221  ;;  %v3824_v20 = vmul.f32 %v3355_v19, %v10211_v57  ;;  %v6520_v37 = vmul.f32 -1.442695, %v10969_v17  ;;  %v10989_v31 = vmul.f32 0.5, %v3368_v54  ;;  %v3379_v50 = vmul.f32 0.5, %v3378_v51 }
 0x261   : > { %14417 = vst [vmem:[#allocation30_spill] sm:$0xff] %v10977_v0  ;;  %v10981_v25 = vpop.eup %7223  ;;  %v10992_v34 = vadd.f32 1.0, %v7222_v39  ;;  %2966 = vadd.xlane.f32.xlu2 %v2874_v49  ;;  %v2872_v62 = vmul.f32 %v10977_v0, %v10977_v0  ;;  %v4150_v24 = vadd.f32 %v4086_v52, %v2126_v61  ;;  %v10998_v1 = vadd.f32 1.0, %v2300_v56  ;;  %v11001_v54 = vpop.f32.mrf.mxu1 }
 0x262   : > { %v10996_v22 = vpop.eup %7225  ;;  %7227 = vpow2.f32 %v6520_v37  ;;  %v4814_v45 = vmul.f32 %v10981_v25, %v10907_v46  ;;  %v2302_v23 = vadd.f32 %v10881_v14, %v9579_v36  ;;  %v3893_v19 = vmul.f32 %v10764_v58, %v3825_v16  ;;  %v11010_v52 = vpop.f32.mrf.mxu2 }
 0x263   : > { %v3387_v61 = vmul.f32 %v10996_v22, %v10914_v38  ;;  %2962 = vadd.xlane.f32.xlu1 %v2872_v62  ;;  %14419 = vst [vmem:[#allocation23_spill] sm:$0xff] %v11010_v52  ;;  %v3892_v51 = vmul.f32 %v10764_v58, %v3824_v20  ;;  %v2747_v39 = vmul.f32 %v8403_v40, %v2642_v48  ;;  %v3370_v14 = vsub.f32 1.5, %v10989_v31  ;;  %v7563_v20 = vld [vmem:[%s7900_s28 + $0xe8] sm:$0xff] }
 0x264   : > { %v4151_v56 = vadd.f32 %v4087_v59, %v2128_v32  ;;  %v3380_v37 = vsub.f32 1.5, %v3379_v50  ;;  %7229 = vrcp.f32 %v10992_v34  ;;  %vm3383_vm8 = vweird.f32 %v10909_v3  ;;  %v11026_v32 = vld [vmem:[%s7900_s28 + $0x118] sm:$0xff] }
 0x265   : > { %v4329_v57 = vpop.f32.mrf.mxu3  ;;  %v3388_v16 = vmul.f32 %v10996_v22, %v3387_v61  ;;  %vm3392_vm9 = vweird.f32 %v10914_v38  ;;  %v11023_v62 = vsub.f32 %v7563_v20, %v2747_v39  ;;  %vm3393_vm10 = vweird.f32 %v10996_v22  ;;  %v11035_v39 = vld [vmem:[%s7900_s28 + $0x108] sm:$0xff]  ;;  %vm11043_vm12 = vmor %vm3382_vm7, %vm3383_vm8  ;;  %v14426_v38 = vld [vmem:[#allocation39_spill] sm:$0xff] }
 0x266   : > { %v11015_v49 = vadd.f32 %v10486_v2, %v4329_v57  ;;  %v2644_v8 = vpop.xlane.xlu2 %2643  ;;  %v4206_v48 = vpack.c.bf16 %v4151_v56, %v4150_v24  ;;  %v4815_v2 = vsub.f32 1.0, %v4814_v45  ;;  %v3960_v57 = vadd.f32 %v10803_v33, %v3892_v51  ;;  %vm11060_vm13 = vmor %vm3392_vm9, %vm3393_vm10 }
 0x267   : > { %14420 = vst [vmem:[#allocation25_spill] sm:$0xff] %v11023_v62  ;;  %v3389_v59 = vmul.f32 0.5, %v3388_v16  ;;  %v2875_v61 = vmul.f32 %v11023_v62, %v11023_v62  ;;  %v2748_v24 = vmul.f32 %v8403_v40, %v2644_v8  ;;  %v3381_v45 = vmul.f32 %v10909_v3, %v3380_v37  ;;  %v14423_v8 = vld [vmem:[#allocation33_spill] sm:$0xff] }
 0x268   : > { %v6521_v31 = vmul.f32 -1.442695, %v11015_v49  ;;  %v7228_v50 = vpop.eup %7227  ;;  %4346 = vmatmul.bf16.gmra.mxu3 %v4206_v48  ;;  %v11053_v20 = vadd.f32 %v14423_v8, %v9542_v47  ;;  %v3961_v37 = vadd.f32 %v10803_v33, %v3893_v19  ;;  %v4025_v48 = vadd.f32 1.0, %v2302_v23 }
 0x269   : > { %v3390_v51 = vsub.f32 1.5, %v3389_v59  ;;  %v11047_v16 = vadd.f32 1.0, %v7228_v50  ;;  %2653 = vadd.xlane.f32.xlu2 %v11026_v32  ;;  %2968 = vadd.xlane.f32.xlu0 %v2875_v61  ;;  %v7564_v59 = vld [vmem:[%s7900_s28 + $0xf0] sm:$0xff]  ;;  %v2309_v52 = vpop.f32.mrf.mxu1  ;;  %v3371_v8 = vmul.f32 %v10893_v18, %v3370_v14  ;;  %v4816_v23 = vmul.f32 %v10981_v25, %v4815_v2 }
 0x26a   : > { %7231 = vpow2.f32 %v6521_v31  ;;  %v11065_v31 = vsub.f32 %v7564_v59, %v2748_v24  ;;  %vm4818_vm1 = vweird.f32 %v10907_v46  ;;  %v4822_v14 = vand.u32 2147483647, %v10907_v46  ;;  %v11089_v24 = vld [vmem:[%s13959_s7] ss:$0 sm:$0xff] }
 0x26b   : > { %2363 = vmatmul.bf16.gmra.mxu1 %v10611_v13  ;;  %v11067_v13 = vpop.eup %7229  ;;  %v3391_v19 = vmul.f32 %v10996_v22, %v3390_v51  ;;  %7233 = vrcp.f32 %v11047_v16  ;;  %2649 = vadd.xlane.f32.xlu1 %v11035_v39  ;;  %v4824_v2 = vand.u32 2147483648, %v10907_v46  ;;  %v4088_v7 = vmul.f32 %v10998_v1, %v3960_v57 }
 0x26c   : > { %v3385_v59 = vsel %vm11043_vm12, %v10909_v3, %v3381_v45  ;;  %v2310_v62 = vadd.f32 %v2309_v52, %v9579_v36  ;;  %v4829_v3 = vmul.f32 %v11067_v13, %v10992_v34  ;;  %v4817_v52 = vadd.f32 %v10981_v25, %v4816_v23 }
 0x26d   : > { %v4332_v50 = vpop.f32.mrf.mxu3  ;;  %2442 = vmatmul.bf16.gmra.mxu2 %v14426_v38  ;;  %v3395_v38 = vsel %vm11060_vm13, %v10996_v22, %v3391_v19  ;;  %v3375_v22 = vsel %vm11079_vm14, %v10893_v18, %v3371_v8  ;;  %vm4819_vm15 = vweird.f32 %v10981_v25  ;;  %v4089_v45 = vmul.f32 %v4025_v48, %v3961_v37 }
 0x26e   : > { %v11092_v51 = vadd.f32 %v11089_v24, %v4332_v50  ;;  %v2876_v50 = vmul.f32 %v11065_v31, %v11065_v31  ;;  %v3828_v1 = vmul.f32 %v3395_v38, %v10304_v60  ;;  %v4830_v19 = vsub.f32 1.0, %v4829_v3  ;;  %vm11134_vm2 = vmor %vm4818_vm1, %vm4819_vm15 }
 0x26f   : > { %vm11126_vm0 = vcmp.eq.f32.partialorder %v4822_v14, 8.507059e+37  ;;  %v4825_v18 = vor.u32 1.1754944e-38, %v4824_v2  ;;  %v3827_v8 = vmul.f32 %v3385_v59, %v10271_v55  ;;  %v4028_v37 = vadd.f32 1.0, %v2310_v62 }
 0x270   : > { %v11102_v0 = vpop.f32.mrf.mxu2  ;;  %v6522_v44 = vmul.f32 -1.442695, %v11092_v51  ;;  %v7232_v57 = vpop.eup %7231  ;;  %v3896_v60 = vmul.f32 %v10764_v58, %v3828_v1  ;;  %v4152_v48 = vadd.f32 %v4088_v7, %v10973_v26  ;;  %v3826_v23 = vmul.f32 %v3375_v22, %v10226_v43 }
 0x271   : > { %14429 = vst [vmem:[#allocation27_spill] sm:$0xff] %v11102_v0  ;;  %v11118_v56 = vadd.f32 1.0, %v7232_v57  ;;  %v11124_v38 = vpop.eup %7233  ;;  %2655 = vadd.xlane.f32.xlu2 %v11108_v42  ;;  %v2307_v61 = vadd.f32 %v11001_v54, %v9579_v36  ;;  %2970 = vadd.xlane.f32.xlu0 %v2876_v50  ;;  %v4821_v62 = vsel %vm11134_vm2, %v10981_v25, %v4817_v52  ;;  %vm4834_vm4 = vweird.f32 %v11067_v13 }
 0x272   : > { %7235 = vpow2.f32 %v6522_v44  ;;  %v4844_v46 = vmul.f32 %v11124_v38, %v11047_v16  ;;  %v3964_v26 = vadd.f32 %v10803_v33, %v3896_v60  ;;  %v4153_v14 = vadd.f32 %v4089_v45, %v10985_v12 }
 0x273   : > { %7237 = vrcp.f32 %v11118_v56  ;;  %2651 = vadd.xlane.f32.xlu1 %v11121_v41  ;;  %v4831_v54 = vmul.f32 %v11067_v13, %v4830_v19  ;;  %v4839_v2 = vand.u32 2147483648, %v10992_v34  ;;  %v3895_v25 = vmul.f32 %v10764_v58, %v3827_v8  ;;  %v11174_v19 = vld [vmem:[%s7900_s28 + $0x128] sm:$0xff] }
 0x274   : > { %v4092_v7 = vmul.f32 %v4028_v37, %v3964_v26  ;;  %v4837_v50 = vand.u32 2147483647, %v10992_v34  ;;  %v2305_v12 = vadd.f32 %v10943_v9, %v9579_v36  ;;  %v4207_v57 = vpack.c.bf16 %v4153_v14, %v4152_v48  ;;  %v14436_v26 = vld [vmem:[#allocation31_spill] sm:$0xff] }
 0x275   : > { %v4334_v55 = vpop.f32.mrf.mxu3  ;;  %v4832_v22 = vadd.f32 %v11067_v13, %v4831_v54  ;;  %vm4833_vm3 = vweird.f32 %v10992_v34  ;;  %v4845_v52 = vsub.f32 1.0, %v4844_v46  ;;  %v4826_v9 = vsel %vm11126_vm0, %v4825_v18, %v4821_v62  ;;  %v14435_v62 = vld [vmem:[#allocation52_spill] sm:$0xff] }
 0x276   : > { %v11151_v43 = vadd.f32 %v11089_v24, %v4334_v55  ;;  %v11169_v60 = vadd.f32 %v4092_v7, %v11053_v20  ;;  %vm4835_vm5 = vmor %vm4833_vm3, %vm4834_vm4  ;;  %v3894_v37 = vmul.f32 %v10764_v58, %v3826_v23  ;;  %v4840_v44 = vor.u32 1.1754944e-38, %v4839_v2 }
 0x277   : > { %v4836_v34 = vsel %vm4835_vm5, %v11067_v13, %v4832_v22  ;;  %v3963_v20 = vadd.f32 %v10803_v33, %v3895_v25  ;;  %v4027_v55 = vadd.f32 1.0, %v2307_v61  ;;  %vm4838_vm6 = vcmp.eq.f32.partialorder %v4837_v50, 8.507059e+37 }
 0x278   : > { %v6523_v59 = vmul.f32 -1.442695, %v11151_v43  ;;  %v7236_v1 = vpop.eup %7235  ;;  %v11160_v3 = vpop.f32.mrf.mxu2  ;;  %4351 = vmatmul.bf16.gmra.mxu3 %v4207_v57  ;;  %v4841_v46 = vsel %vm4838_vm6, %v4840_v44, %v4836_v34  ;;  %v5689_v0 = vmul.f32 %v4826_v9, %v10840_v10  ;;  %v4846_v18 = vmul.f32 %v11124_v38, %v4845_v52  ;;  %v11205_v9 = vld [vmem:[%s7900_s28 + $0x130] sm:$0xff]  ;;  %v14438_v34 = vld [vmem:[#allocation29_spill] sm:$0xff] }
 0x279   : > { %14434 = vst [vmem:[#allocation33_spill] sm:$0xff] %v11160_v3  ;;  %v11166_v45 = vadd.f32 1.0, %v7236_v1  ;;  %v7238_v8 = vpop.eup %7237  ;;  %2657 = vadd.xlane.f32.xlu0 %v11174_v19  ;;  %v5690_v23 = vmul.f32 %v4841_v46, %v10887_v35  ;;  %v2138_v14 = vadd.f32 %v14436_v26, %v9542_v47  ;;  %v3962_v61 = vadd.f32 %v10803_v33, %v3894_v37 }
 0x27a   : > { %7239 = vpow2.f32 %v6523_v59  ;;  %v4859_v48 = vmul.f32 %v7238_v8, %v11118_v56  ;;  %v4026_v54 = vadd.f32 1.0, %v2305_v12  ;;  %vm4864_vm7 = vweird.f32 %v7238_v8 }
 0x27b   : > { %7241 = vrcp.f32 %v11166_v45  ;;  %v4091_v7 = vmul.f32 %v4027_v55, %v3963_v20  ;;  %v5750_v59 = vpack.c.bf16 %v5690_v23, %v5689_v0  ;;  %vm4849_vm8 = vweird.f32 %v11124_v38 }
 0x27c   : > { %v4860_v58 = vsub.f32 1.0, %v4859_v48  ;;  %v4869_v50 = vand.u32 2147483648, %v11118_v56  ;;  %v4847_v12 = vadd.f32 %v11124_v38, %v4846_v18  ;;  %vm4863_vm9 = vweird.f32 %v11118_v56 }
 0x27d   : > { %v4337_v13 = vpop.f32.mrf.mxu3  ;;  %2447 = vmatmul.bf16.gmra.mxu2 %v14435_v62  ;;  %v4867_v52 = vand.u32 2147483647, %v11118_v56  ;;  %5870 = vmatmul.bf16.gmra.mxu0 %v5750_v59  ;;  %v2136_v44 = vadd.f32 %v14438_v34, %v9542_v47  ;;  %v4854_v48 = vand.u32 2147483648, %v11047_v16  ;;  %v4090_v20 = vmul.f32 %v4026_v54, %v3962_v61  ;;  %vm11213_vm10 = vmor %vm4863_vm9, %vm4864_vm7 }
 0x27e   : > { %v11192_v2 = vadd.f32 %v11089_v24, %v4337_v13  ;;  %v4861_v10 = vmul.f32 %v7238_v8, %v4860_v58  ;;  %vm4848_vm11 = vweird.f32 %v11047_v16  ;;  %v4852_v56 = vand.u32 2147483647, %v11047_v16 }
 0x27f   : > { %vm4850_vm12 = vmor %vm4848_vm11, %vm4849_vm8  ;;  %v4870_v0 = vor.u32 1.1754944e-38, %v4869_v50  ;;  %v4155_v18 = vadd.f32 %v4091_v7, %v2138_v14  ;;  %vm4868_vm13 = vcmp.eq.f32.partialorder %v4867_v52, 8.507059e+37  ;;  %v4855_v62 = vor.u32 1.1754944e-38, %v4854_v48 }
 0x280   : > { %v7240_v25 = vpop.eup %7239  ;;  %v11195_v35 = vpop.f32.mrf.mxu2  ;;  %v6524_v57 = vmul.f32 -1.442695, %v11192_v2  ;;  %v4862_v22 = vadd.f32 %v7238_v8, %v4861_v10  ;;  %v4851_v58 = vsel %vm4850_vm12, %v11124_v38, %v4847_v12  ;;  %v4154_v16 = vadd.f32 %v4090_v20, %v2136_v44 }
 0x281   : > { %14437 = vst [vmem:[#allocation39_spill] sm:$0xff] %v11195_v35  ;;  %v11198_v1 = vadd.f32 1.0, %v7240_v25  ;;  %v11207_v37 = vpop.eup %7241  ;;  %2659 = vadd.xlane.f32.xlu0 %v11205_v9  ;;  %vm4853_vm14 = vcmp.eq.f32.partialorder %v4852_v56, 8.507059e+37  ;;  %vm4878_vm4 = vweird.f32 %v11166_v45 }
 0x282   : > { %v4866_v46 = vsel %vm11213_vm10, %v7238_v8, %v4862_v22  ;;  %v4874_v23 = vmul.f32 %v11207_v37, %v11166_v45  ;;  %v4856_v54 = vsel %vm4853_vm14, %v4855_v62, %v4851_v58  ;;  %v4208_v10 = vpack.c.bf16 %v4155_v18, %v4154_v16 }
 0x283   : > { %7243 = vrcp.f32 %v11198_v1  ;;  %v4871_v26 = vsel %vm4868_vm13, %v4870_v0, %v4866_v46  ;;  %v5691_v12 = vmul.f32 %v4856_v54, %v10969_v17  ;;  %vm4879_vm15 = vweird.f32 %v11207_v37 }
 0x284   : > { %7245 = vpow2.f32 %v6524_v57  ;;  %v5692_v7 = vmul.f32 %v4871_v26, %v11015_v49  ;;  %v4875_v59 = vsub.f32 1.0, %v4874_v23  ;;  %v4899_v55 = vand.u32 2147483648, %v11198_v1  ;;  %vm4880_vm3 = vmor %vm4878_vm4, %vm4879_vm15 }
 0x285   : > { %v4339_v13 = vpop.f32.mrf.mxu3  ;;  %vm4893_vm0 = vweird.f32 %v11198_v1  ;;  %v4897_v56 = vand.u32 2147483647, %v11198_v1  ;;  %v4882_v18 = vand.u32 2147483647, %v11166_v45 }
 0x286   : > { %v11229_v8 = vadd.f32 %v11089_v24, %v4339_v13  ;;  %v4876_v52 = vmul.f32 %v11207_v37, %v4875_v59  ;;  %v5751_v44 = vpack.c.bf16 %v5692_v7, %v5691_v12  ;;  %v4900_v23 = vor.u32 1.1754944e-38, %v4899_v55 }
 0x287   : > { %vm4898_vm5 = vcmp.eq.f32.partialorder %v4897_v56, 8.507059e+37  ;;  %vm4883_vm6 = vcmp.eq.f32.partialorder %v4882_v18, 8.507059e+37 }
 0x288   : > { %v11231_v25 = vpop.f32.mrf.mxu2  ;;  %v6525_v14 = vmul.f32 -1.442695, %v11229_v8  ;;  %4356 = vmatmul.bf16.gmra.mxu3 %v4208_v10  ;;  %v4877_v17 = vadd.f32 %v11207_v37, %v4876_v52 }
 0x289   : > { %v7244_v61 = vpop.eup %7243  ;;  %14441 = vst [vmem:[#allocation52_spill] sm:$0xff] %v11231_v25 }
 0x28a   : > { %v7246_v38 = vpop.eup %7245  ;;  %v4889_v50 = vmul.f32 %v7244_v61, %v11198_v1  ;;  %7247 = vpow2.f32 %v6525_v14  ;;  %vm4894_vm1 = vweird.f32 %v7244_v61  ;;  %v4881_v13 = vsel %vm4880_vm3, %v11207_v37, %v4877_v17 }
 0x28b   : > { %v11236_v57 = vadd.f32 1.0, %v7246_v38  ;;  %vm4895_vm2 = vmor %vm4893_vm0, %vm4894_vm1 }
 0x28c   : > { %v4890_v22 = vsub.f32 1.0, %v4889_v50 }
 0x28d   : > { %7249 = vrcp.f32 %v11236_v57  ;;  %2452 = vmatmul.bf16.gmra.mxu2 %v9710_v29  ;;  %5875 = vmatmul.bf16.gmra.mxu0 %v5751_v44  ;;  %v4884_v29 = vand.u32 2147483648, %v11166_v45  ;;  %vm4908_vm11 = vweird.f32 %v11236_v57 }
 0x28e   : > { %v4891_v34 = vmul.f32 %v7244_v61, %v4890_v22 }
 0x28f   : > { %v4885_v62 = vor.u32 1.1754944e-38, %v4884_v29 }
 0x290   : > { %v4892_v48 = vadd.f32 %v7244_v61, %v4891_v34  ;;  %v7248_v49 = vpop.eup %7247  ;;  %v11243_v20 = vpop.f32.mrf.mxu2 }
 0x291   : > { %14442 = vst [vmem:[#allocation31_spill] sm:$0xff] %v11243_v20  ;;  %v4672_v46 = vadd.f32 1.0, %v7248_v49  ;;  %v4886_v26 = vsel %vm4883_vm6, %v4885_v62, %v4881_v13 }
 0x292   : > { %v4896_v58 = vsel %vm4895_vm2, %v7244_v61, %v4892_v48  ;;  %v5693_v38 = vmul.f32 %v4886_v26, %v11092_v51  ;;  %v4912_v48 = vand.u32 2147483647, %v11236_v57  ;;  %v7567_v26 = vld [vmem:[%s7900_s28] sm:$0xff] }
 0x293   : > { %v7250_v0 = vpop.eup %7249  ;;  %7251 = vrcp.f32 %v4672_v46  ;;  %v4901_v16 = vsel %vm4898_vm5, %v4900_v23, %v4896_v58  ;;  %v4929_v52 = vand.u32 2147483648, %v4672_v46  ;;  %vm4923_vm9 = vweird.f32 %v4672_v46 }
 0x294   : > { %v4904_v1 = vmul.f32 %v7250_v0, %v11236_v57  ;;  %v5694_v45 = vmul.f32 %v4901_v16, %v11151_v43  ;;  %vm4909_vm8 = vweird.f32 %v7250_v0  ;;  %v4927_v44 = vand.u32 2147483647, %v4672_v46 }
 0x295   : > { %v4914_v43 = vand.u32 2147483648, %v11236_v57  ;;  %vm4910_vm12 = vmor %vm4908_vm11, %vm4909_vm8  ;;  %v4930_v49 = vor.u32 1.1754944e-38, %v4929_v52  ;;  %vm4913_vm14 = vcmp.eq.f32.partialorder %v4912_v48, 8.507059e+37  ;;  %v11273_v57 = vld [vmem:[%s13961_s9] ss:$0 sm:$0xff]  ;;  %v2311_v52 = vpop.f32.mrf.mxu1  ;;  %2368 = vmatmul.bf16.gmra.mxu1 %v10678_v28 }
 0x296   : > { %v4905_v61 = vsub.f32 1.0, %v4904_v1  ;;  %v5752_v50 = vpack.c.bf16 %v5694_v45, %v5693_v38  ;;  %vm4928_vm13 = vcmp.eq.f32.partialorder %v4927_v44, 8.507059e+37 }
 0x297   : > { %v4915_v17 = vor.u32 1.1754944e-38, %v4914_v43 }
 0x298   : > { %v11256_v54 = vpop.f32.mrf.mxu2  ;;  %v4906_v59 = vmul.f32 %v7250_v0, %v4905_v61 }
 0x299   : > { %14443 = vst [vmem:[#allocation29_spill] sm:$0xff] %v11256_v54  ;;  %v7252_v10 = vpop.eup %7251 }
 0x29a   : > { %v4919_v14 = vmul.f32 %v7252_v10, %v4672_v46  ;;  %vm4924_vm7 = vweird.f32 %v7252_v10  ;;  %v4907_v34 = vadd.f32 %v7250_v0, %v4906_v59 }
 0x29b   : > { %vm4925_vm10 = vmor %vm4923_vm9, %vm4924_vm7 }
 0x29c   : > { %v4920_v7 = vsub.f32 1.0, %v4919_v14  ;;  %v4911_v55 = vsel %vm4910_vm12, %v7250_v0, %v4907_v34  ;;  %v7566_v0 = vld [vmem:[%s13957_s5] sm:$0x7] }
 0x29d   : > { %2457 = vmatmul.bf16.gmra.mxu2 %v9804_v6  ;;  %5880 = vmatmul.bf16.gmra.mxu0 %v5752_v50  ;;  %v4916_v29 = vsel %vm4913_vm14, %v4915_v17, %v4911_v55  ;;  %v11278_v13 = vperm.slane %v7566_v0, 2 }
 0x29e   : > { %v4921_v37 = vmul.f32 %v7252_v10, %v4920_v7  ;;  %v5695_v58 = vmul.f32 %v4916_v29, %v11192_v2  ;;  %v7569_v29 = vld [vmem:[%s7900_s28 + $0x10] sm:$0xff] }
 0x2a0   : > { %v11261_v12 = vpop.f32.mrf.mxu2  ;;  %v4922_v22 = vadd.f32 %v7252_v10, %v4921_v37  ;;  %v7568_v37 = vld [vmem:[%s7900_s28 + $0x8] sm:$0xff] }
 0x2a1   : > { %14444 = vst [vmem:[#allocation75_spill] sm:$0xff] %v11261_v12  ;;  %v5856_v51 = vpop.f32.mrf.mxu0 }
 0x2a2   : > { %v4926_v6 = vsel %vm4925_vm10, %v7252_v10, %v4922_v22 }
 0x2a3   : > { %v4931_v56 = vsel %vm4928_vm13, %v4930_v49, %v4926_v6 }
 0x2a4   : > { %v5696_v18 = vmul.f32 %v4931_v56, %v11229_v8  ;;  %v5857_v8 = vadd.f32 %v11273_v57, %v5856_v51 }
 0x2a6   : > { %v5753_v1 = vpack.c.bf16 %v5696_v18, %v5695_v58 }
 0x2a8   : > { %v11266_v46 = vpop.f32.mrf.mxu2 }
 0x2a9   : > { %14445 = vst [vmem:[#allocation76_spill] sm:$0xff] %v11266_v46  ;;  %v5858_v23 = vpop.f32.mrf.mxu0 }
 0x2ad   : > { %2462 = vmatmul.bf16.gmra.mxu2 %v8082_v15  ;;  %5885 = vmatmul.bf16.gmra.mxu0 %v5753_v1  ;;  %v5859_v15 = vadd.f32 %v11273_v57, %v5858_v23  ;;  %v11303_v23 = vpop.f32.mrf.mxu1 }
 0x2b0   : > { %v2423_v62 = vpop.f32.mrf.mxu2 }
 0x2b1   : > { %v2424_v2 = vadd.f32 %v2423_v62, %v11278_v13  ;;  %v5861_v45 = vpop.f32.mrf.mxu0 }
 0x2b2   : > { %v5862_v44 = vadd.f32 %v11273_v57, %v5861_v45 }
 0x2b3   : > { %v6016_v16 = vmul.f32 %v5857_v8, %v2424_v2 }
 0x2b5   : > { %v6080_v10 = vadd.f32 %v7567_v26, %v6016_v16 }
 0x2b6   : > { %v2957_v61 = vpop.xlane.xlu0 %2956 }
 0x2b7   : > { %6144 = vst [vmem:[%s11286_s15] sm:$0xff] %v6080_v10  ;;  %v3061_v14 = vmul.f32 %v2957_v61, %v8403_v40 }
 0x2b8   : > { %v2425_v38 = vpop.f32.mrf.mxu2 }
 0x2b9   : > { %v2426_v7 = vadd.f32 %v2425_v38, %v11278_v13  ;;  %v3125_v59 = vadd.f32 1e-06, %v3061_v14  ;;  %v5863_v48 = vpop.f32.mrf.mxu0  ;;  %v2312_v38 = vadd.f32 %v2311_v52, %v9579_v36 }
 0x2ba   : > { %v5864_v1 = vadd.f32 %v11273_v57, %v5863_v48 }
 0x2bb   : > { %v6017_v50 = vmul.f32 %v5859_v15, %v2426_v7  ;;  %7253 = vrsqrt.f32 %v3125_v59  ;;  %vm3402_vm15 = vweird.f32 %v3125_v59 }
 0x2bd   : > { %v6081_v22 = vadd.f32 %v7568_v37, %v6017_v50  ;;  %2467 = vmatmul.bf16.gmra.mxu2 %v8132_v30 }
 0x2be   : > { %v2959_v34 = vpop.xlane.xlu0 %2958 }
 0x2bf   : > { %6145 = vst [vmem:[%s11286_s15 + $0x8] sm:$0xff] %v6081_v22  ;;  %v3062_v43 = vmul.f32 %v2959_v34, %v8403_v40 }
 0x2c0   : > { %v2428_v51 = vpop.f32.mrf.mxu2 }
 0x2c1   : > { %v7254_v6 = vpop.eup %7253  ;;  %v2429_v49 = vadd.f32 %v2428_v51, %v11278_v13  ;;  %v11299_v55 = vadd.f32 1e-06, %v3062_v43  ;;  %v5866_v45 = vpop.f32.mrf.mxu0 }
 0x2c2   : > { %v3397_v17 = vmul.f32 %v7254_v6, %v3125_v59  ;;  %vm3403_vm1 = vweird.f32 %v7254_v6 }
 0x2c3   : > { %v6018_v30 = vmul.f32 %v5862_v44, %v2429_v49  ;;  %7255 = vrsqrt.f32 %v11299_v55  ;;  %vm3404_vm0 = vmor %vm3402_vm15, %vm3403_vm1  ;;  %v7570_v44 = vld [vmem:[%s7900_s28 + $0x18] sm:$0xff]  ;;  %vm3412_vm4 = vweird.f32 %v11299_v55 }
 0x2c4   : > { %v3398_v56 = vmul.f32 %v7254_v6, %v3397_v17  ;;  %v11329_v17 = vpop.f32.mrf.mxu1 }
 0x2c5   : > { %v6082_v18 = vadd.f32 %v7569_v29, %v6018_v30  ;;  %v14446_v30 = vld [vmem:[#allocation20_spill] sm:$0xff]  ;;  %v4029_v29 = vadd.f32 1.0, %v2312_v38 }
 0x2c6   : > { %v3399_v58 = vmul.f32 0.5, %v3398_v56  ;;  %v2646_v0 = vpop.xlane.xlu0 %2645  ;;  %2373 = vmatmul.bf16.gmra.mxu1 %v14446_v30  ;;  %v5867_v56 = vadd.f32 %v11273_v57, %v5866_v45 }
 0x2c7   : > { %6146 = vst [vmem:[%s11286_s15 + $0x10] sm:$0xff] %v6082_v18  ;;  %v2749_v8 = vmul.f32 %v8403_v40, %v2646_v0 }
 0x2c8   : > { %v2430_v62 = vpop.f32.mrf.mxu2  ;;  %v3400_v2 = vsub.f32 1.5, %v3399_v58  ;;  %v2961_v50 = vpop.xlane.xlu1 %2960 }
 0x2c9   : > { %v11308_v16 = vpop.eup %7255  ;;  %v2431_v26 = vadd.f32 %v2430_v62, %v11278_v13  ;;  %v11312_v10 = vsub.f32 %v10863_v5, %v2749_v8  ;;  %v2965_v7 = vpop.xlane.xlu2 %2964  ;;  %v3063_v59 = vmul.f32 %v2961_v50, %v8403_v40 }
 0x2ca   : > { %v3401_v61 = vmul.f32 %v7254_v6, %v3400_v2  ;;  %v3407_v15 = vmul.f32 %v11308_v16, %v11299_v55  ;;  %v3065_v34 = vmul.f32 %v2965_v7, %v8403_v40  ;;  %vm3413_vm2 = vweird.f32 %v11308_v16  ;;  %v5868_v7 = vpop.f32.mrf.mxu0 }
 0x2cb   : > { %v6019_v14 = vmul.f32 %v5864_v1, %v2431_v26  ;;  %v2877_v37 = vmul.f32 %v11312_v10, %v11312_v10  ;;  %v11327_v49 = vadd.f32 1e-06, %v3063_v59  ;;  %v14447_v1 = vld [vmem:[#allocation34_spill] sm:$0xff]  ;;  %vm11362_vm3 = vmor %vm3412_vm4, %vm3413_vm2 }
 0x2cc   : > { %v3405_v22 = vsel %vm3404_vm0, %v7254_v6, %v3401_v61  ;;  %v3408_v5 = vmul.f32 %v11308_v16, %v3407_v15  ;;  %v11325_v48 = vadd.f32 1e-06, %v3065_v34  ;;  %v2143_v8 = vadd.f32 %v14447_v1, %v9542_v47 }
 0x2cd   : > { %v6083_v43 = vadd.f32 %v7570_v44, %v6019_v14  ;;  %v3829_v51 = vmul.f32 %v3405_v22, %v10779_v53  ;;  %2972 = vadd.xlane.f32.xlu1 %v2877_v37  ;;  %2472 = vmatmul.bf16.gmra.mxu2 %v14304_v11  ;;  %v11337_v53 = vld [vmem:[%s13954_s2] ss:$0 sm:$0xff]  ;;  %v11366_v44 = vpop.f32.mrf.mxu1  ;;  %vm3422_vm5 = vweird.f32 %v11327_v49 }
 0x2ce   : > { %v3409_v52 = vmul.f32 0.5, %v3408_v5  ;;  %v2648_v6 = vpop.xlane.xlu0 %2647  ;;  %7257 = vrsqrt.f32 %v11325_v48  ;;  %v7572_v37 = vld [vmem:[%s7900_s28 + $0x20] sm:$0xff]  ;;  %vm3442_vm8 = vweird.f32 %v11325_v48 }
 0x2cf   : > { %6147 = vst [vmem:[%s11286_s15 + $0x18] sm:$0xff] %v6083_v43  ;;  %v3897_v11 = vmul.f32 %v11337_v53, %v3829_v51  ;;  %v2750_v18 = vmul.f32 %v8403_v40, %v2648_v6  ;;  %7259 = vrsqrt.f32 %v11327_v49  ;;  %v5869_v51 = vadd.f32 %v11273_v57, %v5868_v7 }
 0x2d0   : > { %v2433_v58 = vpop.f32.mrf.mxu2  ;;  %v3410_v0 = vsub.f32 1.5, %v3409_v52 }
 0x2d1   : > { %v2434_v62 = vadd.f32 %v2433_v58, %v11278_v13  ;;  %v3965_v2 = vadd.f32 %v10803_v33, %v3897_v11  ;;  %v4342_v26 = vpop.f32.mrf.mxu3  ;;  %v11348_v45 = vsub.f32 %v10917_v63, %v2750_v18 }
 0x2d2   : > { %v11351_v61 = vadd.f32 %v11089_v24, %v4342_v26  ;;  %v3411_v38 = vmul.f32 %v11308_v16, %v3410_v0 }
 0x2d3   : > { %v6020_v15 = vmul.f32 %v5867_v56, %v2434_v62  ;;  %v4093_v14 = vmul.f32 %v4029_v29, %v3965_v2  ;;  %v2878_v33 = vmul.f32 %v11348_v45, %v11348_v45 }
 0x2d4   : > { %v6526_v50 = vmul.f32 -1.442695, %v11351_v61  ;;  %v11360_v5 = vpop.eup %7257  ;;  %v2967_v59 = vpop.xlane.xlu2 %2966  ;;  %v3415_v55 = vsel %vm11362_vm3, %v11308_v16, %v3411_v38 }
 0x2d5   : > { %v6084_v22 = vadd.f32 %v7572_v37, %v6020_v15  ;;  %v4157_v63 = vadd.f32 %v4093_v14, %v2143_v8  ;;  %2974 = vadd.xlane.f32.xlu1 %v2878_v33  ;;  %v11368_v43 = vpop.eup %7259  ;;  %v3437_v52 = vmul.f32 %v11360_v5, %v11325_v48  ;;  %v3066_v6 = vmul.f32 %v2967_v59, %v8403_v40  ;;  %v11392_v14 = vld [vmem:[%s7900_s28 + $0x138] sm:$0xff] }
 0x2d6   : > { %7261 = vpow2.f32 %v6526_v50  ;;  %v3417_v11 = vmul.f32 %v11368_v43, %v11327_v49  ;;  %v2963_v29 = vpop.xlane.xlu1 %2962  ;;  %v3830_v8 = vmul.f32 %v3415_v55, %v10814_v4  ;;  %vm3423_vm6 = vweird.f32 %v11368_v43  ;;  %v7573_v50 = vld [vmem:[%s7900_s28 + $0x28] sm:$0xff]  ;;  %v11409_v55 = vpop.f32.mrf.mxu1 }
 0x2d7   : > { %6148 = vst [vmem:[%s11286_s15 + $0x20] sm:$0xff] %v6084_v22  ;;  %v4209_v18 = vpack.c.bf16 %v4157_v63, %v11169_v60  ;;  %v3438_v0 = vmul.f32 %v11360_v5, %v3437_v52  ;;  %v11383_v1 = vadd.f32 1e-06, %v3066_v6  ;;  %v3064_v2 = vmul.f32 %v2963_v29, %v8403_v40  ;;  %v14450_v52 = vld [vmem:[#allocation24_spill] sm:$0xff]  ;;  %vm11417_vm7 = vmor %vm3422_vm5, %vm3423_vm6 }
 0x2d8   : > { %v2435_v56 = vpop.f32.mrf.mxu2  ;;  %v3418_v62 = vmul.f32 %v11368_v43, %v3417_v11  ;;  %v2315_v63 = vadd.f32 %v11303_v23, %v9579_v36  ;;  %v3898_v34 = vmul.f32 %v11337_v53, %v3830_v8  ;;  %2378 = vmatmul.bf16.gmra.mxu1 %v14450_v52  ;;  %vm3443_vm9 = vweird.f32 %v11360_v5 }
 0x2d9   : > { %v2436_v58 = vadd.f32 %v2435_v56, %v11278_v13  ;;  %v4344_v16 = vpop.f32.mrf.mxu3  ;;  %4361 = vmatmul.bf16.gmra.mxu3 %v4209_v18  ;;  %v3439_v60 = vmul.f32 0.5, %v3438_v0  ;;  %v11396_v4 = vadd.f32 1e-06, %v3064_v2  ;;  %7263 = vrsqrt.f32 %v11383_v1  ;;  %vm11450_vm10 = vmor %vm3442_vm8, %vm3443_vm9 }
 0x2da   : > { %v11389_v26 = vadd.f32 %v11089_v24, %v4344_v16  ;;  %v3419_v7 = vmul.f32 0.5, %v3418_v62  ;;  %v4030_v16 = vadd.f32 1.0, %v2315_v63  ;;  %vm3452_vm13 = vweird.f32 %v11383_v1 }
 0x2db   : > { %v6021_v15 = vmul.f32 %v5869_v51, %v2436_v58  ;;  %7265 = vrsqrt.f32 %v11396_v4  ;;  %v3440_v6 = vsub.f32 1.5, %v3439_v60  ;;  %v11431_v58 = vld [vmem:[%s13955_s3] ss:$0 sm:$0xff]  ;;  %vm3432_vm11 = vweird.f32 %v11396_v4 }
 0x2dc   : > { %v7262_v38 = vpop.eup %7261  ;;  %v6527_v22 = vmul.f32 -1.442695, %v11389_v26  ;;  %v3420_v59 = vsub.f32 1.5, %v3419_v7  ;;  %v2654_v51 = vpop.xlane.xlu2 %2653  ;;  %v3966_v0 = vadd.f32 %v11431_v58, %v3898_v34  ;;  %v14457_v34 = vld [vmem:[#allocation40_spill] sm:$0xff] }
 0x2dd   : > { %v6085_v33 = vadd.f32 %v7573_v50, %v6021_v15  ;;  %v11400_v37 = vadd.f32 1.0, %v7262_v38  ;;  %2477 = vmatmul.bf16.gmra.mxu2 %v14311_v27  ;;  %2661 = vadd.xlane.f32.xlu1 %v11392_v14  ;;  %v2969_v23 = vpop.xlane.xlu0 %2968  ;;  %v2753_v11 = vmul.f32 %v8403_v40, %v2654_v51  ;;  %v3441_v48 = vmul.f32 %v11360_v5, %v3440_v6  ;;  %v14453_v38 = vld [vmem:[#allocation35_spill] sm:$0xff] }
 0x2de   : > { %v3421_v56 = vmul.f32 %v11368_v43, %v3420_v59  ;;  %v2650_v29 = vpop.xlane.xlu1 %2649  ;;  %v3067_v18 = vmul.f32 %v2969_v23, %v8403_v40  ;;  %v2146_v7 = vadd.f32 %v14453_v38, %v9542_v47  ;;  %v11468_v59 = vadd.f32 %v14457_v34, %v9542_v47  ;;  %v14458_v34 = vld [vmem:[#allocation73_spill] sm:$0xff] }
 0x2df   : > { %6149 = vst [vmem:[%s11286_s15 + $0x28] sm:$0xff] %v6085_v33  ;;  %7267 = vrcp.f32 %v11400_v37  ;;  %v2751_v49 = vmul.f32 %v8403_v40, %v2650_v29  ;;  %v11437_v62 = vpop.eup %7263  ;;  %v11441_v2 = vsub.f32 %v11026_v32, %v2753_v11  ;;  %v4094_v6 = vmul.f32 %v4030_v16, %v3966_v0  ;;  %v11480_v11 = vpop.f32.mrf.mxu1 }
 0x2e0   : > { %7269 = vpow2.f32 %v6527_v22  ;;  %v3425_v8 = vsel %vm11417_vm7, %v11368_v43, %v3421_v56  ;;  %v11455_v33 = vadd.f32 1e-06, %v3067_v18  ;;  %v11458_v22 = vld [vmem:[%s7900_s28 + $0x140] sm:$0xff]  ;;  %v2317_v27 = vadd.f32 %v11329_v17, %v9579_v36 }
 0x2e1   : > { %v11444_v15 = vsub.f32 %v11035_v39, %v2751_v49  ;;  %v11446_v60 = vpop.eup %7265  ;;  %v3831_v43 = vmul.f32 %v3425_v8, %v10875_v21  ;;  %v14456_v39 = vld [vmem:[#allocation37_spill] sm:$0xff]  ;;  %v2881_v21 = vmul.f32 %v11441_v2, %v11441_v2  ;;  %v2320_v23 = vadd.f32 %v11366_v44, %v9579_v36 }
 0x2e2   : > { %v11464_v63 = vadd.f32 %v14456_v39, %v9542_v47  ;;  %v3427_v51 = vmul.f32 %v11446_v60, %v11396_v4  ;;  %7271 = vrsqrt.f32 %v11455_v33  ;;  %v3445_v18 = vsel %vm11450_vm10, %v11360_v5, %v3441_v48 }
 0x2e3   : > { %v3447_v49 = vmul.f32 %v11437_v62, %v11383_v1  ;;  %2980 = vadd.xlane.f32.xlu0 %v2881_v21  ;;  %v2879_v44 = vmul.f32 %v11444_v15, %v11444_v15  ;;  %v3899_v16 = vmul.f32 %v11337_v53, %v3831_v43  ;;  %vm3433_vm12 = vweird.f32 %v11446_v60 }
 0x2e4   : > { %v2656_v56 = vpop.xlane.xlu2 %2655  ;;  %v3428_v17 = vmul.f32 %v11446_v60, %v3427_v51  ;;  %v4944_v48 = vand.u32 2147483648, %v11400_v37  ;;  %v3833_v51 = vmul.f32 %v3445_v18, %v14458_v34  ;;  %v4031_v21 = vadd.f32 1.0, %v2317_v27  ;;  %vm11515_vm14 = vmor %vm3432_vm11, %vm3433_vm12  ;;  %v14462_v34 = vld [vmem:[#allocation28_spill] sm:$0xff] }
 0x2e5   : > { %v11460_v32 = vpop.eup %7267  ;;  %2663 = vadd.xlane.f32.xlu1 %v11458_v22  ;;  %v2971_v0 = vpop.xlane.xlu0 %2970  ;;  %2976 = vadd.xlane.f32.xlu2 %v2879_v44  ;;  %v2754_v50 = vmul.f32 %v8403_v40, %v2656_v56  ;;  %v11500_v43 = vadd.f32 1.0, %v2320_v23  ;;  %v11503_v46 = vadd.f32 %v4094_v6, %v2146_v7  ;;  %v4942_v52 = vand.u32 2147483647, %v11400_v37 }
 0x2e6   : > { %v7270_v29 = vpop.eup %7269  ;;  %v4934_v8 = vmul.f32 %v11460_v32, %v11400_v37  ;;  %v3429_v5 = vmul.f32 0.5, %v3428_v17  ;;  %v2652_v39 = vpop.xlane.xlu1 %2651  ;;  %v3967_v56 = vadd.f32 %v11431_v58, %v3899_v16  ;;  %vm3453_vm1 = vweird.f32 %v11437_v62 }
 0x2e7   : > { %v11494_v38 = vadd.f32 1.0, %v7270_v29  ;;  %v3448_v29 = vmul.f32 %v11437_v62, %v3447_v49  ;;  %v11520_v6 = vsub.f32 %v11108_v42, %v2754_v50  ;;  %v2752_v23 = vmul.f32 %v8403_v40, %v2652_v39  ;;  %v11540_v39 = vpop.f32.mrf.mxu1  ;;  %vm11581_vm5 = vmor %vm3452_vm13, %vm3453_vm1 }
 0x2e8   : > { %v3430_v17 = vsub.f32 1.5, %v3429_v5  ;;  %v11508_v44 = vpop.eup %7271  ;;  %v4935_v7 = vsub.f32 1.0, %v4934_v8  ;;  %v11525_v49 = vor.u32 1.1754944e-38, %v4944_v48  ;;  %v14461_v5 = vld [vmem:[#allocation14_spill] sm:$0xff]  ;;  %vm4938_vm15 = vweird.f32 %v11400_v37  ;;  %2383 = vmatmul.bf16.gmra.mxu1 %v14462_v34 }
 0x2e9   : > { %7273 = vrcp.f32 %v11494_v38  ;;  %v3457_v16 = vmul.f32 %v11508_v44, %v11455_v33  ;;  %v11533_v42 = vadd.f32 %v11409_v55, %v9579_v36  ;;  %v3901_v8 = vmul.f32 %v11337_v53, %v3833_v51 }
 0x2ea   : > { %v3431_v18 = vmul.f32 %v11446_v60, %v3430_v17  ;;  %v11537_v50 = vsub.f32 %v11121_v41, %v2752_v23  ;;  %v3068_v48 = vmul.f32 %v2971_v0, %v8403_v40  ;;  %v3449_v17 = vmul.f32 0.5, %v3448_v29  ;;  %v11555_v29 = vpop.f32.mrf.mxu2 }
 0x2eb   : > { %v4347_v4 = vpop.f32.mrf.mxu3  ;;  %v3458_v12 = vmul.f32 %v11508_v44, %v3457_v16  ;;  %v4095_v41 = vmul.f32 %v4031_v21, %v3967_v56  ;;  %v4936_v23 = vmul.f32 %v11460_v32, %v4935_v7  ;;  %v2882_v34 = vmul.f32 %v11520_v6, %v11520_v6  ;;  %v14465_v21 = vld [vmem:[#allocation30_spill] sm:$0xff] }
 0x2ec   : > { %v11548_v55 = vadd.f32 %v11089_v24, %v4347_v4  ;;  %v11551_v0 = vadd.f32 1e-06, %v3068_v48  ;;  %vm4939_vm0 = vweird.f32 %v11460_v32  ;;  %vm11560_vm2 = vcmp.eq.f32.partialorder %v4942_v52, 8.507059e+37 }
 0x2ed   : > { %2482 = vmatmul.bf16.gmra.mxu2 %v14461_v5  ;;  %v3435_v5 = vsel %vm11515_vm14, %v11446_v60, %v3431_v18  ;;  %v2658_v51 = vpop.xlane.xlu0 %2657  ;;  %v3459_v60 = vmul.f32 0.5, %v3458_v12  ;;  %vm3462_vm4 = vweird.f32 %v11455_v33  ;;  %2982 = vadd.xlane.f32.xlu0 %v2882_v34  ;;  %v2880_v7 = vmul.f32 %v11537_v50, %v11537_v50  ;;  %vm11596_vm7 = vmor %vm4938_vm15, %vm4939_vm0 }
 0x2ee   : > { %v6528_v18 = vmul.f32 -1.442695, %v11548_v55  ;;  %v3832_v56 = vmul.f32 %v3435_v5, %v14465_v21  ;;  %7275 = vrsqrt.f32 %v11551_v0  ;;  %v3450_v4 = vsub.f32 1.5, %v3449_v17 }
 0x2ef   : > { %v7274_v30 = vpop.eup %7273  ;;  %v4959_v48 = vand.u32 2147483648, %v11494_v38  ;;  %v4937_v52 = vadd.f32 %v11460_v32, %v4936_v23  ;;  %v3460_v28 = vsub.f32 1.5, %v3459_v60  ;;  %2978 = vadd.xlane.f32.xlu2 %v2880_v7  ;;  %v2755_v54 = vmul.f32 %v8403_v40, %v2658_v51  ;;  %v14472_v23 = vld [vmem:[#allocation15_spill] sm:$0xff] }
 0x2f0   : > { %v4949_v27 = vmul.f32 %v7274_v30, %v11494_v38  ;;  %7277 = vpow2.f32 %v6528_v18  ;;  %v4159_v5 = vadd.f32 %v4095_v41, %v11464_v63  ;;  %vm4954_vm3 = vweird.f32 %v7274_v30 }
 0x2f1   : > { %v4957_v34 = vand.u32 2147483647, %v11494_v38  ;;  %v11575_v20 = vadd.f32 %v11431_v58, %v3901_v8  ;;  %v3900_v51 = vmul.f32 %v11337_v53, %v3832_v56  ;;  %vm3463_vm6 = vweird.f32 %v11508_v44 }
 0x2f2   : > { %v4950_v12 = vsub.f32 1.0, %v4949_v27  ;;  %v11588_v63 = vsub.f32 %v11174_v19, %v2755_v54  ;;  %v4210_v41 = vpack.c.bf16 %v4159_v5, %v11503_v46  ;;  %v3451_v8 = vmul.f32 %v11437_v62, %v3450_v4  ;;  %v11605_v19 = vld [vmem:[%s7900_s28 + $0x158] sm:$0xff]  ;;  %v11616_v56 = vpop.f32.mrf.mxu2  ;;  %vm11622_vm10 = vmor %vm3462_vm4, %vm3463_vm6 }
 0x2f3   : > { %v4349_v17 = vpop.f32.mrf.mxu3  ;;  %vm4953_vm8 = vweird.f32 %v11494_v38  ;;  %v4941_v46 = vsel %vm11596_vm7, %v11460_v32, %v4937_v52  ;;  %v3461_v37 = vmul.f32 %v11508_v44, %v3460_v28  ;;  %v4960_v18 = vor.u32 1.1754944e-38, %v4959_v48  ;;  %v11630_v48 = vld [vmem:[%s7900_s28 + $0x148] sm:$0xff] }
 0x2f4   : > { %v4951_v21 = vmul.f32 %v7274_v30, %v4950_v12  ;;  %v11602_v27 = vadd.f32 %v11089_v24, %v4349_v17  ;;  %v11607_v54 = vpop.eup %7275  ;;  %vm4955_vm9 = vmor %vm4953_vm8, %vm4954_vm3  ;;  %4366 = vmatmul.bf16.gmra.mxu3 %v4210_v41  ;;  %v2883_v38 = vmul.f32 %v11588_v63, %v11588_v63  ;;  %vm4958_vm11 = vcmp.eq.f32.partialorder %v4957_v34, 8.507059e+37 }
 0x2f5   : > { %v2660_v24 = vpop.xlane.xlu0 %2659  ;;  %v3467_v32 = vmul.f32 %v11607_v54, %v11551_v0  ;;  %v3968_v52 = vadd.f32 %v11431_v58, %v3900_v51  ;;  %2669 = vadd.xlane.f32.xlu0 %v11605_v19  ;;  %v3455_v51 = vsel %vm11581_vm5, %v11437_v62, %v3451_v8  ;;  %vm3472_vm12 = vweird.f32 %v11551_v0 }
 0x2f6   : > { %v4952_v60 = vadd.f32 %v7274_v30, %v4951_v21  ;;  %v7278_v7 = vpop.eup %7277  ;;  %v6529_v12 = vmul.f32 -1.442695, %v11602_v27  ;;  %v4033_v21 = vadd.f32 1.0, %v11533_v42  ;;  %2984 = vadd.xlane.f32.xlu1 %v2883_v38  ;;  %v2756_v34 = vmul.f32 %v8403_v40, %v2660_v24  ;;  %v11672_v38 = vld [vmem:[%s7900_s28 + $0x160] sm:$0xff] }
 0x2f7   : > { %v11634_v17 = vadd.f32 1.0, %v7278_v7  ;;  %v3468_v33 = vmul.f32 %v11607_v54, %v3467_v32  ;;  %v3465_v42 = vsel %vm11622_vm10, %v11508_v44, %v3461_v37  ;;  %2665 = vadd.xlane.f32.xlu2 %v11630_v48  ;;  %vm3473_vm13 = vweird.f32 %v11607_v54  ;;  %v14473_v37 = vld [vmem:[#allocation22_spill] sm:$0xff]  ;;  %v14475_v7 = vld [vmem:[#allocation25_spill] sm:$0xff] }
 0x2f8   : > { %v4956_v28 = vsel %vm4955_vm9, %v7274_v30, %v4952_v60  ;;  %v4946_v30 = vsel %vm11560_vm2, %v11525_v49, %v4941_v46  ;;  %7279 = vpow2.f32 %v6529_v12  ;;  %v11654_v41 = vsub.f32 %v11205_v9, %v2756_v34  ;;  %vm11684_vm14 = vmor %vm3472_vm12, %vm3473_vm13  ;;  %v11693_v34 = vld [vmem:[%s7900_s28 + $0x150] sm:$0xff]  ;;  %v11728_v32 = vld [vmem:[%s7900_s28 + $0x168] sm:$0xff] }
 0x2f9   : > { %v4961_v5 = vsel %vm4958_vm11, %v4960_v18, %v4956_v28  ;;  %7281 = vrcp.f32 %v11634_v17  ;;  %v3469_v16 = vmul.f32 0.5, %v3468_v33  ;;  %v5697_v44 = vmul.f32 %v4946_v30, %v11351_v61 }
 0x2fa   : > { %v5698_v49 = vmul.f32 %v4961_v5, %v11389_v26  ;;  %v4096_v8 = vmul.f32 %v11500_v43, %v3968_v52  ;;  %v2439_v1 = vadd.f32 %v11555_v29, %v11278_v13  ;;  %v5871_v60 = vpop.f32.mrf.mxu0  ;;  %v11664_v26 = vld [vmem:[%s13959_s7] ss:$0 sm:$0xff]  ;;  %v3834_v18 = vmul.f32 %v3455_v51, %v14473_v37  ;;  %v14474_v29 = vld [vmem:[#allocation42_spill] sm:$0xff]  ;;  %v11689_v52 = vpop.f32.mrf.mxu2 }
 0x2fb   : > { %v4352_v62 = vpop.f32.mrf.mxu3  ;;  %v3470_v46 = vsub.f32 1.5, %v3469_v16  ;;  %v5872_v61 = vadd.f32 %v11273_v57, %v5871_v60  ;;  %v2884_v43 = vmul.f32 %v11654_v41, %v11654_v41  ;;  %v2153_v24 = vadd.f32 %v14474_v29, %v9542_v47  ;;  %v2329_v16 = vpop.f32.mrf.mxu1 }
 0x2fc   : > { %v11667_v9 = vadd.f32 %v11664_v26, %v4352_v62  ;;  %v3835_v4 = vmul.f32 %v3465_v42, %v14475_v7  ;;  %v4097_v28 = vmul.f32 %v4033_v21, %v11575_v20  ;;  %v5754_v20 = vpack.c.bf16 %v5698_v49, %v5697_v44 }
 0x2fd   : > { %2487 = vmatmul.bf16.gmra.mxu2 %v14472_v23  ;;  %v3471_v30 = vmul.f32 %v11607_v54, %v3470_v46  ;;  %v6022_v33 = vmul.f32 %v5872_v61, %v2439_v1  ;;  %v4160_v0 = vadd.f32 %v4096_v8, %v11468_v59  ;;  %v2325_v51 = vadd.f32 %v11480_v11, %v9579_v36  ;;  %v7576_v23 = vld [vmem:[%s7900_s28 + $0x30] sm:$0xff] }
 0x2fe   : > { %v6530_v12 = vmul.f32 -1.442695, %v11667_v9  ;;  %v7280_v5 = vpop.eup %7279  ;;  %2671 = vadd.xlane.f32.xlu0 %v11672_v38  ;;  %2986 = vadd.xlane.f32.xlu1 %v2884_v43  ;;  %v3902_v59 = vmul.f32 %v11337_v53, %v3834_v18  ;;  %v2327_v11 = vadd.f32 %v11540_v39, %v9579_v36  ;;  %v3903_v8 = vmul.f32 %v11337_v53, %v3835_v4 }
 0x2ff   : > { %v11695_v21 = vpop.eup %7281  ;;  %v11700_v42 = vadd.f32 1.0, %v7280_v5  ;;  %v3475_v62 = vsel %vm11684_vm14, %v11607_v54, %v3471_v30  ;;  %v6086_v44 = vadd.f32 %v7576_v23, %v6022_v33  ;;  %5890 = vmatmul.bf16.gmra.mxu0 %v5754_v20  ;;  %2667 = vadd.xlane.f32.xlu2 %v11693_v34  ;;  %v4161_v1 = vadd.f32 %v4097_v28, %v2153_v24 }
 0x300   : > { %7283 = vpow2.f32 %v6530_v12  ;;  %v4964_v49 = vmul.f32 %v11695_v21, %v11634_v17  ;;  %v2330_v60 = vadd.f32 %v2329_v16, %v9579_v36  ;;  %v3836_v46 = vmul.f32 %v3475_v62, %v11065_v31 }
 0x301   : > { %7285 = vrcp.f32 %v11700_v42  ;;  %6150 = vst [vmem:[%s11286_s15 + $0x30] sm:$0xff] %v6086_v44  ;;  %v2441_v37 = vadd.f32 %v11616_v56, %v11278_v13  ;;  %v4034_v61 = vadd.f32 1.0, %v2325_v51  ;;  %v4211_v29 = vpack.c.bf16 %v4161_v1, %v4160_v0  ;;  %v14478_v56 = vld [vmem:[#allocation45_spill] sm:$0xff] }
 0x302   : > { %v4965_v54 = vsub.f32 1.0, %v4964_v49  ;;  %v5873_v43 = vpop.f32.mrf.mxu0  ;;  %v3970_v24 = vadd.f32 %v11431_v58, %v3902_v59  ;;  %v3904_v4 = vmul.f32 %v11337_v53, %v3836_v46  ;;  %v2156_v12 = vadd.f32 %v14478_v56, %v9542_v47  ;;  %v14479_v49 = vld [vmem:[#allocation48_spill] sm:$0xff]  ;;  %v2445_v44 = vpop.f32.mrf.mxu2 }
 0x303   : > { %v4354_v18 = vpop.f32.mrf.mxu3  ;;  %v5874_v28 = vadd.f32 %v11273_v57, %v5873_v43  ;;  %v3971_v5 = vadd.f32 %v11431_v58, %v3903_v8  ;;  %v4035_v30 = vadd.f32 1.0, %v2327_v11  ;;  %v4036_v51 = vadd.f32 1.0, %v2330_v60  ;;  %v14480_v11 = vld [vmem:[#allocation51_spill] sm:$0xff] }
 0x304   : > { %v11721_v39 = vadd.f32 %v11664_v26, %v4354_v18  ;;  %v4966_v7 = vmul.f32 %v11695_v21, %v4965_v54  ;;  %4371 = vmatmul.bf16.gmra.mxu3 %v4211_v29  ;;  %v3972_v0 = vadd.f32 %v11431_v58, %v3904_v4  ;;  %v2158_v59 = vadd.f32 %v14479_v49, %v9542_v47 }
 0x305   : > { %v6023_v16 = vmul.f32 %v5874_v28, %v2441_v37  ;;  %vm4969_vm1 = vweird.f32 %v11695_v21  ;;  %v2161_v8 = vadd.f32 %v14480_v11, %v9542_v47  ;;  %v4098_v1 = vmul.f32 %v4034_v61, %v3970_v24  ;;  %v7577_v61 = vld [vmem:[%s7900_s28 + $0x38] sm:$0xff]  ;;  %v14483_v28 = vld [vmem:[#allocation16_spill] sm:$0xff] }
 0x306   : > { %v7284_v31 = vpop.eup %7283  ;;  %v6531_v33 = vmul.f32 -1.442695, %v11721_v39  ;;  %v4967_v23 = vadd.f32 %v11695_v21, %v4966_v7  ;;  %2673 = vadd.xlane.f32.xlu1 %v11728_v32  ;;  %vm4968_vm15 = vweird.f32 %v11634_v17  ;;  %v4972_v60 = vand.u32 2147483647, %v11634_v17 }
 0x307   : > { %v11734_v20 = vadd.f32 1.0, %v7284_v31  ;;  %v7286_v62 = vpop.eup %7285  ;;  %v4974_v46 = vand.u32 2147483648, %v11634_v17  ;;  %v4099_v37 = vmul.f32 %v4035_v30, %v3971_v5  ;;  %vm11749_vm0 = vmor %vm4968_vm15, %vm4969_vm1  ;;  %v4100_v29 = vmul.f32 %v4036_v51, %v3972_v0  ;;  %v11770_v51 = vld [vmem:[%s7900_s28 + $0x170] sm:$0xff] }
 0x308   : > { %7287 = vpow2.f32 %v6531_v33  ;;  %v4979_v54 = vmul.f32 %v7286_v62, %v11700_v42  ;;  %v6087_v7 = vadd.f32 %v7577_v61, %v6023_v16  ;;  %v2444_v24 = vadd.f32 %v11689_v52, %v11278_v13 }
 0x309   : > { %7289 = vrcp.f32 %v11734_v20  ;;  %v4971_v17 = vsel %vm11749_vm0, %v11695_v21, %v4967_v23  ;;  %v4987_v31 = vand.u32 2147483647, %v11700_v42  ;;  %v4989_v56 = vand.u32 2147483648, %v11700_v42 }
 0x30a   : > { %v4980_v43 = vsub.f32 1.0, %v4979_v54  ;;  %v5876_v5 = vpop.f32.mrf.mxu0  ;;  %vm4984_vm2 = vweird.f32 %v7286_v62  ;;  %v11765_v0 = vadd.f32 %v4100_v29, %v2161_v8  ;;  %6151 = vst [vmem:[%s11286_s15 + $0x38] sm:$0xff] %v6087_v7  ;;  %vm4973_vm4 = vcmp.eq.f32.partialorder %v4972_v60, 8.507059e+37 }
 0x30b   : > { %v4357_v4 = vpop.f32.mrf.mxu3  ;;  %v5877_v52 = vadd.f32 %v11273_v57, %v5876_v5  ;;  %v4975_v21 = vor.u32 1.1754944e-38, %v4974_v46  ;;  %vm4983_vm3 = vweird.f32 %v11700_v42  ;;  %v4163_v18 = vadd.f32 %v4099_v37, %v2158_v59  ;;  %v2448_v37 = vpop.f32.mrf.mxu2 }
 0x30c   : > { %v11763_v30 = vadd.f32 %v11664_v26, %v4357_v4  ;;  %v4981_v33 = vmul.f32 %v7286_v62, %v4980_v43  ;;  %vm4985_vm5 = vmor %vm4983_vm3, %vm4984_vm2  ;;  %v4990_v29 = vor.u32 1.1754944e-38, %v4989_v56  ;;  %vm4988_vm6 = vcmp.eq.f32.partialorder %v4987_v31, 8.507059e+37 }
 0x30d   : > { %2492 = vmatmul.bf16.gmra.mxu2 %v14483_v28  ;;  %v6024_v8 = vmul.f32 %v5877_v52, %v2444_v24  ;;  %v4976_v43 = vsel %vm4973_vm4, %v4975_v21, %v4971_v17  ;;  %v4162_v46 = vadd.f32 %v4098_v1, %v2156_v12  ;;  %v7578_v24 = vld [vmem:[%s7900_s28 + $0x40] sm:$0xff]  ;;  %v2446_v17 = vadd.f32 %v2445_v44, %v11278_v13 }
 0x30e   : > { %v7288_v16 = vpop.eup %7287  ;;  %v6532_v49 = vmul.f32 -1.442695, %v11763_v30  ;;  %v4982_v11 = vadd.f32 %v7286_v62, %v4981_v33  ;;  %2675 = vadd.xlane.f32.xlu1 %v11770_v51  ;;  %v5699_v4 = vmul.f32 %v4976_v43, %v11548_v55  ;;  %vm4998_vm8 = vweird.f32 %v11734_v20  ;;  %v7579_v43 = vld [vmem:[%s7900_s28 + $0x48] sm:$0xff] }
 0x30f   : > { %v11774_v23 = vpop.eup %7289  ;;  %v11776_v54 = vadd.f32 1.0, %v7288_v16  ;;  %v6088_v59 = vadd.f32 %v7578_v24, %v6024_v8  ;;  %v4212_v31 = vpack.c.bf16 %v4163_v18, %v4162_v46  ;;  %v5002_v8 = vand.u32 2147483647, %v11734_v20 }
 0x310   : > { %v4994_v60 = vmul.f32 %v11774_v23, %v11734_v20  ;;  %7291 = vpow2.f32 %v6532_v49  ;;  %v4986_v42 = vsel %vm4985_vm5, %v7286_v62, %v4982_v11  ;;  %vm4999_vm7 = vweird.f32 %v11774_v23 }
 0x311   : > { %7293 = vrcp.f32 %v11776_v54  ;;  %v4991_v61 = vsel %vm4988_vm6, %v4990_v29, %v4986_v42  ;;  %6152 = vst [vmem:[%s11286_s15 + $0x40] sm:$0xff] %v6088_v59  ;;  %v5004_v11 = vand.u32 2147483648, %v11734_v20  ;;  %vm11804_vm9 = vmor %vm4998_vm8, %vm4999_vm7  ;;  %v5019_v42 = vand.u32 2147483648, %v11776_v54 }
 0x312   : > { %v4995_v7 = vsub.f32 1.0, %v4994_v60  ;;  %v5700_v28 = vmul.f32 %v4991_v61, %v11602_v27  ;;  %v5878_v62 = vpop.f32.mrf.mxu0  ;;  %v2449_v46 = vadd.f32 %v2448_v37, %v11278_v13  ;;  %v14486_v61 = vld [vmem:[#allocation18_spill] sm:$0xff]  ;;  %v5017_v20 = vand.u32 2147483647, %v11776_v54 }
 0x313   : > { %v4359_v56 = vpop.f32.mrf.mxu3  ;;  %v5879_v12 = vadd.f32 %v11273_v57, %v5878_v62  ;;  %vm5003_vm11 = vcmp.eq.f32.partialorder %v5002_v8, 8.507059e+37  ;;  %vm5013_vm12 = vweird.f32 %v11776_v54 }
 0x314   : > { %v4996_v5 = vmul.f32 %v11774_v23, %v4995_v7  ;;  %v11790_v33 = vadd.f32 %v11664_v26, %v4359_v56  ;;  %v5755_v1 = vpack.c.bf16 %v5700_v28, %v5699_v4  ;;  %4376 = vmatmul.bf16.gmra.mxu3 %v4212_v31  ;;  %v2450_v4 = vpop.f32.mrf.mxu2  ;;  %v5005_v28 = vor.u32 1.1754944e-38, %v5004_v11  ;;  %v7580_v11 = vld [vmem:[%s7900_s28 + $0x50] sm:$0xff] }
 0x315   : > { %v6025_v44 = vmul.f32 %v5879_v12, %v2446_v17  ;;  %vm5018_vm14 = vcmp.eq.f32.partialorder %v5017_v20, 8.507059e+37  ;;  %v2451_v8 = vadd.f32 %v2450_v4, %v11278_v13 }
 0x316   : > { %v7292_v52 = vpop.eup %7291  ;;  %v6533_v55 = vmul.f32 -1.442695, %v11790_v33  ;;  %5895 = vmatmul.bf16.gmra.mxu0 %v5755_v1  ;;  %v4997_v21 = vadd.f32 %v11774_v23, %v4996_v5 }
 0x317   : > { %v7294_v27 = vpop.eup %7293  ;;  %v11794_v16 = vadd.f32 1.0, %v7292_v52  ;;  %v6089_v29 = vadd.f32 %v7579_v43, %v6025_v44 }
 0x318   : > { %v5009_v49 = vmul.f32 %v7294_v27, %v11776_v54  ;;  %7295 = vpow2.f32 %v6533_v55  ;;  %v5001_v7 = vsel %vm11804_vm9, %v11774_v23, %v4997_v21  ;;  %vm5014_vm10 = vweird.f32 %v7294_v27 }
 0x319   : > { %7297 = vrcp.f32 %v11794_v16  ;;  %6153 = vst [vmem:[%s11286_s15 + $0x48] sm:$0xff] %v6089_v29  ;;  %v5006_v62 = vsel %vm5003_vm11, %v5005_v28, %v5001_v7  ;;  %vm5015_vm13 = vmor %vm5013_vm12, %vm5014_vm10  ;;  %v5020_v23 = vor.u32 1.1754944e-38, %v5019_v42  ;;  %v7581_v7 = vld [vmem:[%s7900_s28 + $0x58] sm:$0xff]  ;;  %vm5028_vm15 = vweird.f32 %v11794_v16 }
 0x31a   : > { %v5010_v18 = vsub.f32 1.0, %v5009_v49  ;;  %v5881_v59 = vpop.f32.mrf.mxu0  ;;  %v5701_v44 = vmul.f32 %v5006_v62, %v11667_v9  ;;  %v5032_v20 = vand.u32 2147483647, %v11794_v16 }
 0x31b   : > { %v5882_v17 = vadd.f32 %v11273_v57, %v5881_v59 }
 0x31c   : > { %v5011_v24 = vmul.f32 %v7294_v27, %v5010_v18  ;;  %v2453_v60 = vpop.f32.mrf.mxu2  ;;  %vm5033_vm4 = vcmp.eq.f32.partialorder %v5032_v20, 8.507059e+37 }
 0x31d   : > { %2497 = vmatmul.bf16.gmra.mxu2 %v14486_v61  ;;  %v6026_v12 = vmul.f32 %v5882_v17, %v2449_v46  ;;  %v5034_v61 = vand.u32 2147483648, %v11794_v16  ;;  %v2454_v28 = vadd.f32 %v2453_v60, %v11278_v13  ;;  %v14489_v17 = vld [vmem:[#allocation62_spill] sm:$0xff] }
 0x31e   : > { %v7296_v56 = vpop.eup %7295  ;;  %v5012_v5 = vadd.f32 %v7294_v27, %v5011_v24 }
 0x31f   : > { %v7298_v37 = vpop.eup %7297  ;;  %v4680_v31 = vadd.f32 1.0, %v7296_v56  ;;  %v6090_v54 = vadd.f32 %v7580_v11, %v6026_v12  ;;  %v11841_v12 = vld [vmem:[%s13961_s9] ss:$0 sm:$0xff] }
 0x320   : > { %v5016_v1 = vsel %vm5015_vm13, %v7294_v27, %v5012_v5  ;;  %v5024_v52 = vmul.f32 %v7298_v37, %v11794_v16  ;;  %vm5029_vm1 = vweird.f32 %v7298_v37  ;;  %v5035_v16 = vor.u32 1.1754944e-38, %v5034_v61 }
 0x321   : > { %v5021_v55 = vsel %vm5018_vm14, %v5020_v23, %v5016_v1  ;;  %7299 = vrcp.f32 %v4680_v31  ;;  %6154 = vst [vmem:[%s11286_s15 + $0x50] sm:$0xff] %v6090_v54  ;;  %vm11829_vm0 = vmor %vm5028_vm15, %vm5029_vm1  ;;  %v5047_v62 = vand.u32 2147483647, %v4680_v31  ;;  %vm5043_vm3 = vweird.f32 %v4680_v31  ;;  %v7583_v54 = vld [vmem:[%s7900_s28 + $0x60] sm:$0xff] }
 0x322   : > { %v5702_v21 = vmul.f32 %v5021_v55, %v11721_v39  ;;  %v5025_v49 = vsub.f32 1.0, %v5024_v52  ;;  %v5883_v43 = vpop.f32.mrf.mxu0 }
 0x323   : > { %v5884_v27 = vadd.f32 %v11273_v57, %v5883_v43  ;;  %v5049_v57 = vand.u32 2147483648, %v4680_v31  ;;  %vm5048_vm6 = vcmp.eq.f32.partialorder %v5047_v62, 8.507059e+37 }
 0x324   : > { %v5026_v18 = vmul.f32 %v7298_v37, %v5025_v49  ;;  %v5756_v29 = vpack.c.bf16 %v5702_v21, %v5701_v44  ;;  %v2455_v49 = vpop.f32.mrf.mxu2 }
 0x325   : > { %v6027_v46 = vmul.f32 %v5884_v27, %v2451_v8 }
 0x326   : > { %5900 = vmatmul.bf16.gmra.mxu0 %v5756_v29  ;;  %v5027_v9 = vadd.f32 %v7298_v37, %v5026_v18  ;;  %v2456_v29 = vadd.f32 %v2455_v49, %v11278_v13 }
 0x327   : > { %v7300_v42 = vpop.eup %7299  ;;  %v6091_v24 = vadd.f32 %v7581_v7, %v6027_v46  ;;  %v2331_v46 = vpop.f32.mrf.mxu1  ;;  %v14491_v7 = vld [vmem:[#allocation65_spill] sm:$0xff] }
 0x328   : > { %v5039_v39 = vmul.f32 %v7300_v42, %v4680_v31  ;;  %v5031_v56 = vsel %vm11829_vm0, %v7298_v37, %v5027_v9  ;;  %vm5044_vm2 = vweird.f32 %v7300_v42  ;;  %v5050_v37 = vor.u32 1.1754944e-38, %v5049_v57 }
 0x329   : > { %6155 = vst [vmem:[%s11286_s15 + $0x58] sm:$0xff] %v6091_v24  ;;  %v5036_v55 = vsel %vm5033_vm4, %v5035_v16, %v5031_v56  ;;  %vm5045_vm5 = vmor %vm5043_vm3, %vm5044_vm2  ;;  %v14492_v56 = vld [vmem:[#allocation12_spill] sm:$0xff]  ;;  %v2332_v49 = vadd.f32 %v2331_v46, %v9579_v36 }
 0x32a   : > { %v5040_v59 = vsub.f32 1.0, %v5039_v39  ;;  %v5886_v23 = vpop.f32.mrf.mxu0  ;;  %v5703_v18 = vmul.f32 %v5036_v55, %v11763_v30  ;;  %v7584_v39 = vld [vmem:[%s7900_s28 + $0x68] sm:$0xff]  ;;  %v14493_v55 = vld [vmem:[#allocation36_spill] sm:$0xff] }
 0x32b   : > { %v5887_v1 = vadd.f32 %v11841_v12, %v5886_v23 }
 0x32c   : > { %v5041_v5 = vmul.f32 %v7300_v42, %v5040_v59 }
 0x32d   : > { %2502 = vmatmul.bf16.gmra.mxu2 %v14489_v17  ;;  %v6028_v44 = vmul.f32 %v5887_v1, %v2454_v28 }
 0x32e   : > { %v5042_v52 = vadd.f32 %v7300_v42, %v5041_v5 }
 0x32f   : > { %v6092_v8 = vadd.f32 %v7583_v54, %v6028_v44  ;;  %v11855_v59 = vpop.f32.mrf.mxu1 }
 0x330   : > { %v5046_v21 = vsel %vm5045_vm5, %v7300_v42, %v5042_v52  ;;  %v14490_v42 = vld [vmem:[#allocation32_spill] sm:$0xff] }
 0x331   : > { %v5051_v11 = vsel %vm5048_vm6, %v5050_v37, %v5046_v21  ;;  %6156 = vst [vmem:[%s11286_s15 + $0x60] sm:$0xff] %v6092_v8  ;;  %2388 = vmatmul.bf16.gmra.mxu1 %v14490_v42 }
 0x332   : > { %v5704_v43 = vmul.f32 %v5051_v11, %v11790_v33  ;;  %v5888_v31 = vpop.f32.mrf.mxu0 }
 0x333   : > { %v5889_v60 = vadd.f32 %v11841_v12, %v5888_v31  ;;  %v4037_v31 = vadd.f32 1.0, %v2332_v49 }
 0x334   : > { %v5757_v27 = vpack.c.bf16 %v5704_v43, %v5703_v18 }
 0x335   : > { %v6029_v9 = vmul.f32 %v5889_v60, %v2456_v29 }
 0x336   : > { %5905 = vmatmul.bf16.gmra.mxu0 %v5757_v27 }
 0x337   : > { %v6093_v61 = vadd.f32 %v7584_v39, %v6029_v9  ;;  %v11860_v52 = vpop.f32.mrf.mxu1 }
 0x339   : > { %6157 = vst [vmem:[%s11286_s15 + $0x68] sm:$0xff] %v6093_v61  ;;  %v14494_v61 = vld [vmem:[#allocation54_spill] sm:$0xff] }
 0x33d   : > { %2507 = vmatmul.bf16.gmra.mxu2 %v14491_v7  ;;  %v2163_v7 = vadd.f32 %v14494_v61, %v9542_v47 }
 0x340   : > { %v2973_v30 = vpop.xlane.xlu1 %2972 }
 0x341   : > { %v3069_v33 = vmul.f32 %v2973_v30, %v8403_v40  ;;  %2393 = vmatmul.bf16.gmra.mxu1 %v14493_v55 }
 0x343   : > { %v3133_v24 = vadd.f32 1e-06, %v3069_v33 }
 0x345   : > { %7301 = vrsqrt.f32 %v3133_v24  ;;  %vm3482_vm8 = vweird.f32 %v3133_v24 }
 0x348   : > { %v2975_v20 = vpop.xlane.xlu1 %2974 }
 0x349   : > { %v3070_v4 = vmul.f32 %v2975_v20, %v8403_v40 }
 0x34b   : > { %v7302_v57 = vpop.eup %7301  ;;  %v3134_v17 = vadd.f32 1e-06, %v3070_v4 }
 0x34c   : > { %v3477_v28 = vmul.f32 %v7302_v57, %v3133_v24  ;;  %vm3483_vm7 = vweird.f32 %v7302_v57 }
 0x34d   : > { %2512 = vmatmul.bf16.gmra.mxu2 %v14492_v56  ;;  %7303 = vrsqrt.f32 %v3134_v17  ;;  %vm3484_vm9 = vmor %vm3482_vm8, %vm3483_vm7  ;;  %v11887_v56 = vpop.f32.mrf.mxu1  ;;  %vm3492_vm11 = vweird.f32 %v3134_v17 }
 0x34e   : > { %v3478_v5 = vmul.f32 %v7302_v57, %v3477_v28 }
 0x350   : > { %v3479_v62 = vmul.f32 0.5, %v3478_v5  ;;  %v2662_v23 = vpop.xlane.xlu1 %2661 }
 0x351   : > { %v2757_v1 = vmul.f32 %v8403_v40, %v2662_v23 }
 0x352   : > { %v3480_v16 = vsub.f32 1.5, %v3479_v62 }
 0x353   : > { %v7304_v37 = vpop.eup %7303  ;;  %v11864_v21 = vsub.f32 %v11392_v14, %v2757_v1 }
 0x354   : > { %v3481_v44 = vmul.f32 %v7302_v57, %v3480_v16  ;;  %v3487_v11 = vmul.f32 %v7304_v37, %v3134_v17  ;;  %vm3493_vm10 = vweird.f32 %v7304_v37 }
 0x355   : > { %v2885_v8 = vmul.f32 %v11864_v21, %v11864_v21  ;;  %vm11894_vm12 = vmor %vm3492_vm11, %vm3493_vm10 }
 0x356   : > { %v3485_v54 = vsel %vm3484_vm9, %v7302_v57, %v3481_v44  ;;  %v3488_v43 = vmul.f32 %v7304_v37, %v3487_v11  ;;  %v2981_v9 = vpop.xlane.xlu0 %2980  ;;  %v14500_v44 = vld [vmem:[#allocation72_spill] sm:$0xff] }
 0x357   : > { %v3837_v18 = vmul.f32 %v3485_v54, %v11312_v10  ;;  %2988 = vadd.xlane.f32.xlu2 %v2885_v8  ;;  %v3073_v46 = vmul.f32 %v2981_v9, %v8403_v40  ;;  %v11911_v9 = vpop.f32.mrf.mxu1 }
 0x358   : > { %v2664_v27 = vpop.xlane.xlu1 %2663  ;;  %v3489_v60 = vmul.f32 0.5, %v3488_v43  ;;  %v2977_v30 = vpop.xlane.xlu2 %2976  ;;  %v11904_v43 = vld [vmem:[%s7900_s28 + $0x178] sm:$0xff] }
 0x359   : > { %v3905_v29 = vmul.f32 %v11337_v53, %v3837_v18  ;;  %v2758_v14 = vmul.f32 %v8403_v40, %v2664_v27  ;;  %v3071_v53 = vmul.f32 %v2977_v30, %v8403_v40  ;;  %v11880_v24 = vadd.f32 1e-06, %v3073_v46 }
 0x35a   : > { %v3490_v4 = vsub.f32 1.5, %v3489_v60 }
 0x35b   : > { %v3973_v39 = vadd.f32 %v11431_v58, %v3905_v29  ;;  %v11877_v10 = vsub.f32 %v11458_v22, %v2758_v14  ;;  %v3135_v5 = vadd.f32 1e-06, %v3071_v53  ;;  %7305 = vrsqrt.f32 %v11880_v24 }
 0x35c   : > { %v4362_v20 = vpop.f32.mrf.mxu3  ;;  %v3491_v23 = vmul.f32 %v7304_v37, %v3490_v4  ;;  %vm3522_vm15 = vweird.f32 %v11880_v24 }
 0x35d   : > { %14495 = vst [vmem:[#allocation34_spill] sm:$0xff] %v11877_v10  ;;  %v4101_v33 = vmul.f32 %v4037_v31, %v3973_v39  ;;  %v11883_v57 = vadd.f32 %v11664_v26, %v4362_v20  ;;  %v2886_v28 = vmul.f32 %v11877_v10, %v11877_v10  ;;  %7307 = vrsqrt.f32 %v3135_v5 }
 0x35e   : > { %v3495_v54 = vsel %vm11894_vm12, %v7304_v37, %v3491_v23  ;;  %v14498_v37 = vld [vmem:[#allocation38_spill] sm:$0xff]  ;;  %vm3502_vm13 = vweird.f32 %v3135_v5 }
 0x35f   : > { %v6534_v22 = vmul.f32 -1.442695, %v11883_v57  ;;  %2990 = vadd.xlane.f32.xlu2 %v2886_v28  ;;  %v4165_v62 = vadd.f32 %v4101_v33, %v2163_v7  ;;  %2398 = vmatmul.bf16.gmra.mxu1 %v14498_v37  ;;  %v3838_v14 = vmul.f32 %v3495_v54, %v11348_v45  ;;  %v14499_v45 = vld [vmem:[#allocation71_spill] sm:$0xff]  ;;  %v2335_v28 = vadd.f32 %v11855_v59, %v9579_v36  ;;  %v11944_v59 = vld [vmem:[%s7900_s28 + $0x180] sm:$0xff] }
 0x360   : > { %v2983_v49 = vpop.xlane.xlu0 %2982  ;;  %v11927_v4 = vadd.f32 %v14499_v45, %v9542_v47 }
 0x361   : > { %7309 = vpow2.f32 %v6534_v22  ;;  %v4213_v16 = vpack.c.bf16 %v4165_v62, %v11765_v0  ;;  %v11892_v1 = vpop.eup %7305  ;;  %v3074_v18 = vmul.f32 %v2983_v49, %v8403_v40  ;;  %v11934_v22 = vld [vmem:[%s13954_s2] ss:$0 sm:$0xff]  ;;  %v11940_v49 = vadd.f32 %v14500_v44, %v9542_v47 }
 0x362   : > { %v3517_v8 = vmul.f32 %v11892_v1, %v11880_v24  ;;  %v2979_v17 = vpop.xlane.xlu2 %2978  ;;  %v3906_v62 = vmul.f32 %v11934_v22, %v3838_v14  ;;  %vm3523_vm0 = vweird.f32 %v11892_v1  ;;  %v4038_v45 = vadd.f32 1.0, %v2335_v28 }
 0x363   : > { %4381 = vmatmul.bf16.gmra.mxu3 %v4213_v16  ;;  %v7308_v0 = vpop.eup %7307  ;;  %v3072_v39 = vmul.f32 %v2979_v17, %v8403_v40  ;;  %v11916_v46 = vadd.f32 1e-06, %v3074_v18  ;;  %v14501_v18 = vld [vmem:[#allocation19_spill] sm:$0xff]  ;;  %vm11994_vm2 = vmor %vm3522_vm15, %vm3523_vm0 }
 0x364   : > { %v4364_v11 = vpop.f32.mrf.mxu3  ;;  %v3497_v27 = vmul.f32 %v7308_v0, %v3135_v5  ;;  %v3518_v60 = vmul.f32 %v11892_v1, %v3517_v8  ;;  %vm3503_vm14 = vweird.f32 %v7308_v0  ;;  %v11948_v17 = vadd.f32 %v14501_v18, %v9542_v47  ;;  %v11963_v5 = vpop.f32.mrf.mxu1 }
 0x365   : > { %v11907_v29 = vadd.f32 %v11664_v26, %v4364_v11  ;;  %v11920_v33 = vadd.f32 1e-06, %v3072_v39  ;;  %7311 = vrsqrt.f32 %v11916_v46  ;;  %vm11952_vm1 = vmor %vm3502_vm13, %vm3503_vm14  ;;  %vm3532_vm5 = vweird.f32 %v11916_v46 }
 0x366   : > { %v3498_v7 = vmul.f32 %v7308_v0, %v3497_v27  ;;  %v3519_v30 = vmul.f32 0.5, %v3518_v60 }
 0x367   : > { %v7310_v31 = vpop.eup %7309  ;;  %2677 = vadd.xlane.f32.xlu2 %v11904_v43  ;;  %v6535_v53 = vmul.f32 -1.442695, %v11907_v29  ;;  %vm3512_vm4 = vweird.f32 %v11920_v33 }
 0x368   : > { %v11918_v61 = vadd.f32 1.0, %v7310_v31  ;;  %v3499_v20 = vmul.f32 0.5, %v3498_v7  ;;  %v2670_v16 = vpop.xlane.xlu0 %2669  ;;  %v3520_v54 = vsub.f32 1.5, %v3519_v30  ;;  %v14510_v31 = vld [vmem:[#allocation74_spill] sm:$0xff] }
 0x369   : > { %v2985_v23 = vpop.xlane.xlu1 %2984  ;;  %v2761_v60 = vmul.f32 %v8403_v40, %v2670_v16 }
 0x36a   : > { %7313 = vrcp.f32 %v11918_v61  ;;  %v3500_v11 = vsub.f32 1.5, %v3499_v20  ;;  %v3075_v8 = vmul.f32 %v2985_v23, %v8403_v40  ;;  %v2666_v27 = vpop.xlane.xlu2 %2665  ;;  %v3974_v20 = vadd.f32 %v11431_v58, %v3906_v62  ;;  %v14509_v62 = vld [vmem:[#allocation21_spill] sm:$0xff] }
 0x36b   : > { %7315 = vrsqrt.f32 %v11920_v33  ;;  %v2759_v39 = vmul.f32 %v8403_v40, %v2666_v27  ;;  %v11965_v30 = vpop.eup %7311  ;;  %v2337_v23 = vadd.f32 %v11860_v52, %v9579_v36  ;;  %v14506_v52 = vld [vmem:[#allocation55_spill] sm:$0xff]  ;;  %vm5058_vm8 = vweird.f32 %v11918_v61 }
 0x36c   : > { %7317 = vpow2.f32 %v6535_v53  ;;  %v3501_v14 = vmul.f32 %v7308_v0, %v3500_v11  ;;  %v11960_v7 = vadd.f32 1e-06, %v3075_v8  ;;  %v11971_v53 = vsub.f32 %v11605_v19, %v2761_v60 }
 0x36d   : > { %v3521_v11 = vmul.f32 %v11892_v1, %v3520_v54  ;;  %v3527_v8 = vmul.f32 %v11965_v30, %v11916_v46  ;;  %v11981_v18 = vsub.f32 %v11630_v48, %v2759_v39  ;;  %v11987_v28 = vadd.f32 %v14506_v52, %v9542_v47 }
 0x36e   : > { %14504 = vst [vmem:[#allocation35_spill] sm:$0xff] %v11971_v53  ;;  %v3505_v44 = vsel %vm11952_vm1, %v7308_v0, %v3501_v14  ;;  %v2340_v48 = vadd.f32 %v11887_v56, %v9579_v36  ;;  %7319 = vrsqrt.f32 %v11960_v7  ;;  %v12003_v54 = vadd.f32 %v14509_v62, %v9542_v47 }
 0x36f   : > { %2679 = vadd.xlane.f32.xlu2 %v11944_v59  ;;  %14505 = vst [vmem:[#allocation37_spill] sm:$0xff] %v11981_v18  ;;  %v3839_v19 = vmul.f32 %v3505_v44, %v11444_v15  ;;  %v12007_v15 = vadd.f32 %v14510_v31, %v9542_v47  ;;  %v4102_v14 = vmul.f32 %v4038_v45, %v3974_v20  ;;  %v4039_v31 = vadd.f32 1.0, %v2337_v23  ;;  %v12032_v23 = vpop.f32.mrf.mxu1 }
 0x370   : > { %v11973_v16 = vpop.eup %7313  ;;  %v3528_v56 = vmul.f32 %v11965_v30, %v3527_v8  ;;  %v2887_v39 = vmul.f32 %v11981_v18, %v11981_v18  ;;  %v2889_v44 = vmul.f32 %v11971_v53, %v11971_v53  ;;  %v3525_v62 = vsel %vm11994_vm2, %v11892_v1, %v3521_v11  ;;  %v14511_v11 = vld [vmem:[#allocation44_spill] sm:$0xff] }
 0x371   : > { %v11983_v58 = vpop.eup %7315  ;;  %v5054_v27 = vmul.f32 %v11973_v16, %v11918_v61  ;;  %v2987_v52 = vpop.xlane.xlu1 %2986  ;;  %v3907_v20 = vmul.f32 %v11934_v22, %v3839_v19  ;;  %v12026_v45 = vadd.f32 1.0, %v2340_v48  ;;  %v2342_v8 = vadd.f32 %v11911_v9, %v9579_v36  ;;  %2403 = vmatmul.bf16.gmra.mxu1 %v14511_v11 }
 0x372   : > { %v3507_v24 = vmul.f32 %v11983_v58, %v11920_v33  ;;  %v7318_v60 = vpop.eup %7317  ;;  %2992 = vadd.xlane.f32.xlu0 %v2887_v39  ;;  %2996 = vadd.xlane.f32.xlu1 %v2889_v44  ;;  %vm3513_vm3 = vweird.f32 %v11983_v58  ;;  %v12038_v0 = vadd.f32 %v4102_v14, %v11927_v4  ;;  %v3841_v48 = vmul.f32 %v3525_v62, %v11441_v2  ;;  %v2668_v44 = vpop.xlane.xlu2 %2667  ;;  %v12052_v2 = vld [vmem:[%s13955_s3] ss:$0 sm:$0xff] }
 0x373   : > { %v12022_v55 = vadd.f32 1.0, %v7318_v60  ;;  %v5055_v1 = vsub.f32 1.0, %v5054_v27  ;;  %v3076_v9 = vmul.f32 %v2987_v52, %v8403_v40  ;;  %v5062_v27 = vand.u32 2147483647, %v11918_v61  ;;  %v12047_v11 = vpop.f32.mrf.mxu2  ;;  %vm12059_vm6 = vmor %vm3512_vm4, %vm3513_vm3 }
 0x374   : > { %v3508_v37 = vmul.f32 %v11983_v58, %v3507_v24  ;;  %v12035_v19 = vpop.eup %7319  ;;  %v3529_v24 = vmul.f32 0.5, %v3528_v56  ;;  %v3975_v4 = vadd.f32 %v12052_v2, %v3907_v20  ;;  %vm3533_vm7 = vweird.f32 %v11965_v30  ;;  %v2672_v56 = vpop.xlane.xlu0 %2671 }
 0x375   : > { %7321 = vrcp.f32 %v12022_v55  ;;  %v3537_v39 = vmul.f32 %v12035_v19, %v11960_v7  ;;  %vm5059_vm9 = vweird.f32 %v11973_v16  ;;  %v12066_v14 = vadd.f32 1.0, %v2342_v8  ;;  %vm12135_vm15 = vmor %vm3532_vm5, %vm3533_vm7 }
 0x376   : > { %v3509_v42 = vmul.f32 0.5, %v3508_v37  ;;  %v5056_v20 = vmul.f32 %v11973_v16, %v5055_v1  ;;  %vm3542_vm10 = vweird.f32 %v11960_v7  ;;  %v3530_v60 = vsub.f32 1.5, %v3529_v24  ;;  %vm12120_vm14 = vmor %vm5058_vm8, %vm5059_vm9 }
 0x377   : > { %v4367_v52 = vpop.f32.mrf.mxu3  ;;  %v3538_v33 = vmul.f32 %v12035_v19, %v3537_v39  ;;  %v3909_v53 = vmul.f32 %v11934_v22, %v3841_v48  ;;  %v2760_v18 = vmul.f32 %v8403_v40, %v2668_v44  ;;  %v12074_v25 = vadd.f32 1e-06, %v3076_v9 }
 0x378   : > { %v3510_v37 = vsub.f32 1.5, %v3509_v42  ;;  %v2762_v1 = vmul.f32 %v8403_v40, %v2672_v56  ;;  %v12083_v39 = vadd.f32 %v11664_v26, %v4367_v52  ;;  %v4103_v24 = vmul.f32 %v4039_v31, %v3975_v4 }
 0x379   : > { %v2674_v35 = vpop.xlane.xlu1 %2673  ;;  %v3539_v3 = vmul.f32 0.5, %v3538_v33  ;;  %vm12085_vm11 = vcmp.eq.f32.partialorder %v5062_v27, 8.507059e+37  ;;  %vm5073_vm12 = vweird.f32 %v12022_v55  ;;  %v12093_v44 = vsub.f32 %v11693_v34, %v2760_v18 }
 0x37a   : > { %v3511_v62 = vmul.f32 %v11983_v58, %v3510_v37  ;;  %v5077_v42 = vand.u32 2147483647, %v12022_v55  ;;  %7323 = vrsqrt.f32 %v12074_v25  ;;  %v12099_v31 = vsub.f32 %v11672_v38, %v2762_v1  ;;  %v14516_v38 = vld [vmem:[#allocation43_spill] sm:$0xff] }
 0x37b   : > { %v12076_v8 = vpop.eup %7321  ;;  %v6536_v56 = vmul.f32 -1.442695, %v12083_v39  ;;  %v2888_v52 = vmul.f32 %v12093_v44, %v12093_v44  ;;  %v5079_v34 = vand.u32 2147483648, %v12022_v55  ;;  %v12109_v10 = vpop.f32.mrf.mxu2  ;;  %2517 = vmatmul.bf16.gmra.mxu2 %v14516_v38  ;;  %v3531_v1 = vmul.f32 %v11965_v30, %v3530_v60 }
 0x37c   : > { %v3515_v37 = vsel %vm12059_vm6, %v11983_v58, %v3511_v62  ;;  %v5069_v9 = vmul.f32 %v12076_v8, %v12022_v55  ;;  %v5057_v58 = vadd.f32 %v11973_v16, %v5056_v20  ;;  %v3540_v62 = vsub.f32 1.5, %v3539_v3  ;;  %v5891_v33 = vpop.f32.mrf.mxu0 }
 0x37d   : > { %v3840_v27 = vmul.f32 %v3515_v37, %v11537_v50  ;;  %v2890_v18 = vmul.f32 %v12099_v31, %v12099_v31  ;;  %v2763_v20 = vmul.f32 %v8403_v40, %v2674_v35  ;;  %vm5074_vm13 = vweird.f32 %v12076_v8  ;;  %2994 = vadd.xlane.f32.xlu0 %v2888_v52 }
 0x37e   : > { %v5070_v4 = vsub.f32 1.0, %v5069_v9  ;;  %7325 = vpow2.f32 %v6536_v56  ;;  %v4167_v3 = vadd.f32 %v4103_v24, %v11940_v49  ;;  %vm3543_vm1 = vweird.f32 %v12035_v19  ;;  %vm12154_vm0 = vmor %vm5073_vm12, %vm5074_vm13 }
 0x37f   : > { %v4369_v37 = vpop.f32.mrf.mxu3  ;;  %2998 = vadd.xlane.f32.xlu1 %v2890_v18  ;;  %v12126_v9 = vsub.f32 %v11728_v32, %v2763_v20  ;;  %v5061_v60 = vsel %vm12120_vm14, %v11973_v16, %v5057_v58  ;;  %v3908_v24 = vmul.f32 %v11934_v22, %v3840_v27  ;;  %v14521_v18 = vand.u32 2147483648, %v11918_v61  ;;  %vm12165_vm2 = vmor %vm3542_vm10, %vm3543_vm1 }
 0x380   : > { %v5071_v50 = vmul.f32 %v12076_v8, %v5070_v4  ;;  %v12129_v4 = vadd.f32 %v11664_v26, %v4369_v37  ;;  %v4214_v56 = vpack.c.bf16 %v4167_v3, %v12038_v0  ;;  %v12145_v52 = vpop.eup %7323  ;;  %v3541_v46 = vmul.f32 %v12035_v19, %v3540_v62  ;;  %v12181_v37 = vld [vmem:[%s7900_s28 + $0x188] sm:$0xff] }
 0x381   : > { %v5065_v20 = vor.u32 1.1754944e-38, %v14521_v18  ;;  %v2891_v0 = vmul.f32 %v12126_v9, %v12126_v9  ;;  %v2676_v27 = vpop.xlane.xlu1 %2675  ;;  %vm5078_vm4 = vcmp.eq.f32.partialorder %v5077_v42, 8.507059e+37  ;;  %v5080_v62 = vor.u32 1.1754944e-38, %v5079_v34 }
 0x382   : > { %v5072_v32 = vadd.f32 %v12076_v8, %v5071_v50  ;;  %v6537_v58 = vmul.f32 -1.442695, %v12129_v4  ;;  %v3547_v38 = vmul.f32 %v12145_v52, %v12074_v25  ;;  %4386 = vmatmul.bf16.gmra.mxu3 %v4214_v56  ;;  %v3535_v50 = vsel %vm12135_vm15, %v11965_v30, %v3531_v1 }
 0x383   : > { %v5066_v7 = vsel %vm12085_vm11, %v5065_v20, %v5061_v60  ;;  %v3977_v3 = vadd.f32 %v12052_v2, %v3909_v53  ;;  %3000 = vadd.xlane.f32.xlu2 %v2891_v0  ;;  %v3976_v42 = vadd.f32 %v12052_v2, %v3908_v24  ;;  %v2764_v49 = vmul.f32 %v8403_v40, %v2676_v27  ;;  %v2463_v18 = vpop.f32.mrf.mxu2 }
 0x384   : > { %v5076_v55 = vsel %vm12154_vm0, %v12076_v8, %v5072_v32  ;;  %7327 = vpow2.f32 %v6537_v58  ;;  %v7326_v8 = vpop.eup %7325  ;;  %v3548_v35 = vmul.f32 %v12145_v52, %v3547_v38  ;;  %v12186_v32 = vld [vmem:[%s7900_s28 + $0x198] sm:$0xff]  ;;  %v3545_v30 = vsel %vm12165_vm2, %v12035_v19, %v3541_v46  ;;  %v5893_v46 = vpop.f32.mrf.mxu0 }
 0x385   : > { %v5081_v34 = vsel %vm5078_vm4, %v5080_v62, %v5076_v55  ;;  %vm3552_vm3 = vweird.f32 %v12074_v25  ;;  %v12193_v53 = vadd.f32 1.0, %v7326_v8  ;;  %v2459_v48 = vadd.f32 %v12047_v11, %v11278_v13  ;;  %2681 = vadd.xlane.f32.xlu0 %v12181_v37  ;;  %v12232_v62 = vld [vmem:[%s7900_s28 + $0x190] sm:$0xff] }
 0x386   : > { %v3549_v1 = vmul.f32 0.5, %v3548_v35  ;;  %vm3553_vm5 = vweird.f32 %v12145_v52  ;;  %v12200_v60 = vsub.f32 %v11770_v51, %v2764_v49  ;;  %v5892_v24 = vadd.f32 %v11841_v12, %v5891_v33 }
 0x387   : > { %v4372_v56 = vpop.f32.mrf.mxu3  ;;  %v5706_v19 = vmul.f32 %v5081_v34, %v11907_v29  ;;  %7329 = vrcp.f32 %v12193_v53  ;;  %v2345_v20 = vadd.f32 %v11963_v5, %v9579_v36  ;;  %v3842_v11 = vmul.f32 %v3535_v50, %v11520_v6  ;;  %2685 = vadd.xlane.f32.xlu1 %v12186_v32  ;;  %v2349_v29 = vpop.f32.mrf.mxu1  ;;  %vm12220_vm6 = vmor %vm3552_vm3, %vm3553_vm5  ;;  %v12246_v34 = vld [vmem:[%s7900_s28 + $0x1a0] sm:$0xff] }
 0x388   : > { %v4104_v51 = vmul.f32 %v12026_v45, %v3976_v42  ;;  %v3550_v16 = vsub.f32 1.5, %v3549_v1  ;;  %v6030_v33 = vmul.f32 %v5892_v24, %v2459_v48  ;;  %v12211_v58 = vadd.f32 %v11664_v26, %v4372_v56  ;;  %v14528_v56 = vld [vmem:[#allocation53_spill] sm:$0xff] }
 0x389   : > { %v5705_v27 = vmul.f32 %v5066_v7, %v11883_v57  ;;  %v3843_v5 = vmul.f32 %v3545_v30, %v11588_v63  ;;  %v4105_v6 = vmul.f32 %v12066_v14, %v3977_v3  ;;  %v2892_v26 = vmul.f32 %v12200_v60, %v12200_v60  ;;  %v7587_v63 = vld [vmem:[%s7900_s28 + $0x70] sm:$0xff] }
 0x38a   : > { %v7328_v0 = vpop.eup %7327  ;;  %v3551_v61 = vmul.f32 %v12145_v52, %v3550_v16  ;;  %v6094_v55 = vadd.f32 %v7587_v63, %v6030_v33  ;;  %v6538_v14 = vmul.f32 -1.442695, %v12211_v58  ;;  %v2350_v25 = vadd.f32 %v2349_v29, %v9579_v36  ;;  %v12271_v29 = vld [vmem:[%s7900_s28 + $0x1a8] sm:$0xff] }
 0x38b   : > { %v12227_v57 = vadd.f32 1.0, %v7328_v0  ;;  %3002 = vadd.xlane.f32.xlu2 %v2892_v26  ;;  %v2461_v38 = vadd.f32 %v12109_v10, %v11278_v13  ;;  %v5894_v50 = vadd.f32 %v11841_v12, %v5893_v46  ;;  %v5758_v7 = vpack.c.bf16 %v5706_v19, %v5705_v27  ;;  %v2465_v24 = vpop.f32.mrf.mxu2  ;;  %2522 = vmatmul.bf16.gmra.mxu2 %v14528_v56  ;;  %v7588_v19 = vld [vmem:[%s7900_s28 + $0x78] sm:$0xff]  ;;  %v12265_v46 = vld [vmem:[%s13959_s7] ss:$0 sm:$0xff] }
 0x38c   : > { %v4168_v3 = vadd.f32 %v4104_v51, %v11948_v17  ;;  %v3555_v8 = vsel %vm12220_vm6, %v12145_v52, %v3551_v61  ;;  %v3910_v42 = vmul.f32 %v11934_v22, %v3842_v11  ;;  %6158 = vst [vmem:[%s11286_s15 + $0x70] sm:$0xff] %v6094_v55  ;;  %v2347_v10 = vadd.f32 %v12032_v23, %v9579_v36 }
 0x38d   : > { %7331 = vrcp.f32 %v12227_v57  ;;  %v12248_v35 = vpop.eup %7329  ;;  %v3844_v17 = vmul.f32 %v3555_v8, %v11654_v41  ;;  %v6031_v49 = vmul.f32 %v5894_v50, %v2461_v38  ;;  %5910 = vmatmul.bf16.gmra.mxu0 %v5758_v7  ;;  %v3911_v30 = vmul.f32 %v11934_v22, %v3843_v5  ;;  %2683 = vadd.xlane.f32.xlu0 %v12232_v62 }
 0x38e   : > { %7333 = vpow2.f32 %v6538_v14  ;;  %v5084_v52 = vmul.f32 %v12248_v35, %v12193_v53  ;;  %v4169_v48 = vadd.f32 %v4105_v6, %v11987_v28  ;;  %v4044_v23 = vadd.f32 1.0, %v2350_v25 }
 0x38f   : > { %v4374_v1 = vpop.f32.mrf.mxu3  ;;  %2687 = vadd.xlane.f32.xlu1 %v12246_v34  ;;  %v3912_v41 = vmul.f32 %v11934_v22, %v3844_v17  ;;  %v6095_v11 = vadd.f32 %v7588_v19, %v6031_v49  ;;  %v4042_v16 = vadd.f32 1.0, %v2345_v20  ;;  %v2464_v0 = vadd.f32 %v2463_v18, %v11278_v13  ;;  %v14529_v49 = vld [vmem:[#allocation26_spill] sm:$0xff] }
 0x390   : > { %v12268_v51 = vadd.f32 %v12265_v46, %v4374_v1  ;;  %v5085_v28 = vsub.f32 1.0, %v5084_v52  ;;  %v4215_v33 = vpack.c.bf16 %v4169_v48, %v4168_v3  ;;  %v3978_v27 = vadd.f32 %v12052_v2, %v3910_v42 }
 0x391   : > { %v4043_v5 = vadd.f32 1.0, %v2347_v10  ;;  %v3980_v6 = vadd.f32 %v12052_v2, %v3912_v41  ;;  %6159 = vst [vmem:[%s11286_s15 + $0x78] sm:$0xff] %v6095_v11  ;;  %v5092_v55 = vand.u32 2147483647, %v12193_v53  ;;  %v3979_v20 = vadd.f32 %v12052_v2, %v3911_v30  ;;  %v7591_v30 = vld [vmem:[%s7900_s28 + $0x88] sm:$0xff] }
 0x392   : > { %v6539_v45 = vmul.f32 -1.442695, %v12268_v51  ;;  %v5086_v63 = vmul.f32 %v12248_v35, %v5085_v28  ;;  %4391 = vmatmul.bf16.gmra.mxu3 %v4215_v33  ;;  %vm5089_vm7 = vweird.f32 %v12248_v35  ;;  %v5094_v7 = vand.u32 2147483648, %v12193_v53  ;;  %v12310_v33 = vld [vmem:[%s7900_s28 + $0x1b0] sm:$0xff] }
 0x393   : > { %v5896_v26 = vpop.f32.mrf.mxu0  ;;  %v7332_v61 = vpop.eup %7331  ;;  %v4108_v38 = vmul.f32 %v4044_v23, %v3980_v6  ;;  %2689 = vadd.xlane.f32.xlu2 %v12271_v29  ;;  %vm5088_vm8 = vweird.f32 %v12193_v53  ;;  %v5109_v10 = vand.u32 2147483648, %v12227_v57  ;;  %v2178_v52 = vadd.f32 %v14529_v49, %v9542_v47  ;;  %v7590_v23 = vld [vmem:[%s7900_s28 + $0x80] sm:$0xff] }
 0x394   : > { %v5897_v14 = vadd.f32 %v11841_v12, %v5896_v26  ;;  %v7334_v18 = vpop.eup %7333  ;;  %v5099_v25 = vmul.f32 %v7332_v61, %v12227_v57  ;;  %7335 = vpow2.f32 %v6539_v45  ;;  %v5087_v50 = vadd.f32 %v12248_v35, %v5086_v63  ;;  %vm12296_vm9 = vmor %vm5088_vm8, %vm5089_vm7  ;;  %v2468_v56 = vpop.f32.mrf.mxu2 }
 0x395   : > { %v12287_v3 = vadd.f32 1.0, %v7334_v18  ;;  %v12292_v17 = vadd.f32 %v4108_v38, %v12007_v15  ;;  %v4106_v48 = vmul.f32 %v4042_v16, %v3978_v27  ;;  %v5107_v1 = vand.u32 2147483647, %v12227_v57 }
 0x396   : > { %v6032_v8 = vmul.f32 %v5897_v14, %v2464_v0  ;;  %v5100_v42 = vsub.f32 1.0, %v5099_v25  ;;  %v5091_v15 = vsel %vm12296_vm9, %v12248_v35, %v5087_v50  ;;  %vm5104_vm10 = vweird.f32 %v7332_v61 }
 0x397   : > { %7337 = vrcp.f32 %v12287_v3  ;;  %v4377_v53 = vpop.f32.mrf.mxu3  ;;  %vm5093_vm11 = vcmp.eq.f32.partialorder %v5092_v55, 8.507059e+37  ;;  %v5095_v11 = vor.u32 1.1754944e-38, %v5094_v7  ;;  %v4107_v28 = vmul.f32 %v4043_v5, %v3979_v20 }
 0x398   : > { %v5101_v41 = vmul.f32 %v7332_v61, %v5100_v42  ;;  %v6096_v19 = vadd.f32 %v7590_v23, %v6032_v8  ;;  %v12307_v16 = vadd.f32 %v12265_v46, %v4377_v53  ;;  %vm5103_vm12 = vweird.f32 %v12227_v57  ;;  %v14532_v42 = vld [vmem:[#allocation68_spill] sm:$0xff] }
 0x399   : > { %v5110_v6 = vor.u32 1.1754944e-38, %v5109_v10  ;;  %v2466_v35 = vadd.f32 %v2465_v24, %v11278_v13  ;;  %v5096_v26 = vsel %vm5093_vm11, %v5095_v11, %v5091_v15  ;;  %vm5105_vm13 = vmor %vm5103_vm12, %vm5104_vm10  ;;  %vm5108_vm14 = vcmp.eq.f32.partialorder %v5107_v1, 8.507059e+37 }
 0x39a   : > { %v7336_v0 = vpop.eup %7335  ;;  %v5102_v27 = vadd.f32 %v7332_v61, %v5101_v41  ;;  %6160 = vst [vmem:[%s11286_s15 + $0x80] sm:$0xff] %v6096_v19  ;;  %v6540_v5 = vmul.f32 -1.442695, %v12307_v16  ;;  %v4171_v24 = vadd.f32 %v4107_v28, %v2178_v52  ;;  %v5707_v18 = vmul.f32 %v5096_v26, %v12083_v39 }
 0x39b   : > { %v5898_v45 = vpop.f32.mrf.mxu0  ;;  %v12316_v63 = vadd.f32 1.0, %v7336_v0  ;;  %2691 = vadd.xlane.f32.xlu2 %v12310_v33  ;;  %v4170_v50 = vadd.f32 %v4106_v48, %v12003_v54  ;;  %v5124_v28 = vand.u32 2147483648, %v12287_v3  ;;  %vm5118_vm15 = vweird.f32 %v12287_v3 }
 0x39c   : > { %v5899_v55 = vadd.f32 %v11841_v12, %v5898_v45  ;;  %v5106_v20 = vsel %vm5105_vm13, %v7332_v61, %v5102_v27  ;;  %v2470_v8 = vpop.f32.mrf.mxu2  ;;  %2527 = vmatmul.bf16.gmra.mxu2 %v14532_v42  ;;  %v5122_v0 = vand.u32 2147483647, %v12287_v3 }
 0x39d   : > { %v7338_v14 = vpop.eup %7337  ;;  %v5111_v57 = vsel %vm5108_vm14, %v5110_v6, %v5106_v20  ;;  %7339 = vrcp.f32 %v12316_v63  ;;  %v4216_v1 = vpack.c.bf16 %v4171_v24, %v4170_v50  ;;  %v5137_v45 = vand.u32 2147483647, %v12316_v63 }
 0x39e   : > { %v5708_v25 = vmul.f32 %v5111_v57, %v12129_v4  ;;  %v5114_v38 = vmul.f32 %v7338_v14, %v12287_v3  ;;  %7341 = vpow2.f32 %v6540_v5  ;;  %v6033_v7 = vmul.f32 %v5899_v55, %v2466_v35  ;;  %v7592_v5 = vld [vmem:[%s7900_s28 + $0x90] sm:$0xff] }
 0x39f   : > { %v4379_v61 = vpop.f32.mrf.mxu3  ;;  %v2469_v4 = vadd.f32 %v2468_v56, %v11278_v13  ;;  %vm5119_vm1 = vweird.f32 %v7338_v14  ;;  %v5139_v26 = vand.u32 2147483648, %v12316_v63  ;;  %v5125_v3 = vor.u32 1.1754944e-38, %v5124_v28 }
 0x3a0   : > { %v5115_v10 = vsub.f32 1.0, %v5114_v38  ;;  %v12328_v49 = vadd.f32 %v12265_v46, %v4379_v61  ;;  %v5759_v52 = vpack.c.bf16 %v5708_v25, %v5707_v18  ;;  %v6097_v39 = vadd.f32 %v7591_v30, %v6033_v7  ;;  %vm12341_vm0 = vmor %vm5118_vm15, %vm5119_vm1 }
 0x3a1   : > { %vm5123_vm4 = vcmp.eq.f32.partialorder %v5122_v0, 8.507059e+37  ;;  %vm5133_vm3 = vweird.f32 %v12316_v63  ;;  %v2471_v38 = vadd.f32 %v2470_v8, %v11278_v13  ;;  %v5140_v61 = vor.u32 1.1754944e-38, %v5139_v26 }
 0x3a2   : > { %v5116_v53 = vmul.f32 %v7338_v14, %v5115_v10  ;;  %v6541_v54 = vmul.f32 -1.442695, %v12328_v49  ;;  %5915 = vmatmul.bf16.gmra.mxu0 %v5759_v52  ;;  %6161 = vst [vmem:[%s11286_s15 + $0x88] sm:$0xff] %v6097_v39  ;;  %4396 = vmatmul.bf16.gmra.mxu3 %v4216_v1  ;;  %vm5138_vm6 = vcmp.eq.f32.partialorder %v5137_v45, 8.507059e+37 }
 0x3a3   : > { %v5901_v48 = vpop.f32.mrf.mxu0  ;;  %v7340_v15 = vpop.eup %7339 }
 0x3a4   : > { %v5902_v41 = vadd.f32 %v11841_v12, %v5901_v48  ;;  %v5117_v23 = vadd.f32 %v7338_v14, %v5116_v53  ;;  %v5129_v19 = vmul.f32 %v7340_v15, %v12316_v63  ;;  %7343 = vpow2.f32 %v6541_v54  ;;  %v7342_v11 = vpop.eup %7341  ;;  %v2473_v20 = vpop.f32.mrf.mxu2  ;;  %v14535_v53 = vld [vmem:[#allocation69_spill] sm:$0xff]  ;;  %v7593_v54 = vld [vmem:[%s7900_s28 + $0x98] sm:$0xff] }
 0x3a5   : > { %v12339_v6 = vadd.f32 1.0, %v7342_v11  ;;  %vm5134_vm2 = vweird.f32 %v7340_v15 }
 0x3a6   : > { %v6034_v56 = vmul.f32 %v5902_v41, %v2469_v4  ;;  %v5130_v27 = vsub.f32 1.0, %v5129_v19  ;;  %v5121_v57 = vsel %vm12341_vm0, %v7338_v14, %v5117_v23  ;;  %vm5135_vm5 = vmor %vm5133_vm3, %vm5134_vm2 }
 0x3a7   : > { %7345 = vrcp.f32 %v12339_v6  ;;  %v5126_v7 = vsel %vm5123_vm4, %v5125_v3, %v5121_v57  ;;  %v5154_v0 = vand.u32 2147483648, %v12339_v6  ;;  %vm5148_vm8 = vweird.f32 %v12339_v6 }
 0x3a8   : > { %v6098_v55 = vadd.f32 %v7592_v5, %v6034_v56  ;;  %v5131_v24 = vmul.f32 %v7340_v15, %v5130_v27  ;;  %v5709_v39 = vmul.f32 %v5126_v7, %v12211_v58  ;;  %v5152_v35 = vand.u32 2147483647, %v12339_v6 }
 0x3aa   : > { %6162 = vst [vmem:[%s11286_s15 + $0x90] sm:$0xff] %v6098_v55  ;;  %v7344_v18 = vpop.eup %7343  ;;  %v5132_v25 = vadd.f32 %v7340_v15, %v5131_v24  ;;  %v7594_v55 = vld [vmem:[%s7900_s28 + $0xa0] sm:$0xff]  ;;  %vm5153_vm11 = vcmp.eq.f32.partialorder %v5152_v35, 8.507059e+37 }
 0x3ab   : > { %v5903_v50 = vpop.f32.mrf.mxu0  ;;  %v4688_v42 = vadd.f32 1.0, %v7344_v18  ;;  %v5155_v18 = vor.u32 1.1754944e-38, %v5154_v0 }
 0x3ac   : > { %v5904_v14 = vadd.f32 %v11841_v12, %v5903_v50  ;;  %v5136_v10 = vsel %vm5135_vm5, %v7340_v15, %v5132_v25  ;;  %v2475_v4 = vpop.f32.mrf.mxu2  ;;  %2532 = vmatmul.bf16.gmra.mxu2 %v14535_v53  ;;  %v2474_v15 = vadd.f32 %v2473_v20, %v11278_v13 }
 0x3ad   : > { %v5141_v52 = vsel %vm5138_vm6, %v5140_v61, %v5136_v10  ;;  %7347 = vrcp.f32 %v4688_v42  ;;  %v7346_v30 = vpop.eup %7345  ;;  %v5169_v5 = vand.u32 2147483648, %v4688_v42  ;;  %v5167_v3 = vand.u32 2147483647, %v4688_v42 }
 0x3ae   : > { %v5710_v63 = vmul.f32 %v5141_v52, %v12268_v51  ;;  %v6035_v1 = vmul.f32 %v5904_v14, %v2471_v38  ;;  %v5144_v8 = vmul.f32 %v7346_v30, %v12339_v6  ;;  %vm5149_vm7 = vweird.f32 %v7346_v30 }
 0x3af   : > { %vm12366_vm9 = vmor %vm5148_vm8, %vm5149_vm7  ;;  %v2476_v25 = vadd.f32 %v2475_v4, %v11278_v13  ;;  %vm5163_vm12 = vweird.f32 %v4688_v42  ;;  %v5170_v7 = vor.u32 1.1754944e-38, %v5169_v5  ;;  %vm5168_vm14 = vcmp.eq.f32.partialorder %v5167_v3, 8.507059e+37 }
 0x3b0   : > { %v6099_v48 = vadd.f32 %v7593_v54, %v6035_v1  ;;  %v5760_v41 = vpack.c.bf16 %v5710_v63, %v5709_v39  ;;  %v5145_v23 = vsub.f32 1.0, %v5144_v8  ;;  %v2351_v63 = vpop.f32.mrf.mxu1  ;;  %v14538_v1 = vld [vmem:[#allocation57_spill] sm:$0xff] }
 0x3b1   : > { %2408 = vmatmul.bf16.gmra.mxu1 %v14538_v1  ;;  %v7595_v8 = vld [vmem:[%s7900_s28 + $0xa8] sm:$0xff] }
 0x3b2   : > { %6163 = vst [vmem:[%s11286_s15 + $0x98] sm:$0xff] %v6099_v48  ;;  %5920 = vmatmul.bf16.gmra.mxu0 %v5760_v41  ;;  %v5146_v58 = vmul.f32 %v7346_v30, %v5145_v23 }
 0x3b3   : > { %v5906_v19 = vpop.f32.mrf.mxu0  ;;  %v7348_v11 = vpop.eup %7347 }
 0x3b4   : > { %v5907_v51 = vadd.f32 %v11841_v12, %v5906_v19  ;;  %v5159_v28 = vmul.f32 %v7348_v11, %v4688_v42  ;;  %v5147_v56 = vadd.f32 %v7346_v30, %v5146_v58  ;;  %vm5164_vm10 = vweird.f32 %v7348_v11 }
 0x3b5   : > { %vm5165_vm13 = vmor %vm5163_vm12, %vm5164_vm10 }
 0x3b6   : > { %v6036_v27 = vmul.f32 %v5907_v51, %v2474_v15  ;;  %v5160_v45 = vsub.f32 1.0, %v5159_v28  ;;  %v5151_v57 = vsel %vm12366_vm9, %v7346_v30, %v5147_v56 }
 0x3b7   : > { %v5156_v50 = vsel %vm5153_vm11, %v5155_v18, %v5151_v57 }
 0x3b8   : > { %v6100_v20 = vadd.f32 %v7594_v55, %v6036_v27  ;;  %v5161_v24 = vmul.f32 %v7348_v11, %v5160_v45  ;;  %v5711_v30 = vmul.f32 %v5156_v50, %v12307_v16  ;;  %v2354_v19 = vpop.f32.mrf.mxu1  ;;  %v2352_v45 = vadd.f32 %v2351_v63, %v9579_v36  ;;  %v14540_v63 = vld [vmem:[#allocation34_spill] sm:$0xff] }
 0x3ba   : > { %6164 = vst [vmem:[%s11286_s15 + $0xa0] sm:$0xff] %v6100_v20  ;;  %v5162_v6 = vadd.f32 %v7348_v11, %v5161_v24  ;;  %v4045_v18 = vadd.f32 1.0, %v2352_v45  ;;  %v14541_v45 = vld [vmem:[#allocation27_spill] sm:$0xff] }
 0x3bb   : > { %v5908_v38 = vpop.f32.mrf.mxu0 }
 0x3bc   : > { %v5909_v61 = vadd.f32 %v11841_v12, %v5908_v38  ;;  %v5166_v14 = vsel %vm5165_vm13, %v7348_v11, %v5162_v6  ;;  %v14539_v38 = vld [vmem:[#allocation23_spill] sm:$0xff] }
 0x3bd   : > { %v5171_v10 = vsel %vm5168_vm14, %v5170_v7, %v5166_v14  ;;  %v2183_v50 = vadd.f32 %v14539_v38, %v9542_v47 }
 0x3be   : > { %v6037_v52 = vmul.f32 %v5909_v61, %v2476_v25  ;;  %v5712_v39 = vmul.f32 %v5171_v10, %v12328_v49 }
 0x3c0   : > { %v6101_v42 = vadd.f32 %v7595_v8, %v6037_v52  ;;  %v5761_v4 = vpack.c.bf16 %v5712_v39, %v5711_v30  ;;  %v2356_v24 = vpop.f32.mrf.mxu1 }
 0x3c2   : > { %6165 = vst [vmem:[%s11286_s15 + $0xa8] sm:$0xff] %v6101_v42  ;;  %5925 = vmatmul.bf16.gmra.mxu0 %v5761_v4 }
 0x3ca   : > { %v2989_v53 = vpop.xlane.xlu2 %2988 }
 0x3cb   : > { %v3077_v54 = vmul.f32 %v2989_v53, %v8403_v40 }
 0x3cd   : > { %v3141_v12 = vadd.f32 1e-06, %v3077_v54 }
 0x3cf   : > { %7349 = vrsqrt.f32 %v3141_v12  ;;  %vm3562_vm15 = vweird.f32 %v3141_v12 }
 0x3d2   : > { %v2991_v48 = vpop.xlane.xlu2 %2990 }
 0x3d3   : > { %v3078_v41 = vmul.f32 %v2991_v48, %v8403_v40 }
 0x3d5   : > { %v7350_v23 = vpop.eup %7349  ;;  %v3142_v16 = vadd.f32 1e-06, %v3078_v41 }
 0x3d6   : > { %v3557_v15 = vmul.f32 %v7350_v23, %v3141_v12  ;;  %vm3563_vm1 = vweird.f32 %v7350_v23 }
 0x3d7   : > { %7351 = vrsqrt.f32 %v3142_v16  ;;  %vm3564_vm0 = vmor %vm3562_vm15, %vm3563_vm1  ;;  %vm3572_vm4 = vweird.f32 %v3142_v16 }
 0x3d8   : > { %v3558_v49 = vmul.f32 %v7350_v23, %v3557_v15  ;;  %v2355_v15 = vadd.f32 %v2354_v19, %v9579_v36  ;;  %v2357_v19 = vadd.f32 %v2356_v24, %v9579_v36  ;;  %v14544_v24 = vld [vmem:[#allocation52_spill] sm:$0xff] }
 0x3da   : > { %v3559_v11 = vmul.f32 0.5, %v3558_v49  ;;  %v2678_v58 = vpop.xlane.xlu2 %2677 }
 0x3db   : > { %v2765_v51 = vmul.f32 %v8403_v40, %v2678_v58 }
 0x3dc   : > { %v3560_v28 = vsub.f32 1.5, %v3559_v11 }
 0x3dd   : > { %v7352_v56 = vpop.eup %7351  ;;  %v12385_v0 = vsub.f32 %v11904_v43, %v2765_v51  ;;  %v12421_v51 = vld [vmem:[%s7900_s28 + $0x1b8] sm:$0xff] }
 0x3de   : > { %v3561_v27 = vmul.f32 %v7350_v23, %v3560_v28  ;;  %v3567_v35 = vmul.f32 %v7352_v56, %v3142_v16  ;;  %vm3573_vm2 = vweird.f32 %v7352_v56  ;;  %v2359_v16 = vpop.f32.mrf.mxu1 }
 0x3df   : > { %v2893_v26 = vmul.f32 %v12385_v0, %v12385_v0  ;;  %vm3574_vm3 = vmor %vm3572_vm4, %vm3573_vm2 }
 0x3e0   : > { %v3565_v5 = vsel %vm3564_vm0, %v7350_v23, %v3561_v27  ;;  %v3568_v55 = vmul.f32 %v7352_v56, %v3567_v35 }
 0x3e1   : > { %v3845_v20 = vmul.f32 %v3565_v5, %v11864_v21  ;;  %3004 = vadd.xlane.f32.xlu0 %v2893_v26  ;;  %v2186_v26 = vadd.f32 %v14541_v45, %v9542_v47  ;;  %v14542_v5 = vld [vmem:[#allocation33_spill] sm:$0xff] }
 0x3e2   : > { %v3569_v57 = vmul.f32 0.5, %v3568_v55  ;;  %v2680_v3 = vpop.xlane.xlu2 %2679  ;;  %v12435_v55 = vadd.f32 %v14542_v5, %v9542_v47 }
 0x3e3   : > { %v3913_v43 = vmul.f32 %v11934_v22, %v3845_v20  ;;  %v2766_v25 = vmul.f32 %v8403_v40, %v2680_v3  ;;  %v2360_v20 = vadd.f32 %v2359_v16, %v9579_v36  ;;  %v14543_v3 = vld [vmem:[#allocation39_spill] sm:$0xff] }
 0x3e4   : > { %v3570_v6 = vsub.f32 1.5, %v3569_v57 }
 0x3e5   : > { %v3981_v7 = vadd.f32 %v12052_v2, %v3913_v43  ;;  %v12397_v61 = vsub.f32 %v11944_v59, %v2766_v25  ;;  %v2997_v42 = vpop.xlane.xlu1 %2996  ;;  %v2993_v4 = vpop.xlane.xlu0 %2992  ;;  %v12443_v43 = vadd.f32 %v14543_v3, %v9542_v47 }
 0x3e6   : > { %v3571_v21 = vmul.f32 %v7352_v56, %v3570_v6  ;;  %v4382_v14 = vpop.f32.mrf.mxu3  ;;  %v3081_v54 = vmul.f32 %v2997_v42, %v8403_v40  ;;  %v3079_v12 = vmul.f32 %v2993_v4, %v8403_v40  ;;  %v12464_v42 = vadd.f32 1.0, %v2357_v19 }
 0x3e7   : > { %v4109_v10 = vmul.f32 %v4045_v18, %v3981_v7  ;;  %v12400_v52 = vadd.f32 %v12265_v46, %v4382_v14  ;;  %v2894_v30 = vmul.f32 %v12397_v61, %v12397_v61  ;;  %v12447_v18 = vadd.f32 %v14544_v24, %v9542_v47 }
 0x3e8   : > { %v3575_v39 = vsel %vm3574_vm3, %v7352_v56, %v3571_v21  ;;  %v12409_v41 = vadd.f32 1e-06, %v3081_v54  ;;  %v12411_v23 = vadd.f32 1e-06, %v3079_v12  ;;  %v4046_v56 = vadd.f32 1.0, %v2355_v15  ;;  %v14546_v21 = vld [vmem:[#allocation29_spill] sm:$0xff] }
 0x3e9   : > { %v3846_v8 = vmul.f32 %v3575_v39, %v14540_v63  ;;  %v6542_v53 = vmul.f32 -1.442695, %v12400_v52  ;;  %3006 = vadd.xlane.f32.xlu0 %v2894_v30  ;;  %v4173_v59 = vadd.f32 %v4109_v10, %v2183_v50  ;;  %v14545_v50 = vld [vmem:[#allocation31_spill] sm:$0xff]  ;;  %v12457_v14 = vadd.f32 %v14546_v21, %v9542_v47  ;;  %v2361_v63 = vpop.f32.mrf.mxu1  ;;  %v12474_v12 = vld [vmem:[%s7900_s28 + $0x1c0] sm:$0xff] }
 0x3ea   : > { %v12453_v7 = vadd.f32 %v14545_v50, %v9542_v47  ;;  %vm3602_vm5 = vweird.f32 %v12409_v41  ;;  %vm3582_vm6 = vweird.f32 %v12411_v23  ;;  %v12471_v54 = vadd.f32 1.0, %v2360_v20 }
 0x3eb   : > { %7353 = vpow2.f32 %v6542_v53  ;;  %v4217_v48 = vpack.c.bf16 %v4173_v59, %v12292_v17  ;;  %v3914_v49 = vmul.f32 %v11934_v22, %v3846_v8 }
 0x3ec   : > { %7355 = vrsqrt.f32 %v12409_v41 }
 0x3ed   : > { %4401 = vmatmul.bf16.gmra.mxu3 %v4217_v48  ;;  %7357 = vrsqrt.f32 %v12411_v23  ;;  %v3982_v28 = vadd.f32 %v12052_v2, %v3914_v49 }
 0x3ee   : > { %v4384_v11 = vpop.f32.mrf.mxu3 }
 0x3ef   : > { %v12418_v58 = vadd.f32 %v12265_v46, %v4384_v11  ;;  %v4110_v25 = vmul.f32 %v4046_v56, %v3982_v28  ;;  %v2362_v11 = vadd.f32 %v2361_v63, %v9579_v36 }
 0x3f0   : > { %v2995_v38 = vpop.xlane.xlu0 %2994 }
 0x3f1   : > { %v7354_v17 = vpop.eup %7353  ;;  %v6543_v27 = vmul.f32 -1.442695, %v12418_v58  ;;  %2693 = vadd.xlane.f32.xlu0 %v12421_v51  ;;  %v3080_v39 = vmul.f32 %v2995_v38, %v8403_v40  ;;  %v12476_v16 = vadd.f32 %v4110_v25, %v2186_v26  ;;  %v12503_v38 = vadd.f32 1.0, %v2362_v11 }
 0x3f2   : > { %v12426_v22 = vadd.f32 1.0, %v7354_v17  ;;  %v12429_v35 = vpop.eup %7355  ;;  %v2999_v30 = vpop.xlane.xlu1 %2998 }
 0x3f3   : > { %7359 = vpow2.f32 %v6543_v27  ;;  %v12439_v57 = vpop.eup %7357  ;;  %v3597_v6 = vmul.f32 %v12429_v35, %v12409_v41  ;;  %v3082_v4 = vmul.f32 %v2999_v30, %v8403_v40  ;;  %v12469_v59 = vadd.f32 1e-06, %v3080_v39 }
 0x3f4   : > { %7361 = vrcp.f32 %v12426_v22  ;;  %v3577_v10 = vmul.f32 %v12439_v57, %v12411_v23  ;;  %vm3583_vm7 = vweird.f32 %v12439_v57  ;;  %v5184_v26 = vand.u32 2147483648, %v12426_v22 }
 0x3f5   : > { %v3598_v8 = vmul.f32 %v12429_v35, %v3597_v6  ;;  %v12478_v49 = vadd.f32 1e-06, %v3082_v4  ;;  %7363 = vrsqrt.f32 %v12469_v59  ;;  %vm3603_vm8 = vweird.f32 %v12429_v35  ;;  %vm12497_vm9 = vmor %vm3582_vm6, %vm3583_vm7 }
 0x3f6   : > { %v3578_v53 = vmul.f32 %v12439_v57, %v3577_v10  ;;  %v3001_v56 = vpop.xlane.xlu2 %3000  ;;  %vm5178_vm10 = vweird.f32 %v12426_v22  ;;  %v5182_v25 = vand.u32 2147483647, %v12426_v22  ;;  %vm12514_vm11 = vmor %vm3602_vm5, %vm3603_vm8  ;;  %vm3592_vm12 = vweird.f32 %v12469_v59 }
 0x3f7   : > { %v3599_v15 = vmul.f32 0.5, %v3598_v8  ;;  %7365 = vrsqrt.f32 %v12478_v49  ;;  %v3083_v20 = vmul.f32 %v3001_v56, %v8403_v40  ;;  %v12520_v8 = vor.u32 1.1754944e-38, %v5184_v26 }
 0x3f8   : > { %v3579_v28 = vmul.f32 0.5, %v3578_v53  ;;  %v2682_v6 = vpop.xlane.xlu0 %2681  ;;  %vm3612_vm13 = vweird.f32 %v12478_v49  ;;  %vm12559_vm1 = vcmp.eq.f32.partialorder %v5182_v25, 8.507059e+37  ;;  %v12573_v25 = vpop.f32.mrf.mxu2 }
 0x3f9   : > { %v7360_v48 = vpop.eup %7359  ;;  %2695 = vadd.xlane.f32.xlu0 %v12474_v12  ;;  %v3600_v19 = vsub.f32 1.5, %v3599_v15  ;;  %v12507_v10 = vadd.f32 1e-06, %v3083_v20  ;;  %v2767_v23 = vmul.f32 %v8403_v40, %v2682_v6  ;;  %v14551_v15 = vld [vmem:[#allocation37_spill] sm:$0xff] }
 0x3fa   : > { %v12482_v17 = vpop.eup %7361  ;;  %v12486_v27 = vadd.f32 1.0, %v7360_v48  ;;  %v3580_v5 = vsub.f32 1.5, %v3579_v28  ;;  %v2686_v30 = vpop.xlane.xlu1 %2685 }
 0x3fb   : > { %v5174_v45 = vmul.f32 %v12482_v17, %v12426_v22  ;;  %v3601_v50 = vmul.f32 %v12429_v35, %v3600_v19  ;;  %v2769_v4 = vmul.f32 %v8403_v40, %v2686_v30  ;;  %v12523_v53 = vpop.eup %7363  ;;  %vm5179_vm14 = vweird.f32 %v12482_v17 }
 0x3fc   : > { %7367 = vrcp.f32 %v12486_v27  ;;  %v3581_v21 = vmul.f32 %v12439_v57, %v3580_v5  ;;  %v3587_v28 = vmul.f32 %v12523_v53, %v12469_v59  ;;  %v5197_v56 = vand.u32 2147483647, %v12486_v27  ;;  %vm12583_vm3 = vmor %vm5178_vm10, %vm5179_vm14 }
 0x3fd   : > { %v5175_v24 = vsub.f32 1.0, %v5174_v45  ;;  %7369 = vrsqrt.f32 %v12507_v10  ;;  %v12531_v41 = vpop.eup %7365  ;;  %v12546_v5 = vsub.f32 %v12186_v32, %v2769_v4  ;;  %v12549_v20 = vsub.f32 %v12181_v37, %v2767_v23  ;;  %v12565_v32 = vpop.f32.mrf.mxu1 }
 0x3fe   : > { %v3585_v48 = vsel %vm12497_vm9, %v12439_v57, %v3581_v21  ;;  %v3605_v57 = vsel %vm12514_vm11, %v12429_v35, %v3601_v50  ;;  %v3607_v26 = vmul.f32 %v12531_v41, %v12478_v49  ;;  %v3003_v3 = vpop.xlane.xlu2 %3002  ;;  %v3588_v21 = vmul.f32 %v12523_v53, %v3587_v28  ;;  %v12635_v49 = vld [vmem:[%s13955_s3] ss:$0 sm:$0xff] }
 0x3ff   : > { %v5176_v63 = vmul.f32 %v12482_v17, %v5175_v24  ;;  %v3847_v11 = vmul.f32 %v3585_v48, %v14551_v15  ;;  %v12554_v24 = vld [vmem:[%s13954_s2] ss:$0 sm:$0xff]  ;;  %vm3593_vm15 = vweird.f32 %v12523_v53  ;;  %vm3622_vm0 = vweird.f32 %v12507_v10 }
 0x400   : > { %v3608_v30 = vmul.f32 %v12531_v41, %v3607_v26  ;;  %vm5193_vm2 = vweird.f32 %v12486_v27  ;;  %v2897_v23 = vmul.f32 %v12546_v5, %v12546_v5  ;;  %vm3613_vm4 = vweird.f32 %v12531_v41  ;;  %vm12601_vm5 = vmor %vm3592_vm12, %vm3593_vm15 }
 0x401   : > { %v3915_v6 = vmul.f32 %v12554_v24, %v3847_v11  ;;  %v5177_v35 = vadd.f32 %v12482_v17, %v5176_v63  ;;  %v3589_v63 = vmul.f32 0.5, %v3588_v21  ;;  %v2895_v28 = vmul.f32 %v12549_v20, %v12549_v20  ;;  %vm12622_vm8 = vmor %vm3612_vm13, %vm3613_vm4 }
 0x402   : > { %v12538_v45 = vpop.eup %7367  ;;  %v3609_v15 = vmul.f32 0.5, %v3608_v30  ;;  %3012 = vadd.xlane.f32.xlu2 %v2897_v23  ;;  %v2688_v21 = vpop.xlane.xlu1 %2687  ;;  %vm12612_vm7 = vcmp.eq.f32.partialorder %v5197_v56, 8.507059e+37 }
 0x403   : > { %v5189_v37 = vmul.f32 %v12538_v45, %v12486_v27  ;;  %v3983_v39 = vadd.f32 %v12052_v2, %v3915_v6  ;;  %v12577_v48 = vpop.eup %7369  ;;  %v14556_v2 = vld [vmem:[#allocation35_spill] sm:$0xff]  ;;  %v3084_v6 = vmul.f32 %v3003_v3, %v8403_v40  ;;  %v3590_v30 = vsub.f32 1.5, %v3589_v63  ;;  %3008 = vadd.xlane.f32.xlu1 %v2895_v28 }
 0x404   : > { %v3849_v26 = vmul.f32 %v3605_v57, %v14556_v2  ;;  %v5181_v22 = vsel %vm12583_vm3, %v12482_v17, %v5177_v35  ;;  %v3617_v19 = vmul.f32 %v12577_v48, %v12507_v10  ;;  %v3610_v1 = vsub.f32 1.5, %v3609_v15 }
 0x405   : > { %v5190_v4 = vsub.f32 1.0, %v5189_v37  ;;  %v4111_v37 = vmul.f32 %v12464_v42, %v3983_v39  ;;  %v12607_v23 = vadd.f32 1e-06, %v3084_v6  ;;  %v3591_v17 = vmul.f32 %v12523_v53, %v3590_v30  ;;  %v4387_v63 = vpop.f32.mrf.mxu3  ;;  %v2366_v50 = vpop.f32.mrf.mxu1 }
 0x406   : > { %v3917_v42 = vmul.f32 %v12554_v24, %v3849_v26  ;;  %v3618_v35 = vmul.f32 %v12577_v48, %v3617_v19  ;;  %vm5194_vm6 = vweird.f32 %v12538_v45  ;;  %v2770_v59 = vmul.f32 %v8403_v40, %v2688_v21  ;;  %v2684_v19 = vpop.xlane.xlu0 %2683  ;;  %v2690_v11 = vpop.xlane.xlu2 %2689 }
 0x407   : > { %v5191_v3 = vmul.f32 %v12538_v45, %v5190_v4  ;;  %v3611_v4 = vmul.f32 %v12531_v41, %v3610_v1  ;;  %vm3623_vm9 = vweird.f32 %v12577_v48  ;;  %7371 = vrsqrt.f32 %v12607_v23  ;;  %vm12658_vm10 = vmor %vm5193_vm2, %vm5194_vm6 }
 0x408   : > { %v3595_v1 = vsel %vm12601_vm5, %v12523_v53, %v3591_v17  ;;  %v3619_v28 = vmul.f32 0.5, %v3618_v35  ;;  %v3985_v2 = vadd.f32 %v12635_v49, %v3917_v42  ;;  %v12639_v26 = vsub.f32 %v12246_v34, %v2770_v59  ;;  %v14564_v17 = vld [vmem:[#allocation70_spill] sm:$0xff]  ;;  %vm12671_vm11 = vmor %vm3622_vm0, %vm3623_vm9 }
 0x409   : > { %v5192_v56 = vadd.f32 %v12538_v45, %v5191_v3  ;;  %v4175_v6 = vadd.f32 %v4111_v37, %v12435_v55  ;;  %v5186_v21 = vsel %vm12559_vm1, %v12520_v8, %v5181_v22  ;;  %v3848_v30 = vmul.f32 %v3595_v1, %v12093_v44  ;;  %v12648_v3 = vpop.f32.mrf.mxu2  ;;  %2537 = vmatmul.bf16.gmra.mxu2 %v14564_v17 }
 0x40a   : > { %v14563_v53 = vand.u32 2147483648, %v12486_v27  ;;  %v3615_v34 = vsel %vm12622_vm8, %v12531_v41, %v3611_v4  ;;  %v3620_v42 = vsub.f32 1.5, %v3619_v28  ;;  %v2768_v44 = vmul.f32 %v8403_v40, %v2684_v19  ;;  %v5911_v35 = vpop.f32.mrf.mxu0  ;;  %v12724_v41 = vld [vmem:[%s7900_s28 + $0x1d8] sm:$0xff] }
 0x40b   : > { %v12664_v8 = vadd.f32 %v12265_v46, %v4387_v63  ;;  %v3916_v37 = vmul.f32 %v12554_v24, %v3848_v30  ;;  %v5196_v27 = vsel %vm12658_vm10, %v12538_v45, %v5192_v56  ;;  %vm3632_vm12 = vweird.f32 %v12607_v23 }
 0x40c   : > { %v5200_v57 = vor.u32 1.1754944e-38, %v14563_v53  ;;  %v2898_v22 = vmul.f32 %v12639_v26, %v12639_v26  ;;  %v3621_v59 = vmul.f32 %v12577_v48, %v3620_v42  ;;  %v4113_v63 = vmul.f32 %v12503_v38, %v3985_v2 }
 0x40d   : > { %v12684_v10 = vsub.f32 %v12232_v62, %v2768_v44  ;;  %v6544_v4 = vmul.f32 -1.442695, %v12664_v8  ;;  %v12687_v15 = vpop.eup %7371  ;;  %v2365_v45 = vadd.f32 %v12565_v32, %v9579_v36  ;;  %v3850_v56 = vmul.f32 %v3615_v34, %v12099_v31  ;;  %v4389_v2 = vpop.f32.mrf.mxu3 }
 0x40e   : > { %3014 = vadd.xlane.f32.xlu2 %v2898_v22  ;;  %v2771_v19 = vmul.f32 %v8403_v40, %v2690_v11  ;;  %v4218_v1 = vpack.c.bf16 %v4175_v6, %v12476_v16  ;;  %v3984_v28 = vadd.f32 %v12635_v49, %v3916_v37  ;;  %v3625_v62 = vsel %vm12671_vm11, %v12577_v48, %v3621_v59  ;;  %v2692_v11 = vpop.xlane.xlu2 %2691 }
 0x40f   : > { %v3627_v38 = vmul.f32 %v12687_v15, %v12607_v23  ;;  %7373 = vpow2.f32 %v6544_v4  ;;  %v5201_v32 = vsel %vm12612_vm7, %v5200_v57, %v5196_v27  ;;  %vm3633_vm13 = vweird.f32 %v12687_v15  ;;  %v12756_v23 = vld [vmem:[%s7900_s28 + $0x1c8] sm:$0xff] }
 0x410   : > { %v2896_v31 = vmul.f32 %v12684_v10, %v12684_v10  ;;  %v3918_v16 = vmul.f32 %v12554_v24, %v3850_v56  ;;  %4406 = vmatmul.bf16.gmra.mxu3 %v4218_v1  ;;  %v12708_v6 = vsub.f32 %v12271_v29, %v2771_v19  ;;  %v12711_v30 = vadd.f32 %v12265_v46, %v4389_v2  ;;  %vm12744_vm14 = vmor %vm3632_vm12, %vm3633_vm13 }
 0x411   : > { %v3628_v48 = vmul.f32 %v12687_v15, %v3627_v38  ;;  %v2367_v39 = vadd.f32 %v2366_v50, %v9579_v36  ;;  %v4050_v57 = vadd.f32 1.0, %v2365_v45  ;;  %v3851_v17 = vmul.f32 %v3625_v62, %v12126_v9  ;;  %v12717_v42 = vpop.f32.mrf.mxu2  ;;  %v12736_v45 = vld [vmem:[%s13961_s9] ss:$0 sm:$0xff] }
 0x412   : > { %3010 = vadd.xlane.f32.xlu1 %v2896_v31  ;;  %v3986_v53 = vadd.f32 %v12635_v49, %v3918_v16  ;;  %v2772_v34 = vmul.f32 %v8403_v40, %v2692_v11  ;;  %v4112_v55 = vmul.f32 %v12471_v54, %v3984_v28  ;;  %v6545_v29 = vmul.f32 -1.442695, %v12711_v30 }
 0x413   : > { %v3629_v44 = vmul.f32 0.5, %v3628_v48  ;;  %v2899_v37 = vmul.f32 %v12708_v6, %v12708_v6  ;;  %v5713_v50 = vmul.f32 %v5186_v21, %v12400_v52  ;;  %v3919_v27 = vmul.f32 %v12554_v24, %v3851_v17  ;;  %v2369_v21 = vpop.f32.mrf.mxu1  ;;  %v14571_v17 = vld [vmem:[#allocation20_spill] sm:$0xff] }
 0x414   : > { %v12729_v9 = vsub.f32 %v12310_v33, %v2772_v34  ;;  %v2479_v22 = vadd.f32 %v12573_v25, %v11278_v13  ;;  %7375 = vpow2.f32 %v6545_v29  ;;  %v4051_v4 = vadd.f32 1.0, %v2367_v39 }
 0x415   : > { %v7374_v59 = vpop.eup %7373  ;;  %v3630_v54 = vsub.f32 1.5, %v3629_v44  ;;  %3016 = vadd.xlane.f32.xlu0 %v2899_v37  ;;  %v5912_v52 = vadd.f32 %v12736_v45, %v5911_v35  ;;  %v5714_v33 = vmul.f32 %v5201_v32, %v12418_v58  ;;  %v4114_v19 = vmul.f32 %v4050_v57, %v3986_v53  ;;  %v5913_v35 = vpop.f32.mrf.mxu0  ;;  %v12784_v44 = vld [vmem:[%s7900_s28 + $0x1e0] sm:$0xff] }
 0x416   : > { %v12748_v56 = vadd.f32 1.0, %v7374_v59  ;;  %2701 = vadd.xlane.f32.xlu2 %v12724_v41  ;;  %v3987_v1 = vadd.f32 %v12635_v49, %v3919_v27  ;;  %v4176_v28 = vadd.f32 %v4112_v55, %v12443_v43  ;;  %v4177_v58 = vadd.f32 %v4113_v63, %v12447_v18  ;;  %v4392_v2 = vpop.f32.mrf.mxu3  ;;  %v7599_v63 = vld [vmem:[%s7900_s28 + $0xb0] sm:$0xff] }
 0x417   : > { %v3631_v62 = vmul.f32 %v12687_v15, %v3630_v54  ;;  %v6038_v38 = vmul.f32 %v5912_v52, %v2479_v22  ;;  %v2900_v32 = vmul.f32 %v12729_v9, %v12729_v9  ;;  %v2370_v31 = vadd.f32 %v2369_v21, %v9579_v36  ;;  %v14572_v54 = vld [vmem:[#allocation75_spill] sm:$0xff]  ;;  %v12800_v52 = vld [vmem:[%s7900_s28 + $0x1d0] sm:$0xff] }
 0x418   : > { %7377 = vrcp.f32 %v12748_v56  ;;  %v2481_v16 = vadd.f32 %v12648_v3, %v11278_v13  ;;  %v4115_v18 = vmul.f32 %v4051_v4, %v3987_v1  ;;  %v12769_v48 = vadd.f32 %v12265_v46, %v4392_v2 }
 0x419   : > { %v3635_v43 = vsel %vm12744_vm14, %v12687_v15, %v3631_v62  ;;  %v6102_v11 = vadd.f32 %v7599_v63, %v6038_v38  ;;  %v12772_v39 = vadd.f32 %v4114_v19, %v12453_v7  ;;  %v5914_v3 = vadd.f32 %v12736_v45, %v5913_v35  ;;  %v2485_v57 = vpop.f32.mrf.mxu2  ;;  %2542 = vmatmul.bf16.gmra.mxu2 %v14571_v17 }
 0x41a   : > { %2697 = vadd.xlane.f32.xlu1 %v12756_v23  ;;  %v3852_v53 = vmul.f32 %v3635_v43, %v12200_v60  ;;  %v7376_v34 = vpop.eup %7375  ;;  %v12779_v15 = vadd.f32 %v4115_v18, %v12457_v14  ;;  %v6546_v55 = vmul.f32 -1.442695, %v12769_v48  ;;  %v4219_v7 = vpack.c.bf16 %v4177_v58, %v4176_v28 }
 0x41b   : > { %6166 = vst [vmem:[%s11286_s15 + $0xb0] sm:$0xff] %v6102_v11  ;;  %v5762_v29 = vpack.c.bf16 %v5714_v33, %v5713_v50  ;;  %v12786_v37 = vadd.f32 1.0, %v7376_v34  ;;  %v6039_v27 = vmul.f32 %v5914_v3, %v2481_v16  ;;  %v4052_v22 = vadd.f32 1.0, %v2370_v31  ;;  %v7600_v33 = vld [vmem:[%s7900_s28 + $0xb8] sm:$0xff]  ;;  %v7601_v3 = vld [vmem:[%s7900_s28 + $0xc0] sm:$0xff] }
 0x41c   : > { %v3920_v60 = vmul.f32 %v12554_v24, %v3852_v53  ;;  %7379 = vpow2.f32 %v6546_v55  ;;  %v4220_v14 = vpack.c.bf16 %v12779_v15, %v12772_v39  ;;  %v2201_v4 = vadd.f32 %v14572_v54, %v9542_v47 }
 0x41d   : > { %3018 = vadd.xlane.f32.xlu0 %v2900_v32  ;;  %5930 = vmatmul.bf16.gmra.mxu0 %v5762_v29  ;;  %7381 = vrcp.f32 %v12786_v37  ;;  %v6103_v25 = vadd.f32 %v7600_v33, %v6039_v27  ;;  %v2484_v1 = vadd.f32 %v12717_v42, %v11278_v13  ;;  %v12814_v32 = vld [vmem:[%s7900_s28 + $0x1e8] sm:$0xff]  ;;  %v5212_v34 = vand.u32 2147483647, %v12748_v56 }
 0x41e   : > { %v12791_v59 = vpop.eup %7377  ;;  %2703 = vadd.xlane.f32.xlu2 %v12784_v44  ;;  %v3988_v21 = vadd.f32 %v12635_v49, %v3920_v60  ;;  %v4394_v19 = vpop.f32.mrf.mxu3  ;;  %v5214_v55 = vand.u32 2147483648, %v12748_v56  ;;  %vm5208_vm15 = vweird.f32 %v12748_v56  ;;  %v2486_v60 = vadd.f32 %v2485_v57, %v11278_v13 }
 0x41f   : > { %v5204_v50 = vmul.f32 %v12791_v59, %v12748_v56  ;;  %v12807_v35 = vadd.f32 %v12265_v46, %v4394_v19  ;;  %v5916_v28 = vpop.f32.mrf.mxu0  ;;  %6167 = vst [vmem:[%s11286_s15 + $0xb8] sm:$0xff] %v6103_v25  ;;  %vm5209_vm1 = vweird.f32 %v12791_v59  ;;  %v5229_v54 = vand.u32 2147483648, %v12786_v37 }
 0x420   : > { %4411 = vmatmul.bf16.gmra.mxu3 %v4219_v7  ;;  %v4116_v62 = vmul.f32 %v4052_v22, %v3988_v21  ;;  %v5917_v38 = vadd.f32 %v12736_v45, %v5916_v28  ;;  %vm12832_vm0 = vmor %vm5208_vm15, %vm5209_vm1  ;;  %v5227_v22 = vand.u32 2147483647, %v12786_v37  ;;  %vm5213_vm4 = vcmp.eq.f32.partialorder %v5212_v34, 8.507059e+37  ;;  %v12852_v28 = vld [vmem:[%s7900_s28 + $0x1f0] sm:$0xff] }
 0x421   : > { %v5205_v58 = vsub.f32 1.0, %v5204_v50  ;;  %v6547_v2 = vmul.f32 -1.442695, %v12807_v35  ;;  %v2488_v31 = vpop.f32.mrf.mxu2  ;;  %v5215_v19 = vor.u32 1.1754944e-38, %v5214_v55  ;;  %vm5223_vm3 = vweird.f32 %v12786_v37 }
 0x422   : > { %2699 = vadd.xlane.f32.xlu1 %v12800_v52  ;;  %v7380_v16 = vpop.eup %7379  ;;  %v12817_v43 = vadd.f32 %v4116_v62, %v2201_v4  ;;  %v6040_v46 = vmul.f32 %v5917_v38, %v2484_v1  ;;  %v12841_v4 = vld [vmem:[%s13959_s7] ss:$0 sm:$0xff]  ;;  %vm5228_vm6 = vcmp.eq.f32.partialorder %v5227_v22, 8.507059e+37 }
 0x423   : > { %v5206_v42 = vmul.f32 %v12791_v59, %v5205_v58  ;;  %v7382_v18 = vpop.eup %7381  ;;  %v12819_v63 = vadd.f32 1.0, %v7380_v16  ;;  %7383 = vpow2.f32 %v6547_v2  ;;  %v14575_v62 = vld [vmem:[#allocation24_spill] sm:$0xff] }
 0x424   : > { %v5219_v53 = vmul.f32 %v7382_v18, %v12786_v37  ;;  %v6104_v17 = vadd.f32 %v7601_v3, %v6040_v46  ;;  %vm5224_vm2 = vweird.f32 %v7382_v18  ;;  %v5230_v46 = vor.u32 1.1754944e-38, %v5229_v54 }
 0x425   : > { %v5207_v11 = vadd.f32 %v12791_v59, %v5206_v42  ;;  %2705 = vadd.xlane.f32.xlu0 %v12814_v32  ;;  %7385 = vrcp.f32 %v12819_v63  ;;  %vm5225_vm5 = vmor %vm5223_vm3, %vm5224_vm2  ;;  %v2489_v3 = vadd.f32 %v2488_v31, %v11278_v13  ;;  %vm5238_vm8 = vweird.f32 %v12819_v63 }
 0x426   : > { %v5220_v7 = vsub.f32 1.0, %v5219_v53  ;;  %6168 = vst [vmem:[%s11286_s15 + $0xc0] sm:$0xff] %v6104_v17  ;;  %v4397_v29 = vpop.f32.mrf.mxu3 }
 0x427   : > { %v12844_v56 = vadd.f32 %v12841_v4, %v4397_v29  ;;  %v5918_v50 = vpop.f32.mrf.mxu0  ;;  %v5211_v57 = vsel %vm12832_vm0, %v12791_v59, %v5207_v11 }
 0x428   : > { %v5221_v21 = vmul.f32 %v7382_v18, %v5220_v7  ;;  %v5919_v33 = vadd.f32 %v12736_v45, %v5918_v50  ;;  %v5216_v42 = vsel %vm5213_vm4, %v5215_v19, %v5211_v57  ;;  %v7603_v7 = vld [vmem:[%s7900_s28 + $0xc8] sm:$0xff] }
 0x429   : > { %v7384_v25 = vpop.eup %7383  ;;  %v6548_v1 = vmul.f32 -1.442695, %v12844_v56  ;;  %v2490_v58 = vpop.f32.mrf.mxu2  ;;  %2547 = vmatmul.bf16.gmra.mxu2 %v14575_v62  ;;  %v5715_v17 = vmul.f32 %v5216_v42, %v12664_v8 }
 0x42a   : > { %v5222_v38 = vadd.f32 %v7382_v18, %v5221_v21  ;;  %v12856_v2 = vadd.f32 1.0, %v7384_v25  ;;  %v6041_v59 = vmul.f32 %v5919_v33, %v2486_v60  ;;  %v5244_v33 = vand.u32 2147483648, %v12819_v63 }
 0x42b   : > { %v12858_v16 = vpop.eup %7385  ;;  %7387 = vpow2.f32 %v6548_v1  ;;  %v5242_v25 = vand.u32 2147483647, %v12819_v63  ;;  %v7604_v1 = vld [vmem:[%s7900_s28 + $0xd0] sm:$0xff]  ;;  %v2491_v42 = vadd.f32 %v2490_v58, %v11278_v13  ;;  %v14578_v58 = vld [vmem:[#allocation28_spill] sm:$0xff] }
 0x42c   : > { %v5226_v11 = vsel %vm5225_vm5, %v7382_v18, %v5222_v38  ;;  %v5234_v53 = vmul.f32 %v12858_v16, %v12819_v63  ;;  %7389 = vrcp.f32 %v12856_v2  ;;  %v6105_v29 = vadd.f32 %v7603_v7, %v6041_v59 }
 0x42d   : > { %2707 = vadd.xlane.f32.xlu0 %v12852_v28  ;;  %v5231_v37 = vsel %vm5228_vm6, %v5230_v46, %v5226_v11  ;;  %vm5239_vm7 = vweird.f32 %v12858_v16  ;;  %v5259_v59 = vand.u32 2147483648, %v12856_v2  ;;  %vm5243_vm11 = vcmp.eq.f32.partialorder %v5242_v25, 8.507059e+37 }
 0x42e   : > { %v5716_v34 = vmul.f32 %v5231_v37, %v12711_v30  ;;  %v5235_v55 = vsub.f32 1.0, %v5234_v53  ;;  %v4399_v18 = vpop.f32.mrf.mxu3  ;;  %6169 = vst [vmem:[%s11286_s15 + $0xc8] sm:$0xff] %v6105_v29  ;;  %vm12889_vm9 = vmor %vm5238_vm8, %vm5239_vm7  ;;  %v5257_v53 = vand.u32 2147483647, %v12856_v2  ;;  %v5245_v37 = vor.u32 1.1754944e-38, %v5244_v33 }
 0x42f   : > { %v12873_v60 = vadd.f32 %v12841_v4, %v4399_v18  ;;  %v5921_v27 = vpop.f32.mrf.mxu0  ;;  %vm5253_vm12 = vweird.f32 %v12856_v2  ;;  %v5260_v29 = vor.u32 1.1754944e-38, %v5259_v59  ;;  %v7606_v59 = vld [vmem:[%s7900_s28 + $0xe0] sm:$0xff] }
 0x430   : > { %4416 = vmatmul.bf16.gmra.mxu3 %v4220_v14  ;;  %v5236_v22 = vmul.f32 %v12858_v16, %v5235_v55  ;;  %v5763_v31 = vpack.c.bf16 %v5716_v34, %v5715_v17  ;;  %v5922_v8 = vadd.f32 %v12736_v45, %v5921_v27  ;;  %vm5258_vm14 = vcmp.eq.f32.partialorder %v5257_v53, 8.507059e+37 }
 0x431   : > { %v7388_v54 = vpop.eup %7387  ;;  %v6549_v30 = vmul.f32 -1.442695, %v12873_v60  ;;  %v2493_v50 = vpop.f32.mrf.mxu2 }
 0x432   : > { %v7390_v57 = vpop.eup %7389  ;;  %v12879_v21 = vadd.f32 1.0, %v7388_v54  ;;  %5935 = vmatmul.bf16.gmra.mxu0 %v5763_v31  ;;  %v6042_v39 = vmul.f32 %v5922_v8, %v2489_v3  ;;  %v5237_v15 = vadd.f32 %v12858_v16, %v5236_v22 }
 0x433   : > { %v5249_v14 = vmul.f32 %v7390_v57, %v12856_v2  ;;  %7391 = vpow2.f32 %v6549_v30  ;;  %vm5254_vm10 = vweird.f32 %v7390_v57 }
 0x434   : > { %7393 = vrcp.f32 %v12879_v21  ;;  %v6106_v62 = vadd.f32 %v7604_v1, %v6042_v39  ;;  %v5241_v46 = vsel %vm12889_vm9, %v12858_v16, %v5237_v15  ;;  %vm5255_vm13 = vmor %vm5253_vm12, %vm5254_vm10  ;;  %v7605_v39 = vld [vmem:[%s7900_s28 + $0xd8] sm:$0xff]  ;;  %vm5268_vm15 = vweird.f32 %v12879_v21 }
 0x435   : > { %v5250_v19 = vsub.f32 1.0, %v5249_v14  ;;  %v5246_v16 = vsel %vm5243_vm11, %v5245_v37, %v5241_v46  ;;  %v2494_v14 = vadd.f32 %v2493_v50, %v11278_v13  ;;  %v5272_v50 = vand.u32 2147483647, %v12879_v21 }
 0x436   : > { %6170 = vst [vmem:[%s11286_s15 + $0xd0] sm:$0xff] %v6106_v62  ;;  %v5717_v54 = vmul.f32 %v5246_v16, %v12769_v48 }
 0x437   : > { %v5251_v11 = vmul.f32 %v7390_v57, %v5250_v19  ;;  %v5923_v63 = vpop.f32.mrf.mxu0  ;;  %vm5273_vm4 = vcmp.eq.f32.partialorder %v5272_v50, 8.507059e+37 }
 0x438   : > { %v5924_v3 = vadd.f32 %v12736_v45, %v5923_v63 }
 0x439   : > { %v7392_v17 = vpop.eup %7391  ;;  %v5252_v34 = vadd.f32 %v7390_v57, %v5251_v11  ;;  %v2495_v55 = vpop.f32.mrf.mxu2  ;;  %2552 = vmatmul.bf16.gmra.mxu2 %v14578_v58 }
 0x43a   : > { %v7394_v7 = vpop.eup %7393  ;;  %v4696_v18 = vadd.f32 1.0, %v7392_v17  ;;  %v6043_v27 = vmul.f32 %v5924_v3, %v2491_v42  ;;  %v2496_v53 = vadd.f32 %v2495_v55, %v11278_v13 }
 0x43b   : > { %v5256_v22 = vsel %vm5255_vm13, %v7390_v57, %v5252_v34  ;;  %v5264_v31 = vmul.f32 %v7394_v7, %v12879_v21  ;;  %vm5269_vm1 = vweird.f32 %v7394_v7 }
 0x43c   : > { %v5261_v8 = vsel %vm5258_vm14, %v5260_v29, %v5256_v22  ;;  %7395 = vrcp.f32 %v4696_v18  ;;  %v6107_v15 = vadd.f32 %v7605_v39, %v6043_v27  ;;  %vm5270_vm0 = vmor %vm5268_vm15, %vm5269_vm1  ;;  %v5289_v11 = vand.u32 2147483648, %v4696_v18 }
 0x43d   : > { %v5718_v2 = vmul.f32 %v5261_v8, %v12807_v35  ;;  %v5265_v30 = vsub.f32 1.0, %v5264_v31  ;;  %v5274_v35 = vand.u32 2147483648, %v12879_v21  ;;  %v5287_v3 = vand.u32 2147483647, %v4696_v18 }
 0x43e   : > { %6171 = vst [vmem:[%s11286_s15 + $0xd8] sm:$0xff] %v6107_v15  ;;  %vm5283_vm3 = vweird.f32 %v4696_v18  ;;  %v5290_v29 = vor.u32 1.1754944e-38, %v5289_v11 }
 0x43f   : > { %v5266_v33 = vmul.f32 %v7394_v7, %v5265_v30  ;;  %v5764_v25 = vpack.c.bf16 %v5718_v2, %v5717_v54  ;;  %v5926_v19 = vpop.f32.mrf.mxu0  ;;  %v5275_v34 = vor.u32 1.1754944e-38, %v5274_v35  ;;  %vm5288_vm6 = vcmp.eq.f32.partialorder %v5287_v3, 8.507059e+37 }
 0x440   : > { %v5927_v57 = vadd.f32 %v12736_v45, %v5926_v19 }
 0x441   : > { %v5267_v38 = vadd.f32 %v7394_v7, %v5266_v33 }
 0x442   : > { %v7396_v1 = vpop.eup %7395  ;;  %5940 = vmatmul.bf16.gmra.mxu0 %v5764_v25  ;;  %v6044_v62 = vmul.f32 %v5927_v57, %v2494_v14  ;;  %v2371_v57 = vpop.f32.mrf.mxu1 }
 0x443   : > { %v5279_v48 = vmul.f32 %v7396_v1, %v4696_v18  ;;  %v5271_v63 = vsel %vm5270_vm0, %v7394_v7, %v5267_v38  ;;  %vm5284_vm2 = vweird.f32 %v7396_v1  ;;  %v7607_v7 = vld [vmem:[%s7900_s28 + $0xe8] sm:$0xff]  ;;  %v2372_v50 = vadd.f32 %v2371_v57, %v9579_v36 }
 0x444   : > { %v6108_v42 = vadd.f32 %v7606_v59, %v6044_v62  ;;  %v5276_v21 = vsel %vm5273_vm4, %v5275_v34, %v5271_v63  ;;  %vm5285_vm5 = vmor %vm5283_vm3, %vm5284_vm2 }
 0x445   : > { %v5280_v46 = vsub.f32 1.0, %v5279_v48  ;;  %v5719_v8 = vmul.f32 %v5276_v21, %v12844_v56 }
 0x446   : > { %6172 = vst [vmem:[%s11286_s15 + $0xe0] sm:$0xff] %v6108_v42 }
 0x447   : > { %v5281_v37 = vmul.f32 %v7396_v1, %v5280_v46  ;;  %v5928_v17 = vpop.f32.mrf.mxu0 }
 0x448   : > { %v5929_v58 = vadd.f32 %v12736_v45, %v5928_v17 }
 0x449   : > { %v5282_v16 = vadd.f32 %v7396_v1, %v5281_v37 }
 0x44a   : > { %v6045_v27 = vmul.f32 %v5929_v58, %v2496_v53  ;;  %v2374_v37 = vpop.f32.mrf.mxu1  ;;  %v14579_v58 = vld [vmem:[#allocation76_spill] sm:$0xff] }
 0x44b   : > { %v5286_v22 = vsel %vm5285_vm5, %v7396_v1, %v5282_v16  ;;  %v2203_v16 = vadd.f32 %v14579_v58, %v9542_v47 }
 0x44c   : > { %v5291_v55 = vsel %vm5288_vm6, %v5290_v29, %v5286_v22  ;;  %v6109_v31 = vadd.f32 %v7607_v7, %v6045_v27 }
 0x44d   : > { %v5720_v54 = vmul.f32 %v5291_v55, %v12873_v60 }
 0x44e   : > { %6173 = vst [vmem:[%s11286_s15 + $0xe8] sm:$0xff] %v6109_v31 }
 0x44f   : > { %v5765_v2 = vpack.c.bf16 %v5720_v54, %v5719_v8 }
 0x452   : > { %5945 = vmatmul.bf16.gmra.mxu0 %v5765_v2  ;;  %v2376_v2 = vpop.f32.mrf.mxu1 }
 0x454   : > { %v3005_v30 = vpop.xlane.xlu0 %3004 }
 0x455   : > { %v3085_v39 = vmul.f32 %v3005_v30, %v8403_v40 }
 0x457   : > { %v3149_v18 = vadd.f32 1e-06, %v3085_v39 }
 0x459   : > { %7397 = vrsqrt.f32 %v3149_v18  ;;  %vm3642_vm8 = vweird.f32 %v3149_v18 }
 0x45c   : > { %v3007_v15 = vpop.xlane.xlu0 %3006 }
 0x45d   : > { %v3086_v14 = vmul.f32 %v3007_v15, %v8403_v40 }
 0x45f   : > { %v7398_v33 = vpop.eup %7397  ;;  %v3150_v25 = vadd.f32 1e-06, %v3086_v14 }
 0x460   : > { %v3637_v19 = vmul.f32 %v7398_v33, %v3149_v18  ;;  %vm3643_vm7 = vweird.f32 %v7398_v33 }
 0x461   : > { %7399 = vrsqrt.f32 %v3150_v25  ;;  %vm3644_vm9 = vmor %vm3642_vm8, %vm3643_vm7  ;;  %vm3652_vm11 = vweird.f32 %v3150_v25 }
 0x462   : > { %v3638_v1 = vmul.f32 %v7398_v33, %v3637_v19 }
 0x464   : > { %v3639_v56 = vmul.f32 0.5, %v3638_v1  ;;  %v2694_v62 = vpop.xlane.xlu0 %2693 }
 0x465   : > { %v2773_v60 = vmul.f32 %v8403_v40, %v2694_v62 }
 0x466   : > { %v3640_v38 = vsub.f32 1.5, %v3639_v56 }
 0x467   : > { %v7400_v48 = vpop.eup %7399  ;;  %v12925_v35 = vsub.f32 %v12421_v51, %v2773_v60  ;;  %v4053_v51 = vadd.f32 1.0, %v2372_v50 }
 0x468   : > { %v3641_v59 = vmul.f32 %v7398_v33, %v3640_v38  ;;  %v3647_v42 = vmul.f32 %v7400_v48, %v3150_v25  ;;  %vm3653_vm10 = vweird.f32 %v7400_v48 }
 0x469   : > { %v2901_v46 = vmul.f32 %v12925_v35, %v12925_v35  ;;  %vm3654_vm12 = vmor %vm3652_vm11, %vm3653_vm10 }
 0x46a   : > { %v3645_v11 = vsel %vm3644_vm9, %v7398_v33, %v3641_v59  ;;  %v3648_v63 = vmul.f32 %v7400_v48, %v3647_v42  ;;  %v12951_v33 = vld [vmem:[%s7900_s28 + $0x1f8] sm:$0xff]  ;;  %v2375_v59 = vadd.f32 %v2374_v37, %v9579_v36  ;;  %v2377_v37 = vadd.f32 %v2376_v2, %v9579_v36 }
 0x46b   : > { %v3853_v53 = vmul.f32 %v3645_v11, %v12385_v0  ;;  %3020 = vadd.xlane.f32.xlu1 %v2901_v46 }
 0x46c   : > { %v2696_v3 = vpop.xlane.xlu0 %2695  ;;  %v3649_v29 = vmul.f32 0.5, %v3648_v63 }
 0x46d   : > { %v3921_v17 = vmul.f32 %v12554_v24, %v3853_v53  ;;  %v2774_v34 = vmul.f32 %v8403_v40, %v2696_v3  ;;  %v4054_v3 = vadd.f32 1.0, %v2375_v59 }
 0x46e   : > { %v3650_v8 = vsub.f32 1.5, %v3649_v29  ;;  %v14580_v29 = vld [vmem:[#allocation56_spill] sm:$0xff] }
 0x46f   : > { %v3989_v21 = vadd.f32 %v12635_v49, %v3921_v17  ;;  %v12937_v27 = vsub.f32 %v12474_v12, %v2774_v34 }
 0x470   : > { %v4402_v22 = vpop.f32.mrf.mxu3  ;;  %v3651_v12 = vmul.f32 %v7400_v48, %v3650_v8 }
 0x471   : > { %v4117_v0 = vmul.f32 %v4053_v51, %v3989_v21  ;;  %v12940_v55 = vadd.f32 %v12841_v4, %v4402_v22  ;;  %v2902_v7 = vmul.f32 %v12937_v27, %v12937_v27  ;;  %v2206_v22 = vadd.f32 %v14580_v29, %v9542_v47 }
 0x472   : > { %v3655_v57 = vsel %vm3654_vm12, %v7400_v48, %v3651_v12  ;;  %v2379_v48 = vpop.f32.mrf.mxu1  ;;  %v14582_v12 = vld [vmem:[#allocation59_spill] sm:$0xff] }
 0x473   : > { %v4181_v31 = vadd.f32 %v4117_v0, %v2203_v16  ;;  %v6550_v54 = vmul.f32 -1.442695, %v12940_v55  ;;  %3022 = vadd.xlane.f32.xlu1 %v2902_v7  ;;  %v3854_v60 = vmul.f32 %v3655_v57, %v12397_v61  ;;  %v14581_v7 = vld [vmem:[#allocation58_spill] sm:$0xff] }
 0x475   : > { %7401 = vpow2.f32 %v6550_v54  ;;  %v4221_v30 = vpack.c.bf16 %v4181_v31, %v12817_v43  ;;  %v3013_v18 = vpop.xlane.xlu2 %3012  ;;  %v3922_v42 = vmul.f32 %v12554_v24, %v3854_v60  ;;  %v12985_v31 = vadd.f32 %v14581_v7, %v9542_v47  ;;  %v13022_v7 = vpop.f32.mrf.mxu2 }
 0x476   : > { %v3089_v14 = vmul.f32 %v3013_v18, %v8403_v40  ;;  %v3009_v1 = vpop.xlane.xlu1 %3008 }
 0x477   : > { %4421 = vmatmul.bf16.gmra.mxu3 %v4221_v30  ;;  %v3087_v25 = vmul.f32 %v3009_v1, %v8403_v40  ;;  %v3990_v34 = vadd.f32 %v12635_v49, %v3922_v42 }
 0x478   : > { %v4404_v39 = vpop.f32.mrf.mxu3  ;;  %v12955_v43 = vadd.f32 1e-06, %v3089_v14  ;;  %v12994_v14 = vadd.f32 1.0, %v2377_v37 }
 0x479   : > { %v12947_v15 = vadd.f32 %v12841_v4, %v4404_v39  ;;  %v3151_v38 = vadd.f32 1e-06, %v3087_v25  ;;  %v12992_v39 = vadd.f32 %v14582_v12, %v9542_v47  ;;  %v4118_v18 = vmul.f32 %v4054_v3, %v3990_v34 }
 0x47a   : > { %v2381_v30 = vpop.f32.mrf.mxu1  ;;  %vm3682_vm15 = vweird.f32 %v12955_v43 }
 0x47b   : > { %v7402_v19 = vpop.eup %7401  ;;  %v6551_v56 = vmul.f32 -1.442695, %v12947_v15  ;;  %2709 = vadd.xlane.f32.xlu1 %v12951_v33  ;;  %vm3662_vm13 = vweird.f32 %v3151_v38  ;;  %v13009_v37 = vadd.f32 %v4118_v18, %v2206_v22 }
 0x47c   : > { %v12958_v62 = vadd.f32 1.0, %v7402_v19 }
 0x47d   : > { %7403 = vpow2.f32 %v6551_v56 }
 0x47e   : > { %7405 = vrsqrt.f32 %v12955_v43  ;;  %v5304_v59 = vand.u32 2147483648, %v12958_v62  ;;  %vm5298_vm8 = vweird.f32 %v12958_v62 }
 0x47f   : > { %7407 = vrcp.f32 %v12958_v62 }
 0x480   : > { %7409 = vrsqrt.f32 %v3151_v38 }
 0x481   : > { %v3015_v46 = vpop.xlane.xlu2 %3014 }
 0x482   : > { %v3090_v53 = vmul.f32 %v3015_v46, %v8403_v40 }
 0x483   : > { %v7404_v50 = vpop.eup %7403 }
 0x484   : > { %v12965_v11 = vpop.eup %7405  ;;  %v12968_v63 = vadd.f32 1.0, %v7404_v50  ;;  %v12976_v58 = vadd.f32 1e-06, %v3090_v53  ;;  %v2382_v50 = vadd.f32 %v2381_v30, %v9579_v36 }
 0x485   : > { %v12970_v61 = vpop.eup %7407  ;;  %v3677_v17 = vmul.f32 %v12965_v11, %v12955_v43  ;;  %v3011_v21 = vpop.xlane.xlu1 %3010  ;;  %vm3683_vm0 = vweird.f32 %v12965_v11 }
 0x486   : > { %v7410_v51 = vpop.eup %7409  ;;  %7411 = vrcp.f32 %v12968_v63  ;;  %v3088_v0 = vmul.f32 %v3011_v21, %v8403_v40  ;;  %v5294_v2 = vmul.f32 %v12970_v61, %v12958_v62  ;;  %v2380_v21 = vadd.f32 %v2379_v48, %v9579_v36  ;;  %vm13069_vm6 = vmor %vm3682_vm15, %vm3683_vm0 }
 0x487   : > { %v3657_v16 = vmul.f32 %v7410_v51, %v3151_v38  ;;  %7413 = vrsqrt.f32 %v12976_v58  ;;  %v3678_v8 = vmul.f32 %v12965_v11, %v3677_v17  ;;  %vm3663_vm14 = vweird.f32 %v7410_v51 }
 0x488   : > { %v12996_v19 = vadd.f32 1e-06, %v3088_v0  ;;  %v3017_v57 = vpop.xlane.xlu0 %3016  ;;  %v5295_v3 = vsub.f32 1.0, %v5294_v2  ;;  %vm13012_vm1 = vmor %vm3662_vm13, %vm3663_vm14  ;;  %v13028_v2 = vor.u32 1.1754944e-38, %v5304_v59  ;;  %vm3692_vm2 = vweird.f32 %v12976_v58 }
 0x489   : > { %v3658_v54 = vmul.f32 %v7410_v51, %v3657_v16  ;;  %v2702_v56 = vpop.xlane.xlu2 %2701  ;;  %v3091_v25 = vmul.f32 %v3017_v57, %v8403_v40  ;;  %v3679_v46 = vmul.f32 0.5, %v3678_v8  ;;  %vm5299_vm3 = vweird.f32 %v12970_v61 }
 0x48a   : > { %7415 = vrsqrt.f32 %v12996_v19  ;;  %v2777_v42 = vmul.f32 %v8403_v40, %v2702_v56  ;;  %v5296_v57 = vmul.f32 %v12970_v61, %v5295_v3  ;;  %vm3672_vm4 = vweird.f32 %v12996_v19  ;;  %vm13170_vm15 = vmor %vm5298_vm8, %vm5299_vm3 }
 0x48b   : > { %v3659_v1 = vmul.f32 0.5, %v3658_v54  ;;  %v13005_v17 = vadd.f32 1e-06, %v3091_v25  ;;  %v3680_v30 = vsub.f32 1.5, %v3679_v46  ;;  %v13049_v46 = vadd.f32 1.0, %v2380_v21 }
 0x48c   : > { %v12999_v60 = vpop.eup %7411  ;;  %v13018_v29 = vsub.f32 %v12724_v41, %v2777_v42  ;;  %v13032_v41 = vadd.f32 1.0, %v2382_v50  ;;  %vm5313_vm5 = vweird.f32 %v12968_v63 }
 0x48d   : > { %v3660_v53 = vsub.f32 1.5, %v3659_v1  ;;  %v13007_v34 = vpop.eup %7413  ;;  %v5309_v0 = vmul.f32 %v12999_v60, %v12968_v63  ;;  %v2698_v54 = vpop.xlane.xlu1 %2697  ;;  %7417 = vrsqrt.f32 %v13005_v17  ;;  %vm5314_vm9 = vweird.f32 %v12999_v60 }
 0x48e   : > { %14585 = vst [vmem:[#allocation40_spill] sm:$0xff] %v13018_v29  ;;  %v3687_v38 = vmul.f32 %v13007_v34, %v12976_v58  ;;  %v2775_v48 = vmul.f32 %v8403_v40, %v2698_v54  ;;  %v2905_v42 = vmul.f32 %v13018_v29, %v13018_v29  ;;  %vm3693_vm10 = vweird.f32 %v13007_v34  ;;  %vm13141_vm13 = vmor %vm5313_vm5, %vm5314_vm9 }
 0x48f   : > { %v3661_v8 = vmul.f32 %v7410_v51, %v3660_v53  ;;  %v5310_v59 = vsub.f32 1.0, %v5309_v0  ;;  %vm13154_vm14 = vmor %vm3692_vm2, %vm3693_vm10 }
 0x490   : > { %v3688_v18 = vmul.f32 %v13007_v34, %v3687_v38  ;;  %v13038_v1 = vpop.eup %7415  ;;  %v13042_v25 = vsub.f32 %v12756_v23, %v2775_v48  ;;  %v3019_v50 = vpop.xlane.xlu0 %3018  ;;  %v5319_v23 = vand.u32 2147483648, %v12968_v63  ;;  %3028 = vadd.xlane.f32.xlu0 %v2905_v42 }
 0x491   : > { %v3665_v12 = vsel %vm13012_vm1, %v7410_v51, %v3661_v8  ;;  %v3667_v51 = vmul.f32 %v13038_v1, %v12996_v19  ;;  %v2704_v3 = vpop.xlane.xlu2 %2703  ;;  %v3681_v8 = vmul.f32 %v12965_v11, %v3680_v30  ;;  %vm3673_vm7 = vweird.f32 %v13038_v1 }
 0x492   : > { %v3855_v56 = vmul.f32 %v3665_v12, %v12549_v20  ;;  %v2903_v16 = vmul.f32 %v13042_v25, %v13042_v25  ;;  %v2778_v0 = vmul.f32 %v8403_v40, %v2704_v3  ;;  %v3689_v38 = vmul.f32 0.5, %v3688_v18  ;;  %vm13107_vm11 = vmor %vm3672_vm4, %vm3673_vm7 }
 0x493   : > { %v3668_v21 = vmul.f32 %v13038_v1, %v3667_v51  ;;  %v13063_v54 = vpop.eup %7417  ;;  %v13076_v12 = vadd.f32 %v12970_v61, %v5296_v57  ;;  %v5311_v18 = vmul.f32 %v12999_v60, %v5310_v59  ;;  %v3092_v3 = vmul.f32 %v3019_v50, %v8403_v40  ;;  %v14588_v57 = vld [vmem:[#allocation32_spill] sm:$0xff] }
 0x494   : > { %v3923_v20 = vmul.f32 %v12554_v24, %v3855_v56  ;;  %v4407_v24 = vpop.f32.mrf.mxu3  ;;  %3024 = vadd.xlane.f32.xlu2 %v2903_v16  ;;  %v13079_v56 = vpop.f32.mrf.mxu2  ;;  %v3697_v43 = vmul.f32 %v13063_v54, %v13005_v17  ;;  %2557 = vmatmul.bf16.gmra.mxu2 %v14588_v57  ;;  %v13094_v16 = vsub.f32 %v12784_v44, %v2778_v0  ;;  %v3690_v53 = vsub.f32 1.5, %v3689_v38  ;;  %v13177_v44 = vld [vmem:[%s13954_s2] ss:$0 sm:$0xff] }
 0x495   : > { %v3669_v42 = vmul.f32 0.5, %v3668_v21  ;;  %v2700_v51 = vpop.xlane.xlu1 %2699  ;;  %v3685_v50 = vsel %vm13069_vm6, %v12965_v11, %v3681_v8  ;;  %v13122_v19 = vadd.f32 1e-06, %v3092_v3  ;;  %v5320_v3 = vor.u32 1.1754944e-38, %v5319_v23 }
 0x496   : > { %v3991_v30 = vadd.f32 %v12635_v49, %v3923_v20  ;;  %v13086_v49 = vadd.f32 %v12841_v4, %v4407_v24  ;;  %v13088_v20 = vpop.f32.mrf.mxu1  ;;  %v2776_v21 = vmul.f32 %v8403_v40, %v2700_v51  ;;  %v3698_v22 = vmul.f32 %v13063_v54, %v3697_v43 }
 0x497   : > { %v3670_v24 = vsub.f32 1.5, %v3669_v42  ;;  %v3857_v42 = vmul.f32 %v3685_v50, %v12546_v5  ;;  %v3691_v57 = vmul.f32 %v13007_v34, %v3690_v53  ;;  %7419 = vrsqrt.f32 %v13122_v19  ;;  %v7610_v50 = vld [vmem:[%s7900_s28 + $0xf0] sm:$0xff] }
 0x498   : > { %v4119_v59 = vmul.f32 %v12994_v14, %v3991_v30  ;;  %v5312_v14 = vadd.f32 %v12999_v60, %v5311_v18  ;;  %v13113_v11 = vsub.f32 %v12800_v52, %v2776_v21  ;;  %v2706_v0 = vpop.xlane.xlu0 %2705  ;;  %v3699_v48 = vmul.f32 0.5, %v3698_v22 }
 0x499   : > { %v3671_v8 = vmul.f32 %v13038_v1, %v3670_v24  ;;  %v6552_v30 = vmul.f32 -1.442695, %v13086_v49  ;;  %v2906_v18 = vmul.f32 %v13094_v16, %v13094_v16  ;;  %v2779_v43 = vmul.f32 %v8403_v40, %v2706_v0 }
 0x49a   : > { %v4183_v29 = vadd.f32 %v4119_v59, %v12985_v31  ;;  %v14591_v31 = vand.u32 2147483647, %v12958_v62  ;;  %v2904_v52 = vmul.f32 %v13113_v11, %v13113_v11  ;;  %v5931_v51 = vpop.f32.mrf.mxu0  ;;  %v3700_v21 = vsub.f32 1.5, %v3699_v48 }
 0x49b   : > { %v3675_v22 = vsel %vm13107_vm11, %v13038_v1, %v3671_v8  ;;  %7421 = vpow2.f32 %v6552_v30  ;;  %3030 = vadd.xlane.f32.xlu1 %v2906_v18  ;;  %v13146_v1 = vsub.f32 %v12814_v32, %v2779_v43  ;;  %vm3702_vm1 = vweird.f32 %v13005_v17 }
 0x49c   : > { %vm13118_vm12 = vcmp.eq.f32.partialorder %v14591_v31, 8.507059e+37  ;;  %v4409_v59 = vpop.f32.mrf.mxu3  ;;  %v3856_v5 = vmul.f32 %v3675_v22, %v12684_v10  ;;  %3026 = vadd.xlane.f32.xlu2 %v2904_v52  ;;  %v13148_v53 = vpop.f32.mrf.mxu2  ;;  %v5316_v23 = vsel %vm13141_vm13, %v12999_v60, %v5312_v14  ;;  %v4222_v24 = vpack.c.bf16 %v4183_v29, %v13009_v37 }
 0x49d   : > { %v13164_v32 = vadd.f32 %v12841_v4, %v4409_v59  ;;  %vm3703_vm0 = vweird.f32 %v13063_v54  ;;  %v3925_v37 = vmul.f32 %v13177_v44, %v3857_v42  ;;  %v2499_v29 = vadd.f32 %v13022_v7, %v11278_v13 }
 0x49e   : > { %v3924_v60 = vmul.f32 %v13177_v44, %v3856_v5  ;;  %v5301_v62 = vsel %vm13170_vm15, %v12970_v61, %v13076_v12  ;;  %v14600_v14 = vand.u32 2147483647, %v12968_v63  ;;  %4426 = vmatmul.bf16.gmra.mxu3 %v4222_v24  ;;  %v2386_v8 = vpop.f32.mrf.mxu1  ;;  %v5932_v31 = vadd.f32 %v12736_v45, %v5931_v51  ;;  %v13198_v63 = vpop.eup %7419  ;;  %v13203_v12 = vld [vmem:[%s13955_s3] ss:$0 sm:$0xff]  ;;  %vm13210_vm4 = vmor %vm3702_vm1, %vm3703_vm0 }
 0x49f   : > { %v6553_v0 = vmul.f32 -1.442695, %v13164_v32  ;;  %v3695_v48 = vsel %vm13154_vm14, %v13007_v34, %v3691_v57  ;;  %v3701_v7 = vmul.f32 %v13063_v54, %v3700_v21  ;;  %v2907_v42 = vmul.f32 %v13146_v1, %v13146_v1 }
 0x4a0   : > { %vm5318_vm2 = vcmp.eq.f32.partialorder %v14600_v14, 8.507059e+37  ;;  %v2708_v61 = vpop.xlane.xlu0 %2707  ;;  %v3992_v52 = vadd.f32 %v13203_v12, %v3924_v60  ;;  %v6046_v43 = vmul.f32 %v5932_v31, %v2499_v29  ;;  %v5306_v57 = vsel %vm13118_vm12, %v13028_v2, %v5301_v62  ;;  %v14603_v60 = vld [vmem:[#allocation36_spill] sm:$0xff] }
 0x4a1   : > { %v5321_v30 = vsel %vm5318_vm2, %v5320_v3, %v5316_v23  ;;  %7423 = vpow2.f32 %v6553_v0  ;;  %v2780_v18 = vmul.f32 %v8403_v40, %v2708_v61  ;;  %v7422_v51 = vpop.eup %7421  ;;  %v3993_v22 = vadd.f32 %v13203_v12, %v3925_v37 }
 0x4a2   : > { %v3707_v3 = vmul.f32 %v13198_v63, %v13122_v19  ;;  %v2385_v17 = vadd.f32 %v13088_v20, %v9579_v36  ;;  %v5722_v59 = vmul.f32 %v5321_v30, %v12947_v15  ;;  %v13224_v5 = vadd.f32 1.0, %v7422_v51  ;;  %v5933_v20 = vpop.f32.mrf.mxu0  ;;  %v14604_v30 = vld [vmem:[#allocation60_spill] sm:$0xff]  ;;  %v7611_v51 = vld [vmem:[%s7900_s28 + $0xf8] sm:$0xff] }
 0x4a3   : > { %v13227_v21 = vsub.f32 %v12852_v28, %v2780_v18  ;;  %v6110_v10 = vadd.f32 %v7610_v50, %v6046_v43  ;;  %v3705_v2 = vsel %vm13210_vm4, %v13063_v54, %v3701_v7  ;;  %v3858_v24 = vmul.f32 %v3695_v48, %v12639_v26 }
 0x4a4   : > { %v4412_v38 = vpop.f32.mrf.mxu3  ;;  %v3708_v23 = vmul.f32 %v13198_v63, %v3707_v3  ;;  %3032 = vadd.xlane.f32.xlu2 %v2907_v42  ;;  %v13238_v58 = vpop.f32.mrf.mxu2  ;;  %v4120_v28 = vmul.f32 %v13049_v46, %v3992_v52  ;;  %vm3712_vm3 = vweird.f32 %v13122_v19  ;;  %7425 = vrcp.f32 %v13224_v5  ;;  %2562 = vmatmul.bf16.gmra.mxu2 %v14603_v60 }
 0x4a5   : > { %v13236_v15 = vadd.f32 %v12841_v4, %v4412_v38  ;;  %6174 = vst [vmem:[%s11286_s15 + $0xf0] sm:$0xff] %v6110_v10  ;;  %v2501_v54 = vadd.f32 %v13079_v56, %v11278_v13  ;;  %vm3713_vm5 = vweird.f32 %v13198_v63  ;;  %v2908_v29 = vmul.f32 %v13227_v21, %v13227_v21 }
 0x4a6   : > { %v3709_v26 = vmul.f32 0.5, %v3708_v23  ;;  %v5721_v46 = vmul.f32 %v5306_v57, %v12940_v55  ;;  %v4121_v14 = vmul.f32 %v13032_v41, %v3993_v22  ;;  %v3859_v0 = vmul.f32 %v3705_v2, %v12708_v6  ;;  %vm13265_vm6 = vmor %vm3712_vm3, %vm3713_vm5 }
 0x4a7   : > { %v6554_v37 = vmul.f32 -1.442695, %v13236_v15  ;;  %v7424_v62 = vpop.eup %7423  ;;  %v5934_v31 = vadd.f32 %v12736_v45, %v5933_v20  ;;  %v3926_v48 = vmul.f32 %v13177_v44, %v3858_v24  ;;  %3034 = vadd.xlane.f32.xlu0 %v2908_v29  ;;  %v2213_v42 = vadd.f32 %v14604_v30, %v9542_v47  ;;  %v2389_v45 = vpop.f32.mrf.mxu1  ;;  %v14608_v20 = vld [vmem:[#allocation63_spill] sm:$0xff] }
 0x4a8   : > { %v3710_v56 = vsub.f32 1.5, %v3709_v26  ;;  %v13256_v7 = vadd.f32 1.0, %v7424_v62  ;;  %v4184_v61 = vadd.f32 %v4120_v28, %v12992_v39  ;;  %v5766_v41 = vpack.c.bf16 %v5722_v59, %v5721_v46 }
 0x4a9   : > { %7427 = vpow2.f32 %v6554_v37  ;;  %v6047_v55 = vmul.f32 %v5934_v31, %v2501_v54  ;;  %v2387_v34 = vadd.f32 %v2386_v8, %v9579_v36  ;;  %v4185_v39 = vadd.f32 %v4121_v14, %v2213_v42  ;;  %v14609_v54 = vld [vmem:[#allocation64_spill] sm:$0xff] }
 0x4aa   : > { %v3711_v52 = vmul.f32 %v13198_v63, %v3710_v56  ;;  %7429 = vrcp.f32 %v13256_v7  ;;  %v13272_v18 = vpop.eup %7425  ;;  %v4058_v43 = vadd.f32 1.0, %v2385_v17  ;;  %v3927_v19 = vmul.f32 %v13177_v44, %v3859_v0  ;;  %5950 = vmatmul.bf16.gmra.mxu0 %v5766_v41  ;;  %v14607_v17 = vld [vmem:[#allocation61_spill] sm:$0xff] }
 0x4ab   : > { %v6111_v57 = vadd.f32 %v7611_v51, %v6047_v55  ;;  %v5324_v59 = vmul.f32 %v13272_v18, %v13224_v5  ;;  %v3994_v8 = vadd.f32 %v13203_v12, %v3926_v48  ;;  %v2390_v50 = vadd.f32 %v2389_v45, %v9579_v36 }
 0x4ac   : > { %v4414_v22 = vpop.f32.mrf.mxu3  ;;  %v3715_v3 = vsel %vm13265_vm6, %v13198_v63, %v3711_v52  ;;  %v13283_v10 = vpop.f32.mrf.mxu2  ;;  %v13287_v38 = vadd.f32 %v14607_v17, %v9542_v47  ;;  %v4223_v23 = vpack.c.bf16 %v4185_v39, %v4184_v61  ;;  %v2218_v28 = vadd.f32 %v14608_v20, %v9542_v47 }
 0x4ad   : > { %v3860_v2 = vmul.f32 %v3715_v3, %v12729_v9  ;;  %6175 = vst [vmem:[%s11286_s15 + $0xf8] sm:$0xff] %v6111_v57  ;;  %v13292_v24 = vadd.f32 %v12841_v4, %v4414_v22  ;;  %v2221_v60 = vadd.f32 %v14609_v54, %v9542_v47  ;;  %v5325_v26 = vsub.f32 1.0, %v5324_v59 }
 0x4ae   : > { %v4059_v37 = vadd.f32 1.0, %v2387_v34  ;;  %v3995_v29 = vadd.f32 %v13203_v12, %v3927_v19  ;;  %4431 = vmatmul.bf16.gmra.mxu3 %v4223_v23  ;;  %vm5328_vm7 = vweird.f32 %v13224_v5  ;;  %v4122_v31 = vmul.f32 %v4058_v43, %v3994_v8  ;;  %v13317_v34 = vld [vmem:[%s13961_s9] ss:$0 sm:$0xff] }
 0x4af   : > { %v7428_v63 = vpop.eup %7427  ;;  %v3928_v9 = vmul.f32 %v13177_v44, %v3860_v2  ;;  %v6555_v46 = vmul.f32 -1.442695, %v13292_v24  ;;  %v5326_v0 = vmul.f32 %v13272_v18, %v5325_v26  ;;  %v4060_v56 = vadd.f32 1.0, %v2390_v50  ;;  %v5936_v48 = vpop.f32.mrf.mxu0  ;;  %v14612_v50 = vld [vmem:[#allocation38_spill] sm:$0xff] }
 0x4b0   : > { %v13299_v62 = vadd.f32 1.0, %v7428_v63  ;;  %v7430_v14 = vpop.eup %7429  ;;  %vm5329_vm8 = vweird.f32 %v13272_v18  ;;  %v2504_v42 = vadd.f32 %v13148_v53, %v11278_v13  ;;  %v5332_v6 = vand.u32 2147483647, %v13224_v5 }
 0x4b1   : > { %v5339_v30 = vmul.f32 %v7430_v14, %v13256_v7  ;;  %v5327_v61 = vadd.f32 %v13272_v18, %v5326_v0  ;;  %v5334_v45 = vand.u32 2147483648, %v13224_v5  ;;  %v3996_v55 = vadd.f32 %v13203_v12, %v3928_v9  ;;  %vm13322_vm9 = vmor %vm5328_vm7, %vm5329_vm8 }
 0x4b2   : > { %7431 = vrcp.f32 %v13299_v62  ;;  %v4123_v52 = vmul.f32 %v4059_v37, %v3995_v29  ;;  %v5937_v39 = vadd.f32 %v13317_v34, %v5936_v48  ;;  %vm5344_vm10 = vweird.f32 %v7430_v14 }
 0x4b3   : > { %v5340_v41 = vsub.f32 1.0, %v5339_v30  ;;  %7433 = vpow2.f32 %v6555_v46  ;;  %v5347_v19 = vand.u32 2147483647, %v13256_v7  ;;  %v5349_v51 = vand.u32 2147483648, %v13256_v7 }
 0x4b4   : > { %v4417_v43 = vpop.f32.mrf.mxu3  ;;  %v4124_v57 = vmul.f32 %v4060_v56, %v3996_v55  ;;  %v13328_v22 = vpop.f32.mrf.mxu2  ;;  %v5331_v3 = vsel %vm13322_vm9, %v13272_v18, %v5327_v61  ;;  %v6048_v8 = vmul.f32 %v5937_v39, %v2504_v42  ;;  %2567 = vmatmul.bf16.gmra.mxu2 %v14612_v50  ;;  %vm5333_vm11 = vcmp.eq.f32.partialorder %v5332_v6, 8.507059e+37  ;;  %v7613_v18 = vld [vmem:[%s7900_s28 + $0x100] sm:$0xff] }
 0x4b5   : > { %v5341_v59 = vmul.f32 %v7430_v14, %v5340_v41  ;;  %v13334_v5 = vadd.f32 %v12841_v4, %v4417_v43  ;;  %v5335_v17 = vor.u32 1.1754944e-38, %v5334_v45  ;;  %v2506_v23 = vadd.f32 %v13238_v58, %v11278_v13  ;;  %v7614_v45 = vld [vmem:[%s7900_s28 + $0x108] sm:$0xff] }
 0x4b6   : > { %v13337_v2 = vadd.f32 %v4124_v57, %v2221_v60  ;;  %vm5343_vm12 = vweird.f32 %v13256_v7  ;;  %v6112_v54 = vadd.f32 %v7613_v18, %v6048_v8  ;;  %v5350_v37 = vor.u32 1.1754944e-38, %v5349_v51 }
 0x4b7   : > { %v5342_v20 = vadd.f32 %v7430_v14, %v5341_v59  ;;  %v6556_v4 = vmul.f32 -1.442695, %v13334_v5  ;;  %v5336_v26 = vsel %vm5333_vm11, %v5335_v17, %v5331_v3  ;;  %vm5345_vm13 = vmor %vm5343_vm12, %vm5344_vm10  ;;  %v4187_v29 = vadd.f32 %v4123_v52, %v2218_v28  ;;  %v5938_v9 = vpop.f32.mrf.mxu0 }
 0x4b8   : > { %v13341_v63 = vpop.eup %7431  ;;  %vm5348_vm14 = vcmp.eq.f32.partialorder %v5347_v19, 8.507059e+37  ;;  %6176 = vst [vmem:[%s11286_s15 + $0x100] sm:$0xff] %v6112_v54  ;;  %v5939_v7 = vadd.f32 %v13317_v34, %v5938_v9  ;;  %v4186_v0 = vadd.f32 %v4122_v31, %v13287_v38  ;;  %v5723_v28 = vmul.f32 %v5336_v26, %v13086_v49  ;;  %v13363_v38 = vld [vmem:[%s13959_s7] ss:$0 sm:$0xff] }
 0x4b9   : > { %v5354_v60 = vmul.f32 %v13341_v63, %v13299_v62  ;;  %v7434_v58 = vpop.eup %7433  ;;  %v5346_v46 = vsel %vm5345_vm13, %v7430_v14, %v5342_v20  ;;  %7435 = vpow2.f32 %v6556_v4  ;;  %v2509_v43 = vadd.f32 %v13283_v10, %v11278_v13  ;;  %v14613_v54 = vld [vmem:[#allocation44_spill] sm:$0xff] }
 0x4ba   : > { %v5351_v56 = vsel %vm5348_vm14, %v5350_v37, %v5346_v46  ;;  %v13352_v48 = vadd.f32 1.0, %v7434_v58  ;;  %v6049_v61 = vmul.f32 %v5939_v7, %v2506_v23  ;;  %v4224_v41 = vpack.c.bf16 %v4187_v29, %v4186_v0  ;;  %v7616_v23 = vld [vmem:[%s7900_s28 + $0x110] sm:$0xff] }
 0x4bb   : > { %v5724_v30 = vmul.f32 %v5351_v56, %v13164_v32  ;;  %v5355_v42 = vsub.f32 1.0, %v5354_v60  ;;  %vm5359_vm1 = vweird.f32 %v13341_v63  ;;  %v5362_v50 = vand.u32 2147483647, %v13299_v62 }
 0x4bc   : > { %v4419_v6 = vpop.f32.mrf.mxu3  ;;  %7437 = vrcp.f32 %v13352_v48  ;;  %v13357_v14 = vpop.f32.mrf.mxu2  ;;  %v6113_v55 = vadd.f32 %v7614_v45, %v6049_v61  ;;  %v5364_v10 = vand.u32 2147483648, %v13299_v62  ;;  %vm5358_vm15 = vweird.f32 %v13299_v62 }
 0x4bd   : > { %v13366_v31 = vadd.f32 %v13363_v38, %v4419_v6  ;;  %v5767_v49 = vpack.c.bf16 %v5724_v30, %v5723_v28  ;;  %v5356_v52 = vmul.f32 %v13341_v63, %v5355_v42  ;;  %vm13385_vm0 = vmor %vm5358_vm15, %vm5359_vm1  ;;  %v5379_v26 = vand.u32 2147483648, %v13352_v48 }
 0x4be   : > { %6177 = vst [vmem:[%s11286_s15 + $0x108] sm:$0xff] %v6113_v55  ;;  %4436 = vmatmul.bf16.gmra.mxu3 %v4224_v41  ;;  %v2511_v37 = vadd.f32 %v13328_v22, %v11278_v13  ;;  %v5377_v9 = vand.u32 2147483647, %v13352_v48  ;;  %vm5363_vm4 = vcmp.eq.f32.partialorder %v5362_v50, 8.507059e+37  ;;  %v5365_v46 = vor.u32 1.1754944e-38, %v5364_v10 }
 0x4bf   : > { %v7436_v32 = vpop.eup %7435  ;;  %v6557_v39 = vmul.f32 -1.442695, %v13366_v31  ;;  %5955 = vmatmul.bf16.gmra.mxu0 %v5767_v49  ;;  %v5941_v19 = vpop.f32.mrf.mxu0  ;;  %v5357_v3 = vadd.f32 %v13341_v63, %v5356_v52  ;;  %vm5373_vm3 = vweird.f32 %v13352_v48  ;;  %v5380_v30 = vor.u32 1.1754944e-38, %v5379_v26 }
 0x4c0   : > { %v13373_v53 = vadd.f32 1.0, %v7436_v32  ;;  %v5942_v51 = vadd.f32 %v13317_v34, %v5941_v19  ;;  %vm5378_vm6 = vcmp.eq.f32.partialorder %v5377_v9, 8.507059e+37 }
 0x4c1   : > { %7439 = vpow2.f32 %v6557_v39  ;;  %v5361_v62 = vsel %vm13385_vm0, %v13341_v63, %v5357_v3  ;;  %v2514_v39 = vadd.f32 %v13357_v14, %v11278_v13 }
 0x4c2   : > { %v7438_v57 = vpop.eup %7437  ;;  %7441 = vrcp.f32 %v13373_v53  ;;  %v6050_v8 = vmul.f32 %v5942_v51, %v2509_v43  ;;  %v5366_v63 = vsel %vm5363_vm4, %v5365_v46, %v5361_v62  ;;  %vm5388_vm8 = vweird.f32 %v13373_v53 }
 0x4c3   : > { %v5369_v59 = vmul.f32 %v7438_v57, %v13352_v48  ;;  %vm5374_vm2 = vweird.f32 %v7438_v57  ;;  %v5725_v55 = vmul.f32 %v5366_v63, %v13236_v15  ;;  %v7617_v48 = vld [vmem:[%s7900_s28 + $0x118] sm:$0xff]  ;;  %v5394_v15 = vand.u32 2147483648, %v13373_v53 }
 0x4c4   : > { %v6114_v20 = vadd.f32 %v7616_v23, %v6050_v8  ;;  %v2515_v18 = vpop.f32.mrf.mxu2  ;;  %2572 = vmatmul.bf16.gmra.mxu2 %v14613_v54  ;;  %vm5375_vm5 = vmor %vm5373_vm3, %vm5374_vm2  ;;  %v7618_v23 = vld [vmem:[%s7900_s28 + $0x120] sm:$0xff] }
 0x4c5   : > { %v5370_v17 = vsub.f32 1.0, %v5369_v59  ;;  %v5395_v54 = vor.u32 1.1754944e-38, %v5394_v15  ;;  %v2516_v26 = vadd.f32 %v2515_v18, %v11278_v13 }
 0x4c6   : > { %6178 = vst [vmem:[%s11286_s15 + $0x110] sm:$0xff] %v6114_v20 }
 0x4c7   : > { %v7440_v29 = vpop.eup %7439  ;;  %v5371_v60 = vmul.f32 %v7438_v57, %v5370_v17  ;;  %v5943_v0 = vpop.f32.mrf.mxu0 }
 0x4c8   : > { %v7442_v58 = vpop.eup %7441  ;;  %v4704_v7 = vadd.f32 1.0, %v7440_v29  ;;  %v5944_v28 = vadd.f32 %v13317_v34, %v5943_v0 }
 0x4c9   : > { %v5372_v56 = vadd.f32 %v7438_v57, %v5371_v60  ;;  %v5384_v22 = vmul.f32 %v7442_v58, %v13373_v53  ;;  %vm5389_vm7 = vweird.f32 %v7442_v58 }
 0x4ca   : > { %7443 = vrcp.f32 %v4704_v7  ;;  %v6051_v6 = vmul.f32 %v5944_v28, %v2511_v37  ;;  %vm5390_vm9 = vmor %vm5388_vm8, %vm5389_vm7  ;;  %v5407_v14 = vand.u32 2147483647, %v4704_v7  ;;  %v5409_v50 = vand.u32 2147483648, %v4704_v7 }
 0x4cb   : > { %v5376_v42 = vsel %vm5375_vm5, %v7438_v57, %v5372_v56  ;;  %v5385_v61 = vsub.f32 1.0, %v5384_v22  ;;  %vm5403_vm12 = vweird.f32 %v4704_v7 }
 0x4cc   : > { %v5381_v45 = vsel %vm5378_vm6, %v5380_v30, %v5376_v42  ;;  %v6115_v32 = vadd.f32 %v7617_v48, %v6051_v6  ;;  %vm5408_vm14 = vcmp.eq.f32.partialorder %v5407_v14, 8.507059e+37 }
 0x4cd   : > { %v5726_v41 = vmul.f32 %v5381_v45, %v13292_v24  ;;  %v5386_v49 = vmul.f32 %v7442_v58, %v5385_v61  ;;  %v5392_v24 = vand.u32 2147483647, %v13373_v53  ;;  %v5410_v53 = vor.u32 1.1754944e-38, %v5409_v50 }
 0x4ce   : > { %6179 = vst [vmem:[%s11286_s15 + $0x118] sm:$0xff] %v6115_v32 }
 0x4cf   : > { %v5768_v52 = vpack.c.bf16 %v5726_v41, %v5725_v55  ;;  %v5946_v19 = vpop.f32.mrf.mxu0  ;;  %v5387_v51 = vadd.f32 %v7442_v58, %v5386_v49  ;;  %vm5393_vm11 = vcmp.eq.f32.partialorder %v5392_v24, 8.507059e+37 }
 0x4d0   : > { %v7444_v43 = vpop.eup %7443  ;;  %v5947_v3 = vadd.f32 %v13317_v34, %v5946_v19 }
 0x4d1   : > { %v5399_v57 = vmul.f32 %v7444_v43, %v4704_v7  ;;  %5960 = vmatmul.bf16.gmra.mxu0 %v5768_v52  ;;  %v5391_v10 = vsel %vm5390_vm9, %v7442_v58, %v5387_v51  ;;  %vm5404_vm10 = vweird.f32 %v7444_v43  ;;  %v7619_v7 = vld [vmem:[%s7900_s28 + $0x128] sm:$0xff]  ;;  %v2391_v52 = vpop.f32.mrf.mxu1 }
 0x4d2   : > { %v6052_v8 = vmul.f32 %v5947_v3, %v2514_v39  ;;  %v5396_v37 = vsel %vm5393_vm11, %v5395_v54, %v5391_v10  ;;  %vm5405_vm13 = vmor %vm5403_vm12, %vm5404_vm10  ;;  %v2392_v39 = vadd.f32 %v2391_v52, %v9579_v36 }
 0x4d3   : > { %v5400_v59 = vsub.f32 1.0, %v5399_v57  ;;  %v5727_v58 = vmul.f32 %v5396_v37, %v13334_v5 }
 0x4d4   : > { %v6116_v20 = vadd.f32 %v7618_v23, %v6052_v8  ;;  %v4061_v15 = vadd.f32 1.0, %v2392_v39  ;;  %v14616_v8 = vld [vmem:[#allocation66_spill] sm:$0xff] }
 0x4d5   : > { %v5401_v17 = vmul.f32 %v7444_v43, %v5400_v59  ;;  %v2223_v14 = vadd.f32 %v14616_v8, %v9542_v47 }
 0x4d6   : > { %6180 = vst [vmem:[%s11286_s15 + $0x120] sm:$0xff] %v6116_v20 }
 0x4d7   : > { %v5402_v4 = vadd.f32 %v7444_v43, %v5401_v17  ;;  %v5948_v29 = vpop.f32.mrf.mxu0 }
 0x4d8   : > { %v5949_v60 = vadd.f32 %v13317_v34, %v5948_v29 }
 0x4d9   : > { %v5406_v62 = vsel %vm5405_vm13, %v7444_v43, %v5402_v4 }
 0x4da   : > { %v5411_v9 = vsel %vm5408_vm14, %v5410_v53, %v5406_v62  ;;  %v6053_v0 = vmul.f32 %v5949_v60, %v2516_v26  ;;  %v2394_v53 = vpop.f32.mrf.mxu1 }
 0x4db   : > { %v5728_v46 = vmul.f32 %v5411_v9, %v13366_v31 }
 0x4dc   : > { %v6117_v22 = vadd.f32 %v7619_v7, %v6053_v0 }
 0x4dd   : > { %v5769_v28 = vpack.c.bf16 %v5728_v46, %v5727_v58 }
 0x4de   : > { %v3021_v56 = vpop.xlane.xlu1 %3020  ;;  %6181 = vst [vmem:[%s11286_s15 + $0x128] sm:$0xff] %v6117_v22 }
 0x4df   : > { %v3093_v18 = vmul.f32 %v3021_v56, %v8403_v40 }
 0x4e1   : > { %v3157_v63 = vadd.f32 1e-06, %v3093_v18  ;;  %5965 = vmatmul.bf16.gmra.mxu0 %v5769_v28 }
 0x4e3   : > { %7445 = vrsqrt.f32 %v3157_v63  ;;  %vm3722_vm15 = vweird.f32 %v3157_v63 }
 0x4e6   : > { %v3023_v30 = vpop.xlane.xlu1 %3022 }
 0x4e7   : > { %v3094_v42 = vmul.f32 %v3023_v30, %v8403_v40  ;;  %v2396_v30 = vpop.f32.mrf.mxu1 }
 0x4e9   : > { %v7446_v61 = vpop.eup %7445  ;;  %v3158_v45 = vadd.f32 1e-06, %v3094_v42 }
 0x4ea   : > { %v3717_v6 = vmul.f32 %v7446_v61, %v3157_v63  ;;  %vm3723_vm1 = vweird.f32 %v7446_v61 }
 0x4eb   : > { %7447 = vrsqrt.f32 %v3158_v45  ;;  %vm3724_vm0 = vmor %vm3722_vm15, %vm3723_vm1  ;;  %vm3732_vm4 = vweird.f32 %v3158_v45 }
 0x4ec   : > { %v3718_v5 = vmul.f32 %v7446_v61, %v3717_v6 }
 0x4ee   : > { %v3719_v55 = vmul.f32 0.5, %v3718_v5  ;;  %v2710_v31 = vpop.xlane.xlu1 %2709 }
 0x4ef   : > { %v2781_v41 = vmul.f32 %v8403_v40, %v2710_v31  ;;  %v2395_v31 = vadd.f32 %v2394_v53, %v9579_v36 }
 0x4f0   : > { %v3720_v49 = vsub.f32 1.5, %v3719_v55 }
 0x4f1   : > { %v13422_v48 = vsub.f32 %v12951_v33, %v2781_v41  ;;  %v7448_v19 = vpop.eup %7447 }
 0x4f2   : > { %v3721_v32 = vmul.f32 %v7446_v61, %v3720_v49  ;;  %v3727_v24 = vmul.f32 %v7448_v19, %v3158_v45  ;;  %vm3733_vm2 = vweird.f32 %v7448_v19 }
 0x4f3   : > { %v2909_v43 = vmul.f32 %v13422_v48, %v13422_v48  ;;  %vm3734_vm3 = vmor %vm3732_vm4, %vm3733_vm2 }
 0x4f4   : > { %v3725_v51 = vsel %vm3724_vm0, %v7446_v61, %v3721_v32  ;;  %v3728_v10 = vmul.f32 %v7448_v19, %v3727_v24  ;;  %v4062_v24 = vadd.f32 1.0, %v2395_v31 }
 0x4f5   : > { %v3861_v57 = vmul.f32 %v3725_v51, %v12925_v35  ;;  %3036 = vadd.xlane.f32.xlu1 %v2909_v43 }
 0x4f6   : > { %v3729_v35 = vmul.f32 0.5, %v3728_v10  ;;  %v13483_v10 = vpop.f32.mrf.mxu1 }
 0x4f7   : > { %v3929_v3 = vmul.f32 %v13177_v44, %v3861_v57 }
 0x4f8   : > { %v3730_v26 = vsub.f32 1.5, %v3729_v35 }
 0x4f9   : > { %v3997_v33 = vadd.f32 %v13203_v12, %v3929_v3 }
 0x4fa   : > { %v4422_v59 = vpop.f32.mrf.mxu3  ;;  %v3731_v9 = vmul.f32 %v7448_v19, %v3730_v26 }
 0x4fb   : > { %v4125_v50 = vmul.f32 %v4061_v15, %v3997_v33  ;;  %v13433_v17 = vadd.f32 %v13363_v38, %v4422_v59  ;;  %v2397_v33 = vadd.f32 %v2396_v30, %v9579_v36 }
 0x4fc   : > { %v3735_v7 = vsel %vm3734_vm3, %v7448_v19, %v3731_v9 }
 0x4fd   : > { %v4189_v23 = vadd.f32 %v4125_v50, %v2223_v14  ;;  %v6558_v20 = vmul.f32 -1.442695, %v13433_v17  ;;  %v3862_v63 = vmul.f32 %v3735_v7, %v12937_v27 }
 0x4ff   : > { %7449 = vpow2.f32 %v6558_v20  ;;  %v4225_v54 = vpack.c.bf16 %v4189_v23, %v13337_v2  ;;  %v3930_v41 = vmul.f32 %v13177_v44, %v3862_v63  ;;  %v13487_v20 = vpop.f32.mrf.mxu2 }
 0x501   : > { %4441 = vmatmul.bf16.gmra.mxu3 %v4225_v54  ;;  %v13474_v15 = vadd.f32 %v13203_v12, %v3930_v41 }
 0x502   : > { %v4424_v4 = vpop.f32.mrf.mxu3 }
 0x503   : > { %v13438_v37 = vadd.f32 %v13363_v38, %v4424_v4  ;;  %v3029_v58 = vpop.xlane.xlu0 %3028 }
 0x504   : > { %v3097_v46 = vmul.f32 %v3029_v58, %v8403_v40 }
 0x505   : > { %v7450_v29 = vpop.eup %7449  ;;  %v6559_v62 = vmul.f32 -1.442695, %v13438_v37 }
 0x506   : > { %v13441_v60 = vadd.f32 1.0, %v7450_v29  ;;  %v13446_v56 = vadd.f32 1e-06, %v3097_v46 }
 0x507   : > { %7451 = vpow2.f32 %v6559_v62  ;;  %v3025_v2 = vpop.xlane.xlu2 %3024 }
 0x508   : > { %7453 = vrcp.f32 %v13441_v60  ;;  %v3095_v0 = vmul.f32 %v3025_v2, %v8403_v40  ;;  %v5422_v8 = vand.u32 2147483647, %v13441_v60  ;;  %v5424_v14 = vand.u32 2147483648, %v13441_v60 }
 0x509   : > { %7455 = vrsqrt.f32 %v13446_v56  ;;  %vm5418_vm5 = vweird.f32 %v13441_v60  ;;  %vm3762_vm9 = vweird.f32 %v13446_v56 }
 0x50a   : > { %v3159_v22 = vadd.f32 1e-06, %v3095_v0  ;;  %vm13502_vm11 = vcmp.eq.f32.partialorder %v5422_v8, 8.507059e+37  ;;  %v5425_v2 = vor.u32 1.1754944e-38, %v5424_v14 }
 0x50c   : > { %7457 = vrsqrt.f32 %v3159_v22  ;;  %vm3742_vm7 = vweird.f32 %v3159_v22 }
 0x50d   : > { %v7452_v28 = vpop.eup %7451 }
 0x50e   : > { %v13449_v18 = vpop.eup %7453  ;;  %v13452_v42 = vadd.f32 1.0, %v7452_v28  ;;  %v3031_v45 = vpop.xlane.xlu1 %3030 }
 0x50f   : > { %v5414_v61 = vmul.f32 %v13449_v18, %v13441_v60  ;;  %v3027_v6 = vpop.xlane.xlu2 %3026  ;;  %v13457_v55 = vpop.eup %7455  ;;  %v3098_v49 = vmul.f32 %v3031_v45, %v8403_v40  ;;  %vm5419_vm6 = vweird.f32 %v13449_v18 }
 0x510   : > { %7459 = vrcp.f32 %v13452_v42  ;;  %v3096_v27 = vmul.f32 %v3027_v6, %v8403_v40  ;;  %v3757_v32 = vmul.f32 %v13457_v55, %v13446_v56  ;;  %v5437_v29 = vand.u32 2147483647, %v13452_v42  ;;  %vm13498_vm10 = vmor %vm5418_vm5, %vm5419_vm6  ;;  %v14628_v56 = vld [vmem:[#allocation17_spill] sm:$0xff] }
 0x511   : > { %v5415_v5 = vsub.f32 1.0, %v5414_v61  ;;  %v13467_v43 = vadd.f32 1e-06, %v3098_v49  ;;  %v5439_v62 = vand.u32 2147483648, %v13452_v42  ;;  %vm5433_vm13 = vweird.f32 %v13452_v42 }
 0x512   : > { %v7458_v52 = vpop.eup %7457  ;;  %v13465_v39 = vadd.f32 1e-06, %v3096_v27  ;;  %v3758_v51 = vmul.f32 %v13457_v55, %v3757_v32  ;;  %vm13524_vm1 = vcmp.eq.f32.partialorder %v5437_v29, 8.507059e+37  ;;  %vm3763_vm15 = vweird.f32 %v13457_v55 }
 0x513   : > { %v3737_v19 = vmul.f32 %v7458_v52, %v3159_v22  ;;  %v5416_v57 = vmul.f32 %v13449_v18, %v5415_v5  ;;  %vm3743_vm8 = vweird.f32 %v7458_v52  ;;  %v5440_v31 = vor.u32 1.1754944e-38, %v5439_v62  ;;  %vm13546_vm3 = vmor %vm3762_vm9, %vm3763_vm15 }
 0x514   : > { %7461 = vrsqrt.f32 %v13465_v39  ;;  %v3759_v50 = vmul.f32 0.5, %v3758_v51  ;;  %vm13506_vm12 = vmor %vm3742_vm7, %vm3743_vm8  ;;  %vm3752_vm0 = vweird.f32 %v13465_v39  ;;  %v13539_v51 = vpop.f32.mrf.mxu2  ;;  %v2400_v5 = vadd.f32 %v13483_v10, %v9579_v36 }
 0x515   : > { %v3738_v59 = vmul.f32 %v7458_v52, %v3737_v19  ;;  %7463 = vrsqrt.f32 %v13467_v43  ;;  %v5417_v54 = vadd.f32 %v13449_v18, %v5416_v57  ;;  %vm3772_vm6 = vweird.f32 %v13467_v43 }
 0x516   : > { %v13471_v3 = vpop.eup %7459  ;;  %v3760_v22 = vsub.f32 1.5, %v3759_v50 }
 0x517   : > { %v5429_v23 = vmul.f32 %v13471_v3, %v13452_v42  ;;  %v3739_v35 = vmul.f32 0.5, %v3738_v59  ;;  %v3033_v4 = vpop.xlane.xlu2 %3032  ;;  %v5421_v6 = vsel %vm13498_vm10, %v13449_v18, %v5417_v54  ;;  %vm5434_vm14 = vweird.f32 %v13471_v3 }
 0x518   : > { %v3099_v26 = vmul.f32 %v3033_v4, %v8403_v40  ;;  %v3761_v49 = vmul.f32 %v13457_v55, %v3760_v22  ;;  %v5426_v19 = vsel %vm13502_vm11, %v5425_v2, %v5421_v6  ;;  %vm5435_vm2 = vmor %vm5433_vm13, %vm5434_vm14  ;;  %v4063_v42 = vadd.f32 1.0, %v2397_v33 }
 0x519   : > { %v5430_v53 = vsub.f32 1.0, %v5429_v23  ;;  %v3740_v9 = vsub.f32 1.5, %v3739_v35  ;;  %v2401_v23 = vpop.f32.mrf.mxu1  ;;  %v4126_v35 = vmul.f32 %v4062_v24, %v13474_v15  ;;  %v5729_v33 = vmul.f32 %v5426_v19, %v13433_v17 }
 0x51a   : > { %v7462_v0 = vpop.eup %7461  ;;  %v13510_v28 = vadd.f32 1e-06, %v3099_v26  ;;  %v3765_v15 = vsel %vm13546_vm3, %v13457_v55, %v3761_v49  ;;  %v2402_v49 = vadd.f32 %v2401_v23, %v9579_v36 }
 0x51b   : > { %v5431_v63 = vmul.f32 %v13471_v3, %v5430_v53  ;;  %v13514_v60 = vpop.eup %7463  ;;  %v3741_v30 = vmul.f32 %v7458_v52, %v3740_v9  ;;  %v3747_v61 = vmul.f32 %v7462_v0, %v13465_v39  ;;  %vm3753_vm4 = vweird.f32 %v7462_v0  ;;  %v14629_v9 = vld [vmem:[#allocation41_spill] sm:$0xff] }
 0x51c   : > { %v3767_v45 = vmul.f32 %v13514_v60, %v13467_v43  ;;  %7465 = vrsqrt.f32 %v13510_v28  ;;  %vm3754_vm5 = vmor %vm3752_vm0, %vm3753_vm4  ;;  %v2228_v58 = vadd.f32 %v14629_v9, %v9542_v47  ;;  %vm3773_vm7 = vweird.f32 %v13514_v60 }
 0x51d   : > { %v3745_v41 = vsel %vm13506_vm12, %v7458_v52, %v3741_v30  ;;  %v3748_v27 = vmul.f32 %v7462_v0, %v3747_v61  ;;  %v5432_v18 = vadd.f32 %v13471_v3, %v5431_v63  ;;  %v14625_v52 = vld [vmem:[#allocation57_spill] sm:$0xff]  ;;  %v14630_v30 = vld [vmem:[#allocation40_spill] sm:$0xff]  ;;  %vm3782_vm8 = vweird.f32 %v13510_v28  ;;  %vm13593_vm10 = vmor %vm3772_vm6, %vm3773_vm7 }
 0x51e   : > { %v3863_v32 = vmul.f32 %v3745_v41, %v13042_v25  ;;  %2577 = vmatmul.bf16.gmra.mxu2 %v14625_v52  ;;  %v3768_v59 = vmul.f32 %v13514_v60, %v3767_v45  ;;  %v3865_v61 = vmul.f32 %v3765_v15, %v14630_v30  ;;  %v2523_v15 = vpop.f32.mrf.mxu2 }
 0x51f   : > { %v3749_v57 = vmul.f32 0.5, %v3748_v27  ;;  %v5436_v8 = vsel %vm5435_vm2, %v13471_v3, %v5432_v18  ;;  %v2226_v3 = vadd.f32 %v14628_v56, %v9542_v47 }
 0x520   : > { %v3931_v14 = vmul.f32 %v13177_v44, %v3863_v32  ;;  %v5441_v50 = vsel %vm13524_vm1, %v5440_v31, %v5436_v8  ;;  %v3769_v62 = vmul.f32 0.5, %v3768_v59  ;;  %v3933_v32 = vmul.f32 %v13177_v44, %v3865_v61 }
 0x521   : > { %v3750_v54 = vsub.f32 1.5, %v3749_v57  ;;  %v5730_v4 = vmul.f32 %v5441_v50, %v13438_v37  ;;  %v4427_v29 = vpop.f32.mrf.mxu3  ;;  %v4190_v7 = vadd.f32 %v4126_v35, %v2226_v3  ;;  %v2404_v19 = vpop.f32.mrf.mxu1  ;;  %v4064_v8 = vadd.f32 1.0, %v2400_v5  ;;  %v7621_v5 = vld [vmem:[%s7900_s28 + $0x138] sm:$0xff] }
 0x522   : > { %v13555_v26 = vpop.eup %7465  ;;  %v3999_v53 = vadd.f32 %v13203_v12, %v3931_v14  ;;  %v13571_v2 = vadd.f32 %v13363_v38, %v4427_v29  ;;  %v3770_v45 = vsub.f32 1.5, %v3769_v62  ;;  %v4001_v23 = vadd.f32 %v13203_v12, %v3933_v32  ;;  %v14635_v62 = vld [vmem:[#allocation13_spill] sm:$0xff] }
 0x523   : > { %v3751_v24 = vmul.f32 %v7462_v0, %v3750_v54  ;;  %v3777_v37 = vmul.f32 %v13555_v26, %v13510_v28  ;;  %v5770_v39 = vpack.c.bf16 %v5730_v4, %v5729_v33  ;;  %vm3783_vm9 = vweird.f32 %v13555_v26  ;;  %v7620_v54 = vld [vmem:[%s7900_s28 + $0x130] sm:$0xff] }
 0x524   : > { %v4127_v46 = vmul.f32 %v4063_v42, %v3999_v53  ;;  %v6560_v6 = vmul.f32 -1.442695, %v13571_v2  ;;  %v3771_v57 = vmul.f32 %v13514_v60, %v3770_v45  ;;  %vm13600_vm11 = vmor %vm3782_vm8, %vm3783_vm9  ;;  %v4065_v35 = vadd.f32 1.0, %v2402_v49 }
 0x525   : > { %v3755_v17 = vsel %vm3754_vm5, %v7462_v0, %v3751_v24  ;;  %v3778_v22 = vmul.f32 %v13555_v26, %v3777_v37  ;;  %5970 = vmatmul.bf16.gmra.mxu0 %v5770_v39  ;;  %v2519_v0 = vadd.f32 %v13487_v20, %v11278_v13  ;;  %v2521_v33 = vadd.f32 %v13539_v51, %v11278_v13  ;;  %v14636_v39 = vld [vmem:[#allocation47_spill] sm:$0xff] }
 0x526   : > { %v4191_v63 = vadd.f32 %v4127_v46, %v2228_v58  ;;  %v3864_v55 = vmul.f32 %v3755_v17, %v13113_v11  ;;  %7467 = vpow2.f32 %v6560_v6  ;;  %v3775_v56 = vsel %vm13593_vm10, %v13514_v60, %v3771_v57 }
 0x527   : > { %v3779_v31 = vmul.f32 0.5, %v3778_v22  ;;  %v5951_v18 = vpop.f32.mrf.mxu0  ;;  %v2231_v37 = vadd.f32 %v14635_v62, %v9542_v47  ;;  %v4129_v60 = vmul.f32 %v4065_v35, %v4001_v23  ;;  %v3866_v9 = vmul.f32 %v3775_v56, %v13094_v16  ;;  %v7622_v62 = vld [vmem:[%s7900_s28 + $0x140] sm:$0xff] }
 0x528   : > { %v3932_v41 = vmul.f32 %v13177_v44, %v3864_v55  ;;  %v4226_v27 = vpack.c.bf16 %v4191_v63, %v4190_v7  ;;  %v5952_v52 = vadd.f32 %v13317_v34, %v5951_v18  ;;  %v2233_v7 = vadd.f32 %v14636_v39, %v9542_v47 }
 0x529   : > { %v3780_v11 = vsub.f32 1.5, %v3779_v31  ;;  %v4429_v10 = vpop.f32.mrf.mxu3  ;;  %v2405_v30 = vadd.f32 %v2404_v19, %v9579_v36  ;;  %v3934_v6 = vmul.f32 %v13177_v44, %v3866_v9  ;;  %v2524_v57 = vadd.f32 %v2523_v15, %v11278_v13 }
 0x52a   : > { %4446 = vmatmul.bf16.gmra.mxu3 %v4226_v27  ;;  %v13591_v43 = vadd.f32 %v13363_v38, %v4429_v10  ;;  %v4000_v59 = vadd.f32 %v13203_v12, %v3932_v41  ;;  %v6054_v25 = vmul.f32 %v5952_v52, %v2519_v0  ;;  %v4193_v61 = vadd.f32 %v4129_v60, %v2233_v7  ;;  %v2525_v10 = vpop.f32.mrf.mxu2 }
 0x52b   : > { %v3781_v14 = vmul.f32 %v13555_v26, %v3780_v11  ;;  %v4002_v49 = vadd.f32 %v13203_v12, %v3934_v6  ;;  %v4066_v32 = vadd.f32 1.0, %v2405_v30 }
 0x52c   : > { %v6561_v42 = vmul.f32 -1.442695, %v13591_v43  ;;  %v7468_v50 = vpop.eup %7467  ;;  %v6118_v4 = vadd.f32 %v7620_v54, %v6054_v25  ;;  %v4128_v53 = vmul.f32 %v4064_v8, %v4000_v59 }
 0x52d   : > { %v13609_v3 = vadd.f32 1.0, %v7468_v50  ;;  %v3785_v24 = vsel %vm13600_vm11, %v13555_v26, %v3781_v14  ;;  %v2406_v26 = vpop.f32.mrf.mxu1  ;;  %v4130_v28 = vmul.f32 %v4066_v32, %v4002_v49  ;;  %v3035_v32 = vpop.xlane.xlu0 %3034 }
 0x52e   : > { %7469 = vpow2.f32 %v6561_v42  ;;  %6182 = vst [vmem:[%s11286_s15 + $0x130] sm:$0xff] %v6118_v4  ;;  %v4192_v17 = vadd.f32 %v4128_v53, %v2231_v37  ;;  %v3867_v22 = vmul.f32 %v3785_v24, %v13146_v1  ;;  %v2407_v27 = vadd.f32 %v2406_v26, %v9579_v36  ;;  %v14637_v53 = vld [vmem:[#allocation46_spill] sm:$0xff] }
 0x52f   : > { %v5953_v29 = vpop.f32.mrf.mxu0  ;;  %7471 = vrcp.f32 %v13609_v3  ;;  %v5454_v35 = vand.u32 2147483648, %v13609_v3  ;;  %vm5448_vm13 = vweird.f32 %v13609_v3  ;;  %v5452_v60 = vand.u32 2147483647, %v13609_v3 }
 0x530   : > { %v5954_v46 = vadd.f32 %v13317_v34, %v5953_v29  ;;  %v3935_v0 = vmul.f32 %v13177_v44, %v3867_v22  ;;  %v4227_v18 = vpack.c.bf16 %v4193_v61, %v4192_v17  ;;  %v4067_v8 = vadd.f32 1.0, %v2407_v27  ;;  %v14638_v29 = vld [vmem:[#allocation50_spill] sm:$0xff] }
 0x531   : > { %v4432_v58 = vpop.f32.mrf.mxu3  ;;  %v2238_v15 = vadd.f32 %v14638_v29, %v9542_v47  ;;  %v5455_v22 = vor.u32 1.1754944e-38, %v5454_v35  ;;  %vm5453_vm0 = vcmp.eq.f32.partialorder %v5452_v60, 8.507059e+37 }
 0x532   : > { %v13623_v51 = vadd.f32 %v13363_v38, %v4432_v58  ;;  %v6055_v63 = vmul.f32 %v5954_v46, %v2521_v33  ;;  %v4003_v59 = vadd.f32 %v13203_v12, %v3935_v0  ;;  %v2236_v33 = vadd.f32 %v14637_v53, %v9542_v47 }
 0x534   : > { %v7470_v55 = vpop.eup %7469  ;;  %v6562_v16 = vmul.f32 -1.442695, %v13623_v51  ;;  %v6119_v31 = vadd.f32 %v7621_v5, %v6055_v63  ;;  %v4131_v56 = vmul.f32 %v4067_v8, %v4003_v59  ;;  %v4194_v7 = vadd.f32 %v4130_v28, %v2236_v33 }
 0x535   : > { %v13631_v45 = vadd.f32 1.0, %v7470_v55  ;;  %v13634_v41 = vpop.eup %7471  ;;  %v2526_v55 = vadd.f32 %v2525_v10, %v11278_v13 }
 0x536   : > { %7473 = vpow2.f32 %v6562_v16  ;;  %v5444_v1 = vmul.f32 %v13634_v41, %v13609_v3  ;;  %6183 = vst [vmem:[%s11286_s15 + $0x138] sm:$0xff] %v6119_v31  ;;  %vm5449_vm12 = vweird.f32 %v13634_v41  ;;  %v4195_v63 = vadd.f32 %v4131_v56, %v2238_v15  ;;  %v2528_v16 = vpop.f32.mrf.mxu2 }
 0x537   : > { %7475 = vrcp.f32 %v13631_v45  ;;  %v5467_v9 = vand.u32 2147483647, %v13631_v45  ;;  %v5469_v58 = vand.u32 2147483648, %v13631_v45  ;;  %vm13667_vm14 = vmor %vm5448_vm13, %vm5449_vm12  ;;  %vm5463_vm15 = vweird.f32 %v13631_v45 }
 0x538   : > { %v5445_v11 = vsub.f32 1.0, %v5444_v1  ;;  %v4228_v49 = vpack.c.bf16 %v4195_v63, %v4194_v7 }
 0x539   : > { %v4434_v19 = vpop.f32.mrf.mxu3  ;;  %vm5468_vm4 = vcmp.eq.f32.partialorder %v5467_v9, 8.507059e+37 }
 0x53a   : > { %4451 = vmatmul.bf16.gmra.mxu3 %v4227_v18  ;;  %v13644_v52 = vadd.f32 %v13363_v38, %v4434_v19  ;;  %v5446_v20 = vmul.f32 %v13634_v41, %v5445_v11 }
 0x53c   : > { %v5956_v44 = vpop.f32.mrf.mxu0  ;;  %v7474_v25 = vpop.eup %7473  ;;  %v6563_v14 = vmul.f32 -1.442695, %v13644_v52  ;;  %v5447_v12 = vadd.f32 %v13634_v41, %v5446_v20 }
 0x53d   : > { %v5957_v42 = vadd.f32 %v13317_v34, %v5956_v44  ;;  %v7476_v50 = vpop.eup %7475  ;;  %v13651_v23 = vadd.f32 1.0, %v7474_v25  ;;  %v7623_v44 = vld [vmem:[%s7900_s28 + $0x148] sm:$0xff] }
 0x53e   : > { %v5459_v54 = vmul.f32 %v7476_v50, %v13631_v45  ;;  %7477 = vpow2.f32 %v6563_v14  ;;  %vm5464_vm1 = vweird.f32 %v7476_v50  ;;  %v5451_v3 = vsel %vm13667_vm14, %v13634_v41, %v5447_v12  ;;  %v2530_v12 = vpop.f32.mrf.mxu2 }
 0x53f   : > { %v6056_v4 = vmul.f32 %v5957_v42, %v2524_v57  ;;  %7479 = vrcp.f32 %v13651_v23  ;;  %vm5465_vm2 = vmor %vm5463_vm15, %vm5464_vm1  ;;  %v5470_v41 = vor.u32 1.1754944e-38, %v5469_v58  ;;  %v5456_v0 = vsel %vm5453_vm0, %v5455_v22, %v5451_v3 }
 0x540   : > { %v5460_v24 = vsub.f32 1.0, %v5459_v54  ;;  %v5731_v20 = vmul.f32 %v5456_v0, %v13571_v2  ;;  %v3100_v42 = vmul.f32 %v3035_v32, %v8403_v40  ;;  %v2529_v2 = vadd.f32 %v2528_v16, %v11278_v13  ;;  %v7625_v32 = vld [vmem:[%s7900_s28 + $0x158] sm:$0xff] }
 0x541   : > { %v6120_v37 = vadd.f32 %v7622_v62, %v6056_v4  ;;  %v4437_v46 = vpop.f32.mrf.mxu3  ;;  %v5482_v33 = vand.u32 2147483647, %v13651_v23  ;;  %v5484_v29 = vand.u32 2147483648, %v13651_v23  ;;  %vm5478_vm5 = vweird.f32 %v13651_v23 }
 0x542   : > { %v5461_v17 = vmul.f32 %v7476_v50, %v5460_v24  ;;  %v13673_v26 = vadd.f32 %v13363_v38, %v4437_v46  ;;  %v13706_v53 = vadd.f32 1e-06, %v3100_v42  ;;  %v2531_v22 = vadd.f32 %v2530_v12, %v11278_v13 }
 0x543   : > { %6184 = vst [vmem:[%s11286_s15 + $0x140] sm:$0xff] %v6120_v37  ;;  %vm5483_vm8 = vcmp.eq.f32.partialorder %v5482_v33, 8.507059e+37  ;;  %v7627_v33 = vld [vmem:[%s7900_s28 + $0x160] sm:$0xff] }
 0x544   : > { %v5958_v30 = vpop.f32.mrf.mxu0  ;;  %v7478_v61 = vpop.eup %7477  ;;  %v5462_v6 = vadd.f32 %v7476_v50, %v5461_v17  ;;  %v6564_v5 = vmul.f32 -1.442695, %v13673_v26  ;;  %v7624_v17 = vld [vmem:[%s7900_s28 + $0x150] sm:$0xff] }
 0x545   : > { %v5959_v31 = vadd.f32 %v13317_v34, %v5958_v30  ;;  %v13682_v27 = vpop.eup %7479  ;;  %v13685_v1 = vadd.f32 1.0, %v7478_v61 }
 0x546   : > { %v5466_v18 = vsel %vm5465_vm2, %v7476_v50, %v5462_v6  ;;  %v5474_v11 = vmul.f32 %v13682_v27, %v13651_v23  ;;  %7481 = vpow2.f32 %v6564_v5  ;;  %vm5479_vm3 = vweird.f32 %v13682_v27 }
 0x547   : > { %v5471_v45 = vsel %vm5468_vm4, %v5470_v41, %v5466_v18  ;;  %7483 = vrcp.f32 %v13685_v1  ;;  %v6057_v57 = vmul.f32 %v5959_v31, %v2526_v55  ;;  %vm13713_vm6 = vmor %vm5478_vm5, %vm5479_vm3  ;;  %v5497_v37 = vand.u32 2147483647, %v13685_v1  ;;  %v2533_v41 = vpop.f32.mrf.mxu2 }
 0x548   : > { %v5732_v19 = vmul.f32 %v5471_v45, %v13591_v43  ;;  %v5475_v10 = vsub.f32 1.0, %v5474_v11  ;;  %v5499_v60 = vand.u32 2147483648, %v13685_v1  ;;  %v5485_v23 = vor.u32 1.1754944e-38, %v5484_v29 }
 0x549   : > { %v4439_v59 = vpop.f32.mrf.mxu3  ;;  %v6121_v25 = vadd.f32 %v7623_v44, %v6057_v57  ;;  %vm5493_vm9 = vweird.f32 %v13685_v1  ;;  %vm5498_vm11 = vcmp.eq.f32.partialorder %v5497_v37, 8.507059e+37  ;;  %v2534_v57 = vadd.f32 %v2533_v41, %v11278_v13 }
 0x54a   : > { %4456 = vmatmul.bf16.gmra.mxu3 %v4228_v49  ;;  %v5476_v8 = vmul.f32 %v13682_v27, %v5475_v10  ;;  %v13695_v14 = vadd.f32 %v13363_v38, %v4439_v59  ;;  %v5771_v50 = vpack.c.bf16 %v5732_v19, %v5731_v20  ;;  %v5500_v30 = vor.u32 1.1754944e-38, %v5499_v60 }
 0x54b   : > { %6185 = vst [vmem:[%s11286_s15 + $0x148] sm:$0xff] %v6121_v25  ;;  %vm3792_vm3 = vweird.f32 %v13706_v53 }
 0x54c   : > { %v7482_v28 = vpop.eup %7481  ;;  %v6565_v43 = vmul.f32 -1.442695, %v13695_v14  ;;  %5975 = vmatmul.bf16.gmra.mxu0 %v5771_v50  ;;  %v5477_v56 = vadd.f32 %v13682_v27, %v5476_v8  ;;  %v13741_v8 = vld [vmem:[%s13961_s9] ss:$0 sm:$0xff] }
 0x54d   : > { %v7484_v35 = vpop.eup %7483  ;;  %v13700_v54 = vadd.f32 1.0, %v7482_v28 }
 0x54e   : > { %v5961_v4 = vpop.f32.mrf.mxu0  ;;  %v5489_v38 = vmul.f32 %v7484_v35, %v13685_v1  ;;  %7485 = vpow2.f32 %v6565_v43  ;;  %v5481_v9 = vsel %vm13713_vm6, %v13682_v27, %v5477_v56  ;;  %vm5494_vm7 = vweird.f32 %v7484_v35 }
 0x54f   : > { %7487 = vrcp.f32 %v13700_v54  ;;  %v5962_v24 = vadd.f32 %v13317_v34, %v5961_v4  ;;  %v5486_v55 = vsel %vm5483_vm8, %v5485_v23, %v5481_v9  ;;  %vm5495_vm10 = vmor %vm5493_vm9, %vm5494_vm7  ;;  %v5514_v25 = vand.u32 2147483648, %v13700_v54  ;;  %v2535_v12 = vpop.f32.mrf.mxu2 }
 0x550   : > { %v5490_v15 = vsub.f32 1.0, %v5489_v38  ;;  %7489 = vrsqrt.f32 %v13706_v53  ;;  %v5733_v1 = vmul.f32 %v5486_v55, %v13623_v51  ;;  %vm5508_vm13 = vweird.f32 %v13700_v54 }
 0x551   : > { %v6058_v46 = vmul.f32 %v5962_v24, %v2529_v2  ;;  %v5512_v42 = vand.u32 2147483647, %v13700_v54  ;;  %v2536_v24 = vadd.f32 %v2535_v12, %v11278_v13 }
 0x552   : > { %v5491_v58 = vmul.f32 %v7484_v35, %v5490_v15 }
 0x553   : > { %v6122_v3 = vadd.f32 %v7624_v17, %v6058_v46  ;;  %vm5513_vm15 = vcmp.eq.f32.partialorder %v5512_v42, 8.507059e+37  ;;  %v14646_v42 = vld [vmem:[#allocation67_spill] sm:$0xff] }
 0x554   : > { %v7486_v39 = vpop.eup %7485  ;;  %v5492_v7 = vadd.f32 %v7484_v35, %v5491_v58 }
 0x555   : > { %v7488_v63 = vpop.eup %7487  ;;  %v4712_v16 = vadd.f32 1.0, %v7486_v39  ;;  %6186 = vst [vmem:[%s11286_s15 + $0x150] sm:$0xff] %v6122_v3 }
 0x556   : > { %v5963_v61 = vpop.f32.mrf.mxu0  ;;  %v5496_v6 = vsel %vm5495_vm10, %v7484_v35, %v5492_v7  ;;  %v5504_v5 = vmul.f32 %v7488_v63, %v13700_v54  ;;  %v13731_v45 = vpop.eup %7489  ;;  %vm5509_vm12 = vweird.f32 %v7488_v63  ;;  %v5515_v54 = vor.u32 1.1754944e-38, %v5514_v25 }
 0x557   : > { %v5964_v31 = vadd.f32 %v13317_v34, %v5963_v61  ;;  %v5501_v27 = vsel %vm5498_vm11, %v5500_v30, %v5496_v6  ;;  %7491 = vrcp.f32 %v4712_v16  ;;  %v3787_v34 = vmul.f32 %v13731_v45, %v13706_v53  ;;  %vm13748_vm14 = vmor %vm5508_vm13, %vm5509_vm12  ;;  %v7628_v30 = vld [vmem:[%s7900_s28 + $0x168] sm:$0xff] }
 0x558   : > { %v5734_v0 = vmul.f32 %v5501_v27, %v13644_v52  ;;  %v5505_v18 = vsub.f32 1.0, %v5504_v5  ;;  %v5527_v2 = vand.u32 2147483647, %v4712_v16  ;;  %v5529_v4 = vand.u32 2147483648, %v4712_v16 }
 0x559   : > { %v6059_v11 = vmul.f32 %v5964_v31, %v2531_v22  ;;  %v3788_v43 = vmul.f32 %v13731_v45, %v3787_v34  ;;  %vm5523_vm0 = vweird.f32 %v4712_v16  ;;  %vm3793_vm5 = vweird.f32 %v13731_v45 }
 0x55a   : > { %v5506_v49 = vmul.f32 %v7488_v63, %v5505_v18  ;;  %v5772_v10 = vpack.c.bf16 %v5734_v0, %v5733_v1  ;;  %v5530_v60 = vor.u32 1.1754944e-38, %v5529_v4  ;;  %vm5528_vm4 = vcmp.eq.f32.partialorder %v5527_v2, 8.507059e+37  ;;  %vm3794_vm6 = vmor %vm3792_vm3, %vm3793_vm5  ;;  %v7629_v0 = vld [vmem:[%s13954_s2] ss:$0 sm:$0xff] }
 0x55b   : > { %v6123_v19 = vadd.f32 %v7625_v32, %v6059_v11  ;;  %v3789_v62 = vmul.f32 0.5, %v3788_v43  ;;  %v7630_v32 = vld [vmem:[%s13955_s3] ss:$0 sm:$0xff] }
 0x55c   : > { %5980 = vmatmul.bf16.gmra.mxu0 %v5772_v10  ;;  %v5507_v51 = vadd.f32 %v7488_v63, %v5506_v49  ;;  %v13784_v43 = vld [vmem:[%s13959_s7] ss:$0 sm:$0xff] }
 0x55d   : > { %6187 = vst [vmem:[%s11286_s15 + $0x158] sm:$0xff] %v6123_v19  ;;  %v7492_v20 = vpop.eup %7491  ;;  %v3790_v55 = vsub.f32 1.5, %v3789_v62 }
 0x55e   : > { %v5966_v59 = vpop.f32.mrf.mxu0  ;;  %v5519_v52 = vmul.f32 %v7492_v20, %v4712_v16  ;;  %v5511_v56 = vsel %vm13748_vm14, %v7488_v63, %v5507_v51  ;;  %vm5524_vm1 = vweird.f32 %v7492_v20 }
 0x55f   : > { %v5967_v44 = vadd.f32 %v13741_v8, %v5966_v59  ;;  %v5516_v37 = vsel %vm5513_vm15, %v5515_v54, %v5511_v56  ;;  %vm5525_vm2 = vmor %vm5523_vm0, %vm5524_vm1  ;;  %v3791_v6 = vmul.f32 %v13731_v45, %v3790_v55 }
 0x560   : > { %v5520_v50 = vsub.f32 1.0, %v5519_v52  ;;  %v5735_v17 = vmul.f32 %v5516_v37, %v13673_v26 }
 0x561   : > { %v6060_v28 = vmul.f32 %v5967_v44, %v2534_v57  ;;  %v3795_v26 = vsel %vm3794_vm6, %v13731_v45, %v3791_v6  ;;  %v14645_v44 = vld [vmem:[#allocation49_spill] sm:$0xff] }
 0x562   : > { %v5521_v38 = vmul.f32 %v7492_v20, %v5520_v50  ;;  %v3868_v27 = vmul.f32 %v3795_v26, %v13227_v21  ;;  %v2241_v25 = vadd.f32 %v14645_v44, %v9542_v47  ;;  %v2243_v50 = vadd.f32 %v14646_v42, %v9542_v47 }
 0x563   : > { %v6124_v29 = vadd.f32 %v7627_v33, %v6060_v28 }
 0x564   : > { %v5522_v15 = vadd.f32 %v7492_v20, %v5521_v38  ;;  %v3936_v18 = vmul.f32 %v7629_v0, %v3868_v27  ;;  %v7632_v27 = vld [vmem:[%s7900_s28 + $0x170] sm:$0xff] }
 0x565   : > { %6188 = vst [vmem:[%s11286_s15 + $0x160] sm:$0xff] %v6124_v29 }
 0x566   : > { %v5968_v9 = vpop.f32.mrf.mxu0  ;;  %v5526_v46 = vsel %vm5525_vm2, %v7492_v20, %v5522_v15  ;;  %v4004_v21 = vadd.f32 %v7630_v32, %v3936_v18 }
 0x567   : > { %v5969_v23 = vadd.f32 %v13741_v8, %v5968_v9  ;;  %v5531_v7 = vsel %vm5528_vm4, %v5530_v60, %v5526_v46 }
 0x568   : > { %v3037_v58 = vpop.xlane.xlu1 %3036  ;;  %v5736_v3 = vmul.f32 %v5531_v7, %v13695_v14  ;;  %v2409_v14 = vpop.f32.mrf.mxu1 }
 0x569   : > { %v3101_v39 = vmul.f32 %v3037_v58, %v8403_v40  ;;  %v6061_v22 = vmul.f32 %v5969_v23, %v2536_v24  ;;  %v2410_v53 = vadd.f32 %v2409_v14, %v9579_v36  ;;  %v2538_v23 = vpop.f32.mrf.mxu2 }
 0x56a   : > { %v5773_v61 = vpack.c.bf16 %v5736_v3, %v5735_v17  ;;  %v2539_v3 = vadd.f32 %v2538_v23, %v11278_v13 }
 0x56b   : > { %v3165_v63 = vadd.f32 1e-06, %v3101_v39  ;;  %v6125_v16 = vadd.f32 %v7628_v30, %v6061_v22  ;;  %v4068_v19 = vadd.f32 1.0, %v2410_v53 }
 0x56c   : > { %5985 = vmatmul.bf16.gmra.mxu0 %v5773_v61 }
 0x56d   : > { %7493 = vrsqrt.f32 %v3165_v63  ;;  %6189 = vst [vmem:[%s11286_s15 + $0x168] sm:$0xff] %v6125_v16  ;;  %vm3802_vm8 = vweird.f32 %v3165_v63  ;;  %v4132_v34 = vmul.f32 %v4068_v19, %v4004_v21 }
 0x570   : > { %v2411_v49 = vpop.f32.mrf.mxu1 }
 0x571   : > { %v2412_v10 = vadd.f32 %v2411_v49, %v9579_v36 }
 0x573   : > { %v7494_v40 = vpop.eup %7493  ;;  %v4069_v51 = vadd.f32 1.0, %v2412_v10 }
 0x574   : > { %v3797_v5 = vmul.f32 %v7494_v40, %v3165_v63  ;;  %vm3803_vm7 = vweird.f32 %v7494_v40 }
 0x575   : > { %vm3804_vm9 = vmor %vm3802_vm8, %vm3803_vm7 }
 0x576   : > { %v3798_v31 = vmul.f32 %v7494_v40, %v3797_v5 }
 0x578   : > { %v3799_v41 = vmul.f32 0.5, %v3798_v31 }
 0x57a   : > { %v3800_v1 = vsub.f32 1.5, %v3799_v41 }
 0x57c   : > { %v3801_v11 = vmul.f32 %v7494_v40, %v3800_v1  ;;  %v2540_v1 = vpop.f32.mrf.mxu2 }
 0x57d   : > { %v2541_v18 = vadd.f32 %v2540_v1, %v11278_v13 }
 0x57e   : > { %v3805_v45 = vsel %vm3804_vm9, %v7494_v40, %v3801_v11 }
 0x57f   : > { %v3869_v57 = vmul.f32 %v3805_v45, %v13422_v48  ;;  %v4196_v48 = vadd.f32 %v4132_v34, %v2241_v25 }
 0x581   : > { %v3937_v20 = vmul.f32 %v7629_v0, %v3869_v57  ;;  %v7633_v57 = vld [vmem:[%s7900_s28 + $0x178] sm:$0xff] }
 0x583   : > { %v4005_v59 = vadd.f32 %v7630_v32, %v3937_v20 }
 0x584   : > { %v4442_v52 = vpop.f32.mrf.mxu3  ;;  %v2543_v42 = vpop.f32.mrf.mxu2 }
 0x585   : > { %v4133_v28 = vmul.f32 %v4069_v51, %v4005_v59  ;;  %v4443_v36 = vadd.f32 %v13784_v43, %v4442_v52 }
 0x587   : > { %v4197_v35 = vadd.f32 %v4133_v28, %v2243_v50  ;;  %v6566_v2 = vmul.f32 -1.442695, %v4443_v36 }
 0x589   : > { %7495 = vpow2.f32 %v6566_v2  ;;  %v4229_v4 = vpack.c.bf16 %v4197_v35, %v4196_v48 }
 0x58b   : > { %4461 = vmatmul.bf16.gmra.mxu3 %v4229_v4 }
 0x58c   : > { %v4444_v12 = vpop.f32.mrf.mxu3 }
 0x58d   : > { %v4445_v56 = vadd.f32 %v13784_v43, %v4444_v12 }
 0x58f   : > { %v7496_v38 = vpop.eup %7495  ;;  %v6567_v33 = vmul.f32 -1.442695, %v4445_v56 }
 0x590   : > { %v4713_v47 = vadd.f32 1.0, %v7496_v38 }
 0x591   : > { %7497 = vpow2.f32 %v6567_v33  ;;  %v2545_v33 = vpop.f32.mrf.mxu2 }
 0x592   : > { %7499 = vrcp.f32 %v4713_v47  ;;  %v5544_v46 = vand.u32 2147483648, %v4713_v47  ;;  %vm5538_vm11 = vweird.f32 %v4713_v47  ;;  %v5542_v39 = vand.u32 2147483647, %v4713_v47 }
 0x594   : > { %v5545_v16 = vor.u32 1.1754944e-38, %v5544_v46  ;;  %vm5543_vm14 = vcmp.eq.f32.partialorder %v5542_v39, 8.507059e+37 }
 0x597   : > { %v7498_v29 = vpop.eup %7497 }
 0x598   : > { %v7500_v54 = vpop.eup %7499  ;;  %v4714_v15 = vadd.f32 1.0, %v7498_v29 }
 0x599   : > { %v5534_v24 = vmul.f32 %v7500_v54, %v4713_v47  ;;  %vm5539_vm10 = vweird.f32 %v7500_v54  ;;  %v2548_v1 = vpop.f32.mrf.mxu2 }
 0x59a   : > { %7501 = vrcp.f32 %v4714_v15  ;;  %vm5540_vm12 = vmor %vm5538_vm11, %vm5539_vm10  ;;  %v5559_v17 = vand.u32 2147483648, %v4714_v15  ;;  %v5557_v55 = vand.u32 2147483647, %v4714_v15  ;;  %vm5553_vm1 = vweird.f32 %v4714_v15 }
 0x59b   : > { %v5535_v62 = vsub.f32 1.0, %v5534_v24 }
 0x59c   : > { %v5560_v26 = vor.u32 1.1754944e-38, %v5559_v17  ;;  %vm5558_vm0 = vcmp.eq.f32.partialorder %v5557_v55, 8.507059e+37 }
 0x59d   : > { %v5536_v37 = vmul.f32 %v7500_v54, %v5535_v62  ;;  %v2544_v62 = vadd.f32 %v2543_v42, %v11278_v13 }
 0x59f   : > { %v5537_v9 = vadd.f32 %v7500_v54, %v5536_v37 }
 0x5a0   : > { %v7502_v60 = vpop.eup %7501 }
 0x5a1   : > { %v5549_v58 = vmul.f32 %v7502_v60, %v4714_v15  ;;  %v5541_v22 = vsel %vm5540_vm12, %v7500_v54, %v5537_v9  ;;  %vm5554_vm13 = vweird.f32 %v7502_v60 }
 0x5a2   : > { %v5971_v30 = vpop.f32.mrf.mxu0  ;;  %v5546_v40 = vsel %vm5543_vm14, %v5545_v16, %v5541_v22  ;;  %vm5555_vm15 = vmor %vm5553_vm1, %vm5554_vm13 }
 0x5a3   : > { %v5550_v7 = vsub.f32 1.0, %v5549_v58  ;;  %v5972_v61 = vadd.f32 %v13741_v8, %v5971_v30  ;;  %v5737_v53 = vmul.f32 %v5546_v40, %v4443_v36 }
 0x5a5   : > { %v5551_v63 = vmul.f32 %v7502_v60, %v5550_v7  ;;  %v6062_v14 = vmul.f32 %v5972_v61, %v2539_v3  ;;  %v2546_v61 = vadd.f32 %v2545_v33, %v11278_v13 }
 0x5a7   : > { %v5552_v6 = vadd.f32 %v7502_v60, %v5551_v63  ;;  %v6126_v41 = vadd.f32 %v7632_v27, %v6062_v14 }
 0x5a9   : > { %v5556_v5 = vsel %vm5555_vm15, %v7502_v60, %v5552_v6  ;;  %6190 = vst [vmem:[%s11286_s15 + $0x170] sm:$0xff] %v6126_v41 }
 0x5aa   : > { %v5561_v31 = vsel %vm5558_vm0, %v5560_v26, %v5556_v5  ;;  %v5973_v11 = vpop.f32.mrf.mxu0  ;;  %v7634_v26 = vld [vmem:[%s7900_s28 + $0x180] sm:$0xff] }
 0x5ab   : > { %v5738_v0 = vmul.f32 %v5561_v31, %v4445_v56  ;;  %v5974_v45 = vadd.f32 %v13741_v8, %v5973_v11 }
 0x5ad   : > { %v5774_v49 = vpack.c.bf16 %v5738_v0, %v5737_v53  ;;  %v4447_v32 = vpop.f32.mrf.mxu3  ;;  %v6063_v19 = vmul.f32 %v5974_v45, %v2541_v18 }
 0x5ae   : > { %v13795_v21 = vadd.f32 %v13784_v43, %v4447_v32 }
 0x5af   : > { %5990 = vmatmul.bf16.gmra.mxu0 %v5774_v49  ;;  %v6127_v20 = vadd.f32 %v7633_v57, %v6063_v19 }
 0x5b0   : > { %v6568_v10 = vmul.f32 -1.442695, %v13795_v21 }
 0x5b1   : > { %6191 = vst [vmem:[%s11286_s15 + $0x178] sm:$0xff] %v6127_v20 }
 0x5b2   : > { %7503 = vpow2.f32 %v6568_v10 }
 0x5b5   : > { %v4449_v34 = vpop.f32.mrf.mxu3 }
 0x5b6   : > { %v13801_v59 = vadd.f32 %v13784_v43, %v4449_v34 }
 0x5b8   : > { %v7504_v51 = vpop.eup %7503  ;;  %v6569_v52 = vmul.f32 -1.442695, %v13801_v59 }
 0x5b9   : > { %v4715_v44 = vadd.f32 1.0, %v7504_v51 }
 0x5ba   : > { %7505 = vpow2.f32 %v6569_v52 }
 0x5bb   : > { %7507 = vrcp.f32 %v4715_v44  ;;  %v5574_v60 = vand.u32 2147483648, %v4715_v44  ;;  %vm5568_vm4 = vweird.f32 %v4715_v44  ;;  %v5572_v23 = vand.u32 2147483647, %v4715_v44 }
 0x5bd   : > { %v4452_v25 = vpop.f32.mrf.mxu3  ;;  %v5575_v16 = vor.u32 1.1754944e-38, %v5574_v60  ;;  %vm5573_vm7 = vcmp.eq.f32.partialorder %v5572_v23, 8.507059e+37 }
 0x5be   : > { %v13805_v50 = vadd.f32 %v13784_v43, %v4452_v25  ;;  %v7635_v25 = vld [vmem:[%s7900_s28 + $0x188] sm:$0xff] }
 0x5c0   : > { %v7506_v28 = vpop.eup %7505  ;;  %v6570_v36 = vmul.f32 -1.442695, %v13805_v50 }
 0x5c1   : > { %v7508_v48 = vpop.eup %7507  ;;  %v4716_v35 = vadd.f32 1.0, %v7506_v28 }
 0x5c2   : > { %v5564_v2 = vmul.f32 %v7508_v48, %v4715_v44  ;;  %7509 = vpow2.f32 %v6570_v36  ;;  %vm5569_vm2 = vweird.f32 %v7508_v48 }
 0x5c3   : > { %7511 = vrcp.f32 %v4716_v35  ;;  %v5587_v39 = vand.u32 2147483647, %v4716_v35  ;;  %v5589_v7 = vand.u32 2147483648, %v4716_v35  ;;  %vm13817_vm3 = vmor %vm5568_vm4, %vm5569_vm2  ;;  %vm5583_vm6 = vweird.f32 %v4716_v35 }
 0x5c4   : > { %v5565_v4 = vsub.f32 1.0, %v5564_v2 }
 0x5c5   : > { %v4454_v12 = vpop.f32.mrf.mxu3  ;;  %vm5588_vm9 = vcmp.eq.f32.partialorder %v5587_v39, 8.507059e+37  ;;  %v5590_v27 = vor.u32 1.1754944e-38, %v5589_v7 }
 0x5c6   : > { %v13809_v56 = vadd.f32 %v13784_v43, %v4454_v12  ;;  %v5566_v38 = vmul.f32 %v7508_v48, %v5565_v4  ;;  %v2550_v12 = vpop.f32.mrf.mxu2 }
 0x5c8   : > { %v7510_v47 = vpop.eup %7509  ;;  %v6571_v29 = vmul.f32 -1.442695, %v13809_v56  ;;  %v5567_v37 = vadd.f32 %v7508_v48, %v5566_v38 }
 0x5c9   : > { %v7512_v54 = vpop.eup %7511  ;;  %v13812_v15 = vadd.f32 1.0, %v7510_v47  ;;  %v5976_v9 = vpop.f32.mrf.mxu0 }
 0x5ca   : > { %v5579_v24 = vmul.f32 %v7512_v54, %v4716_v35  ;;  %7513 = vpow2.f32 %v6571_v29  ;;  %v5977_v46 = vadd.f32 %v13741_v8, %v5976_v9  ;;  %vm5584_vm5 = vweird.f32 %v7512_v54 }
 0x5cb   : > { %7515 = vrcp.f32 %v13812_v15  ;;  %v5571_v30 = vsel %vm13817_vm3, %v7508_v48, %v5567_v37  ;;  %vm5585_vm8 = vmor %vm5583_vm6, %vm5584_vm5  ;;  %v2549_v48 = vadd.f32 %v2548_v1, %v11278_v13  ;;  %v5604_v2 = vand.u32 2147483648, %v13812_v15  ;;  %v7637_v1 = vld [vmem:[%s7900_s28 + $0x198] sm:$0xff] }
 0x5cc   : > { %v5580_v58 = vsub.f32 1.0, %v5579_v24  ;;  %v6064_v63 = vmul.f32 %v5977_v46, %v2544_v62  ;;  %v5576_v53 = vsel %vm5573_vm7, %v5575_v16, %v5571_v30  ;;  %vm5598_vm11 = vweird.f32 %v13812_v15  ;;  %v7636_v46 = vld [vmem:[%s7900_s28 + $0x190] sm:$0xff] }
 0x5cd   : > { %v4457_v17 = vpop.f32.mrf.mxu3  ;;  %v5739_v10 = vmul.f32 %v5576_v53, %v13795_v21  ;;  %v5602_v38 = vand.u32 2147483647, %v13812_v15  ;;  %v5605_v9 = vor.u32 1.1754944e-38, %v5604_v2  ;;  %v2551_v30 = vadd.f32 %v2550_v12, %v11278_v13 }
 0x5ce   : > { %v5581_v22 = vmul.f32 %v7512_v54, %v5580_v58  ;;  %v13822_v55 = vadd.f32 %v13784_v43, %v4457_v17  ;;  %v6128_v14 = vadd.f32 %v7634_v26, %v6064_v63 }
 0x5cf   : > { %vm5603_vm14 = vcmp.eq.f32.partialorder %v5602_v38, 8.507059e+37 }
 0x5d0   : > { %v7514_v6 = vpop.eup %7513  ;;  %v5582_v40 = vadd.f32 %v7512_v54, %v5581_v22  ;;  %v6572_v5 = vmul.f32 -1.442695, %v13822_v55  ;;  %6192 = vst [vmem:[%s11286_s15 + $0x180] sm:$0xff] %v6128_v14 }
 0x5d1   : > { %v7516_v31 = vpop.eup %7515  ;;  %v4718_v41 = vadd.f32 1.0, %v7514_v6  ;;  %v5978_v49 = vpop.f32.mrf.mxu0 }
 0x5d2   : > { %v5586_v0 = vsel %vm5585_vm8, %v7512_v54, %v5582_v40  ;;  %v5594_v18 = vmul.f32 %v7516_v31, %v13812_v15  ;;  %7517 = vpow2.f32 %v6572_v5  ;;  %v5979_v19 = vadd.f32 %v13741_v8, %v5978_v49  ;;  %v2553_v5 = vpop.f32.mrf.mxu2 }
 0x5d3   : > { %v5591_v11 = vsel %vm5588_vm9, %v5590_v27, %v5586_v0  ;;  %7519 = vrcp.f32 %v4718_v41  ;;  %vm5599_vm10 = vweird.f32 %v7516_v31  ;;  %v5617_v54 = vand.u32 2147483647, %v4718_v41 }
 0x5d4   : > { %v5740_v45 = vmul.f32 %v5591_v11, %v13801_v59  ;;  %v5595_v32 = vsub.f32 1.0, %v5594_v18  ;;  %v6065_v34 = vmul.f32 %v5979_v19, %v2546_v61  ;;  %vm13848_vm12 = vmor %vm5598_vm11, %vm5599_vm10  ;;  %v5619_v24 = vand.u32 2147483648, %v4718_v41 }
 0x5d5   : > { %v4459_v57 = vpop.f32.mrf.mxu3  ;;  %vm5613_vm1 = vweird.f32 %v4718_v41  ;;  %vm5618_vm0 = vcmp.eq.f32.partialorder %v5617_v54, 8.507059e+37  ;;  %v2554_v49 = vadd.f32 %v2553_v5, %v11278_v13  ;;  %v7639_v54 = vld [vmem:[%s7900_s28 + $0x1a8] sm:$0xff] }
 0x5d6   : > { %v5596_v20 = vmul.f32 %v7516_v31, %v5595_v32  ;;  %v13835_v51 = vadd.f32 %v13784_v43, %v4459_v57  ;;  %v5775_v52 = vpack.c.bf16 %v5740_v45, %v5739_v10  ;;  %v6129_v42 = vadd.f32 %v7635_v25, %v6065_v34 }
 0x5d7   : > { %v5620_v17 = vor.u32 1.1754944e-38, %v5619_v24 }
 0x5d8   : > { %v7518_v44 = vpop.eup %7517  ;;  %v6573_v28 = vmul.f32 -1.442695, %v13835_v51  ;;  %5995 = vmatmul.bf16.gmra.mxu0 %v5775_v52  ;;  %v5597_v21 = vadd.f32 %v7516_v31, %v5596_v20  ;;  %6193 = vst [vmem:[%s11286_s15 + $0x188] sm:$0xff] %v6129_v42 }
 0x5d9   : > { %v7520_v36 = vpop.eup %7519  ;;  %v13839_v59 = vadd.f32 1.0, %v7518_v44  ;;  %v5981_v4 = vpop.f32.mrf.mxu0 }
 0x5da   : > { %v5609_v35 = vmul.f32 %v7520_v36, %v4718_v41  ;;  %7521 = vpow2.f32 %v6573_v28  ;;  %v5982_v47 = vadd.f32 %v13741_v8, %v5981_v4  ;;  %v5601_v62 = vsel %vm13848_vm12, %v7516_v31, %v5597_v21  ;;  %v2555_v25 = vpop.f32.mrf.mxu2  ;;  %v7638_v28 = vld [vmem:[%s7900_s28 + $0x1a0] sm:$0xff] }
 0x5db   : > { %7523 = vrcp.f32 %v13839_v59  ;;  %vm5614_vm13 = vweird.f32 %v7520_v36  ;;  %v5606_v7 = vsel %vm5603_vm14, %v5605_v9, %v5601_v62  ;;  %vm5628_vm4 = vweird.f32 %v13839_v59 }
 0x5dc   : > { %v5610_v33 = vsub.f32 1.0, %v5609_v35  ;;  %v6066_v60 = vmul.f32 %v5982_v47, %v2549_v48  ;;  %vm5615_vm15 = vmor %vm5613_vm1, %vm5614_vm13  ;;  %v5741_v6 = vmul.f32 %v5606_v7, %v13805_v50  ;;  %v5634_v50 = vand.u32 2147483648, %v13839_v59 }
 0x5dd   : > { %v5632_v45 = vand.u32 2147483647, %v13839_v59  ;;  %v2556_v35 = vadd.f32 %v2555_v25, %v11278_v13  ;;  %v7641_v25 = vld [vmem:[%s7900_s28 + $0x1b8] sm:$0xff] }
 0x5de   : > { %v5611_v37 = vmul.f32 %v7520_v36, %v5610_v33  ;;  %v6130_v23 = vadd.f32 %v7636_v46, %v6066_v60  ;;  %v5635_v44 = vor.u32 1.1754944e-38, %v5634_v50 }
 0x5df   : > { %vm5633_vm6 = vcmp.eq.f32.partialorder %v5632_v45, 8.507059e+37 }
 0x5e0   : > { %v7522_v58 = vpop.eup %7521  ;;  %v5612_v15 = vadd.f32 %v7520_v36, %v5611_v37  ;;  %6194 = vst [vmem:[%s11286_s15 + $0x190] sm:$0xff] %v6130_v23 }
 0x5e1   : > { %v7524_v39 = vpop.eup %7523  ;;  %v4720_v3 = vadd.f32 1.0, %v7522_v58  ;;  %v5983_v61 = vpop.f32.mrf.mxu0 }
 0x5e2   : > { %v5616_v22 = vsel %vm5615_vm15, %v7520_v36, %v5612_v15  ;;  %v5624_v63 = vmul.f32 %v7524_v39, %v13839_v59  ;;  %v5984_v14 = vadd.f32 %v13741_v8, %v5983_v61  ;;  %vm5629_vm2 = vweird.f32 %v7524_v39 }
 0x5e3   : > { %v5621_v16 = vsel %vm5618_vm0, %v5620_v17, %v5616_v22  ;;  %7525 = vrcp.f32 %v4720_v3  ;;  %vm5630_vm3 = vmor %vm5628_vm4, %vm5629_vm2  ;;  %v5647_v10 = vand.u32 2147483647, %v4720_v3  ;;  %v5649_v57 = vand.u32 2147483648, %v4720_v3 }
 0x5e4   : > { %v5742_v40 = vmul.f32 %v5621_v16, %v13809_v56  ;;  %v5625_v26 = vsub.f32 1.0, %v5624_v63  ;;  %v6067_v27 = vmul.f32 %v5984_v14, %v2551_v30  ;;  %vm5643_vm7 = vweird.f32 %v4720_v3 }
 0x5e5   : > { %v5650_v48 = vor.u32 1.1754944e-38, %v5649_v57  ;;  %vm5648_vm9 = vcmp.eq.f32.partialorder %v5647_v10, 8.507059e+37 }
 0x5e6   : > { %v5626_v31 = vmul.f32 %v7524_v39, %v5625_v26  ;;  %v5776_v41 = vpack.c.bf16 %v5742_v40, %v5741_v6  ;;  %v6131_v53 = vadd.f32 %v7637_v1, %v6067_v27 }
 0x5e8   : > { %6000 = vmatmul.bf16.gmra.mxu0 %v5776_v41  ;;  %v5627_v18 = vadd.f32 %v7524_v39, %v5626_v31  ;;  %6195 = vst [vmem:[%s11286_s15 + $0x198] sm:$0xff] %v6131_v53 }
 0x5e9   : > { %v7526_v0 = vpop.eup %7525  ;;  %v5986_v56 = vpop.f32.mrf.mxu0 }
 0x5ea   : > { %v5639_v11 = vmul.f32 %v7526_v0, %v4720_v3  ;;  %v5987_v19 = vadd.f32 %v13741_v8, %v5986_v56  ;;  %v5631_v20 = vsel %vm5630_vm3, %v7524_v39, %v5627_v18  ;;  %vm5644_vm5 = vweird.f32 %v7526_v0  ;;  %v2558_v3 = vpop.f32.mrf.mxu2 }
 0x5eb   : > { %v5636_v59 = vsel %vm5633_vm6, %v5635_v44, %v5631_v20  ;;  %vm5645_vm8 = vmor %vm5643_vm7, %vm5644_vm5  ;;  %v2559_v61 = vadd.f32 %v2558_v3, %v11278_v13 }
 0x5ec   : > { %v5640_v32 = vsub.f32 1.0, %v5639_v11  ;;  %v6068_v52 = vmul.f32 %v5987_v19, %v2554_v49  ;;  %v5743_v12 = vmul.f32 %v5636_v59, %v13822_v55  ;;  %v7640_v11 = vld [vmem:[%s7900_s28 + $0x1b0] sm:$0xff] }
 0x5ee   : > { %v5641_v34 = vmul.f32 %v7526_v0, %v5640_v32  ;;  %v6132_v36 = vadd.f32 %v7638_v28, %v6068_v52 }
 0x5f0   : > { %v5642_v42 = vadd.f32 %v7526_v0, %v5641_v34  ;;  %6196 = vst [vmem:[%s11286_s15 + $0x1a0] sm:$0xff] %v6132_v36 }
 0x5f1   : > { %v5988_v4 = vpop.f32.mrf.mxu0 }
 0x5f2   : > { %v5646_v21 = vsel %vm5645_vm8, %v7526_v0, %v5642_v42  ;;  %v5989_v33 = vadd.f32 %v13741_v8, %v5988_v4  ;;  %v2560_v0 = vpop.f32.mrf.mxu2 }
 0x5f3   : > { %v5651_v2 = vsel %vm5648_vm9, %v5650_v48, %v5646_v21  ;;  %v2561_v32 = vadd.f32 %v2560_v0, %v11278_v13 }
 0x5f4   : > { %v5744_v38 = vmul.f32 %v5651_v2, %v13835_v51  ;;  %v6069_v47 = vmul.f32 %v5989_v33, %v2556_v35  ;;  %v7642_v2 = vld [vmem:[%s7900_s28 + $0x1c0] sm:$0xff] }
 0x5f6   : > { %v5777_v29 = vpack.c.bf16 %v5744_v38, %v5743_v12  ;;  %v6133_v24 = vadd.f32 %v7639_v54, %v6069_v47  ;;  %v7643_v54 = vld [vmem:[%s7900_s28 + $0x1c8] sm:$0xff] }
 0x5f8   : > { %6005 = vmatmul.bf16.gmra.mxu0 %v5777_v29  ;;  %6197 = vst [vmem:[%s11286_s15 + $0x1a8] sm:$0xff] %v6133_v24 }
 0x5fa   : > { %v2563_v28 = vpop.f32.mrf.mxu2 }
 0x5fb   : > { %v2564_v59 = vadd.f32 %v2563_v28, %v11278_v13 }
 0x602   : > { %v2565_v36 = vpop.f32.mrf.mxu2 }
 0x603   : > { %v2566_v38 = vadd.f32 %v2565_v36, %v11278_v13 }
 0x60a   : > { %v2568_v12 = vpop.f32.mrf.mxu2 }
 0x60e   : > { %v4462_v62 = vpop.f32.mrf.mxu3 }
 0x60f   : > { %v4463_v37 = vadd.f32 %v13784_v43, %v4462_v62  ;;  %v2569_v62 = vadd.f32 %v2568_v12, %v11278_v13 }
 0x611   : > { %v6574_v60 = vmul.f32 -1.442695, %v4463_v37 }
 0x613   : > { %7527 = vpow2.f32 %v6574_v60  ;;  %v2570_v60 = vpop.f32.mrf.mxu2 }
 0x616   : > { %v4464_v9 = vpop.f32.mrf.mxu3 }
 0x617   : > { %v4465_v58 = vadd.f32 %v13784_v43, %v4464_v9 }
 0x619   : > { %v7528_v15 = vpop.eup %7527  ;;  %v6575_v55 = vmul.f32 -1.442695, %v4465_v58 }
 0x61a   : > { %v4721_v46 = vadd.f32 1.0, %v7528_v15  ;;  %v7644_v15 = vld [vmem:[%s7900_s28 + $0x1d0] sm:$0xff] }
 0x61b   : > { %7529 = vpow2.f32 %v6575_v55 }
 0x61c   : > { %7531 = vrcp.f32 %v4721_v46  ;;  %v5664_v43 = vand.u32 2147483648, %v4721_v46  ;;  %vm5658_vm11 = vweird.f32 %v4721_v46  ;;  %v5662_v40 = vand.u32 2147483647, %v4721_v46 }
 0x61e   : > { %v5665_v53 = vor.u32 1.1754944e-38, %v5664_v43  ;;  %vm5663_vm14 = vcmp.eq.f32.partialorder %v5662_v40, 8.507059e+37  ;;  %v7646_v43 = vld [vmem:[%s7900_s28 + $0x1e0] sm:$0xff] }
 0x621   : > { %v7530_v51 = vpop.eup %7529 }
 0x622   : > { %v7532_v23 = vpop.eup %7531  ;;  %v4722_v39 = vadd.f32 1.0, %v7530_v51 }
 0x623   : > { %v5654_v7 = vmul.f32 %v7532_v23, %v4721_v46  ;;  %vm5659_vm10 = vweird.f32 %v7532_v23  ;;  %v2571_v46 = vadd.f32 %v2570_v60, %v11278_v13 }
 0x624   : > { %7533 = vrcp.f32 %v4722_v39  ;;  %vm5660_vm12 = vmor %vm5658_vm11, %vm5659_vm10  ;;  %v5677_v5 = vand.u32 2147483647, %v4722_v39  ;;  %v5679_v31 = vand.u32 2147483648, %v4722_v39  ;;  %vm5673_vm1 = vweird.f32 %v4722_v39 }
 0x625   : > { %v5655_v17 = vsub.f32 1.0, %v5654_v7 }
 0x626   : > { %v5680_v56 = vor.u32 1.1754944e-38, %v5679_v31  ;;  %vm5678_vm0 = vcmp.eq.f32.partialorder %v5677_v5, 8.507059e+37  ;;  %v7647_v31 = vld [vmem:[%s7900_s28 + $0x1e8] sm:$0xff] }
 0x627   : > { %v5656_v22 = vmul.f32 %v7532_v23, %v5655_v17  ;;  %v7645_v17 = vld [vmem:[%s7900_s28 + $0x1d8] sm:$0xff] }
 0x629   : > { %v5657_v30 = vadd.f32 %v7532_v23, %v5656_v22 }
 0x62a   : > { %v7534_v63 = vpop.eup %7533 }
 0x62b   : > { %v5669_v16 = vmul.f32 %v7534_v63, %v4722_v39  ;;  %v5661_v27 = vsel %vm5660_vm12, %v7532_v23, %v5657_v30  ;;  %vm5674_vm13 = vweird.f32 %v7534_v63  ;;  %v2573_v39 = vpop.f32.mrf.mxu2 }
 0x62c   : > { %v5991_v6 = vpop.f32.mrf.mxu0  ;;  %v5666_v50 = vsel %vm5663_vm14, %v5665_v53, %v5661_v27  ;;  %vm5675_vm15 = vmor %vm5673_vm1, %vm5674_vm13  ;;  %v2574_v22 = vadd.f32 %v2573_v39, %v11278_v13 }
 0x62d   : > { %v5670_v26 = vsub.f32 1.0, %v5669_v16  ;;  %v5992_v14 = vadd.f32 %v13741_v8, %v5991_v6  ;;  %v5745_v57 = vmul.f32 %v5666_v50, %v4463_v37 }
 0x62f   : > { %v5671_v41 = vmul.f32 %v7534_v63, %v5670_v26  ;;  %v6070_v1 = vmul.f32 %v5992_v14, %v2559_v61 }
 0x631   : > { %v5672_v18 = vadd.f32 %v7534_v63, %v5671_v41  ;;  %v6134_v49 = vadd.f32 %v7640_v11, %v6070_v1  ;;  %v7648_v11 = vld [vmem:[%s7900_s28 + $0x1f0] sm:$0xff] }
 0x633   : > { %v5676_v45 = vsel %vm5675_vm15, %v7534_v63, %v5672_v18  ;;  %6198 = vst [vmem:[%s11286_s15 + $0x1b0] sm:$0xff] %v6134_v49  ;;  %v2575_v61 = vpop.f32.mrf.mxu2 }
 0x634   : > { %v5681_v19 = vsel %vm5678_vm0, %v5680_v56, %v5676_v45  ;;  %v5993_v10 = vpop.f32.mrf.mxu0  ;;  %v2576_v40 = vadd.f32 %v2575_v61, %v11278_v13 }
 0x635   : > { %v5746_v20 = vmul.f32 %v5681_v19, %v4465_v58  ;;  %v5994_v34 = vadd.f32 %v13741_v8, %v5993_v10  ;;  %v7649_v10 = vld [vmem:[%s7900_s28 + $0x1f8] sm:$0xff] }
 0x637   : > { %v6071_v52 = vmul.f32 %v5994_v34, %v2561_v32  ;;  %v5778_v44 = vpack.c.bf16 %v5746_v20, %v5745_v57 }
 0x639   : > { %v6135_v42 = vadd.f32 %v7641_v25, %v6071_v52  ;;  %6010 = vmatmul.bf16.gmra.mxu0 %v5778_v44 }
 0x63b   : > { %6199 = vst [vmem:[%s11286_s15 + $0x1b8] sm:$0xff] %v6135_v42  ;;  %v2578_v41 = vpop.f32.mrf.mxu2 }
 0x63c   : > { %v2579_v1 = vadd.f32 %v2578_v41, %v11278_v13 }
 0x643   : > { %v2580_v50 = vpop.f32.mrf.mxu2 }
 0x644   : > { %v2581_v45 = vadd.f32 %v2580_v50, %v11278_v13 }
 0x655   : > { %v5996_v48 = vpop.f32.mrf.mxu0 }
 0x656   : > { %v5997_v21 = vadd.f32 %v13741_v8, %v5996_v48 }
 0x658   : > { %v6072_v35 = vmul.f32 %v5997_v21, %v2564_v59 }
 0x65a   : > { %v6136_v4 = vadd.f32 %v7642_v2, %v6072_v35 }
 0x65c   : > { %6200 = vst [vmem:[%s11286_s15 + $0x1c0] sm:$0xff] %v6136_v4 }
 0x65d   : > { %v5998_v33 = vpop.f32.mrf.mxu0 }
 0x65e   : > { %v5999_v47 = vadd.f32 %v13741_v8, %v5998_v33 }
 0x660   : > { %v6073_v29 = vmul.f32 %v5999_v47, %v2566_v38 }
 0x662   : > { %v6137_v24 = vadd.f32 %v7643_v54, %v6073_v29 }
 0x664   : > { %6201 = vst [vmem:[%s11286_s15 + $0x1c8] sm:$0xff] %v6137_v24 }
 0x665   : > { %v6001_v37 = vpop.f32.mrf.mxu0 }
 0x666   : > { %v6002_v9 = vadd.f32 %v13741_v8, %v6001_v37 }
 0x668   : > { %v6074_v58 = vmul.f32 %v6002_v9, %v2569_v62 }
 0x66a   : > { %v6138_v55 = vadd.f32 %v7644_v15, %v6074_v58 }
 0x66c   : > { %6202 = vst [vmem:[%s11286_s15 + $0x1d0] sm:$0xff] %v6138_v55 }
 0x66d   : > { %v6003_v51 = vpop.f32.mrf.mxu0 }
 0x66e   : > { %v6004_v23 = vadd.f32 %v13741_v8, %v6003_v51 }
 0x670   : > { %v6075_v7 = vmul.f32 %v6004_v23, %v2571_v46 }
 0x672   : > { %v6139_v3 = vadd.f32 %v7645_v17, %v6075_v7 }
 0x674   : > { %6203 = vst [vmem:[%s11286_s15 + $0x1d8] sm:$0xff] %v6139_v3 }
 0x675   : > { %v6006_v63 = vpop.f32.mrf.mxu0 }
 0x676   : > { %v6007_v30 = vadd.f32 %v13741_v8, %v6006_v63 }
 0x678   : > { %v6076_v16 = vmul.f32 %v6007_v30, %v2574_v22 }
 0x67a   : > { %v6140_v6 = vadd.f32 %v7646_v43, %v6076_v16 }
 0x67c   : > { %6204 = vst [vmem:[%s11286_s15 + $0x1e0] sm:$0xff] %v6140_v6 }
 0x67d   : > { %v6008_v26 = vpop.f32.mrf.mxu0 }
 0x67e   : > { %v6009_v14 = vadd.f32 %v13741_v8, %v6008_v26 }
 0x680   : > { %v6077_v5 = vmul.f32 %v6009_v14, %v2576_v40 }
 0x682   : > { %v6141_v27 = vadd.f32 %v7647_v31, %v6077_v5 }
 0x684   : > { %6205 = vst [vmem:[%s11286_s15 + $0x1e8] sm:$0xff] %v6141_v27 }
 0x6b6   : > { %v6011_v53 = vpop.f32.mrf.mxu0 }
 0x6b7   : > { %v6012_v0 = vadd.f32 %v13741_v8, %v6011_v53 }
 0x6b9   : > { %v6078_v18 = vmul.f32 %v6012_v0, %v2579_v1 }
 0x6bb   : > { %v6142_v49 = vadd.f32 %v7648_v11, %v6078_v18 }
 0x6bd   : > { %6206 = vst [vmem:[%s11286_s15 + $0x1f0] sm:$0xff] %v6142_v49 }
 0x6be   : > { %v6013_v56 = vpop.f32.mrf.mxu0 }
 0x6bf   : > { %v6014_v32 = vadd.f32 %v13741_v8, %v6013_v56 }
 0x6c1   : > { %v6079_v19 = vmul.f32 %v6014_v32, %v2581_v45 }
 0x6c3   : > { %v6143_v57 = vadd.f32 %v7649_v10, %v6079_v19 }
 0x6c5   : > { %6207 = vst [vmem:[%s11286_s15 + $0x1f8] sm:$0xff] %v6143_v57 }
 0x6c6   : > { %7707 = shalt.err (!%p7704_p7)
}
 0x6c7   : > { %s7751_s18 = smov 128   ;;  %s7752_s28 = smov 8  }
 0x6c8   : > { %6840 = dma.vmem_to_hbm [thread:$0]  (%p7858_p11), %s6222_s26, 8192, %s6224_s22, %s6209_s17, %s7751_s18, %s7751_s18, %s7752_s28  }
 0x6c9 PF: > { %s6238_s11 = sand.u32 1, %s7734_s13   ;;  %p14652_p5 = scmp.ge.s32.totalorder %s7746_s16, 2 }
 0x6ca   : > { %s6239_s27 = scalar_lea.sflag [#allocation4], %s6238_s11 }
 0x6cb   : > { %p6847_p8 = pnand %p14652_p5, %p7862_p12 }
 0x6cd   : > { %p6848_p10 = pneg %p6847_p8 }
 0x6cf   : > { %7729 = dma.done.wait (%p6848_p10), %s6239_s27, 8192  }
 0x6d0   : > { %7731 = vsyncadd (%p6848_p10), %s6239_s27, 4294959104  ;;  %s14653_s16 = sld [smem:[#allocation9_spill]]  ;;  %s14656_s13 = smov %s7738_s14 }
 0x6d1   : > { %s14654_s12 = sld [smem:[#allocation8_spill]] }
 0x6d2   : > { %s14655_s15 = sld [smem:[#allocation10_spill]] }
 0x6d6   : > { %p23_p2 = scmp.ge.s32.totalorder %s14653_s16, 4  }
 0x6d7   : > { %s14657_s14 = smov %s14654_s12 }
 0x6d8   :  { %25 = sbr.rel (!%p23_p2) target bundleno = 5 (0x5), region = 108 }
 0x6dd   :  { %6245 = vsyncpa [#allocation3], 1 }
 0x6de   :  { %6247 = vsyncpa [#allocation3 + $0x1], 1 }
 0x6df   :  { %6248 = vsyncpa [#allocation4], 1 }
 0x6e0   :  { %6250 = vsyncpa [#allocation4 + $0x1], 1 }

</bundles_post_ra>
